<compile_context>
chip_gen: v5e
topology: v5e:2x2
jax: 0.10.0
libtpu: 0.0.40
codegen_flags: <defaults>
</compile_context>

<pallas_src>
import jax
import jax.numpy as jnp
import numpy as np
from jax import lax
from jax.experimental import pallas as pl
from jax.experimental.pallas import tpu as pltpu


def upsample_conv_kernel(x_ref, w_ref, b_ref, e_ref, o_ref):
    # x_ref: (1, Cin, H+2, W+2)  VMEM, original-resolution input, zero-padded by 1
    # w_ref: (16*Cout*Cin,)      SMEM, parity-combined 2x2 taps, flattened as
    #                            idx = (t*Cout + co)*Cin + ci, t = ((dp*2+dq)*2+u)*2+v
    # b_ref: (Cout,)             SMEM bias
    # e_ref: (4, W, 4*W)         VMEM constant 0/1 depth-to-space scatter matrices
    # o_ref: (1, Cout*H, 4*W)    row-major layout == NCHW (Cout, 2H, 2W)
    _, Cin, Hp, Wp = x_ref.shape
    H, W = Hp - 2, Wp - 2
    W2 = 2 * W
    Cout = b_ref.shape[0]

    xb = x_ref[0]                                       # (Cin, H+2, W+2), loaded once

    # Per-(row-parity, col-parity, out-channel) accumulators, initialized with
    # the bias broadcast from an SMEM scalar (no separate bias pass).
    acc = [[[jnp.zeros((H, W), jnp.float32) + b_ref[co] for co in range(Cout)]
            for _dq in range(2)] for _dp in range(2)]

    # Window-major accumulation: each of the 9 shifted original-resolution
    # windows is sliced exactly once, where it is consumed, and scattered into
    # the parity accumulators with scalar(SMEM) x vector FMAs on the VPU.
    # TODO(synk): at production Cin/Cout, replace this with bf16 MXU matmuls.
    for ro in range(3):
        for cf in range(3):
            win = xb[:, ro:ro + H, cf:cf + W]           # (Cin, H, W)
            for dp in range(2):
                u = ro - dp
                if u < 0 or u > 1:
                    continue
                for dq in range(2):
                    v = cf - dq
                    if v < 0 or v > 1:
                        continue
                    t = ((dp * 2 + dq) * 2 + u) * 2 + v
                    for co in range(Cout):
                        base = (t * Cout + co) * Cin
                        a = acc[dp][dq][co]
                        for ci in range(Cin):
                            a = a + w_ref[base + ci] * win[ci]
                        acc[dp][dq][co] = a

    # Depth-to-space: fold Cout into the matmul M dimension — 4 batched 0/1
    # matmuls total on the otherwise-idle MXU.  e_ref[dp*2+dq] places original
    # column j at output column dp*W2 + 2*j + dq, so each result row holds both
    # row-parities back to back; row-major order of `full` is exactly NCHW, so
    # one store per grid step and no row-scatter matmuls / strided stores.
    full = jnp.zeros((Cout * H, 2 * W2), jnp.float32)
    for dp in range(2):
        for dq in range(2):
            a_big = jnp.concatenate(acc[dp][dq], axis=0)            # (Cout*H, W)
            full = full + jnp.dot(a_big, e_ref[dp * 2 + dq],
                                  preferred_element_type=jnp.float32)
    o_ref[0] = full.astype(o_ref.dtype)


def _parity_weights(weight):
    """(Cout, Cin, 3, 3) -> (16, Cout, Cin) parity-combined 2x2 weights.

    For output parity d (per axis), 3x3 tap k lands on original-resolution
    offset group u = floor((d + k - 1)/2) - (d - 1), u in {0, 1}.
    """
    Cout, Cin = weight.shape[0], weight.shape[1]
    S = np.zeros((2, 2, 3), np.float32)
    for d in range(2):
        for k in range(3):
            u = (d + k - 1) // 2 - (d - 1)
            S[d, u, k] = 1.0
    S = jnp.asarray(S, dtype=weight.dtype)
    wp = jnp.einsum('puy,qvx,oiyx->pquvoi', S, S, weight)            # (2,2,2,2,Cout,Cin)
    return wp.reshape(16, Cout, Cin)


def _dts_scatter_mats(W):
    """(4, W, 4*W) constant 0/1 matrices: E[dp*2+dq][j, dp*2W + 2j + dq] = 1."""
    W2 = 2 * W
    E = np.zeros((2, 2, W, 2 * W2), np.float32)
    for dp in range(2):
        for dq in range(2):
            for j in range(W):
                E[dp, dq, j, dp * W2 + 2 * j + dq] = 1.0
    return jnp.asarray(E.reshape(4, W, 2 * W2))


def upsample_forward(x, weight, bias):
    """Forward of Upsample(in_ch, out_ch, use_conv=True).

    x:      (B, Cin, H, W)    NCHW, like PyTorch
    weight: (Cout, Cin, 3, 3) PyTorch Conv2d layout
    bias:   (Cout,)
    returns (B, Cout, 2H, 2W) NCHW
    """
    B, Cin, H, W = x.shape
    Cout = weight.shape[0]
    H2, W2 = 2 * H, 2 * W

    # Only original-resolution HBM traffic: a 1-pixel zero pad of x.
    x_pad = jnp.pad(x, ((0, 0), (0, 0), (1, 1), (1, 1)))             # (B, Cin, H+2, W+2)
    w_flat = _parity_weights(weight).reshape(-1).astype(jnp.float32)  # (16*Cout*Cin,)
    b_flat = bias.astype(jnp.float32)                                 # (Cout,)
    e_mats = _dts_scatter_mats(W)                                     # (4, W, 2*W2)

    out_flat = pl.pallas_call(
        upsample_conv_kernel,
        out_shape=jax.ShapeDtypeStruct((B, Cout * H, 2 * W2), x.dtype),
        grid=(B,),
        in_specs=[
            pl.BlockSpec((1, Cin, H + 2, W + 2), lambda b: (b, 0, 0, 0)),
            pl.BlockSpec(memory_space=pltpu.MemorySpace.SMEM),
            pl.BlockSpec(memory_space=pltpu.MemorySpace.SMEM),
            pl.BlockSpec((4, W, 2 * W2), lambda b: (0, 0, 0)),
        ],
        out_specs=pl.BlockSpec((1, Cout * H, 2 * W2), lambda b: (b, 0, 0)),
        compiler_params=pltpu.CompilerParams(
            dimension_semantics=("parallel",),
            vmem_limit_bytes=32 * 1024 * 1024),
    )(x_pad, w_flat, b_flat, e_mats)

    # Free metadata reshape: rows of out_flat are already in NCHW linear order.
    return out_flat.reshape(B, Cout, H2, W2)


def reference_forward(x, weight, bias):
    """Pure-JAX reference: nearest upsample x2 then 3x3 same conv (NCHW)."""
    x_up = jnp.repeat(jnp.repeat(x, 2, axis=2), 2, axis=3)
    out = lax.conv_general_dilated(
        x_up, weight, window_strides=(1, 1), padding=((1, 1), (1, 1)),
        dimension_numbers=("NCHW", "OIHW", "NCHW"))
    return out + bias[None, :, None, None]


if __name__ == "__main__":
    B, Cin, Cout, H, W = 2, 4, 4, 16, 16

    key = jax.random.PRNGKey(0)
    kx, kw, kb = jax.random.split(key, 3)

    x = jax.random.normal(kx, (B, Cin, H, W), dtype=jnp.float32)
    weight = 0.1 * jax.random.normal(kw, (Cout, Cin, 3, 3), dtype=jnp.float32)
    bias = 0.1 * jax.random.normal(kb, (Cout,), dtype=jnp.float32)

    out = jax.block_until_ready(upsample_forward(x, weight, bias))

    ref = jax.block_until_ready(reference_forward(x, weight, bias))
    # Tolerance covers TPU f32 matmul emulation in both kernel and XLA reference.
    np.testing.assert_allclose(np.asarray(out), np.asarray(ref),
                               rtol=1e-4, atol=1e-4)
    assert out.shape == (B, Cout, 2 * H, 2 * W)

    print("KERNEL_OK")
</pallas_src>

<mosaic_0001>
module attributes {stable_mosaic.version = 11 : i64} {
  func.func @upsample_conv_kernel(%arg0: i32, %arg1: memref<1x4x18x18xf32, #tpu.memory_space<vmem>>, %arg2: memref<256xf32, #tpu.memory_space<smem>>, %arg3: memref<4xf32, #tpu.memory_space<smem>>, %arg4: memref<4x16x64xf32, #tpu.memory_space<vmem>>, %arg5: memref<1x64x64xf32, #tpu.memory_space<vmem>>) attributes {dimension_semantics = [#tpu.dimension_semantics<parallel>], iteration_bounds = array<i64: 2>, scalar_prefetch = 0 : i64, scratch_operands = 0 : i64, tpu.core_type = #tpu.core_type<tc>, window_params = [{transform_indices = @transform_0, window_bounds = array<i64: 1, 4, 18, 18>}, {transform_indices = @transform_1, window_bounds = array<i64: 256>}, {transform_indices = @transform_2, window_bounds = array<i64: 4>}, {pipeline_mode = #tpu.pipeline_mode<synchronous>, transform_indices = @transform_3, window_bounds = array<i64: 4, 16, 64>}, {transform_indices = @transform_4, window_bounds = array<i64: 1, 64, 64>}]} {
    %c0 = arith.constant 0 : index
    %c0_0 = arith.constant 0 : index
    %c0_1 = arith.constant 0 : index
    %c0_2 = arith.constant 0 : index
    %0 = vector.load %arg1[%c0, %c0_0, %c0_1, %c0_2] : memref<1x4x18x18xf32, #tpu.memory_space<vmem>>, vector<1x4x18x18xf32>
    %1 = vector.shape_cast %0 : vector<1x4x18x18xf32> to vector<4x18x18xf32>
    %cst = arith.constant 0.000000e+00 : f32
    %2 = vector.broadcast %cst : f32 to vector<16x16xf32>
    %c0_3 = arith.constant 0 : index
    %3 = memref.load %arg3[%c0_3] : memref<4xf32, #tpu.memory_space<smem>>
    %4 = vector.broadcast %3 : f32 to vector<16x16xf32>
    %5 = arith.addf %2, %4 : vector<16x16xf32>
    %cst_4 = arith.constant 0.000000e+00 : f32
    %6 = vector.broadcast %cst_4 : f32 to vector<16x16xf32>
    %c1 = arith.constant 1 : index
    %7 = memref.load %arg3[%c1] : memref<4xf32, #tpu.memory_space<smem>>
    %8 = vector.broadcast %7 : f32 to vector<16x16xf32>
    %9 = arith.addf %6, %8 : vector<16x16xf32>
    %cst_5 = arith.constant 0.000000e+00 : f32
    %10 = vector.broadcast %cst_5 : f32 to vector<16x16xf32>
    %c2 = arith.constant 2 : index
    %11 = memref.load %arg3[%c2] : memref<4xf32, #tpu.memory_space<smem>>
    %12 = vector.broadcast %11 : f32 to vector<16x16xf32>
    %13 = arith.addf %10, %12 : vector<16x16xf32>
    %cst_6 = arith.constant 0.000000e+00 : f32
    %14 = vector.broadcast %cst_6 : f32 to vector<16x16xf32>
    %c3 = arith.constant 3 : index
    %15 = memref.load %arg3[%c3] : memref<4xf32, #tpu.memory_space<smem>>
    %16 = vector.broadcast %15 : f32 to vector<16x16xf32>
    %17 = arith.addf %14, %16 : vector<16x16xf32>
    %cst_7 = arith.constant 0.000000e+00 : f32
    %18 = vector.broadcast %cst_7 : f32 to vector<16x16xf32>
    %c0_8 = arith.constant 0 : index
    %19 = memref.load %arg3[%c0_8] : memref<4xf32, #tpu.memory_space<smem>>
    %20 = vector.broadcast %19 : f32 to vector<16x16xf32>
    %21 = arith.addf %18, %20 : vector<16x16xf32>
    %cst_9 = arith.constant 0.000000e+00 : f32
    %22 = vector.broadcast %cst_9 : f32 to vector<16x16xf32>
    %c1_10 = arith.constant 1 : index
    %23 = memref.load %arg3[%c1_10] : memref<4xf32, #tpu.memory_space<smem>>
    %24 = vector.broadcast %23 : f32 to vector<16x16xf32>
    %25 = arith.addf %22, %24 : vector<16x16xf32>
    %cst_11 = arith.constant 0.000000e+00 : f32
    %26 = vector.broadcast %cst_11 : f32 to vector<16x16xf32>
    %c2_12 = arith.constant 2 : index
    %27 = memref.load %arg3[%c2_12] : memref<4xf32, #tpu.memory_space<smem>>
    %28 = vector.broadcast %27 : f32 to vector<16x16xf32>
    %29 = arith.addf %26, %28 : vector<16x16xf32>
    %cst_13 = arith.constant 0.000000e+00 : f32
    %30 = vector.broadcast %cst_13 : f32 to vector<16x16xf32>
    %c3_14 = arith.constant 3 : index
    %31 = memref.load %arg3[%c3_14] : memref<4xf32, #tpu.memory_space<smem>>
    %32 = vector.broadcast %31 : f32 to vector<16x16xf32>
    %33 = arith.addf %30, %32 : vector<16x16xf32>
    %cst_15 = arith.constant 0.000000e+00 : f32
    %34 = vector.broadcast %cst_15 : f32 to vector<16x16xf32>
    %c0_16 = arith.constant 0 : index
    %35 = memref.load %arg3[%c0_16] : memref<4xf32, #tpu.memory_space<smem>>
    %36 = vector.broadcast %35 : f32 to vector<16x16xf32>
    %37 = arith.addf %34, %36 : vector<16x16xf32>
    %cst_17 = arith.constant 0.000000e+00 : f32
    %38 = vector.broadcast %cst_17 : f32 to vector<16x16xf32>
    %c1_18 = arith.constant 1 : index
    %39 = memref.load %arg3[%c1_18] : memref<4xf32, #tpu.memory_space<smem>>
    %40 = vector.broadcast %39 : f32 to vector<16x16xf32>
    %41 = arith.addf %38, %40 : vector<16x16xf32>
    %cst_19 = arith.constant 0.000000e+00 : f32
    %42 = vector.broadcast %cst_19 : f32 to vector<16x16xf32>
    %c2_20 = arith.constant 2 : index
    %43 = memref.load %arg3[%c2_20] : memref<4xf32, #tpu.memory_space<smem>>
    %44 = vector.broadcast %43 : f32 to vector<16x16xf32>
    %45 = arith.addf %42, %44 : vector<16x16xf32>
    %cst_21 = arith.constant 0.000000e+00 : f32
    %46 = vector.broadcast %cst_21 : f32 to vector<16x16xf32>
    %c3_22 = arith.constant 3 : index
    %47 = memref.load %arg3[%c3_22] : memref<4xf32, #tpu.memory_space<smem>>
    %48 = vector.broadcast %47 : f32 to vector<16x16xf32>
    %49 = arith.addf %46, %48 : vector<16x16xf32>
    %cst_23 = arith.constant 0.000000e+00 : f32
    %50 = vector.broadcast %cst_23 : f32 to vector<16x16xf32>
    %c0_24 = arith.constant 0 : index
    %51 = memref.load %arg3[%c0_24] : memref<4xf32, #tpu.memory_space<smem>>
    %52 = vector.broadcast %51 : f32 to vector<16x16xf32>
    %53 = arith.addf %50, %52 : vector<16x16xf32>
    %cst_25 = arith.constant 0.000000e+00 : f32
    %54 = vector.broadcast %cst_25 : f32 to vector<16x16xf32>
    %c1_26 = arith.constant 1 : index
    %55 = memref.load %arg3[%c1_26] : memref<4xf32, #tpu.memory_space<smem>>
    %56 = vector.broadcast %55 : f32 to vector<16x16xf32>
    %57 = arith.addf %54, %56 : vector<16x16xf32>
    %cst_27 = arith.constant 0.000000e+00 : f32
    %58 = vector.broadcast %cst_27 : f32 to vector<16x16xf32>
    %c2_28 = arith.constant 2 : index
    %59 = memref.load %arg3[%c2_28] : memref<4xf32, #tpu.memory_space<smem>>
    %60 = vector.broadcast %59 : f32 to vector<16x16xf32>
    %61 = arith.addf %58, %60 : vector<16x16xf32>
    %cst_29 = arith.constant 0.000000e+00 : f32
    %62 = vector.broadcast %cst_29 : f32 to vector<16x16xf32>
    %c3_30 = arith.constant 3 : index
    %63 = memref.load %arg3[%c3_30] : memref<4xf32, #tpu.memory_space<smem>>
    %64 = vector.broadcast %63 : f32 to vector<16x16xf32>
    %65 = arith.addf %62, %64 : vector<16x16xf32>
    %66 = vector.extract_strided_slice %1 {offsets = [0, 0, 0], sizes = [4, 16, 16], strides = [1, 1, 1]} : vector<4x18x18xf32> to vector<4x16x16xf32>
    %c0_31 = arith.constant 0 : index
    %67 = memref.load %arg2[%c0_31] : memref<256xf32, #tpu.memory_space<smem>>
    %68 = vector.extract_strided_slice %66 {offsets = [0, 0, 0], sizes = [1, 16, 16], strides = [1, 1, 1]} : vector<4x16x16xf32> to vector<1x16x16xf32>
    %69 = vector.shape_cast %68 : vector<1x16x16xf32> to vector<16x16xf32>
    %70 = vector.broadcast %67 : f32 to vector<16x16xf32>
    %71 = arith.mulf %70, %69 : vector<16x16xf32>
    %72 = arith.addf %5, %71 : vector<16x16xf32>
    %c1_32 = arith.constant 1 : index
    %73 = memref.load %arg2[%c1_32] : memref<256xf32, #tpu.memory_space<smem>>
    %74 = vector.extract_strided_slice %66 {offsets = [1, 0, 0], sizes = [1, 16, 16], strides = [1, 1, 1]} : vector<4x16x16xf32> to vector<1x16x16xf32>
    %75 = vector.shape_cast %74 : vector<1x16x16xf32> to vector<16x16xf32>
    %76 = vector.broadcast %73 : f32 to vector<16x16xf32>
    %77 = arith.mulf %76, %75 : vector<16x16xf32>
    %78 = arith.addf %72, %77 : vector<16x16xf32>
    %c2_33 = arith.constant 2 : index
    %79 = memref.load %arg2[%c2_33] : memref<256xf32, #tpu.memory_space<smem>>
    %80 = vector.extract_strided_slice %66 {offsets = [2, 0, 0], sizes = [1, 16, 16], strides = [1, 1, 1]} : vector<4x16x16xf32> to vector<1x16x16xf32>
    %81 = vector.shape_cast %80 : vector<1x16x16xf32> to vector<16x16xf32>
    %82 = vector.broadcast %79 : f32 to vector<16x16xf32>
    %83 = arith.mulf %82, %81 : vector<16x16xf32>
    %84 = arith.addf %78, %83 : vector<16x16xf32>
    %c3_34 = arith.constant 3 : index
    %85 = memref.load %arg2[%c3_34] : memref<256xf32, #tpu.memory_space<smem>>
    %86 = vector.extract_strided_slice %66 {offsets = [3, 0, 0], sizes = [1, 16, 16], strides = [1, 1, 1]} : vector<4x16x16xf32> to vector<1x16x16xf32>
    %87 = vector.shape_cast %86 : vector<1x16x16xf32> to vector<16x16xf32>
    %88 = vector.broadcast %85 : f32 to vector<16x16xf32>
    %89 = arith.mulf %88, %87 : vector<16x16xf32>
    %90 = arith.addf %84, %89 : vector<16x16xf32>
    %c4 = arith.constant 4 : index
    %91 = memref.load %arg2[%c4] : memref<256xf32, #tpu.memory_space<smem>>
    %92 = vector.extract_strided_slice %66 {offsets = [0, 0, 0], sizes = [1, 16, 16], strides = [1, 1, 1]} : vector<4x16x16xf32> to vector<1x16x16xf32>
    %93 = vector.shape_cast %92 : vector<1x16x16xf32> to vector<16x16xf32>
    %94 = vector.broadcast %91 : f32 to vector<16x16xf32>
    %95 = arith.mulf %94, %93 : vector<16x16xf32>
    %96 = arith.addf %9, %95 : vector<16x16xf32>
    %c5 = arith.constant 5 : index
    %97 = memref.load %arg2[%c5] : memref<256xf32, #tpu.memory_space<smem>>
    %98 = vector.extract_strided_slice %66 {offsets = [1, 0, 0], sizes = [1, 16, 16], strides = [1, 1, 1]} : vector<4x16x16xf32> to vector<1x16x16xf32>
    %99 = vector.shape_cast %98 : vector<1x16x16xf32> to vector<16x16xf32>
    %100 = vector.broadcast %97 : f32 to vector<16x16xf32>
    %101 = arith.mulf %100, %99 : vector<16x16xf32>
    %102 = arith.addf %96, %101 : vector<16x16xf32>
    %c6 = arith.constant 6 : index
    %103 = memref.load %arg2[%c6] : memref<256xf32, #tpu.memory_space<smem>>
    %104 = vector.extract_strided_slice %66 {offsets = [2, 0, 0], sizes = [1, 16, 16], strides = [1, 1, 1]} : vector<4x16x16xf32> to vector<1x16x16xf32>
    %105 = vector.shape_cast %104 : vector<1x16x16xf32> to vector<16x16xf32>
    %106 = vector.broadcast %103 : f32 to vector<16x16xf32>
    %107 = arith.mulf %106, %105 : vector<16x16xf32>
    %108 = arith.addf %102, %107 : vector<16x16xf32>
    %c7 = arith.constant 7 : index
    %109 = memref.load %arg2[%c7] : memref<256xf32, #tpu.memory_space<smem>>
    %110 = vector.extract_strided_slice %66 {offsets = [3, 0, 0], sizes = [1, 16, 16], strides = [1, 1, 1]} : vector<4x16x16xf32> to vector<1x16x16xf32>
    %111 = vector.shape_cast %110 : vector<1x16x16xf32> to vector<16x16xf32>
    %112 = vector.broadcast %109 : f32 to vector<16x16xf32>
    %113 = arith.mulf %112, %111 : vector<16x16xf32>
    %114 = arith.addf %108, %113 : vector<16x16xf32>
    %c8 = arith.constant 8 : index
    %115 = memref.load %arg2[%c8] : memref<256xf32, #tpu.memory_space<smem>>
    %116 = vector.extract_strided_slice %66 {offsets = [0, 0, 0], sizes = [1, 16, 16], strides = [1, 1, 1]} : vector<4x16x16xf32> to vector<1x16x16xf32>
    %117 = vector.shape_cast %116 : vector<1x16x16xf32> to vector<16x16xf32>
    %118 = vector.broadcast %115 : f32 to vector<16x16xf32>
    %119 = arith.mulf %118, %117 : vector<16x16xf32>
    %120 = arith.addf %13, %119 : vector<16x16xf32>
    %c9 = arith.constant 9 : index
    %121 = memref.load %arg2[%c9] : memref<256xf32, #tpu.memory_space<smem>>
    %122 = vector.extract_strided_slice %66 {offsets = [1, 0, 0], sizes = [1, 16, 16], strides = [1, 1, 1]} : vector<4x16x16xf32> to vector<1x16x16xf32>
    %123 = vector.shape_cast %122 : vector<1x16x16xf32> to vector<16x16xf32>
    %124 = vector.broadcast %121 : f32 to vector<16x16xf32>
    %125 = arith.mulf %124, %123 : vector<16x16xf32>
    %126 = arith.addf %120, %125 : vector<16x16xf32>
    %c10 = arith.constant 10 : index
    %127 = memref.load %arg2[%c10] : memref<256xf32, #tpu.memory_space<smem>>
    %128 = vector.extract_strided_slice %66 {offsets = [2, 0, 0], sizes = [1, 16, 16], strides = [1, 1, 1]} : vector<4x16x16xf32> to vector<1x16x16xf32>
    %129 = vector.shape_cast %128 : vector<1x16x16xf32> to vector<16x16xf32>
    %130 = vector.broadcast %127 : f32 to vector<16x16xf32>
    %131 = arith.mulf %130, %129 : vector<16x16xf32>
    %132 = arith.addf %126, %131 : vector<16x16xf32>
    %c11 = arith.constant 11 : index
    %133 = memref.load %arg2[%c11] : memref<256xf32, #tpu.memory_space<smem>>
    %134 = vector.extract_strided_slice %66 {offsets = [3, 0, 0], sizes = [1, 16, 16], strides = [1, 1, 1]} : vector<4x16x16xf32> to vector<1x16x16xf32>
    %135 = vector.shape_cast %134 : vector<1x16x16xf32> to vector<16x16xf32>
    %136 = vector.broadcast %133 : f32 to vector<16x16xf32>
    %137 = arith.mulf %136, %135 : vector<16x16xf32>
    %138 = arith.addf %132, %137 : vector<16x16xf32>
    %c12 = arith.constant 12 : index
    %139 = memref.load %arg2[%c12] : memref<256xf32, #tpu.memory_space<smem>>
    %140 = vector.extract_strided_slice %66 {offsets = [0, 0, 0], sizes = [1, 16, 16], strides = [1, 1, 1]} : vector<4x16x16xf32> to vector<1x16x16xf32>
    %141 = vector.shape_cast %140 : vector<1x16x16xf32> to vector<16x16xf32>
    %142 = vector.broadcast %139 : f32 to vector<16x16xf32>
    %143 = arith.mulf %142, %141 : vector<16x16xf32>
    %144 = arith.addf %17, %143 : vector<16x16xf32>
    %c13 = arith.constant 13 : index
    %145 = memref.load %arg2[%c13] : memref<256xf32, #tpu.memory_space<smem>>
    %146 = vector.extract_strided_slice %66 {offsets = [1, 0, 0], sizes = [1, 16, 16], strides = [1, 1, 1]} : vector<4x16x16xf32> to vector<1x16x16xf32>
    %147 = vector.shape_cast %146 : vector<1x16x16xf32> to vector<16x16xf32>
    %148 = vector.broadcast %145 : f32 to vector<16x16xf32>
    %149 = arith.mulf %148, %147 : vector<16x16xf32>
    %150 = arith.addf %144, %149 : vector<16x16xf32>
    %c14 = arith.constant 14 : index
    %151 = memref.load %arg2[%c14] : memref<256xf32, #tpu.memory_space<smem>>
    %152 = vector.extract_strided_slice %66 {offsets = [2, 0, 0], sizes = [1, 16, 16], strides = [1, 1, 1]} : vector<4x16x16xf32> to vector<1x16x16xf32>
    %153 = vector.shape_cast %152 : vector<1x16x16xf32> to vector<16x16xf32>
    %154 = vector.broadcast %151 : f32 to vector<16x16xf32>
    %155 = arith.mulf %154, %153 : vector<16x16xf32>
    %156 = arith.addf %150, %155 : vector<16x16xf32>
    %c15 = arith.constant 15 : index
    %157 = memref.load %arg2[%c15] : memref<256xf32, #tpu.memory_space<smem>>
    %158 = vector.extract_strided_slice %66 {offsets = [3, 0, 0], sizes = [1, 16, 16], strides = [1, 1, 1]} : vector<4x16x16xf32> to vector<1x16x16xf32>
    %159 = vector.shape_cast %158 : vector<1x16x16xf32> to vector<16x16xf32>
    %160 = vector.broadcast %157 : f32 to vector<16x16xf32>
    %161 = arith.mulf %160, %159 : vector<16x16xf32>
    %162 = arith.addf %156, %161 : vector<16x16xf32>
    %163 = vector.extract_strided_slice %1 {offsets = [0, 0, 1], sizes = [4, 16, 16], strides = [1, 1, 1]} : vector<4x18x18xf32> to vector<4x16x16xf32>
    %c16 = arith.constant 16 : index
    %164 = memref.load %arg2[%c16] : memref<256xf32, #tpu.memory_space<smem>>
    %165 = vector.extract_strided_slice %163 {offsets = [0, 0, 0], sizes = [1, 16, 16], strides = [1, 1, 1]} : vector<4x16x16xf32> to vector<1x16x16xf32>
    %166 = vector.shape_cast %165 : vector<1x16x16xf32> to vector<16x16xf32>
    %167 = vector.broadcast %164 : f32 to vector<16x16xf32>
    %168 = arith.mulf %167, %166 : vector<16x16xf32>
    %169 = arith.addf %90, %168 : vector<16x16xf32>
    %c17 = arith.constant 17 : index
    %170 = memref.load %arg2[%c17] : memref<256xf32, #tpu.memory_space<smem>>
    %171 = vector.extract_strided_slice %163 {offsets = [1, 0, 0], sizes = [1, 16, 16], strides = [1, 1, 1]} : vector<4x16x16xf32> to vector<1x16x16xf32>
    %172 = vector.shape_cast %171 : vector<1x16x16xf32> to vector<16x16xf32>
    %173 = vector.broadcast %170 : f32 to vector<16x16xf32>
    %174 = arith.mulf %173, %172 : vector<16x16xf32>
    %175 = arith.addf %169, %174 : vector<16x16xf32>
    %c18 = arith.constant 18 : index
    %176 = memref.load %arg2[%c18] : memref<256xf32, #tpu.memory_space<smem>>
    %177 = vector.extract_strided_slice %163 {offsets = [2, 0, 0], sizes = [1, 16, 16], strides = [1, 1, 1]} : vector<4x16x16xf32> to vector<1x16x16xf32>
    %178 = vector.shape_cast %177 : vector<1x16x16xf32> to vector<16x16xf32>
    %179 = vector.broadcast %176 : f32 to vector<16x16xf32>
    %180 = arith.mulf %179, %178 : vector<16x16xf32>
    %181 = arith.addf %175, %180 : vector<16x16xf32>
    %c19 = arith.constant 19 : index
    %182 = memref.load %arg2[%c19] : memref<256xf32, #tpu.memory_space<smem>>
    %183 = vector.extract_strided_slice %163 {offsets = [3, 0, 0], sizes = [1, 16, 16], strides = [1, 1, 1]} : vector<4x16x16xf32> to vector<1x16x16xf32>
    %184 = vector.shape_cast %183 : vector<1x16x16xf32> to vector<16x16xf32>
    %185 = vector.broadcast %182 : f32 to vector<16x16xf32>
    %186 = arith.mulf %185, %184 : vector<16x16xf32>
    %187 = arith.addf %181, %186 : vector<16x16xf32>
    %c20 = arith.constant 20 : index
    %188 = memref.load %arg2[%c20] : memref<256xf32, #tpu.memory_space<smem>>
    %189 = vector.extract_strided_slice %163 {offsets = [0, 0, 0], sizes = [1, 16, 16], strides = [1, 1, 1]} : vector<4x16x16xf32> to vector<1x16x16xf32>
    %190 = vector.shape_cast %189 : vector<1x16x16xf32> to vector<16x16xf32>
    %191 = vector.broadcast %188 : f32 to vector<16x16xf32>
    %192 = arith.mulf %191, %190 : vector<16x16xf32>
    %193 = arith.addf %114, %192 : vector<16x16xf32>
    %c21 = arith.constant 21 : index
    %194 = memref.load %arg2[%c21] : memref<256xf32, #tpu.memory_space<smem>>
    %195 = vector.extract_strided_slice %163 {offsets = [1, 0, 0], sizes = [1, 16, 16], strides = [1, 1, 1]} : vector<4x16x16xf32> to vector<1x16x16xf32>
    %196 = vector.shape_cast %195 : vector<1x16x16xf32> to vector<16x16xf32>
    %197 = vector.broadcast %194 : f32 to vector<16x16xf32>
    %198 = arith.mulf %197, %196 : vector<16x16xf32>
    %199 = arith.addf %193, %198 : vector<16x16xf32>
    %c22 = arith.constant 22 : index
    %200 = memref.load %arg2[%c22] : memref<256xf32, #tpu.memory_space<smem>>
    %201 = vector.extract_strided_slice %163 {offsets = [2, 0, 0], sizes = [1, 16, 16], strides = [1, 1, 1]} : vector<4x16x16xf32> to vector<1x16x16xf32>
    %202 = vector.shape_cast %201 : vector<1x16x16xf32> to vector<16x16xf32>
    %203 = vector.broadcast %200 : f32 to vector<16x16xf32>
    %204 = arith.mulf %203, %202 : vector<16x16xf32>
    %205 = arith.addf %199, %204 : vector<16x16xf32>
    %c23 = arith.constant 23 : index
    %206 = memref.load %arg2[%c23] : memref<256xf32, #tpu.memory_space<smem>>
    %207 = vector.extract_strided_slice %163 {offsets = [3, 0, 0], sizes = [1, 16, 16], strides = [1, 1, 1]} : vector<4x16x16xf32> to vector<1x16x16xf32>
    %208 = vector.shape_cast %207 : vector<1x16x16xf32> to vector<16x16xf32>
    %209 = vector.broadcast %206 : f32 to vector<16x16xf32>
    %210 = arith.mulf %209, %208 : vector<16x16xf32>
    %211 = arith.addf %205, %210 : vector<16x16xf32>
    %c24 = arith.constant 24 : index
    %212 = memref.load %arg2[%c24] : memref<256xf32, #tpu.memory_space<smem>>
    %213 = vector.extract_strided_slice %163 {offsets = [0, 0, 0], sizes = [1, 16, 16], strides = [1, 1, 1]} : vector<4x16x16xf32> to vector<1x16x16xf32>
    %214 = vector.shape_cast %213 : vector<1x16x16xf32> to vector<16x16xf32>
    %215 = vector.broadcast %212 : f32 to vector<16x16xf32>
    %216 = arith.mulf %215, %214 : vector<16x16xf32>
    %217 = arith.addf %138, %216 : vector<16x16xf32>
    %c25 = arith.constant 25 : index
    %218 = memref.load %arg2[%c25] : memref<256xf32, #tpu.memory_space<smem>>
    %219 = vector.extract_strided_slice %163 {offsets = [1, 0, 0], sizes = [1, 16, 16], strides = [1, 1, 1]} : vector<4x16x16xf32> to vector<1x16x16xf32>
    %220 = vector.shape_cast %219 : vector<1x16x16xf32> to vector<16x16xf32>
    %221 = vector.broadcast %218 : f32 to vector<16x16xf32>
    %222 = arith.mulf %221, %220 : vector<16x16xf32>
    %223 = arith.addf %217, %222 : vector<16x16xf32>
    %c26 = arith.constant 26 : index
    %224 = memref.load %arg2[%c26] : memref<256xf32, #tpu.memory_space<smem>>
    %225 = vector.extract_strided_slice %163 {offsets = [2, 0, 0], sizes = [1, 16, 16], strides = [1, 1, 1]} : vector<4x16x16xf32> to vector<1x16x16xf32>
    %226 = vector.shape_cast %225 : vector<1x16x16xf32> to vector<16x16xf32>
    %227 = vector.broadcast %224 : f32 to vector<16x16xf32>
    %228 = arith.mulf %227, %226 : vector<16x16xf32>
    %229 = arith.addf %223, %228 : vector<16x16xf32>
    %c27 = arith.constant 27 : index
    %230 = memref.load %arg2[%c27] : memref<256xf32, #tpu.memory_space<smem>>
    %231 = vector.extract_strided_slice %163 {offsets = [3, 0, 0], sizes = [1, 16, 16], strides = [1, 1, 1]} : vector<4x16x16xf32> to vector<1x16x16xf32>
    %232 = vector.shape_cast %231 : vector<1x16x16xf32> to vector<16x16xf32>
    %233 = vector.broadcast %230 : f32 to vector<16x16xf32>
    %234 = arith.mulf %233, %232 : vector<16x16xf32>
    %235 = arith.addf %229, %234 : vector<16x16xf32>
    %c28 = arith.constant 28 : index
    %236 = memref.load %arg2[%c28] : memref<256xf32, #tpu.memory_space<smem>>
    %237 = vector.extract_strided_slice %163 {offsets = [0, 0, 0], sizes = [1, 16, 16], strides = [1, 1, 1]} : vector<4x16x16xf32> to vector<1x16x16xf32>
    %238 = vector.shape_cast %237 : vector<1x16x16xf32> to vector<16x16xf32>
    %239 = vector.broadcast %236 : f32 to vector<16x16xf32>
    %240 = arith.mulf %239, %238 : vector<16x16xf32>
    %241 = arith.addf %162, %240 : vector<16x16xf32>
    %c29 = arith.constant 29 : index
    %242 = memref.load %arg2[%c29] : memref<256xf32, #tpu.memory_space<smem>>
    %243 = vector.extract_strided_slice %163 {offsets = [1, 0, 0], sizes = [1, 16, 16], strides = [1, 1, 1]} : vector<4x16x16xf32> to vector<1x16x16xf32>
    %244 = vector.shape_cast %243 : vector<1x16x16xf32> to vector<16x16xf32>
    %245 = vector.broadcast %242 : f32 to vector<16x16xf32>
    %246 = arith.mulf %245, %244 : vector<16x16xf32>
    %247 = arith.addf %241, %246 : vector<16x16xf32>
    %c30 = arith.constant 30 : index
    %248 = memref.load %arg2[%c30] : memref<256xf32, #tpu.memory_space<smem>>
    %249 = vector.extract_strided_slice %163 {offsets = [2, 0, 0], sizes = [1, 16, 16], strides = [1, 1, 1]} : vector<4x16x16xf32> to vector<1x16x16xf32>
    %250 = vector.shape_cast %249 : vector<1x16x16xf32> to vector<16x16xf32>
    %251 = vector.broadcast %248 : f32 to vector<16x16xf32>
    %252 = arith.mulf %251, %250 : vector<16x16xf32>
    %253 = arith.addf %247, %252 : vector<16x16xf32>
    %c31 = arith.constant 31 : index
    %254 = memref.load %arg2[%c31] : memref<256xf32, #tpu.memory_space<smem>>
    %255 = vector.extract_strided_slice %163 {offsets = [3, 0, 0], sizes = [1, 16, 16], strides = [1, 1, 1]} : vector<4x16x16xf32> to vector<1x16x16xf32>
    %256 = vector.shape_cast %255 : vector<1x16x16xf32> to vector<16x16xf32>
    %257 = vector.broadcast %254 : f32 to vector<16x16xf32>
    %258 = arith.mulf %257, %256 : vector<16x16xf32>
    %259 = arith.addf %253, %258 : vector<16x16xf32>
    %c64 = arith.constant 64 : index
    %260 = memref.load %arg2[%c64] : memref<256xf32, #tpu.memory_space<smem>>
    %261 = vector.extract_strided_slice %163 {offsets = [0, 0, 0], sizes = [1, 16, 16], strides = [1, 1, 1]} : vector<4x16x16xf32> to vector<1x16x16xf32>
    %262 = vector.shape_cast %261 : vector<1x16x16xf32> to vector<16x16xf32>
    %263 = vector.broadcast %260 : f32 to vector<16x16xf32>
    %264 = arith.mulf %263, %262 : vector<16x16xf32>
    %265 = arith.addf %21, %264 : vector<16x16xf32>
    %c65 = arith.constant 65 : index
    %266 = memref.load %arg2[%c65] : memref<256xf32, #tpu.memory_space<smem>>
    %267 = vector.extract_strided_slice %163 {offsets = [1, 0, 0], sizes = [1, 16, 16], strides = [1, 1, 1]} : vector<4x16x16xf32> to vector<1x16x16xf32>
    %268 = vector.shape_cast %267 : vector<1x16x16xf32> to vector<16x16xf32>
    %269 = vector.broadcast %266 : f32 to vector<16x16xf32>
    %270 = arith.mulf %269, %268 : vector<16x16xf32>
    %271 = arith.addf %265, %270 : vector<16x16xf32>
    %c66 = arith.constant 66 : index
    %272 = memref.load %arg2[%c66] : memref<256xf32, #tpu.memory_space<smem>>
    %273 = vector.extract_strided_slice %163 {offsets = [2, 0, 0], sizes = [1, 16, 16], strides = [1, 1, 1]} : vector<4x16x16xf32> to vector<1x16x16xf32>
    %274 = vector.shape_cast %273 : vector<1x16x16xf32> to vector<16x16xf32>
    %275 = vector.broadcast %272 : f32 to vector<16x16xf32>
    %276 = arith.mulf %275, %274 : vector<16x16xf32>
    %277 = arith.addf %271, %276 : vector<16x16xf32>
    %c67 = arith.constant 67 : index
    %278 = memref.load %arg2[%c67] : memref<256xf32, #tpu.memory_space<smem>>
    %279 = vector.extract_strided_slice %163 {offsets = [3, 0, 0], sizes = [1, 16, 16], strides = [1, 1, 1]} : vector<4x16x16xf32> to vector<1x16x16xf32>
    %280 = vector.shape_cast %279 : vector<1x16x16xf32> to vector<16x16xf32>
    %281 = vector.broadcast %278 : f32 to vector<16x16xf32>
    %282 = arith.mulf %281, %280 : vector<16x16xf32>
    %283 = arith.addf %277, %282 : vector<16x16xf32>
    %c68 = arith.constant 68 : index
    %284 = memref.load %arg2[%c68] : memref<256xf32, #tpu.memory_space<smem>>
    %285 = vector.extract_strided_slice %163 {offsets = [0, 0, 0], sizes = [1, 16, 16], strides = [1, 1, 1]} : vector<4x16x16xf32> to vector<1x16x16xf32>
    %286 = vector.shape_cast %285 : vector<1x16x16xf32> to vector<16x16xf32>
    %287 = vector.broadcast %284 : f32 to vector<16x16xf32>
    %288 = arith.mulf %287, %286 : vector<16x16xf32>
    %289 = arith.addf %25, %288 : vector<16x16xf32>
    %c69 = arith.constant 69 : index
    %290 = memref.load %arg2[%c69] : memref<256xf32, #tpu.memory_space<smem>>
    %291 = vector.extract_strided_slice %163 {offsets = [1, 0, 0], sizes = [1, 16, 16], strides = [1, 1, 1]} : vector<4x16x16xf32> to vector<1x16x16xf32>
    %292 = vector.shape_cast %291 : vector<1x16x16xf32> to vector<16x16xf32>
    %293 = vector.broadcast %290 : f32 to vector<16x16xf32>
    %294 = arith.mulf %293, %292 : vector<16x16xf32>
    %295 = arith.addf %289, %294 : vector<16x16xf32>
    %c70 = arith.constant 70 : index
    %296 = memref.load %arg2[%c70] : memref<256xf32, #tpu.memory_space<smem>>
    %297 = vector.extract_strided_slice %163 {offsets = [2, 0, 0], sizes = [1, 16, 16], strides = [1, 1, 1]} : vector<4x16x16xf32> to vector<1x16x16xf32>
    %298 = vector.shape_cast %297 : vector<1x16x16xf32> to vector<16x16xf32>
    %299 = vector.broadcast %296 : f32 to vector<16x16xf32>
    %300 = arith.mulf %299, %298 : vector<16x16xf32>
    %301 = arith.addf %295, %300 : vector<16x16xf32>
    %c71 = arith.constant 71 : index
    %302 = memref.load %arg2[%c71] : memref<256xf32, #tpu.memory_space<smem>>
    %303 = vector.extract_strided_slice %163 {offsets = [3, 0, 0], sizes = [1, 16, 16], strides = [1, 1, 1]} : vector<4x16x16xf32> to vector<1x16x16xf32>
    %304 = vector.shape_cast %303 : vector<1x16x16xf32> to vector<16x16xf32>
    %305 = vector.broadcast %302 : f32 to vector<16x16xf32>
    %306 = arith.mulf %305, %304 : vector<16x16xf32>
    %307 = arith.addf %301, %306 : vector<16x16xf32>
    %c72 = arith.constant 72 : index
    %308 = memref.load %arg2[%c72] : memref<256xf32, #tpu.memory_space<smem>>
    %309 = vector.extract_strided_slice %163 {offsets = [0, 0, 0], sizes = [1, 16, 16], strides = [1, 1, 1]} : vector<4x16x16xf32> to vector<1x16x16xf32>
    %310 = vector.shape_cast %309 : vector<1x16x16xf32> to vector<16x16xf32>
    %311 = vector.broadcast %308 : f32 to vector<16x16xf32>
    %312 = arith.mulf %311, %310 : vector<16x16xf32>
    %313 = arith.addf %29, %312 : vector<16x16xf32>
    %c73 = arith.constant 73 : index
    %314 = memref.load %arg2[%c73] : memref<256xf32, #tpu.memory_space<smem>>
    %315 = vector.extract_strided_slice %163 {offsets = [1, 0, 0], sizes = [1, 16, 16], strides = [1, 1, 1]} : vector<4x16x16xf32> to vector<1x16x16xf32>
    %316 = vector.shape_cast %315 : vector<1x16x16xf32> to vector<16x16xf32>
    %317 = vector.broadcast %314 : f32 to vector<16x16xf32>
    %318 = arith.mulf %317, %316 : vector<16x16xf32>
    %319 = arith.addf %313, %318 : vector<16x16xf32>
    %c74 = arith.constant 74 : index
    %320 = memref.load %arg2[%c74] : memref<256xf32, #tpu.memory_space<smem>>
    %321 = vector.extract_strided_slice %163 {offsets = [2, 0, 0], sizes = [1, 16, 16], strides = [1, 1, 1]} : vector<4x16x16xf32> to vector<1x16x16xf32>
    %322 = vector.shape_cast %321 : vector<1x16x16xf32> to vector<16x16xf32>
    %323 = vector.broadcast %320 : f32 to vector<16x16xf32>
    %324 = arith.mulf %323, %322 : vector<16x16xf32>
    %325 = arith.addf %319, %324 : vector<16x16xf32>
    %c75 = arith.constant 75 : index
    %326 = memref.load %arg2[%c75] : memref<256xf32, #tpu.memory_space<smem>>
    %327 = vector.extract_strided_slice %163 {offsets = [3, 0, 0], sizes = [1, 16, 16], strides = [1, 1, 1]} : vector<4x16x16xf32> to vector<1x16x16xf32>
    %328 = vector.shape_cast %327 : vector<1x16x16xf32> to vector<16x16xf32>
    %329 = vector.broadcast %326 : f32 to vector<16x16xf32>
    %330 = arith.mulf %329, %328 : vector<16x16xf32>
    %331 = arith.addf %325, %330 : vector<16x16xf32>
    %c76 = arith.constant 76 : index
    %332 = memref.load %arg2[%c76] : memref<256xf32, #tpu.memory_space<smem>>
    %333 = vector.extract_strided_slice %163 {offsets = [0, 0, 0], sizes = [1, 16, 16], strides = [1, 1, 1]} : vector<4x16x16xf32> to vector<1x16x16xf32>
    %334 = vector.shape_cast %333 : vector<1x16x16xf32> to vector<16x16xf32>
    %335 = vector.broadcast %332 : f32 to vector<16x16xf32>
    %336 = arith.mulf %335, %334 : vector<16x16xf32>
    %337 = arith.addf %33, %336 : vector<16x16xf32>
    %c77 = arith.constant 77 : index
    %338 = memref.load %arg2[%c77] : memref<256xf32, #tpu.memory_space<smem>>
    %339 = vector.extract_strided_slice %163 {offsets = [1, 0, 0], sizes = [1, 16, 16], strides = [1, 1, 1]} : vector<4x16x16xf32> to vector<1x16x16xf32>
    %340 = vector.shape_cast %339 : vector<1x16x16xf32> to vector<16x16xf32>
    %341 = vector.broadcast %338 : f32 to vector<16x16xf32>
    %342 = arith.mulf %341, %340 : vector<16x16xf32>
    %343 = arith.addf %337, %342 : vector<16x16xf32>
    %c78 = arith.constant 78 : index
    %344 = memref.load %arg2[%c78] : memref<256xf32, #tpu.memory_space<smem>>
    %345 = vector.extract_strided_slice %163 {offsets = [2, 0, 0], sizes = [1, 16, 16], strides = [1, 1, 1]} : vector<4x16x16xf32> to vector<1x16x16xf32>
    %346 = vector.shape_cast %345 : vector<1x16x16xf32> to vector<16x16xf32>
    %347 = vector.broadcast %344 : f32 to vector<16x16xf32>
    %348 = arith.mulf %347, %346 : vector<16x16xf32>
    %349 = arith.addf %343, %348 : vector<16x16xf32>
    %c79 = arith.constant 79 : index
    %350 = memref.load %arg2[%c79] : memref<256xf32, #tpu.memory_space<smem>>
    %351 = vector.extract_strided_slice %163 {offsets = [3, 0, 0], sizes = [1, 16, 16], strides = [1, 1, 1]} : vector<4x16x16xf32> to vector<1x16x16xf32>
    %352 = vector.shape_cast %351 : vector<1x16x16xf32> to vector<16x16xf32>
    %353 = vector.broadcast %350 : f32 to vector<16x16xf32>
    %354 = arith.mulf %353, %352 : vector<16x16xf32>
    %355 = arith.addf %349, %354 : vector<16x16xf32>
    %356 = vector.extract_strided_slice %1 {offsets = [0, 0, 2], sizes = [4, 16, 16], strides = [1, 1, 1]} : vector<4x18x18xf32> to vector<4x16x16xf32>
    %c80 = arith.constant 80 : index
    %357 = memref.load %arg2[%c80] : memref<256xf32, #tpu.memory_space<smem>>
    %358 = vector.extract_strided_slice %356 {offsets = [0, 0, 0], sizes = [1, 16, 16], strides = [1, 1, 1]} : vector<4x16x16xf32> to vector<1x16x16xf32>
    %359 = vector.shape_cast %358 : vector<1x16x16xf32> to vector<16x16xf32>
    %360 = vector.broadcast %357 : f32 to vector<16x16xf32>
    %361 = arith.mulf %360, %359 : vector<16x16xf32>
    %362 = arith.addf %283, %361 : vector<16x16xf32>
    %c81 = arith.constant 81 : index
    %363 = memref.load %arg2[%c81] : memref<256xf32, #tpu.memory_space<smem>>
    %364 = vector.extract_strided_slice %356 {offsets = [1, 0, 0], sizes = [1, 16, 16], strides = [1, 1, 1]} : vector<4x16x16xf32> to vector<1x16x16xf32>
    %365 = vector.shape_cast %364 : vector<1x16x16xf32> to vector<16x16xf32>
    %366 = vector.broadcast %363 : f32 to vector<16x16xf32>
    %367 = arith.mulf %366, %365 : vector<16x16xf32>
    %368 = arith.addf %362, %367 : vector<16x16xf32>
    %c82 = arith.constant 82 : index
    %369 = memref.load %arg2[%c82] : memref<256xf32, #tpu.memory_space<smem>>
    %370 = vector.extract_strided_slice %356 {offsets = [2, 0, 0], sizes = [1, 16, 16], strides = [1, 1, 1]} : vector<4x16x16xf32> to vector<1x16x16xf32>
    %371 = vector.shape_cast %370 : vector<1x16x16xf32> to vector<16x16xf32>
    %372 = vector.broadcast %369 : f32 to vector<16x16xf32>
    %373 = arith.mulf %372, %371 : vector<16x16xf32>
    %374 = arith.addf %368, %373 : vector<16x16xf32>
    %c83 = arith.constant 83 : index
    %375 = memref.load %arg2[%c83] : memref<256xf32, #tpu.memory_space<smem>>
    %376 = vector.extract_strided_slice %356 {offsets = [3, 0, 0], sizes = [1, 16, 16], strides = [1, 1, 1]} : vector<4x16x16xf32> to vector<1x16x16xf32>
    %377 = vector.shape_cast %376 : vector<1x16x16xf32> to vector<16x16xf32>
    %378 = vector.broadcast %375 : f32 to vector<16x16xf32>
    %379 = arith.mulf %378, %377 : vector<16x16xf32>
    %380 = arith.addf %374, %379 : vector<16x16xf32>
    %c84 = arith.constant 84 : index
    %381 = memref.load %arg2[%c84] : memref<256xf32, #tpu.memory_space<smem>>
    %382 = vector.extract_strided_slice %356 {offsets = [0, 0, 0], sizes = [1, 16, 16], strides = [1, 1, 1]} : vector<4x16x16xf32> to vector<1x16x16xf32>
    %383 = vector.shape_cast %382 : vector<1x16x16xf32> to vector<16x16xf32>
    %384 = vector.broadcast %381 : f32 to vector<16x16xf32>
    %385 = arith.mulf %384, %383 : vector<16x16xf32>
    %386 = arith.addf %307, %385 : vector<16x16xf32>
    %c85 = arith.constant 85 : index
    %387 = memref.load %arg2[%c85] : memref<256xf32, #tpu.memory_space<smem>>
    %388 = vector.extract_strided_slice %356 {offsets = [1, 0, 0], sizes = [1, 16, 16], strides = [1, 1, 1]} : vector<4x16x16xf32> to vector<1x16x16xf32>
    %389 = vector.shape_cast %388 : vector<1x16x16xf32> to vector<16x16xf32>
    %390 = vector.broadcast %387 : f32 to vector<16x16xf32>
    %391 = arith.mulf %390, %389 : vector<16x16xf32>
    %392 = arith.addf %386, %391 : vector<16x16xf32>
    %c86 = arith.constant 86 : index
    %393 = memref.load %arg2[%c86] : memref<256xf32, #tpu.memory_space<smem>>
    %394 = vector.extract_strided_slice %356 {offsets = [2, 0, 0], sizes = [1, 16, 16], strides = [1, 1, 1]} : vector<4x16x16xf32> to vector<1x16x16xf32>
    %395 = vector.shape_cast %394 : vector<1x16x16xf32> to vector<16x16xf32>
    %396 = vector.broadcast %393 : f32 to vector<16x16xf32>
    %397 = arith.mulf %396, %395 : vector<16x16xf32>
    %398 = arith.addf %392, %397 : vector<16x16xf32>
    %c87 = arith.constant 87 : index
    %399 = memref.load %arg2[%c87] : memref<256xf32, #tpu.memory_space<smem>>
    %400 = vector.extract_strided_slice %356 {offsets = [3, 0, 0], sizes = [1, 16, 16], strides = [1, 1, 1]} : vector<4x16x16xf32> to vector<1x16x16xf32>
    %401 = vector.shape_cast %400 : vector<1x16x16xf32> to vector<16x16xf32>
    %402 = vector.broadcast %399 : f32 to vector<16x16xf32>
    %403 = arith.mulf %402, %401 : vector<16x16xf32>
    %404 = arith.addf %398, %403 : vector<16x16xf32>
    %c88 = arith.constant 88 : index
    %405 = memref.load %arg2[%c88] : memref<256xf32, #tpu.memory_space<smem>>
    %406 = vector.extract_strided_slice %356 {offsets = [0, 0, 0], sizes = [1, 16, 16], strides = [1, 1, 1]} : vector<4x16x16xf32> to vector<1x16x16xf32>
    %407 = vector.shape_cast %406 : vector<1x16x16xf32> to vector<16x16xf32>
    %408 = vector.broadcast %405 : f32 to vector<16x16xf32>
    %409 = arith.mulf %408, %407 : vector<16x16xf32>
    %410 = arith.addf %331, %409 : vector<16x16xf32>
    %c89 = arith.constant 89 : index
    %411 = memref.load %arg2[%c89] : memref<256xf32, #tpu.memory_space<smem>>
    %412 = vector.extract_strided_slice %356 {offsets = [1, 0, 0], sizes = [1, 16, 16], strides = [1, 1, 1]} : vector<4x16x16xf32> to vector<1x16x16xf32>
    %413 = vector.shape_cast %412 : vector<1x16x16xf32> to vector<16x16xf32>
    %414 = vector.broadcast %411 : f32 to vector<16x16xf32>
    %415 = arith.mulf %414, %413 : vector<16x16xf32>
    %416 = arith.addf %410, %415 : vector<16x16xf32>
    %c90 = arith.constant 90 : index
    %417 = memref.load %arg2[%c90] : memref<256xf32, #tpu.memory_space<smem>>
    %418 = vector.extract_strided_slice %356 {offsets = [2, 0, 0], sizes = [1, 16, 16], strides = [1, 1, 1]} : vector<4x16x16xf32> to vector<1x16x16xf32>
    %419 = vector.shape_cast %418 : vector<1x16x16xf32> to vector<16x16xf32>
    %420 = vector.broadcast %417 : f32 to vector<16x16xf32>
    %421 = arith.mulf %420, %419 : vector<16x16xf32>
    %422 = arith.addf %416, %421 : vector<16x16xf32>
    %c91 = arith.constant 91 : index
    %423 = memref.load %arg2[%c91] : memref<256xf32, #tpu.memory_space<smem>>
    %424 = vector.extract_strided_slice %356 {offsets = [3, 0, 0], sizes = [1, 16, 16], strides = [1, 1, 1]} : vector<4x16x16xf32> to vector<1x16x16xf32>
    %425 = vector.shape_cast %424 : vector<1x16x16xf32> to vector<16x16xf32>
    %426 = vector.broadcast %423 : f32 to vector<16x16xf32>
    %427 = arith.mulf %426, %425 : vector<16x16xf32>
    %428 = arith.addf %422, %427 : vector<16x16xf32>
    %c92 = arith.constant 92 : index
    %429 = memref.load %arg2[%c92] : memref<256xf32, #tpu.memory_space<smem>>
    %430 = vector.extract_strided_slice %356 {offsets = [0, 0, 0], sizes = [1, 16, 16], strides = [1, 1, 1]} : vector<4x16x16xf32> to vector<1x16x16xf32>
    %431 = vector.shape_cast %430 : vector<1x16x16xf32> to vector<16x16xf32>
    %432 = vector.broadcast %429 : f32 to vector<16x16xf32>
    %433 = arith.mulf %432, %431 : vector<16x16xf32>
    %434 = arith.addf %355, %433 : vector<16x16xf32>
    %c93 = arith.constant 93 : index
    %435 = memref.load %arg2[%c93] : memref<256xf32, #tpu.memory_space<smem>>
    %436 = vector.extract_strided_slice %356 {offsets = [1, 0, 0], sizes = [1, 16, 16], strides = [1, 1, 1]} : vector<4x16x16xf32> to vector<1x16x16xf32>
    %437 = vector.shape_cast %436 : vector<1x16x16xf32> to vector<16x16xf32>
    %438 = vector.broadcast %435 : f32 to vector<16x16xf32>
    %439 = arith.mulf %438, %437 : vector<16x16xf32>
    %440 = arith.addf %434, %439 : vector<16x16xf32>
    %c94 = arith.constant 94 : index
    %441 = memref.load %arg2[%c94] : memref<256xf32, #tpu.memory_space<smem>>
    %442 = vector.extract_strided_slice %356 {offsets = [2, 0, 0], sizes = [1, 16, 16], strides = [1, 1, 1]} : vector<4x16x16xf32> to vector<1x16x16xf32>
    %443 = vector.shape_cast %442 : vector<1x16x16xf32> to vector<16x16xf32>
    %444 = vector.broadcast %441 : f32 to vector<16x16xf32>
    %445 = arith.mulf %444, %443 : vector<16x16xf32>
    %446 = arith.addf %440, %445 : vector<16x16xf32>
    %c95 = arith.constant 95 : index
    %447 = memref.load %arg2[%c95] : memref<256xf32, #tpu.memory_space<smem>>
    %448 = vector.extract_strided_slice %356 {offsets = [3, 0, 0], sizes = [1, 16, 16], strides = [1, 1, 1]} : vector<4x16x16xf32> to vector<1x16x16xf32>
    %449 = vector.shape_cast %448 : vector<1x16x16xf32> to vector<16x16xf32>
    %450 = vector.broadcast %447 : f32 to vector<16x16xf32>
    %451 = arith.mulf %450, %449 : vector<16x16xf32>
    %452 = arith.addf %446, %451 : vector<16x16xf32>
    %453 = vector.extract_strided_slice %1 {offsets = [0, 1, 0], sizes = [4, 16, 16], strides = [1, 1, 1]} : vector<4x18x18xf32> to vector<4x16x16xf32>
    %c32 = arith.constant 32 : index
    %454 = memref.load %arg2[%c32] : memref<256xf32, #tpu.memory_space<smem>>
    %455 = vector.extract_strided_slice %453 {offsets = [0, 0, 0], sizes = [1, 16, 16], strides = [1, 1, 1]} : vector<4x16x16xf32> to vector<1x16x16xf32>
    %456 = vector.shape_cast %455 : vector<1x16x16xf32> to vector<16x16xf32>
    %457 = vector.broadcast %454 : f32 to vector<16x16xf32>
    %458 = arith.mulf %457, %456 : vector<16x16xf32>
    %459 = arith.addf %187, %458 : vector<16x16xf32>
    %c33 = arith.constant 33 : index
    %460 = memref.load %arg2[%c33] : memref<256xf32, #tpu.memory_space<smem>>
    %461 = vector.extract_strided_slice %453 {offsets = [1, 0, 0], sizes = [1, 16, 16], strides = [1, 1, 1]} : vector<4x16x16xf32> to vector<1x16x16xf32>
    %462 = vector.shape_cast %461 : vector<1x16x16xf32> to vector<16x16xf32>
    %463 = vector.broadcast %460 : f32 to vector<16x16xf32>
    %464 = arith.mulf %463, %462 : vector<16x16xf32>
    %465 = arith.addf %459, %464 : vector<16x16xf32>
    %c34 = arith.constant 34 : index
    %466 = memref.load %arg2[%c34] : memref<256xf32, #tpu.memory_space<smem>>
    %467 = vector.extract_strided_slice %453 {offsets = [2, 0, 0], sizes = [1, 16, 16], strides = [1, 1, 1]} : vector<4x16x16xf32> to vector<1x16x16xf32>
    %468 = vector.shape_cast %467 : vector<1x16x16xf32> to vector<16x16xf32>
    %469 = vector.broadcast %466 : f32 to vector<16x16xf32>
    %470 = arith.mulf %469, %468 : vector<16x16xf32>
    %471 = arith.addf %465, %470 : vector<16x16xf32>
    %c35 = arith.constant 35 : index
    %472 = memref.load %arg2[%c35] : memref<256xf32, #tpu.memory_space<smem>>
    %473 = vector.extract_strided_slice %453 {offsets = [3, 0, 0], sizes = [1, 16, 16], strides = [1, 1, 1]} : vector<4x16x16xf32> to vector<1x16x16xf32>
    %474 = vector.shape_cast %473 : vector<1x16x16xf32> to vector<16x16xf32>
    %475 = vector.broadcast %472 : f32 to vector<16x16xf32>
    %476 = arith.mulf %475, %474 : vector<16x16xf32>
    %477 = arith.addf %471, %476 : vector<16x16xf32>
    %c36 = arith.constant 36 : index
    %478 = memref.load %arg2[%c36] : memref<256xf32, #tpu.memory_space<smem>>
    %479 = vector.extract_strided_slice %453 {offsets = [0, 0, 0], sizes = [1, 16, 16], strides = [1, 1, 1]} : vector<4x16x16xf32> to vector<1x16x16xf32>
    %480 = vector.shape_cast %479 : vector<1x16x16xf32> to vector<16x16xf32>
    %481 = vector.broadcast %478 : f32 to vector<16x16xf32>
    %482 = arith.mulf %481, %480 : vector<16x16xf32>
    %483 = arith.addf %211, %482 : vector<16x16xf32>
    %c37 = arith.constant 37 : index
    %484 = memref.load %arg2[%c37] : memref<256xf32, #tpu.memory_space<smem>>
    %485 = vector.extract_strided_slice %453 {offsets = [1, 0, 0], sizes = [1, 16, 16], strides = [1, 1, 1]} : vector<4x16x16xf32> to vector<1x16x16xf32>
    %486 = vector.shape_cast %485 : vector<1x16x16xf32> to vector<16x16xf32>
    %487 = vector.broadcast %484 : f32 to vector<16x16xf32>
    %488 = arith.mulf %487, %486 : vector<16x16xf32>
    %489 = arith.addf %483, %488 : vector<16x16xf32>
    %c38 = arith.constant 38 : index
    %490 = memref.load %arg2[%c38] : memref<256xf32, #tpu.memory_space<smem>>
    %491 = vector.extract_strided_slice %453 {offsets = [2, 0, 0], sizes = [1, 16, 16], strides = [1, 1, 1]} : vector<4x16x16xf32> to vector<1x16x16xf32>
    %492 = vector.shape_cast %491 : vector<1x16x16xf32> to vector<16x16xf32>
    %493 = vector.broadcast %490 : f32 to vector<16x16xf32>
    %494 = arith.mulf %493, %492 : vector<16x16xf32>
    %495 = arith.addf %489, %494 : vector<16x16xf32>
    %c39 = arith.constant 39 : index
    %496 = memref.load %arg2[%c39] : memref<256xf32, #tpu.memory_space<smem>>
    %497 = vector.extract_strided_slice %453 {offsets = [3, 0, 0], sizes = [1, 16, 16], strides = [1, 1, 1]} : vector<4x16x16xf32> to vector<1x16x16xf32>
    %498 = vector.shape_cast %497 : vector<1x16x16xf32> to vector<16x16xf32>
    %499 = vector.broadcast %496 : f32 to vector<16x16xf32>
    %500 = arith.mulf %499, %498 : vector<16x16xf32>
    %501 = arith.addf %495, %500 : vector<16x16xf32>
    %c40 = arith.constant 40 : index
    %502 = memref.load %arg2[%c40] : memref<256xf32, #tpu.memory_space<smem>>
    %503 = vector.extract_strided_slice %453 {offsets = [0, 0, 0], sizes = [1, 16, 16], strides = [1, 1, 1]} : vector<4x16x16xf32> to vector<1x16x16xf32>
    %504 = vector.shape_cast %503 : vector<1x16x16xf32> to vector<16x16xf32>
    %505 = vector.broadcast %502 : f32 to vector<16x16xf32>
    %506 = arith.mulf %505, %504 : vector<16x16xf32>
    %507 = arith.addf %235, %506 : vector<16x16xf32>
    %c41 = arith.constant 41 : index
    %508 = memref.load %arg2[%c41] : memref<256xf32, #tpu.memory_space<smem>>
    %509 = vector.extract_strided_slice %453 {offsets = [1, 0, 0], sizes = [1, 16, 16], strides = [1, 1, 1]} : vector<4x16x16xf32> to vector<1x16x16xf32>
    %510 = vector.shape_cast %509 : vector<1x16x16xf32> to vector<16x16xf32>
    %511 = vector.broadcast %508 : f32 to vector<16x16xf32>
    %512 = arith.mulf %511, %510 : vector<16x16xf32>
    %513 = arith.addf %507, %512 : vector<16x16xf32>
    %c42 = arith.constant 42 : index
    %514 = memref.load %arg2[%c42] : memref<256xf32, #tpu.memory_space<smem>>
    %515 = vector.extract_strided_slice %453 {offsets = [2, 0, 0], sizes = [1, 16, 16], strides = [1, 1, 1]} : vector<4x16x16xf32> to vector<1x16x16xf32>
    %516 = vector.shape_cast %515 : vector<1x16x16xf32> to vector<16x16xf32>
    %517 = vector.broadcast %514 : f32 to vector<16x16xf32>
    %518 = arith.mulf %517, %516 : vector<16x16xf32>
    %519 = arith.addf %513, %518 : vector<16x16xf32>
    %c43 = arith.constant 43 : index
    %520 = memref.load %arg2[%c43] : memref<256xf32, #tpu.memory_space<smem>>
    %521 = vector.extract_strided_slice %453 {offsets = [3, 0, 0], sizes = [1, 16, 16], strides = [1, 1, 1]} : vector<4x16x16xf32> to vector<1x16x16xf32>
    %522 = vector.shape_cast %521 : vector<1x16x16xf32> to vector<16x16xf32>
    %523 = vector.broadcast %520 : f32 to vector<16x16xf32>
    %524 = arith.mulf %523, %522 : vector<16x16xf32>
    %525 = arith.addf %519, %524 : vector<16x16xf32>
    %c44 = arith.constant 44 : index
    %526 = memref.load %arg2[%c44] : memref<256xf32, #tpu.memory_space<smem>>
    %527 = vector.extract_strided_slice %453 {offsets = [0, 0, 0], sizes = [1, 16, 16], strides = [1, 1, 1]} : vector<4x16x16xf32> to vector<1x16x16xf32>
    %528 = vector.shape_cast %527 : vector<1x16x16xf32> to vector<16x16xf32>
    %529 = vector.broadcast %526 : f32 to vector<16x16xf32>
    %530 = arith.mulf %529, %528 : vector<16x16xf32>
    %531 = arith.addf %259, %530 : vector<16x16xf32>
    %c45 = arith.constant 45 : index
    %532 = memref.load %arg2[%c45] : memref<256xf32, #tpu.memory_space<smem>>
    %533 = vector.extract_strided_slice %453 {offsets = [1, 0, 0], sizes = [1, 16, 16], strides = [1, 1, 1]} : vector<4x16x16xf32> to vector<1x16x16xf32>
    %534 = vector.shape_cast %533 : vector<1x16x16xf32> to vector<16x16xf32>
    %535 = vector.broadcast %532 : f32 to vector<16x16xf32>
    %536 = arith.mulf %535, %534 : vector<16x16xf32>
    %537 = arith.addf %531, %536 : vector<16x16xf32>
    %c46 = arith.constant 46 : index
    %538 = memref.load %arg2[%c46] : memref<256xf32, #tpu.memory_space<smem>>
    %539 = vector.extract_strided_slice %453 {offsets = [2, 0, 0], sizes = [1, 16, 16], strides = [1, 1, 1]} : vector<4x16x16xf32> to vector<1x16x16xf32>
    %540 = vector.shape_cast %539 : vector<1x16x16xf32> to vector<16x16xf32>
    %541 = vector.broadcast %538 : f32 to vector<16x16xf32>
    %542 = arith.mulf %541, %540 : vector<16x16xf32>
    %543 = arith.addf %537, %542 : vector<16x16xf32>
    %c47 = arith.constant 47 : index
    %544 = memref.load %arg2[%c47] : memref<256xf32, #tpu.memory_space<smem>>
    %545 = vector.extract_strided_slice %453 {offsets = [3, 0, 0], sizes = [1, 16, 16], strides = [1, 1, 1]} : vector<4x16x16xf32> to vector<1x16x16xf32>
    %546 = vector.shape_cast %545 : vector<1x16x16xf32> to vector<16x16xf32>
    %547 = vector.broadcast %544 : f32 to vector<16x16xf32>
    %548 = arith.mulf %547, %546 : vector<16x16xf32>
    %549 = arith.addf %543, %548 : vector<16x16xf32>
    %c128 = arith.constant 128 : index
    %550 = memref.load %arg2[%c128] : memref<256xf32, #tpu.memory_space<smem>>
    %551 = vector.extract_strided_slice %453 {offsets = [0, 0, 0], sizes = [1, 16, 16], strides = [1, 1, 1]} : vector<4x16x16xf32> to vector<1x16x16xf32>
    %552 = vector.shape_cast %551 : vector<1x16x16xf32> to vector<16x16xf32>
    %553 = vector.broadcast %550 : f32 to vector<16x16xf32>
    %554 = arith.mulf %553, %552 : vector<16x16xf32>
    %555 = arith.addf %37, %554 : vector<16x16xf32>
    %c129 = arith.constant 129 : index
    %556 = memref.load %arg2[%c129] : memref<256xf32, #tpu.memory_space<smem>>
    %557 = vector.extract_strided_slice %453 {offsets = [1, 0, 0], sizes = [1, 16, 16], strides = [1, 1, 1]} : vector<4x16x16xf32> to vector<1x16x16xf32>
    %558 = vector.shape_cast %557 : vector<1x16x16xf32> to vector<16x16xf32>
    %559 = vector.broadcast %556 : f32 to vector<16x16xf32>
    %560 = arith.mulf %559, %558 : vector<16x16xf32>
    %561 = arith.addf %555, %560 : vector<16x16xf32>
    %c130 = arith.constant 130 : index
    %562 = memref.load %arg2[%c130] : memref<256xf32, #tpu.memory_space<smem>>
    %563 = vector.extract_strided_slice %453 {offsets = [2, 0, 0], sizes = [1, 16, 16], strides = [1, 1, 1]} : vector<4x16x16xf32> to vector<1x16x16xf32>
    %564 = vector.shape_cast %563 : vector<1x16x16xf32> to vector<16x16xf32>
    %565 = vector.broadcast %562 : f32 to vector<16x16xf32>
    %566 = arith.mulf %565, %564 : vector<16x16xf32>
    %567 = arith.addf %561, %566 : vector<16x16xf32>
    %c131 = arith.constant 131 : index
    %568 = memref.load %arg2[%c131] : memref<256xf32, #tpu.memory_space<smem>>
    %569 = vector.extract_strided_slice %453 {offsets = [3, 0, 0], sizes = [1, 16, 16], strides = [1, 1, 1]} : vector<4x16x16xf32> to vector<1x16x16xf32>
    %570 = vector.shape_cast %569 : vector<1x16x16xf32> to vector<16x16xf32>
    %571 = vector.broadcast %568 : f32 to vector<16x16xf32>
    %572 = arith.mulf %571, %570 : vector<16x16xf32>
    %573 = arith.addf %567, %572 : vector<16x16xf32>
    %c132 = arith.constant 132 : index
    %574 = memref.load %arg2[%c132] : memref<256xf32, #tpu.memory_space<smem>>
    %575 = vector.extract_strided_slice %453 {offsets = [0, 0, 0], sizes = [1, 16, 16], strides = [1, 1, 1]} : vector<4x16x16xf32> to vector<1x16x16xf32>
    %576 = vector.shape_cast %575 : vector<1x16x16xf32> to vector<16x16xf32>
    %577 = vector.broadcast %574 : f32 to vector<16x16xf32>
    %578 = arith.mulf %577, %576 : vector<16x16xf32>
    %579 = arith.addf %41, %578 : vector<16x16xf32>
    %c133 = arith.constant 133 : index
    %580 = memref.load %arg2[%c133] : memref<256xf32, #tpu.memory_space<smem>>
    %581 = vector.extract_strided_slice %453 {offsets = [1, 0, 0], sizes = [1, 16, 16], strides = [1, 1, 1]} : vector<4x16x16xf32> to vector<1x16x16xf32>
    %582 = vector.shape_cast %581 : vector<1x16x16xf32> to vector<16x16xf32>
    %583 = vector.broadcast %580 : f32 to vector<16x16xf32>
    %584 = arith.mulf %583, %582 : vector<16x16xf32>
    %585 = arith.addf %579, %584 : vector<16x16xf32>
    %c134 = arith.constant 134 : index
    %586 = memref.load %arg2[%c134] : memref<256xf32, #tpu.memory_space<smem>>
    %587 = vector.extract_strided_slice %453 {offsets = [2, 0, 0], sizes = [1, 16, 16], strides = [1, 1, 1]} : vector<4x16x16xf32> to vector<1x16x16xf32>
    %588 = vector.shape_cast %587 : vector<1x16x16xf32> to vector<16x16xf32>
    %589 = vector.broadcast %586 : f32 to vector<16x16xf32>
    %590 = arith.mulf %589, %588 : vector<16x16xf32>
    %591 = arith.addf %585, %590 : vector<16x16xf32>
    %c135 = arith.constant 135 : index
    %592 = memref.load %arg2[%c135] : memref<256xf32, #tpu.memory_space<smem>>
    %593 = vector.extract_strided_slice %453 {offsets = [3, 0, 0], sizes = [1, 16, 16], strides = [1, 1, 1]} : vector<4x16x16xf32> to vector<1x16x16xf32>
    %594 = vector.shape_cast %593 : vector<1x16x16xf32> to vector<16x16xf32>
    %595 = vector.broadcast %592 : f32 to vector<16x16xf32>
    %596 = arith.mulf %595, %594 : vector<16x16xf32>
    %597 = arith.addf %591, %596 : vector<16x16xf32>
    %c136 = arith.constant 136 : index
    %598 = memref.load %arg2[%c136] : memref<256xf32, #tpu.memory_space<smem>>
    %599 = vector.extract_strided_slice %453 {offsets = [0, 0, 0], sizes = [1, 16, 16], strides = [1, 1, 1]} : vector<4x16x16xf32> to vector<1x16x16xf32>
    %600 = vector.shape_cast %599 : vector<1x16x16xf32> to vector<16x16xf32>
    %601 = vector.broadcast %598 : f32 to vector<16x16xf32>
    %602 = arith.mulf %601, %600 : vector<16x16xf32>
    %603 = arith.addf %45, %602 : vector<16x16xf32>
    %c137 = arith.constant 137 : index
    %604 = memref.load %arg2[%c137] : memref<256xf32, #tpu.memory_space<smem>>
    %605 = vector.extract_strided_slice %453 {offsets = [1, 0, 0], sizes = [1, 16, 16], strides = [1, 1, 1]} : vector<4x16x16xf32> to vector<1x16x16xf32>
    %606 = vector.shape_cast %605 : vector<1x16x16xf32> to vector<16x16xf32>
    %607 = vector.broadcast %604 : f32 to vector<16x16xf32>
    %608 = arith.mulf %607, %606 : vector<16x16xf32>
    %609 = arith.addf %603, %608 : vector<16x16xf32>
    %c138 = arith.constant 138 : index
    %610 = memref.load %arg2[%c138] : memref<256xf32, #tpu.memory_space<smem>>
    %611 = vector.extract_strided_slice %453 {offsets = [2, 0, 0], sizes = [1, 16, 16], strides = [1, 1, 1]} : vector<4x16x16xf32> to vector<1x16x16xf32>
    %612 = vector.shape_cast %611 : vector<1x16x16xf32> to vector<16x16xf32>
    %613 = vector.broadcast %610 : f32 to vector<16x16xf32>
    %614 = arith.mulf %613, %612 : vector<16x16xf32>
    %615 = arith.addf %609, %614 : vector<16x16xf32>
    %c139 = arith.constant 139 : index
    %616 = memref.load %arg2[%c139] : memref<256xf32, #tpu.memory_space<smem>>
    %617 = vector.extract_strided_slice %453 {offsets = [3, 0, 0], sizes = [1, 16, 16], strides = [1, 1, 1]} : vector<4x16x16xf32> to vector<1x16x16xf32>
    %618 = vector.shape_cast %617 : vector<1x16x16xf32> to vector<16x16xf32>
    %619 = vector.broadcast %616 : f32 to vector<16x16xf32>
    %620 = arith.mulf %619, %618 : vector<16x16xf32>
    %621 = arith.addf %615, %620 : vector<16x16xf32>
    %c140 = arith.constant 140 : index
    %622 = memref.load %arg2[%c140] : memref<256xf32, #tpu.memory_space<smem>>
    %623 = vector.extract_strided_slice %453 {offsets = [0, 0, 0], sizes = [1, 16, 16], strides = [1, 1, 1]} : vector<4x16x16xf32> to vector<1x16x16xf32>
    %624 = vector.shape_cast %623 : vector<1x16x16xf32> to vector<16x16xf32>
    %625 = vector.broadcast %622 : f32 to vector<16x16xf32>
    %626 = arith.mulf %625, %624 : vector<16x16xf32>
    %627 = arith.addf %49, %626 : vector<16x16xf32>
    %c141 = arith.constant 141 : index
    %628 = memref.load %arg2[%c141] : memref<256xf32, #tpu.memory_space<smem>>
    %629 = vector.extract_strided_slice %453 {offsets = [1, 0, 0], sizes = [1, 16, 16], strides = [1, 1, 1]} : vector<4x16x16xf32> to vector<1x16x16xf32>
    %630 = vector.shape_cast %629 : vector<1x16x16xf32> to vector<16x16xf32>
    %631 = vector.broadcast %628 : f32 to vector<16x16xf32>
    %632 = arith.mulf %631, %630 : vector<16x16xf32>
    %633 = arith.addf %627, %632 : vector<16x16xf32>
    %c142 = arith.constant 142 : index
    %634 = memref.load %arg2[%c142] : memref<256xf32, #tpu.memory_space<smem>>
    %635 = vector.extract_strided_slice %453 {offsets = [2, 0, 0], sizes = [1, 16, 16], strides = [1, 1, 1]} : vector<4x16x16xf32> to vector<1x16x16xf32>
    %636 = vector.shape_cast %635 : vector<1x16x16xf32> to vector<16x16xf32>
    %637 = vector.broadcast %634 : f32 to vector<16x16xf32>
    %638 = arith.mulf %637, %636 : vector<16x16xf32>
    %639 = arith.addf %633, %638 : vector<16x16xf32>
    %c143 = arith.constant 143 : index
    %640 = memref.load %arg2[%c143] : memref<256xf32, #tpu.memory_space<smem>>
    %641 = vector.extract_strided_slice %453 {offsets = [3, 0, 0], sizes = [1, 16, 16], strides = [1, 1, 1]} : vector<4x16x16xf32> to vector<1x16x16xf32>
    %642 = vector.shape_cast %641 : vector<1x16x16xf32> to vector<16x16xf32>
    %643 = vector.broadcast %640 : f32 to vector<16x16xf32>
    %644 = arith.mulf %643, %642 : vector<16x16xf32>
    %645 = arith.addf %639, %644 : vector<16x16xf32>
    %646 = vector.extract_strided_slice %1 {offsets = [0, 1, 1], sizes = [4, 16, 16], strides = [1, 1, 1]} : vector<4x18x18xf32> to vector<4x16x16xf32>
    %c48 = arith.constant 48 : index
    %647 = memref.load %arg2[%c48] : memref<256xf32, #tpu.memory_space<smem>>
    %648 = vector.extract_strided_slice %646 {offsets = [0, 0, 0], sizes = [1, 16, 16], strides = [1, 1, 1]} : vector<4x16x16xf32> to vector<1x16x16xf32>
    %649 = vector.shape_cast %648 : vector<1x16x16xf32> to vector<16x16xf32>
    %650 = vector.broadcast %647 : f32 to vector<16x16xf32>
    %651 = arith.mulf %650, %649 : vector<16x16xf32>
    %652 = arith.addf %477, %651 : vector<16x16xf32>
    %c49 = arith.constant 49 : index
    %653 = memref.load %arg2[%c49] : memref<256xf32, #tpu.memory_space<smem>>
    %654 = vector.extract_strided_slice %646 {offsets = [1, 0, 0], sizes = [1, 16, 16], strides = [1, 1, 1]} : vector<4x16x16xf32> to vector<1x16x16xf32>
    %655 = vector.shape_cast %654 : vector<1x16x16xf32> to vector<16x16xf32>
    %656 = vector.broadcast %653 : f32 to vector<16x16xf32>
    %657 = arith.mulf %656, %655 : vector<16x16xf32>
    %658 = arith.addf %652, %657 : vector<16x16xf32>
    %c50 = arith.constant 50 : index
    %659 = memref.load %arg2[%c50] : memref<256xf32, #tpu.memory_space<smem>>
    %660 = vector.extract_strided_slice %646 {offsets = [2, 0, 0], sizes = [1, 16, 16], strides = [1, 1, 1]} : vector<4x16x16xf32> to vector<1x16x16xf32>
    %661 = vector.shape_cast %660 : vector<1x16x16xf32> to vector<16x16xf32>
    %662 = vector.broadcast %659 : f32 to vector<16x16xf32>
    %663 = arith.mulf %662, %661 : vector<16x16xf32>
    %664 = arith.addf %658, %663 : vector<16x16xf32>
    %c51 = arith.constant 51 : index
    %665 = memref.load %arg2[%c51] : memref<256xf32, #tpu.memory_space<smem>>
    %666 = vector.extract_strided_slice %646 {offsets = [3, 0, 0], sizes = [1, 16, 16], strides = [1, 1, 1]} : vector<4x16x16xf32> to vector<1x16x16xf32>
    %667 = vector.shape_cast %666 : vector<1x16x16xf32> to vector<16x16xf32>
    %668 = vector.broadcast %665 : f32 to vector<16x16xf32>
    %669 = arith.mulf %668, %667 : vector<16x16xf32>
    %670 = arith.addf %664, %669 : vector<16x16xf32>
    %c52 = arith.constant 52 : index
    %671 = memref.load %arg2[%c52] : memref<256xf32, #tpu.memory_space<smem>>
    %672 = vector.extract_strided_slice %646 {offsets = [0, 0, 0], sizes = [1, 16, 16], strides = [1, 1, 1]} : vector<4x16x16xf32> to vector<1x16x16xf32>
    %673 = vector.shape_cast %672 : vector<1x16x16xf32> to vector<16x16xf32>
    %674 = vector.broadcast %671 : f32 to vector<16x16xf32>
    %675 = arith.mulf %674, %673 : vector<16x16xf32>
    %676 = arith.addf %501, %675 : vector<16x16xf32>
    %c53 = arith.constant 53 : index
    %677 = memref.load %arg2[%c53] : memref<256xf32, #tpu.memory_space<smem>>
    %678 = vector.extract_strided_slice %646 {offsets = [1, 0, 0], sizes = [1, 16, 16], strides = [1, 1, 1]} : vector<4x16x16xf32> to vector<1x16x16xf32>
    %679 = vector.shape_cast %678 : vector<1x16x16xf32> to vector<16x16xf32>
    %680 = vector.broadcast %677 : f32 to vector<16x16xf32>
    %681 = arith.mulf %680, %679 : vector<16x16xf32>
    %682 = arith.addf %676, %681 : vector<16x16xf32>
    %c54 = arith.constant 54 : index
    %683 = memref.load %arg2[%c54] : memref<256xf32, #tpu.memory_space<smem>>
    %684 = vector.extract_strided_slice %646 {offsets = [2, 0, 0], sizes = [1, 16, 16], strides = [1, 1, 1]} : vector<4x16x16xf32> to vector<1x16x16xf32>
    %685 = vector.shape_cast %684 : vector<1x16x16xf32> to vector<16x16xf32>
    %686 = vector.broadcast %683 : f32 to vector<16x16xf32>
    %687 = arith.mulf %686, %685 : vector<16x16xf32>
    %688 = arith.addf %682, %687 : vector<16x16xf32>
    %c55 = arith.constant 55 : index
    %689 = memref.load %arg2[%c55] : memref<256xf32, #tpu.memory_space<smem>>
    %690 = vector.extract_strided_slice %646 {offsets = [3, 0, 0], sizes = [1, 16, 16], strides = [1, 1, 1]} : vector<4x16x16xf32> to vector<1x16x16xf32>
    %691 = vector.shape_cast %690 : vector<1x16x16xf32> to vector<16x16xf32>
    %692 = vector.broadcast %689 : f32 to vector<16x16xf32>
    %693 = arith.mulf %692, %691 : vector<16x16xf32>
    %694 = arith.addf %688, %693 : vector<16x16xf32>
    %c56 = arith.constant 56 : index
    %695 = memref.load %arg2[%c56] : memref<256xf32, #tpu.memory_space<smem>>
    %696 = vector.extract_strided_slice %646 {offsets = [0, 0, 0], sizes = [1, 16, 16], strides = [1, 1, 1]} : vector<4x16x16xf32> to vector<1x16x16xf32>
    %697 = vector.shape_cast %696 : vector<1x16x16xf32> to vector<16x16xf32>
    %698 = vector.broadcast %695 : f32 to vector<16x16xf32>
    %699 = arith.mulf %698, %697 : vector<16x16xf32>
    %700 = arith.addf %525, %699 : vector<16x16xf32>
    %c57 = arith.constant 57 : index
    %701 = memref.load %arg2[%c57] : memref<256xf32, #tpu.memory_space<smem>>
    %702 = vector.extract_strided_slice %646 {offsets = [1, 0, 0], sizes = [1, 16, 16], strides = [1, 1, 1]} : vector<4x16x16xf32> to vector<1x16x16xf32>
    %703 = vector.shape_cast %702 : vector<1x16x16xf32> to vector<16x16xf32>
    %704 = vector.broadcast %701 : f32 to vector<16x16xf32>
    %705 = arith.mulf %704, %703 : vector<16x16xf32>
    %706 = arith.addf %700, %705 : vector<16x16xf32>
    %c58 = arith.constant 58 : index
    %707 = memref.load %arg2[%c58] : memref<256xf32, #tpu.memory_space<smem>>
    %708 = vector.extract_strided_slice %646 {offsets = [2, 0, 0], sizes = [1, 16, 16], strides = [1, 1, 1]} : vector<4x16x16xf32> to vector<1x16x16xf32>
    %709 = vector.shape_cast %708 : vector<1x16x16xf32> to vector<16x16xf32>
    %710 = vector.broadcast %707 : f32 to vector<16x16xf32>
    %711 = arith.mulf %710, %709 : vector<16x16xf32>
    %712 = arith.addf %706, %711 : vector<16x16xf32>
    %c59 = arith.constant 59 : index
    %713 = memref.load %arg2[%c59] : memref<256xf32, #tpu.memory_space<smem>>
    %714 = vector.extract_strided_slice %646 {offsets = [3, 0, 0], sizes = [1, 16, 16], strides = [1, 1, 1]} : vector<4x16x16xf32> to vector<1x16x16xf32>
    %715 = vector.shape_cast %714 : vector<1x16x16xf32> to vector<16x16xf32>
    %716 = vector.broadcast %713 : f32 to vector<16x16xf32>
    %717 = arith.mulf %716, %715 : vector<16x16xf32>
    %718 = arith.addf %712, %717 : vector<16x16xf32>
    %c60 = arith.constant 60 : index
    %719 = memref.load %arg2[%c60] : memref<256xf32, #tpu.memory_space<smem>>
    %720 = vector.extract_strided_slice %646 {offsets = [0, 0, 0], sizes = [1, 16, 16], strides = [1, 1, 1]} : vector<4x16x16xf32> to vector<1x16x16xf32>
    %721 = vector.shape_cast %720 : vector<1x16x16xf32> to vector<16x16xf32>
    %722 = vector.broadcast %719 : f32 to vector<16x16xf32>
    %723 = arith.mulf %722, %721 : vector<16x16xf32>
    %724 = arith.addf %549, %723 : vector<16x16xf32>
    %c61 = arith.constant 61 : index
    %725 = memref.load %arg2[%c61] : memref<256xf32, #tpu.memory_space<smem>>
    %726 = vector.extract_strided_slice %646 {offsets = [1, 0, 0], sizes = [1, 16, 16], strides = [1, 1, 1]} : vector<4x16x16xf32> to vector<1x16x16xf32>
    %727 = vector.shape_cast %726 : vector<1x16x16xf32> to vector<16x16xf32>
    %728 = vector.broadcast %725 : f32 to vector<16x16xf32>
    %729 = arith.mulf %728, %727 : vector<16x16xf32>
    %730 = arith.addf %724, %729 : vector<16x16xf32>
    %c62 = arith.constant 62 : index
    %731 = memref.load %arg2[%c62] : memref<256xf32, #tpu.memory_space<smem>>
    %732 = vector.extract_strided_slice %646 {offsets = [2, 0, 0], sizes = [1, 16, 16], strides = [1, 1, 1]} : vector<4x16x16xf32> to vector<1x16x16xf32>
    %733 = vector.shape_cast %732 : vector<1x16x16xf32> to vector<16x16xf32>
    %734 = vector.broadcast %731 : f32 to vector<16x16xf32>
    %735 = arith.mulf %734, %733 : vector<16x16xf32>
    %736 = arith.addf %730, %735 : vector<16x16xf32>
    %c63 = arith.constant 63 : index
    %737 = memref.load %arg2[%c63] : memref<256xf32, #tpu.memory_space<smem>>
    %738 = vector.extract_strided_slice %646 {offsets = [3, 0, 0], sizes = [1, 16, 16], strides = [1, 1, 1]} : vector<4x16x16xf32> to vector<1x16x16xf32>
    %739 = vector.shape_cast %738 : vector<1x16x16xf32> to vector<16x16xf32>
    %740 = vector.broadcast %737 : f32 to vector<16x16xf32>
    %741 = arith.mulf %740, %739 : vector<16x16xf32>
    %742 = arith.addf %736, %741 : vector<16x16xf32>
    %c96 = arith.constant 96 : index
    %743 = memref.load %arg2[%c96] : memref<256xf32, #tpu.memory_space<smem>>
    %744 = vector.extract_strided_slice %646 {offsets = [0, 0, 0], sizes = [1, 16, 16], strides = [1, 1, 1]} : vector<4x16x16xf32> to vector<1x16x16xf32>
    %745 = vector.shape_cast %744 : vector<1x16x16xf32> to vector<16x16xf32>
    %746 = vector.broadcast %743 : f32 to vector<16x16xf32>
    %747 = arith.mulf %746, %745 : vector<16x16xf32>
    %748 = arith.addf %380, %747 : vector<16x16xf32>
    %c97 = arith.constant 97 : index
    %749 = memref.load %arg2[%c97] : memref<256xf32, #tpu.memory_space<smem>>
    %750 = vector.extract_strided_slice %646 {offsets = [1, 0, 0], sizes = [1, 16, 16], strides = [1, 1, 1]} : vector<4x16x16xf32> to vector<1x16x16xf32>
    %751 = vector.shape_cast %750 : vector<1x16x16xf32> to vector<16x16xf32>
    %752 = vector.broadcast %749 : f32 to vector<16x16xf32>
    %753 = arith.mulf %752, %751 : vector<16x16xf32>
    %754 = arith.addf %748, %753 : vector<16x16xf32>
    %c98 = arith.constant 98 : index
    %755 = memref.load %arg2[%c98] : memref<256xf32, #tpu.memory_space<smem>>
    %756 = vector.extract_strided_slice %646 {offsets = [2, 0, 0], sizes = [1, 16, 16], strides = [1, 1, 1]} : vector<4x16x16xf32> to vector<1x16x16xf32>
    %757 = vector.shape_cast %756 : vector<1x16x16xf32> to vector<16x16xf32>
    %758 = vector.broadcast %755 : f32 to vector<16x16xf32>
    %759 = arith.mulf %758, %757 : vector<16x16xf32>
    %760 = arith.addf %754, %759 : vector<16x16xf32>
    %c99 = arith.constant 99 : index
    %761 = memref.load %arg2[%c99] : memref<256xf32, #tpu.memory_space<smem>>
    %762 = vector.extract_strided_slice %646 {offsets = [3, 0, 0], sizes = [1, 16, 16], strides = [1, 1, 1]} : vector<4x16x16xf32> to vector<1x16x16xf32>
    %763 = vector.shape_cast %762 : vector<1x16x16xf32> to vector<16x16xf32>
    %764 = vector.broadcast %761 : f32 to vector<16x16xf32>
    %765 = arith.mulf %764, %763 : vector<16x16xf32>
    %766 = arith.addf %760, %765 : vector<16x16xf32>
    %c100 = arith.constant 100 : index
    %767 = memref.load %arg2[%c100] : memref<256xf32, #tpu.memory_space<smem>>
    %768 = vector.extract_strided_slice %646 {offsets = [0, 0, 0], sizes = [1, 16, 16], strides = [1, 1, 1]} : vector<4x16x16xf32> to vector<1x16x16xf32>
    %769 = vector.shape_cast %768 : vector<1x16x16xf32> to vector<16x16xf32>
    %770 = vector.broadcast %767 : f32 to vector<16x16xf32>
    %771 = arith.mulf %770, %769 : vector<16x16xf32>
    %772 = arith.addf %404, %771 : vector<16x16xf32>
    %c101 = arith.constant 101 : index
    %773 = memref.load %arg2[%c101] : memref<256xf32, #tpu.memory_space<smem>>
    %774 = vector.extract_strided_slice %646 {offsets = [1, 0, 0], sizes = [1, 16, 16], strides = [1, 1, 1]} : vector<4x16x16xf32> to vector<1x16x16xf32>
    %775 = vector.shape_cast %774 : vector<1x16x16xf32> to vector<16x16xf32>
    %776 = vector.broadcast %773 : f32 to vector<16x16xf32>
    %777 = arith.mulf %776, %775 : vector<16x16xf32>
    %778 = arith.addf %772, %777 : vector<16x16xf32>
    %c102 = arith.constant 102 : index
    %779 = memref.load %arg2[%c102] : memref<256xf32, #tpu.memory_space<smem>>
    %780 = vector.extract_strided_slice %646 {offsets = [2, 0, 0], sizes = [1, 16, 16], strides = [1, 1, 1]} : vector<4x16x16xf32> to vector<1x16x16xf32>
    %781 = vector.shape_cast %780 : vector<1x16x16xf32> to vector<16x16xf32>
    %782 = vector.broadcast %779 : f32 to vector<16x16xf32>
    %783 = arith.mulf %782, %781 : vector<16x16xf32>
    %784 = arith.addf %778, %783 : vector<16x16xf32>
    %c103 = arith.constant 103 : index
    %785 = memref.load %arg2[%c103] : memref<256xf32, #tpu.memory_space<smem>>
    %786 = vector.extract_strided_slice %646 {offsets = [3, 0, 0], sizes = [1, 16, 16], strides = [1, 1, 1]} : vector<4x16x16xf32> to vector<1x16x16xf32>
    %787 = vector.shape_cast %786 : vector<1x16x16xf32> to vector<16x16xf32>
    %788 = vector.broadcast %785 : f32 to vector<16x16xf32>
    %789 = arith.mulf %788, %787 : vector<16x16xf32>
    %790 = arith.addf %784, %789 : vector<16x16xf32>
    %c104 = arith.constant 104 : index
    %791 = memref.load %arg2[%c104] : memref<256xf32, #tpu.memory_space<smem>>
    %792 = vector.extract_strided_slice %646 {offsets = [0, 0, 0], sizes = [1, 16, 16], strides = [1, 1, 1]} : vector<4x16x16xf32> to vector<1x16x16xf32>
    %793 = vector.shape_cast %792 : vector<1x16x16xf32> to vector<16x16xf32>
    %794 = vector.broadcast %791 : f32 to vector<16x16xf32>
    %795 = arith.mulf %794, %793 : vector<16x16xf32>
    %796 = arith.addf %428, %795 : vector<16x16xf32>
    %c105 = arith.constant 105 : index
    %797 = memref.load %arg2[%c105] : memref<256xf32, #tpu.memory_space<smem>>
    %798 = vector.extract_strided_slice %646 {offsets = [1, 0, 0], sizes = [1, 16, 16], strides = [1, 1, 1]} : vector<4x16x16xf32> to vector<1x16x16xf32>
    %799 = vector.shape_cast %798 : vector<1x16x16xf32> to vector<16x16xf32>
    %800 = vector.broadcast %797 : f32 to vector<16x16xf32>
    %801 = arith.mulf %800, %799 : vector<16x16xf32>
    %802 = arith.addf %796, %801 : vector<16x16xf32>
    %c106 = arith.constant 106 : index
    %803 = memref.load %arg2[%c106] : memref<256xf32, #tpu.memory_space<smem>>
    %804 = vector.extract_strided_slice %646 {offsets = [2, 0, 0], sizes = [1, 16, 16], strides = [1, 1, 1]} : vector<4x16x16xf32> to vector<1x16x16xf32>
    %805 = vector.shape_cast %804 : vector<1x16x16xf32> to vector<16x16xf32>
    %806 = vector.broadcast %803 : f32 to vector<16x16xf32>
    %807 = arith.mulf %806, %805 : vector<16x16xf32>
    %808 = arith.addf %802, %807 : vector<16x16xf32>
    %c107 = arith.constant 107 : index
    %809 = memref.load %arg2[%c107] : memref<256xf32, #tpu.memory_space<smem>>
    %810 = vector.extract_strided_slice %646 {offsets = [3, 0, 0], sizes = [1, 16, 16], strides = [1, 1, 1]} : vector<4x16x16xf32> to vector<1x16x16xf32>
    %811 = vector.shape_cast %810 : vector<1x16x16xf32> to vector<16x16xf32>
    %812 = vector.broadcast %809 : f32 to vector<16x16xf32>
    %813 = arith.mulf %812, %811 : vector<16x16xf32>
    %814 = arith.addf %808, %813 : vector<16x16xf32>
    %c108 = arith.constant 108 : index
    %815 = memref.load %arg2[%c108] : memref<256xf32, #tpu.memory_space<smem>>
    %816 = vector.extract_strided_slice %646 {offsets = [0, 0, 0], sizes = [1, 16, 16], strides = [1, 1, 1]} : vector<4x16x16xf32> to vector<1x16x16xf32>
    %817 = vector.shape_cast %816 : vector<1x16x16xf32> to vector<16x16xf32>
    %818 = vector.broadcast %815 : f32 to vector<16x16xf32>
    %819 = arith.mulf %818, %817 : vector<16x16xf32>
    %820 = arith.addf %452, %819 : vector<16x16xf32>
    %c109 = arith.constant 109 : index
    %821 = memref.load %arg2[%c109] : memref<256xf32, #tpu.memory_space<smem>>
    %822 = vector.extract_strided_slice %646 {offsets = [1, 0, 0], sizes = [1, 16, 16], strides = [1, 1, 1]} : vector<4x16x16xf32> to vector<1x16x16xf32>
    %823 = vector.shape_cast %822 : vector<1x16x16xf32> to vector<16x16xf32>
    %824 = vector.broadcast %821 : f32 to vector<16x16xf32>
    %825 = arith.mulf %824, %823 : vector<16x16xf32>
    %826 = arith.addf %820, %825 : vector<16x16xf32>
    %c110 = arith.constant 110 : index
    %827 = memref.load %arg2[%c110] : memref<256xf32, #tpu.memory_space<smem>>
    %828 = vector.extract_strided_slice %646 {offsets = [2, 0, 0], sizes = [1, 16, 16], strides = [1, 1, 1]} : vector<4x16x16xf32> to vector<1x16x16xf32>
    %829 = vector.shape_cast %828 : vector<1x16x16xf32> to vector<16x16xf32>
    %830 = vector.broadcast %827 : f32 to vector<16x16xf32>
    %831 = arith.mulf %830, %829 : vector<16x16xf32>
    %832 = arith.addf %826, %831 : vector<16x16xf32>
    %c111 = arith.constant 111 : index
    %833 = memref.load %arg2[%c111] : memref<256xf32, #tpu.memory_space<smem>>
    %834 = vector.extract_strided_slice %646 {offsets = [3, 0, 0], sizes = [1, 16, 16], strides = [1, 1, 1]} : vector<4x16x16xf32> to vector<1x16x16xf32>
    %835 = vector.shape_cast %834 : vector<1x16x16xf32> to vector<16x16xf32>
    %836 = vector.broadcast %833 : f32 to vector<16x16xf32>
    %837 = arith.mulf %836, %835 : vector<16x16xf32>
    %838 = arith.addf %832, %837 : vector<16x16xf32>
    %c144 = arith.constant 144 : index
    %839 = memref.load %arg2[%c144] : memref<256xf32, #tpu.memory_space<smem>>
    %840 = vector.extract_strided_slice %646 {offsets = [0, 0, 0], sizes = [1, 16, 16], strides = [1, 1, 1]} : vector<4x16x16xf32> to vector<1x16x16xf32>
    %841 = vector.shape_cast %840 : vector<1x16x16xf32> to vector<16x16xf32>
    %842 = vector.broadcast %839 : f32 to vector<16x16xf32>
    %843 = arith.mulf %842, %841 : vector<16x16xf32>
    %844 = arith.addf %573, %843 : vector<16x16xf32>
    %c145 = arith.constant 145 : index
    %845 = memref.load %arg2[%c145] : memref<256xf32, #tpu.memory_space<smem>>
    %846 = vector.extract_strided_slice %646 {offsets = [1, 0, 0], sizes = [1, 16, 16], strides = [1, 1, 1]} : vector<4x16x16xf32> to vector<1x16x16xf32>
    %847 = vector.shape_cast %846 : vector<1x16x16xf32> to vector<16x16xf32>
    %848 = vector.broadcast %845 : f32 to vector<16x16xf32>
    %849 = arith.mulf %848, %847 : vector<16x16xf32>
    %850 = arith.addf %844, %849 : vector<16x16xf32>
    %c146 = arith.constant 146 : index
    %851 = memref.load %arg2[%c146] : memref<256xf32, #tpu.memory_space<smem>>
    %852 = vector.extract_strided_slice %646 {offsets = [2, 0, 0], sizes = [1, 16, 16], strides = [1, 1, 1]} : vector<4x16x16xf32> to vector<1x16x16xf32>
    %853 = vector.shape_cast %852 : vector<1x16x16xf32> to vector<16x16xf32>
    %854 = vector.broadcast %851 : f32 to vector<16x16xf32>
    %855 = arith.mulf %854, %853 : vector<16x16xf32>
    %856 = arith.addf %850, %855 : vector<16x16xf32>
    %c147 = arith.constant 147 : index
    %857 = memref.load %arg2[%c147] : memref<256xf32, #tpu.memory_space<smem>>
    %858 = vector.extract_strided_slice %646 {offsets = [3, 0, 0], sizes = [1, 16, 16], strides = [1, 1, 1]} : vector<4x16x16xf32> to vector<1x16x16xf32>
    %859 = vector.shape_cast %858 : vector<1x16x16xf32> to vector<16x16xf32>
    %860 = vector.broadcast %857 : f32 to vector<16x16xf32>
    %861 = arith.mulf %860, %859 : vector<16x16xf32>
    %862 = arith.addf %856, %861 : vector<16x16xf32>
    %c148 = arith.constant 148 : index
    %863 = memref.load %arg2[%c148] : memref<256xf32, #tpu.memory_space<smem>>
    %864 = vector.extract_strided_slice %646 {offsets = [0, 0, 0], sizes = [1, 16, 16], strides = [1, 1, 1]} : vector<4x16x16xf32> to vector<1x16x16xf32>
    %865 = vector.shape_cast %864 : vector<1x16x16xf32> to vector<16x16xf32>
    %866 = vector.broadcast %863 : f32 to vector<16x16xf32>
    %867 = arith.mulf %866, %865 : vector<16x16xf32>
    %868 = arith.addf %597, %867 : vector<16x16xf32>
    %c149 = arith.constant 149 : index
    %869 = memref.load %arg2[%c149] : memref<256xf32, #tpu.memory_space<smem>>
    %870 = vector.extract_strided_slice %646 {offsets = [1, 0, 0], sizes = [1, 16, 16], strides = [1, 1, 1]} : vector<4x16x16xf32> to vector<1x16x16xf32>
    %871 = vector.shape_cast %870 : vector<1x16x16xf32> to vector<16x16xf32>
    %872 = vector.broadcast %869 : f32 to vector<16x16xf32>
    %873 = arith.mulf %872, %871 : vector<16x16xf32>
    %874 = arith.addf %868, %873 : vector<16x16xf32>
    %c150 = arith.constant 150 : index
    %875 = memref.load %arg2[%c150] : memref<256xf32, #tpu.memory_space<smem>>
    %876 = vector.extract_strided_slice %646 {offsets = [2, 0, 0], sizes = [1, 16, 16], strides = [1, 1, 1]} : vector<4x16x16xf32> to vector<1x16x16xf32>
    %877 = vector.shape_cast %876 : vector<1x16x16xf32> to vector<16x16xf32>
    %878 = vector.broadcast %875 : f32 to vector<16x16xf32>
    %879 = arith.mulf %878, %877 : vector<16x16xf32>
    %880 = arith.addf %874, %879 : vector<16x16xf32>
    %c151 = arith.constant 151 : index
    %881 = memref.load %arg2[%c151] : memref<256xf32, #tpu.memory_space<smem>>
    %882 = vector.extract_strided_slice %646 {offsets = [3, 0, 0], sizes = [1, 16, 16], strides = [1, 1, 1]} : vector<4x16x16xf32> to vector<1x16x16xf32>
    %883 = vector.shape_cast %882 : vector<1x16x16xf32> to vector<16x16xf32>
    %884 = vector.broadcast %881 : f32 to vector<16x16xf32>
    %885 = arith.mulf %884, %883 : vector<16x16xf32>
    %886 = arith.addf %880, %885 : vector<16x16xf32>
    %c152 = arith.constant 152 : index
    %887 = memref.load %arg2[%c152] : memref<256xf32, #tpu.memory_space<smem>>
    %888 = vector.extract_strided_slice %646 {offsets = [0, 0, 0], sizes = [1, 16, 16], strides = [1, 1, 1]} : vector<4x16x16xf32> to vector<1x16x16xf32>
    %889 = vector.shape_cast %888 : vector<1x16x16xf32> to vector<16x16xf32>
    %890 = vector.broadcast %887 : f32 to vector<16x16xf32>
    %891 = arith.mulf %890, %889 : vector<16x16xf32>
    %892 = arith.addf %621, %891 : vector<16x16xf32>
    %c153 = arith.constant 153 : index
    %893 = memref.load %arg2[%c153] : memref<256xf32, #tpu.memory_space<smem>>
    %894 = vector.extract_strided_slice %646 {offsets = [1, 0, 0], sizes = [1, 16, 16], strides = [1, 1, 1]} : vector<4x16x16xf32> to vector<1x16x16xf32>
    %895 = vector.shape_cast %894 : vector<1x16x16xf32> to vector<16x16xf32>
    %896 = vector.broadcast %893 : f32 to vector<16x16xf32>
    %897 = arith.mulf %896, %895 : vector<16x16xf32>
    %898 = arith.addf %892, %897 : vector<16x16xf32>
    %c154 = arith.constant 154 : index
    %899 = memref.load %arg2[%c154] : memref<256xf32, #tpu.memory_space<smem>>
    %900 = vector.extract_strided_slice %646 {offsets = [2, 0, 0], sizes = [1, 16, 16], strides = [1, 1, 1]} : vector<4x16x16xf32> to vector<1x16x16xf32>
    %901 = vector.shape_cast %900 : vector<1x16x16xf32> to vector<16x16xf32>
    %902 = vector.broadcast %899 : f32 to vector<16x16xf32>
    %903 = arith.mulf %902, %901 : vector<16x16xf32>
    %904 = arith.addf %898, %903 : vector<16x16xf32>
    %c155 = arith.constant 155 : index
    %905 = memref.load %arg2[%c155] : memref<256xf32, #tpu.memory_space<smem>>
    %906 = vector.extract_strided_slice %646 {offsets = [3, 0, 0], sizes = [1, 16, 16], strides = [1, 1, 1]} : vector<4x16x16xf32> to vector<1x16x16xf32>
    %907 = vector.shape_cast %906 : vector<1x16x16xf32> to vector<16x16xf32>
    %908 = vector.broadcast %905 : f32 to vector<16x16xf32>
    %909 = arith.mulf %908, %907 : vector<16x16xf32>
    %910 = arith.addf %904, %909 : vector<16x16xf32>
    %c156 = arith.constant 156 : index
    %911 = memref.load %arg2[%c156] : memref<256xf32, #tpu.memory_space<smem>>
    %912 = vector.extract_strided_slice %646 {offsets = [0, 0, 0], sizes = [1, 16, 16], strides = [1, 1, 1]} : vector<4x16x16xf32> to vector<1x16x16xf32>
    %913 = vector.shape_cast %912 : vector<1x16x16xf32> to vector<16x16xf32>
    %914 = vector.broadcast %911 : f32 to vector<16x16xf32>
    %915 = arith.mulf %914, %913 : vector<16x16xf32>
    %916 = arith.addf %645, %915 : vector<16x16xf32>
    %c157 = arith.constant 157 : index
    %917 = memref.load %arg2[%c157] : memref<256xf32, #tpu.memory_space<smem>>
    %918 = vector.extract_strided_slice %646 {offsets = [1, 0, 0], sizes = [1, 16, 16], strides = [1, 1, 1]} : vector<4x16x16xf32> to vector<1x16x16xf32>
    %919 = vector.shape_cast %918 : vector<1x16x16xf32> to vector<16x16xf32>
    %920 = vector.broadcast %917 : f32 to vector<16x16xf32>
    %921 = arith.mulf %920, %919 : vector<16x16xf32>
    %922 = arith.addf %916, %921 : vector<16x16xf32>
    %c158 = arith.constant 158 : index
    %923 = memref.load %arg2[%c158] : memref<256xf32, #tpu.memory_space<smem>>
    %924 = vector.extract_strided_slice %646 {offsets = [2, 0, 0], sizes = [1, 16, 16], strides = [1, 1, 1]} : vector<4x16x16xf32> to vector<1x16x16xf32>
    %925 = vector.shape_cast %924 : vector<1x16x16xf32> to vector<16x16xf32>
    %926 = vector.broadcast %923 : f32 to vector<16x16xf32>
    %927 = arith.mulf %926, %925 : vector<16x16xf32>
    %928 = arith.addf %922, %927 : vector<16x16xf32>
    %c159 = arith.constant 159 : index
    %929 = memref.load %arg2[%c159] : memref<256xf32, #tpu.memory_space<smem>>
    %930 = vector.extract_strided_slice %646 {offsets = [3, 0, 0], sizes = [1, 16, 16], strides = [1, 1, 1]} : vector<4x16x16xf32> to vector<1x16x16xf32>
    %931 = vector.shape_cast %930 : vector<1x16x16xf32> to vector<16x16xf32>
    %932 = vector.broadcast %929 : f32 to vector<16x16xf32>
    %933 = arith.mulf %932, %931 : vector<16x16xf32>
    %934 = arith.addf %928, %933 : vector<16x16xf32>
    %c192 = arith.constant 192 : index
    %935 = memref.load %arg2[%c192] : memref<256xf32, #tpu.memory_space<smem>>
    %936 = vector.extract_strided_slice %646 {offsets = [0, 0, 0], sizes = [1, 16, 16], strides = [1, 1, 1]} : vector<4x16x16xf32> to vector<1x16x16xf32>
    %937 = vector.shape_cast %936 : vector<1x16x16xf32> to vector<16x16xf32>
    %938 = vector.broadcast %935 : f32 to vector<16x16xf32>
    %939 = arith.mulf %938, %937 : vector<16x16xf32>
    %940 = arith.addf %53, %939 : vector<16x16xf32>
    %c193 = arith.constant 193 : index
    %941 = memref.load %arg2[%c193] : memref<256xf32, #tpu.memory_space<smem>>
    %942 = vector.extract_strided_slice %646 {offsets = [1, 0, 0], sizes = [1, 16, 16], strides = [1, 1, 1]} : vector<4x16x16xf32> to vector<1x16x16xf32>
    %943 = vector.shape_cast %942 : vector<1x16x16xf32> to vector<16x16xf32>
    %944 = vector.broadcast %941 : f32 to vector<16x16xf32>
    %945 = arith.mulf %944, %943 : vector<16x16xf32>
    %946 = arith.addf %940, %945 : vector<16x16xf32>
    %c194 = arith.constant 194 : index
    %947 = memref.load %arg2[%c194] : memref<256xf32, #tpu.memory_space<smem>>
    %948 = vector.extract_strided_slice %646 {offsets = [2, 0, 0], sizes = [1, 16, 16], strides = [1, 1, 1]} : vector<4x16x16xf32> to vector<1x16x16xf32>
    %949 = vector.shape_cast %948 : vector<1x16x16xf32> to vector<16x16xf32>
    %950 = vector.broadcast %947 : f32 to vector<16x16xf32>
    %951 = arith.mulf %950, %949 : vector<16x16xf32>
    %952 = arith.addf %946, %951 : vector<16x16xf32>
    %c195 = arith.constant 195 : index
    %953 = memref.load %arg2[%c195] : memref<256xf32, #tpu.memory_space<smem>>
    %954 = vector.extract_strided_slice %646 {offsets = [3, 0, 0], sizes = [1, 16, 16], strides = [1, 1, 1]} : vector<4x16x16xf32> to vector<1x16x16xf32>
    %955 = vector.shape_cast %954 : vector<1x16x16xf32> to vector<16x16xf32>
    %956 = vector.broadcast %953 : f32 to vector<16x16xf32>
    %957 = arith.mulf %956, %955 : vector<16x16xf32>
    %958 = arith.addf %952, %957 : vector<16x16xf32>
    %c196 = arith.constant 196 : index
    %959 = memref.load %arg2[%c196] : memref<256xf32, #tpu.memory_space<smem>>
    %960 = vector.extract_strided_slice %646 {offsets = [0, 0, 0], sizes = [1, 16, 16], strides = [1, 1, 1]} : vector<4x16x16xf32> to vector<1x16x16xf32>
    %961 = vector.shape_cast %960 : vector<1x16x16xf32> to vector<16x16xf32>
    %962 = vector.broadcast %959 : f32 to vector<16x16xf32>
    %963 = arith.mulf %962, %961 : vector<16x16xf32>
    %964 = arith.addf %57, %963 : vector<16x16xf32>
    %c197 = arith.constant 197 : index
    %965 = memref.load %arg2[%c197] : memref<256xf32, #tpu.memory_space<smem>>
    %966 = vector.extract_strided_slice %646 {offsets = [1, 0, 0], sizes = [1, 16, 16], strides = [1, 1, 1]} : vector<4x16x16xf32> to vector<1x16x16xf32>
    %967 = vector.shape_cast %966 : vector<1x16x16xf32> to vector<16x16xf32>
    %968 = vector.broadcast %965 : f32 to vector<16x16xf32>
    %969 = arith.mulf %968, %967 : vector<16x16xf32>
    %970 = arith.addf %964, %969 : vector<16x16xf32>
    %c198 = arith.constant 198 : index
    %971 = memref.load %arg2[%c198] : memref<256xf32, #tpu.memory_space<smem>>
    %972 = vector.extract_strided_slice %646 {offsets = [2, 0, 0], sizes = [1, 16, 16], strides = [1, 1, 1]} : vector<4x16x16xf32> to vector<1x16x16xf32>
    %973 = vector.shape_cast %972 : vector<1x16x16xf32> to vector<16x16xf32>
    %974 = vector.broadcast %971 : f32 to vector<16x16xf32>
    %975 = arith.mulf %974, %973 : vector<16x16xf32>
    %976 = arith.addf %970, %975 : vector<16x16xf32>
    %c199 = arith.constant 199 : index
    %977 = memref.load %arg2[%c199] : memref<256xf32, #tpu.memory_space<smem>>
    %978 = vector.extract_strided_slice %646 {offsets = [3, 0, 0], sizes = [1, 16, 16], strides = [1, 1, 1]} : vector<4x16x16xf32> to vector<1x16x16xf32>
    %979 = vector.shape_cast %978 : vector<1x16x16xf32> to vector<16x16xf32>
    %980 = vector.broadcast %977 : f32 to vector<16x16xf32>
    %981 = arith.mulf %980, %979 : vector<16x16xf32>
    %982 = arith.addf %976, %981 : vector<16x16xf32>
    %c200 = arith.constant 200 : index
    %983 = memref.load %arg2[%c200] : memref<256xf32, #tpu.memory_space<smem>>
    %984 = vector.extract_strided_slice %646 {offsets = [0, 0, 0], sizes = [1, 16, 16], strides = [1, 1, 1]} : vector<4x16x16xf32> to vector<1x16x16xf32>
    %985 = vector.shape_cast %984 : vector<1x16x16xf32> to vector<16x16xf32>
    %986 = vector.broadcast %983 : f32 to vector<16x16xf32>
    %987 = arith.mulf %986, %985 : vector<16x16xf32>
    %988 = arith.addf %61, %987 : vector<16x16xf32>
    %c201 = arith.constant 201 : index
    %989 = memref.load %arg2[%c201] : memref<256xf32, #tpu.memory_space<smem>>
    %990 = vector.extract_strided_slice %646 {offsets = [1, 0, 0], sizes = [1, 16, 16], strides = [1, 1, 1]} : vector<4x16x16xf32> to vector<1x16x16xf32>
    %991 = vector.shape_cast %990 : vector<1x16x16xf32> to vector<16x16xf32>
    %992 = vector.broadcast %989 : f32 to vector<16x16xf32>
    %993 = arith.mulf %992, %991 : vector<16x16xf32>
    %994 = arith.addf %988, %993 : vector<16x16xf32>
    %c202 = arith.constant 202 : index
    %995 = memref.load %arg2[%c202] : memref<256xf32, #tpu.memory_space<smem>>
    %996 = vector.extract_strided_slice %646 {offsets = [2, 0, 0], sizes = [1, 16, 16], strides = [1, 1, 1]} : vector<4x16x16xf32> to vector<1x16x16xf32>
    %997 = vector.shape_cast %996 : vector<1x16x16xf32> to vector<16x16xf32>
    %998 = vector.broadcast %995 : f32 to vector<16x16xf32>
    %999 = arith.mulf %998, %997 : vector<16x16xf32>
    %1000 = arith.addf %994, %999 : vector<16x16xf32>
    %c203 = arith.constant 203 : index
    %1001 = memref.load %arg2[%c203] : memref<256xf32, #tpu.memory_space<smem>>
    %1002 = vector.extract_strided_slice %646 {offsets = [3, 0, 0], sizes = [1, 16, 16], strides = [1, 1, 1]} : vector<4x16x16xf32> to vector<1x16x16xf32>
    %1003 = vector.shape_cast %1002 : vector<1x16x16xf32> to vector<16x16xf32>
    %1004 = vector.broadcast %1001 : f32 to vector<16x16xf32>
    %1005 = arith.mulf %1004, %1003 : vector<16x16xf32>
    %1006 = arith.addf %1000, %1005 : vector<16x16xf32>
    %c204 = arith.constant 204 : index
    %1007 = memref.load %arg2[%c204] : memref<256xf32, #tpu.memory_space<smem>>
    %1008 = vector.extract_strided_slice %646 {offsets = [0, 0, 0], sizes = [1, 16, 16], strides = [1, 1, 1]} : vector<4x16x16xf32> to vector<1x16x16xf32>
    %1009 = vector.shape_cast %1008 : vector<1x16x16xf32> to vector<16x16xf32>
    %1010 = vector.broadcast %1007 : f32 to vector<16x16xf32>
    %1011 = arith.mulf %1010, %1009 : vector<16x16xf32>
    %1012 = arith.addf %65, %1011 : vector<16x16xf32>
    %c205 = arith.constant 205 : index
    %1013 = memref.load %arg2[%c205] : memref<256xf32, #tpu.memory_space<smem>>
    %1014 = vector.extract_strided_slice %646 {offsets = [1, 0, 0], sizes = [1, 16, 16], strides = [1, 1, 1]} : vector<4x16x16xf32> to vector<1x16x16xf32>
    %1015 = vector.shape_cast %1014 : vector<1x16x16xf32> to vector<16x16xf32>
    %1016 = vector.broadcast %1013 : f32 to vector<16x16xf32>
    %1017 = arith.mulf %1016, %1015 : vector<16x16xf32>
    %1018 = arith.addf %1012, %1017 : vector<16x16xf32>
    %c206 = arith.constant 206 : index
    %1019 = memref.load %arg2[%c206] : memref<256xf32, #tpu.memory_space<smem>>
    %1020 = vector.extract_strided_slice %646 {offsets = [2, 0, 0], sizes = [1, 16, 16], strides = [1, 1, 1]} : vector<4x16x16xf32> to vector<1x16x16xf32>
    %1021 = vector.shape_cast %1020 : vector<1x16x16xf32> to vector<16x16xf32>
    %1022 = vector.broadcast %1019 : f32 to vector<16x16xf32>
    %1023 = arith.mulf %1022, %1021 : vector<16x16xf32>
    %1024 = arith.addf %1018, %1023 : vector<16x16xf32>
    %c207 = arith.constant 207 : index
    %1025 = memref.load %arg2[%c207] : memref<256xf32, #tpu.memory_space<smem>>
    %1026 = vector.extract_strided_slice %646 {offsets = [3, 0, 0], sizes = [1, 16, 16], strides = [1, 1, 1]} : vector<4x16x16xf32> to vector<1x16x16xf32>
    %1027 = vector.shape_cast %1026 : vector<1x16x16xf32> to vector<16x16xf32>
    %1028 = vector.broadcast %1025 : f32 to vector<16x16xf32>
    %1029 = arith.mulf %1028, %1027 : vector<16x16xf32>
    %1030 = arith.addf %1024, %1029 : vector<16x16xf32>
    %1031 = vector.extract_strided_slice %1 {offsets = [0, 1, 2], sizes = [4, 16, 16], strides = [1, 1, 1]} : vector<4x18x18xf32> to vector<4x16x16xf32>
    %c112 = arith.constant 112 : index
    %1032 = memref.load %arg2[%c112] : memref<256xf32, #tpu.memory_space<smem>>
    %1033 = vector.extract_strided_slice %1031 {offsets = [0, 0, 0], sizes = [1, 16, 16], strides = [1, 1, 1]} : vector<4x16x16xf32> to vector<1x16x16xf32>
    %1034 = vector.shape_cast %1033 : vector<1x16x16xf32> to vector<16x16xf32>
    %1035 = vector.broadcast %1032 : f32 to vector<16x16xf32>
    %1036 = arith.mulf %1035, %1034 : vector<16x16xf32>
    %1037 = arith.addf %766, %1036 : vector<16x16xf32>
    %c113 = arith.constant 113 : index
    %1038 = memref.load %arg2[%c113] : memref<256xf32, #tpu.memory_space<smem>>
    %1039 = vector.extract_strided_slice %1031 {offsets = [1, 0, 0], sizes = [1, 16, 16], strides = [1, 1, 1]} : vector<4x16x16xf32> to vector<1x16x16xf32>
    %1040 = vector.shape_cast %1039 : vector<1x16x16xf32> to vector<16x16xf32>
    %1041 = vector.broadcast %1038 : f32 to vector<16x16xf32>
    %1042 = arith.mulf %1041, %1040 : vector<16x16xf32>
    %1043 = arith.addf %1037, %1042 : vector<16x16xf32>
    %c114 = arith.constant 114 : index
    %1044 = memref.load %arg2[%c114] : memref<256xf32, #tpu.memory_space<smem>>
    %1045 = vector.extract_strided_slice %1031 {offsets = [2, 0, 0], sizes = [1, 16, 16], strides = [1, 1, 1]} : vector<4x16x16xf32> to vector<1x16x16xf32>
    %1046 = vector.shape_cast %1045 : vector<1x16x16xf32> to vector<16x16xf32>
    %1047 = vector.broadcast %1044 : f32 to vector<16x16xf32>
    %1048 = arith.mulf %1047, %1046 : vector<16x16xf32>
    %1049 = arith.addf %1043, %1048 : vector<16x16xf32>
    %c115 = arith.constant 115 : index
    %1050 = memref.load %arg2[%c115] : memref<256xf32, #tpu.memory_space<smem>>
    %1051 = vector.extract_strided_slice %1031 {offsets = [3, 0, 0], sizes = [1, 16, 16], strides = [1, 1, 1]} : vector<4x16x16xf32> to vector<1x16x16xf32>
    %1052 = vector.shape_cast %1051 : vector<1x16x16xf32> to vector<16x16xf32>
    %1053 = vector.broadcast %1050 : f32 to vector<16x16xf32>
    %1054 = arith.mulf %1053, %1052 : vector<16x16xf32>
    %1055 = arith.addf %1049, %1054 : vector<16x16xf32>
    %c116 = arith.constant 116 : index
    %1056 = memref.load %arg2[%c116] : memref<256xf32, #tpu.memory_space<smem>>
    %1057 = vector.extract_strided_slice %1031 {offsets = [0, 0, 0], sizes = [1, 16, 16], strides = [1, 1, 1]} : vector<4x16x16xf32> to vector<1x16x16xf32>
    %1058 = vector.shape_cast %1057 : vector<1x16x16xf32> to vector<16x16xf32>
    %1059 = vector.broadcast %1056 : f32 to vector<16x16xf32>
    %1060 = arith.mulf %1059, %1058 : vector<16x16xf32>
    %1061 = arith.addf %790, %1060 : vector<16x16xf32>
    %c117 = arith.constant 117 : index
    %1062 = memref.load %arg2[%c117] : memref<256xf32, #tpu.memory_space<smem>>
    %1063 = vector.extract_strided_slice %1031 {offsets = [1, 0, 0], sizes = [1, 16, 16], strides = [1, 1, 1]} : vector<4x16x16xf32> to vector<1x16x16xf32>
    %1064 = vector.shape_cast %1063 : vector<1x16x16xf32> to vector<16x16xf32>
    %1065 = vector.broadcast %1062 : f32 to vector<16x16xf32>
    %1066 = arith.mulf %1065, %1064 : vector<16x16xf32>
    %1067 = arith.addf %1061, %1066 : vector<16x16xf32>
    %c118 = arith.constant 118 : index
    %1068 = memref.load %arg2[%c118] : memref<256xf32, #tpu.memory_space<smem>>
    %1069 = vector.extract_strided_slice %1031 {offsets = [2, 0, 0], sizes = [1, 16, 16], strides = [1, 1, 1]} : vector<4x16x16xf32> to vector<1x16x16xf32>
    %1070 = vector.shape_cast %1069 : vector<1x16x16xf32> to vector<16x16xf32>
    %1071 = vector.broadcast %1068 : f32 to vector<16x16xf32>
    %1072 = arith.mulf %1071, %1070 : vector<16x16xf32>
    %1073 = arith.addf %1067, %1072 : vector<16x16xf32>
    %c119 = arith.constant 119 : index
    %1074 = memref.load %arg2[%c119] : memref<256xf32, #tpu.memory_space<smem>>
    %1075 = vector.extract_strided_slice %1031 {offsets = [3, 0, 0], sizes = [1, 16, 16], strides = [1, 1, 1]} : vector<4x16x16xf32> to vector<1x16x16xf32>
    %1076 = vector.shape_cast %1075 : vector<1x16x16xf32> to vector<16x16xf32>
    %1077 = vector.broadcast %1074 : f32 to vector<16x16xf32>
    %1078 = arith.mulf %1077, %1076 : vector<16x16xf32>
    %1079 = arith.addf %1073, %1078 : vector<16x16xf32>
    %c120 = arith.constant 120 : index
    %1080 = memref.load %arg2[%c120] : memref<256xf32, #tpu.memory_space<smem>>
    %1081 = vector.extract_strided_slice %1031 {offsets = [0, 0, 0], sizes = [1, 16, 16], strides = [1, 1, 1]} : vector<4x16x16xf32> to vector<1x16x16xf32>
    %1082 = vector.shape_cast %1081 : vector<1x16x16xf32> to vector<16x16xf32>
    %1083 = vector.broadcast %1080 : f32 to vector<16x16xf32>
    %1084 = arith.mulf %1083, %1082 : vector<16x16xf32>
    %1085 = arith.addf %814, %1084 : vector<16x16xf32>
    %c121 = arith.constant 121 : index
    %1086 = memref.load %arg2[%c121] : memref<256xf32, #tpu.memory_space<smem>>
    %1087 = vector.extract_strided_slice %1031 {offsets = [1, 0, 0], sizes = [1, 16, 16], strides = [1, 1, 1]} : vector<4x16x16xf32> to vector<1x16x16xf32>
    %1088 = vector.shape_cast %1087 : vector<1x16x16xf32> to vector<16x16xf32>
    %1089 = vector.broadcast %1086 : f32 to vector<16x16xf32>
    %1090 = arith.mulf %1089, %1088 : vector<16x16xf32>
    %1091 = arith.addf %1085, %1090 : vector<16x16xf32>
    %c122 = arith.constant 122 : index
    %1092 = memref.load %arg2[%c122] : memref<256xf32, #tpu.memory_space<smem>>
    %1093 = vector.extract_strided_slice %1031 {offsets = [2, 0, 0], sizes = [1, 16, 16], strides = [1, 1, 1]} : vector<4x16x16xf32> to vector<1x16x16xf32>
    %1094 = vector.shape_cast %1093 : vector<1x16x16xf32> to vector<16x16xf32>
    %1095 = vector.broadcast %1092 : f32 to vector<16x16xf32>
    %1096 = arith.mulf %1095, %1094 : vector<16x16xf32>
    %1097 = arith.addf %1091, %1096 : vector<16x16xf32>
    %c123 = arith.constant 123 : index
    %1098 = memref.load %arg2[%c123] : memref<256xf32, #tpu.memory_space<smem>>
    %1099 = vector.extract_strided_slice %1031 {offsets = [3, 0, 0], sizes = [1, 16, 16], strides = [1, 1, 1]} : vector<4x16x16xf32> to vector<1x16x16xf32>
    %1100 = vector.shape_cast %1099 : vector<1x16x16xf32> to vector<16x16xf32>
    %1101 = vector.broadcast %1098 : f32 to vector<16x16xf32>
    %1102 = arith.mulf %1101, %1100 : vector<16x16xf32>
    %1103 = arith.addf %1097, %1102 : vector<16x16xf32>
    %c124 = arith.constant 124 : index
    %1104 = memref.load %arg2[%c124] : memref<256xf32, #tpu.memory_space<smem>>
    %1105 = vector.extract_strided_slice %1031 {offsets = [0, 0, 0], sizes = [1, 16, 16], strides = [1, 1, 1]} : vector<4x16x16xf32> to vector<1x16x16xf32>
    %1106 = vector.shape_cast %1105 : vector<1x16x16xf32> to vector<16x16xf32>
    %1107 = vector.broadcast %1104 : f32 to vector<16x16xf32>
    %1108 = arith.mulf %1107, %1106 : vector<16x16xf32>
    %1109 = arith.addf %838, %1108 : vector<16x16xf32>
    %c125 = arith.constant 125 : index
    %1110 = memref.load %arg2[%c125] : memref<256xf32, #tpu.memory_space<smem>>
    %1111 = vector.extract_strided_slice %1031 {offsets = [1, 0, 0], sizes = [1, 16, 16], strides = [1, 1, 1]} : vector<4x16x16xf32> to vector<1x16x16xf32>
    %1112 = vector.shape_cast %1111 : vector<1x16x16xf32> to vector<16x16xf32>
    %1113 = vector.broadcast %1110 : f32 to vector<16x16xf32>
    %1114 = arith.mulf %1113, %1112 : vector<16x16xf32>
    %1115 = arith.addf %1109, %1114 : vector<16x16xf32>
    %c126 = arith.constant 126 : index
    %1116 = memref.load %arg2[%c126] : memref<256xf32, #tpu.memory_space<smem>>
    %1117 = vector.extract_strided_slice %1031 {offsets = [2, 0, 0], sizes = [1, 16, 16], strides = [1, 1, 1]} : vector<4x16x16xf32> to vector<1x16x16xf32>
    %1118 = vector.shape_cast %1117 : vector<1x16x16xf32> to vector<16x16xf32>
    %1119 = vector.broadcast %1116 : f32 to vector<16x16xf32>
    %1120 = arith.mulf %1119, %1118 : vector<16x16xf32>
    %1121 = arith.addf %1115, %1120 : vector<16x16xf32>
    %c127 = arith.constant 127 : index
    %1122 = memref.load %arg2[%c127] : memref<256xf32, #tpu.memory_space<smem>>
    %1123 = vector.extract_strided_slice %1031 {offsets = [3, 0, 0], sizes = [1, 16, 16], strides = [1, 1, 1]} : vector<4x16x16xf32> to vector<1x16x16xf32>
    %1124 = vector.shape_cast %1123 : vector<1x16x16xf32> to vector<16x16xf32>
    %1125 = vector.broadcast %1122 : f32 to vector<16x16xf32>
    %1126 = arith.mulf %1125, %1124 : vector<16x16xf32>
    %1127 = arith.addf %1121, %1126 : vector<16x16xf32>
    %c208 = arith.constant 208 : index
    %1128 = memref.load %arg2[%c208] : memref<256xf32, #tpu.memory_space<smem>>
    %1129 = vector.extract_strided_slice %1031 {offsets = [0, 0, 0], sizes = [1, 16, 16], strides = [1, 1, 1]} : vector<4x16x16xf32> to vector<1x16x16xf32>
    %1130 = vector.shape_cast %1129 : vector<1x16x16xf32> to vector<16x16xf32>
    %1131 = vector.broadcast %1128 : f32 to vector<16x16xf32>
    %1132 = arith.mulf %1131, %1130 : vector<16x16xf32>
    %1133 = arith.addf %958, %1132 : vector<16x16xf32>
    %c209 = arith.constant 209 : index
    %1134 = memref.load %arg2[%c209] : memref<256xf32, #tpu.memory_space<smem>>
    %1135 = vector.extract_strided_slice %1031 {offsets = [1, 0, 0], sizes = [1, 16, 16], strides = [1, 1, 1]} : vector<4x16x16xf32> to vector<1x16x16xf32>
    %1136 = vector.shape_cast %1135 : vector<1x16x16xf32> to vector<16x16xf32>
    %1137 = vector.broadcast %1134 : f32 to vector<16x16xf32>
    %1138 = arith.mulf %1137, %1136 : vector<16x16xf32>
    %1139 = arith.addf %1133, %1138 : vector<16x16xf32>
    %c210 = arith.constant 210 : index
    %1140 = memref.load %arg2[%c210] : memref<256xf32, #tpu.memory_space<smem>>
    %1141 = vector.extract_strided_slice %1031 {offsets = [2, 0, 0], sizes = [1, 16, 16], strides = [1, 1, 1]} : vector<4x16x16xf32> to vector<1x16x16xf32>
    %1142 = vector.shape_cast %1141 : vector<1x16x16xf32> to vector<16x16xf32>
    %1143 = vector.broadcast %1140 : f32 to vector<16x16xf32>
    %1144 = arith.mulf %1143, %1142 : vector<16x16xf32>
    %1145 = arith.addf %1139, %1144 : vector<16x16xf32>
    %c211 = arith.constant 211 : index
    %1146 = memref.load %arg2[%c211] : memref<256xf32, #tpu.memory_space<smem>>
    %1147 = vector.extract_strided_slice %1031 {offsets = [3, 0, 0], sizes = [1, 16, 16], strides = [1, 1, 1]} : vector<4x16x16xf32> to vector<1x16x16xf32>
    %1148 = vector.shape_cast %1147 : vector<1x16x16xf32> to vector<16x16xf32>
    %1149 = vector.broadcast %1146 : f32 to vector<16x16xf32>
    %1150 = arith.mulf %1149, %1148 : vector<16x16xf32>
    %1151 = arith.addf %1145, %1150 : vector<16x16xf32>
    %c212 = arith.constant 212 : index
    %1152 = memref.load %arg2[%c212] : memref<256xf32, #tpu.memory_space<smem>>
    %1153 = vector.extract_strided_slice %1031 {offsets = [0, 0, 0], sizes = [1, 16, 16], strides = [1, 1, 1]} : vector<4x16x16xf32> to vector<1x16x16xf32>
    %1154 = vector.shape_cast %1153 : vector<1x16x16xf32> to vector<16x16xf32>
    %1155 = vector.broadcast %1152 : f32 to vector<16x16xf32>
    %1156 = arith.mulf %1155, %1154 : vector<16x16xf32>
    %1157 = arith.addf %982, %1156 : vector<16x16xf32>
    %c213 = arith.constant 213 : index
    %1158 = memref.load %arg2[%c213] : memref<256xf32, #tpu.memory_space<smem>>
    %1159 = vector.extract_strided_slice %1031 {offsets = [1, 0, 0], sizes = [1, 16, 16], strides = [1, 1, 1]} : vector<4x16x16xf32> to vector<1x16x16xf32>
    %1160 = vector.shape_cast %1159 : vector<1x16x16xf32> to vector<16x16xf32>
    %1161 = vector.broadcast %1158 : f32 to vector<16x16xf32>
    %1162 = arith.mulf %1161, %1160 : vector<16x16xf32>
    %1163 = arith.addf %1157, %1162 : vector<16x16xf32>
    %c214 = arith.constant 214 : index
    %1164 = memref.load %arg2[%c214] : memref<256xf32, #tpu.memory_space<smem>>
    %1165 = vector.extract_strided_slice %1031 {offsets = [2, 0, 0], sizes = [1, 16, 16], strides = [1, 1, 1]} : vector<4x16x16xf32> to vector<1x16x16xf32>
    %1166 = vector.shape_cast %1165 : vector<1x16x16xf32> to vector<16x16xf32>
    %1167 = vector.broadcast %1164 : f32 to vector<16x16xf32>
    %1168 = arith.mulf %1167, %1166 : vector<16x16xf32>
    %1169 = arith.addf %1163, %1168 : vector<16x16xf32>
    %c215 = arith.constant 215 : index
    %1170 = memref.load %arg2[%c215] : memref<256xf32, #tpu.memory_space<smem>>
    %1171 = vector.extract_strided_slice %1031 {offsets = [3, 0, 0], sizes = [1, 16, 16], strides = [1, 1, 1]} : vector<4x16x16xf32> to vector<1x16x16xf32>
    %1172 = vector.shape_cast %1171 : vector<1x16x16xf32> to vector<16x16xf32>
    %1173 = vector.broadcast %1170 : f32 to vector<16x16xf32>
    %1174 = arith.mulf %1173, %1172 : vector<16x16xf32>
    %1175 = arith.addf %1169, %1174 : vector<16x16xf32>
    %c216 = arith.constant 216 : index
    %1176 = memref.load %arg2[%c216] : memref<256xf32, #tpu.memory_space<smem>>
    %1177 = vector.extract_strided_slice %1031 {offsets = [0, 0, 0], sizes = [1, 16, 16], strides = [1, 1, 1]} : vector<4x16x16xf32> to vector<1x16x16xf32>
    %1178 = vector.shape_cast %1177 : vector<1x16x16xf32> to vector<16x16xf32>
    %1179 = vector.broadcast %1176 : f32 to vector<16x16xf32>
    %1180 = arith.mulf %1179, %1178 : vector<16x16xf32>
    %1181 = arith.addf %1006, %1180 : vector<16x16xf32>
    %c217 = arith.constant 217 : index
    %1182 = memref.load %arg2[%c217] : memref<256xf32, #tpu.memory_space<smem>>
    %1183 = vector.extract_strided_slice %1031 {offsets = [1, 0, 0], sizes = [1, 16, 16], strides = [1, 1, 1]} : vector<4x16x16xf32> to vector<1x16x16xf32>
    %1184 = vector.shape_cast %1183 : vector<1x16x16xf32> to vector<16x16xf32>
    %1185 = vector.broadcast %1182 : f32 to vector<16x16xf32>
    %1186 = arith.mulf %1185, %1184 : vector<16x16xf32>
    %1187 = arith.addf %1181, %1186 : vector<16x16xf32>
    %c218 = arith.constant 218 : index
    %1188 = memref.load %arg2[%c218] : memref<256xf32, #tpu.memory_space<smem>>
    %1189 = vector.extract_strided_slice %1031 {offsets = [2, 0, 0], sizes = [1, 16, 16], strides = [1, 1, 1]} : vector<4x16x16xf32> to vector<1x16x16xf32>
    %1190 = vector.shape_cast %1189 : vector<1x16x16xf32> to vector<16x16xf32>
    %1191 = vector.broadcast %1188 : f32 to vector<16x16xf32>
    %1192 = arith.mulf %1191, %1190 : vector<16x16xf32>
    %1193 = arith.addf %1187, %1192 : vector<16x16xf32>
    %c219 = arith.constant 219 : index
    %1194 = memref.load %arg2[%c219] : memref<256xf32, #tpu.memory_space<smem>>
    %1195 = vector.extract_strided_slice %1031 {offsets = [3, 0, 0], sizes = [1, 16, 16], strides = [1, 1, 1]} : vector<4x16x16xf32> to vector<1x16x16xf32>
    %1196 = vector.shape_cast %1195 : vector<1x16x16xf32> to vector<16x16xf32>
    %1197 = vector.broadcast %1194 : f32 to vector<16x16xf32>
    %1198 = arith.mulf %1197, %1196 : vector<16x16xf32>
    %1199 = arith.addf %1193, %1198 : vector<16x16xf32>
    %c220 = arith.constant 220 : index
    %1200 = memref.load %arg2[%c220] : memref<256xf32, #tpu.memory_space<smem>>
    %1201 = vector.extract_strided_slice %1031 {offsets = [0, 0, 0], sizes = [1, 16, 16], strides = [1, 1, 1]} : vector<4x16x16xf32> to vector<1x16x16xf32>
    %1202 = vector.shape_cast %1201 : vector<1x16x16xf32> to vector<16x16xf32>
    %1203 = vector.broadcast %1200 : f32 to vector<16x16xf32>
    %1204 = arith.mulf %1203, %1202 : vector<16x16xf32>
    %1205 = arith.addf %1030, %1204 : vector<16x16xf32>
    %c221 = arith.constant 221 : index
    %1206 = memref.load %arg2[%c221] : memref<256xf32, #tpu.memory_space<smem>>
    %1207 = vector.extract_strided_slice %1031 {offsets = [1, 0, 0], sizes = [1, 16, 16], strides = [1, 1, 1]} : vector<4x16x16xf32> to vector<1x16x16xf32>
    %1208 = vector.shape_cast %1207 : vector<1x16x16xf32> to vector<16x16xf32>
    %1209 = vector.broadcast %1206 : f32 to vector<16x16xf32>
    %1210 = arith.mulf %1209, %1208 : vector<16x16xf32>
    %1211 = arith.addf %1205, %1210 : vector<16x16xf32>
    %c222 = arith.constant 222 : index
    %1212 = memref.load %arg2[%c222] : memref<256xf32, #tpu.memory_space<smem>>
    %1213 = vector.extract_strided_slice %1031 {offsets = [2, 0, 0], sizes = [1, 16, 16], strides = [1, 1, 1]} : vector<4x16x16xf32> to vector<1x16x16xf32>
    %1214 = vector.shape_cast %1213 : vector<1x16x16xf32> to vector<16x16xf32>
    %1215 = vector.broadcast %1212 : f32 to vector<16x16xf32>
    %1216 = arith.mulf %1215, %1214 : vector<16x16xf32>
    %1217 = arith.addf %1211, %1216 : vector<16x16xf32>
    %c223 = arith.constant 223 : index
    %1218 = memref.load %arg2[%c223] : memref<256xf32, #tpu.memory_space<smem>>
    %1219 = vector.extract_strided_slice %1031 {offsets = [3, 0, 0], sizes = [1, 16, 16], strides = [1, 1, 1]} : vector<4x16x16xf32> to vector<1x16x16xf32>
    %1220 = vector.shape_cast %1219 : vector<1x16x16xf32> to vector<16x16xf32>
    %1221 = vector.broadcast %1218 : f32 to vector<16x16xf32>
    %1222 = arith.mulf %1221, %1220 : vector<16x16xf32>
    %1223 = arith.addf %1217, %1222 : vector<16x16xf32>
    %1224 = vector.extract_strided_slice %1 {offsets = [0, 2, 0], sizes = [4, 16, 16], strides = [1, 1, 1]} : vector<4x18x18xf32> to vector<4x16x16xf32>
    %c160 = arith.constant 160 : index
    %1225 = memref.load %arg2[%c160] : memref<256xf32, #tpu.memory_space<smem>>
    %1226 = vector.extract_strided_slice %1224 {offsets = [0, 0, 0], sizes = [1, 16, 16], strides = [1, 1, 1]} : vector<4x16x16xf32> to vector<1x16x16xf32>
    %1227 = vector.shape_cast %1226 : vector<1x16x16xf32> to vector<16x16xf32>
    %1228 = vector.broadcast %1225 : f32 to vector<16x16xf32>
    %1229 = arith.mulf %1228, %1227 : vector<16x16xf32>
    %1230 = arith.addf %862, %1229 : vector<16x16xf32>
    %c161 = arith.constant 161 : index
    %1231 = memref.load %arg2[%c161] : memref<256xf32, #tpu.memory_space<smem>>
    %1232 = vector.extract_strided_slice %1224 {offsets = [1, 0, 0], sizes = [1, 16, 16], strides = [1, 1, 1]} : vector<4x16x16xf32> to vector<1x16x16xf32>
    %1233 = vector.shape_cast %1232 : vector<1x16x16xf32> to vector<16x16xf32>
    %1234 = vector.broadcast %1231 : f32 to vector<16x16xf32>
    %1235 = arith.mulf %1234, %1233 : vector<16x16xf32>
    %1236 = arith.addf %1230, %1235 : vector<16x16xf32>
    %c162 = arith.constant 162 : index
    %1237 = memref.load %arg2[%c162] : memref<256xf32, #tpu.memory_space<smem>>
    %1238 = vector.extract_strided_slice %1224 {offsets = [2, 0, 0], sizes = [1, 16, 16], strides = [1, 1, 1]} : vector<4x16x16xf32> to vector<1x16x16xf32>
    %1239 = vector.shape_cast %1238 : vector<1x16x16xf32> to vector<16x16xf32>
    %1240 = vector.broadcast %1237 : f32 to vector<16x16xf32>
    %1241 = arith.mulf %1240, %1239 : vector<16x16xf32>
    %1242 = arith.addf %1236, %1241 : vector<16x16xf32>
    %c163 = arith.constant 163 : index
    %1243 = memref.load %arg2[%c163] : memref<256xf32, #tpu.memory_space<smem>>
    %1244 = vector.extract_strided_slice %1224 {offsets = [3, 0, 0], sizes = [1, 16, 16], strides = [1, 1, 1]} : vector<4x16x16xf32> to vector<1x16x16xf32>
    %1245 = vector.shape_cast %1244 : vector<1x16x16xf32> to vector<16x16xf32>
    %1246 = vector.broadcast %1243 : f32 to vector<16x16xf32>
    %1247 = arith.mulf %1246, %1245 : vector<16x16xf32>
    %1248 = arith.addf %1242, %1247 : vector<16x16xf32>
    %c164 = arith.constant 164 : index
    %1249 = memref.load %arg2[%c164] : memref<256xf32, #tpu.memory_space<smem>>
    %1250 = vector.extract_strided_slice %1224 {offsets = [0, 0, 0], sizes = [1, 16, 16], strides = [1, 1, 1]} : vector<4x16x16xf32> to vector<1x16x16xf32>
    %1251 = vector.shape_cast %1250 : vector<1x16x16xf32> to vector<16x16xf32>
    %1252 = vector.broadcast %1249 : f32 to vector<16x16xf32>
    %1253 = arith.mulf %1252, %1251 : vector<16x16xf32>
    %1254 = arith.addf %886, %1253 : vector<16x16xf32>
    %c165 = arith.constant 165 : index
    %1255 = memref.load %arg2[%c165] : memref<256xf32, #tpu.memory_space<smem>>
    %1256 = vector.extract_strided_slice %1224 {offsets = [1, 0, 0], sizes = [1, 16, 16], strides = [1, 1, 1]} : vector<4x16x16xf32> to vector<1x16x16xf32>
    %1257 = vector.shape_cast %1256 : vector<1x16x16xf32> to vector<16x16xf32>
    %1258 = vector.broadcast %1255 : f32 to vector<16x16xf32>
    %1259 = arith.mulf %1258, %1257 : vector<16x16xf32>
    %1260 = arith.addf %1254, %1259 : vector<16x16xf32>
    %c166 = arith.constant 166 : index
    %1261 = memref.load %arg2[%c166] : memref<256xf32, #tpu.memory_space<smem>>
    %1262 = vector.extract_strided_slice %1224 {offsets = [2, 0, 0], sizes = [1, 16, 16], strides = [1, 1, 1]} : vector<4x16x16xf32> to vector<1x16x16xf32>
    %1263 = vector.shape_cast %1262 : vector<1x16x16xf32> to vector<16x16xf32>
    %1264 = vector.broadcast %1261 : f32 to vector<16x16xf32>
    %1265 = arith.mulf %1264, %1263 : vector<16x16xf32>
    %1266 = arith.addf %1260, %1265 : vector<16x16xf32>
    %c167 = arith.constant 167 : index
    %1267 = memref.load %arg2[%c167] : memref<256xf32, #tpu.memory_space<smem>>
    %1268 = vector.extract_strided_slice %1224 {offsets = [3, 0, 0], sizes = [1, 16, 16], strides = [1, 1, 1]} : vector<4x16x16xf32> to vector<1x16x16xf32>
    %1269 = vector.shape_cast %1268 : vector<1x16x16xf32> to vector<16x16xf32>
    %1270 = vector.broadcast %1267 : f32 to vector<16x16xf32>
    %1271 = arith.mulf %1270, %1269 : vector<16x16xf32>
    %1272 = arith.addf %1266, %1271 : vector<16x16xf32>
    %c168 = arith.constant 168 : index
    %1273 = memref.load %arg2[%c168] : memref<256xf32, #tpu.memory_space<smem>>
    %1274 = vector.extract_strided_slice %1224 {offsets = [0, 0, 0], sizes = [1, 16, 16], strides = [1, 1, 1]} : vector<4x16x16xf32> to vector<1x16x16xf32>
    %1275 = vector.shape_cast %1274 : vector<1x16x16xf32> to vector<16x16xf32>
    %1276 = vector.broadcast %1273 : f32 to vector<16x16xf32>
    %1277 = arith.mulf %1276, %1275 : vector<16x16xf32>
    %1278 = arith.addf %910, %1277 : vector<16x16xf32>
    %c169 = arith.constant 169 : index
    %1279 = memref.load %arg2[%c169] : memref<256xf32, #tpu.memory_space<smem>>
    %1280 = vector.extract_strided_slice %1224 {offsets = [1, 0, 0], sizes = [1, 16, 16], strides = [1, 1, 1]} : vector<4x16x16xf32> to vector<1x16x16xf32>
    %1281 = vector.shape_cast %1280 : vector<1x16x16xf32> to vector<16x16xf32>
    %1282 = vector.broadcast %1279 : f32 to vector<16x16xf32>
    %1283 = arith.mulf %1282, %1281 : vector<16x16xf32>
    %1284 = arith.addf %1278, %1283 : vector<16x16xf32>
    %c170 = arith.constant 170 : index
    %1285 = memref.load %arg2[%c170] : memref<256xf32, #tpu.memory_space<smem>>
    %1286 = vector.extract_strided_slice %1224 {offsets = [2, 0, 0], sizes = [1, 16, 16], strides = [1, 1, 1]} : vector<4x16x16xf32> to vector<1x16x16xf32>
    %1287 = vector.shape_cast %1286 : vector<1x16x16xf32> to vector<16x16xf32>
    %1288 = vector.broadcast %1285 : f32 to vector<16x16xf32>
    %1289 = arith.mulf %1288, %1287 : vector<16x16xf32>
    %1290 = arith.addf %1284, %1289 : vector<16x16xf32>
    %c171 = arith.constant 171 : index
    %1291 = memref.load %arg2[%c171] : memref<256xf32, #tpu.memory_space<smem>>
    %1292 = vector.extract_strided_slice %1224 {offsets = [3, 0, 0], sizes = [1, 16, 16], strides = [1, 1, 1]} : vector<4x16x16xf32> to vector<1x16x16xf32>
    %1293 = vector.shape_cast %1292 : vector<1x16x16xf32> to vector<16x16xf32>
    %1294 = vector.broadcast %1291 : f32 to vector<16x16xf32>
    %1295 = arith.mulf %1294, %1293 : vector<16x16xf32>
    %1296 = arith.addf %1290, %1295 : vector<16x16xf32>
    %c172 = arith.constant 172 : index
    %1297 = memref.load %arg2[%c172] : memref<256xf32, #tpu.memory_space<smem>>
    %1298 = vector.extract_strided_slice %1224 {offsets = [0, 0, 0], sizes = [1, 16, 16], strides = [1, 1, 1]} : vector<4x16x16xf32> to vector<1x16x16xf32>
    %1299 = vector.shape_cast %1298 : vector<1x16x16xf32> to vector<16x16xf32>
    %1300 = vector.broadcast %1297 : f32 to vector<16x16xf32>
    %1301 = arith.mulf %1300, %1299 : vector<16x16xf32>
    %1302 = arith.addf %934, %1301 : vector<16x16xf32>
    %c173 = arith.constant 173 : index
    %1303 = memref.load %arg2[%c173] : memref<256xf32, #tpu.memory_space<smem>>
    %1304 = vector.extract_strided_slice %1224 {offsets = [1, 0, 0], sizes = [1, 16, 16], strides = [1, 1, 1]} : vector<4x16x16xf32> to vector<1x16x16xf32>
    %1305 = vector.shape_cast %1304 : vector<1x16x16xf32> to vector<16x16xf32>
    %1306 = vector.broadcast %1303 : f32 to vector<16x16xf32>
    %1307 = arith.mulf %1306, %1305 : vector<16x16xf32>
    %1308 = arith.addf %1302, %1307 : vector<16x16xf32>
    %c174 = arith.constant 174 : index
    %1309 = memref.load %arg2[%c174] : memref<256xf32, #tpu.memory_space<smem>>
    %1310 = vector.extract_strided_slice %1224 {offsets = [2, 0, 0], sizes = [1, 16, 16], strides = [1, 1, 1]} : vector<4x16x16xf32> to vector<1x16x16xf32>
    %1311 = vector.shape_cast %1310 : vector<1x16x16xf32> to vector<16x16xf32>
    %1312 = vector.broadcast %1309 : f32 to vector<16x16xf32>
    %1313 = arith.mulf %1312, %1311 : vector<16x16xf32>
    %1314 = arith.addf %1308, %1313 : vector<16x16xf32>
    %c175 = arith.constant 175 : index
    %1315 = memref.load %arg2[%c175] : memref<256xf32, #tpu.memory_space<smem>>
    %1316 = vector.extract_strided_slice %1224 {offsets = [3, 0, 0], sizes = [1, 16, 16], strides = [1, 1, 1]} : vector<4x16x16xf32> to vector<1x16x16xf32>
    %1317 = vector.shape_cast %1316 : vector<1x16x16xf32> to vector<16x16xf32>
    %1318 = vector.broadcast %1315 : f32 to vector<16x16xf32>
    %1319 = arith.mulf %1318, %1317 : vector<16x16xf32>
    %1320 = arith.addf %1314, %1319 : vector<16x16xf32>
    %1321 = vector.extract_strided_slice %1 {offsets = [0, 2, 1], sizes = [4, 16, 16], strides = [1, 1, 1]} : vector<4x18x18xf32> to vector<4x16x16xf32>
    %c176 = arith.constant 176 : index
    %1322 = memref.load %arg2[%c176] : memref<256xf32, #tpu.memory_space<smem>>
    %1323 = vector.extract_strided_slice %1321 {offsets = [0, 0, 0], sizes = [1, 16, 16], strides = [1, 1, 1]} : vector<4x16x16xf32> to vector<1x16x16xf32>
    %1324 = vector.shape_cast %1323 : vector<1x16x16xf32> to vector<16x16xf32>
    %1325 = vector.broadcast %1322 : f32 to vector<16x16xf32>
    %1326 = arith.mulf %1325, %1324 : vector<16x16xf32>
    %1327 = arith.addf %1248, %1326 : vector<16x16xf32>
    %c177 = arith.constant 177 : index
    %1328 = memref.load %arg2[%c177] : memref<256xf32, #tpu.memory_space<smem>>
    %1329 = vector.extract_strided_slice %1321 {offsets = [1, 0, 0], sizes = [1, 16, 16], strides = [1, 1, 1]} : vector<4x16x16xf32> to vector<1x16x16xf32>
    %1330 = vector.shape_cast %1329 : vector<1x16x16xf32> to vector<16x16xf32>
    %1331 = vector.broadcast %1328 : f32 to vector<16x16xf32>
    %1332 = arith.mulf %1331, %1330 : vector<16x16xf32>
    %1333 = arith.addf %1327, %1332 : vector<16x16xf32>
    %c178 = arith.constant 178 : index
    %1334 = memref.load %arg2[%c178] : memref<256xf32, #tpu.memory_space<smem>>
    %1335 = vector.extract_strided_slice %1321 {offsets = [2, 0, 0], sizes = [1, 16, 16], strides = [1, 1, 1]} : vector<4x16x16xf32> to vector<1x16x16xf32>
    %1336 = vector.shape_cast %1335 : vector<1x16x16xf32> to vector<16x16xf32>
    %1337 = vector.broadcast %1334 : f32 to vector<16x16xf32>
    %1338 = arith.mulf %1337, %1336 : vector<16x16xf32>
    %1339 = arith.addf %1333, %1338 : vector<16x16xf32>
    %c179 = arith.constant 179 : index
    %1340 = memref.load %arg2[%c179] : memref<256xf32, #tpu.memory_space<smem>>
    %1341 = vector.extract_strided_slice %1321 {offsets = [3, 0, 0], sizes = [1, 16, 16], strides = [1, 1, 1]} : vector<4x16x16xf32> to vector<1x16x16xf32>
    %1342 = vector.shape_cast %1341 : vector<1x16x16xf32> to vector<16x16xf32>
    %1343 = vector.broadcast %1340 : f32 to vector<16x16xf32>
    %1344 = arith.mulf %1343, %1342 : vector<16x16xf32>
    %1345 = arith.addf %1339, %1344 : vector<16x16xf32>
    %c180 = arith.constant 180 : index
    %1346 = memref.load %arg2[%c180] : memref<256xf32, #tpu.memory_space<smem>>
    %1347 = vector.extract_strided_slice %1321 {offsets = [0, 0, 0], sizes = [1, 16, 16], strides = [1, 1, 1]} : vector<4x16x16xf32> to vector<1x16x16xf32>
    %1348 = vector.shape_cast %1347 : vector<1x16x16xf32> to vector<16x16xf32>
    %1349 = vector.broadcast %1346 : f32 to vector<16x16xf32>
    %1350 = arith.mulf %1349, %1348 : vector<16x16xf32>
    %1351 = arith.addf %1272, %1350 : vector<16x16xf32>
    %c181 = arith.constant 181 : index
    %1352 = memref.load %arg2[%c181] : memref<256xf32, #tpu.memory_space<smem>>
    %1353 = vector.extract_strided_slice %1321 {offsets = [1, 0, 0], sizes = [1, 16, 16], strides = [1, 1, 1]} : vector<4x16x16xf32> to vector<1x16x16xf32>
    %1354 = vector.shape_cast %1353 : vector<1x16x16xf32> to vector<16x16xf32>
    %1355 = vector.broadcast %1352 : f32 to vector<16x16xf32>
    %1356 = arith.mulf %1355, %1354 : vector<16x16xf32>
    %1357 = arith.addf %1351, %1356 : vector<16x16xf32>
    %c182 = arith.constant 182 : index
    %1358 = memref.load %arg2[%c182] : memref<256xf32, #tpu.memory_space<smem>>
    %1359 = vector.extract_strided_slice %1321 {offsets = [2, 0, 0], sizes = [1, 16, 16], strides = [1, 1, 1]} : vector<4x16x16xf32> to vector<1x16x16xf32>
    %1360 = vector.shape_cast %1359 : vector<1x16x16xf32> to vector<16x16xf32>
    %1361 = vector.broadcast %1358 : f32 to vector<16x16xf32>
    %1362 = arith.mulf %1361, %1360 : vector<16x16xf32>
    %1363 = arith.addf %1357, %1362 : vector<16x16xf32>
    %c183 = arith.constant 183 : index
    %1364 = memref.load %arg2[%c183] : memref<256xf32, #tpu.memory_space<smem>>
    %1365 = vector.extract_strided_slice %1321 {offsets = [3, 0, 0], sizes = [1, 16, 16], strides = [1, 1, 1]} : vector<4x16x16xf32> to vector<1x16x16xf32>
    %1366 = vector.shape_cast %1365 : vector<1x16x16xf32> to vector<16x16xf32>
    %1367 = vector.broadcast %1364 : f32 to vector<16x16xf32>
    %1368 = arith.mulf %1367, %1366 : vector<16x16xf32>
    %1369 = arith.addf %1363, %1368 : vector<16x16xf32>
    %c184 = arith.constant 184 : index
    %1370 = memref.load %arg2[%c184] : memref<256xf32, #tpu.memory_space<smem>>
    %1371 = vector.extract_strided_slice %1321 {offsets = [0, 0, 0], sizes = [1, 16, 16], strides = [1, 1, 1]} : vector<4x16x16xf32> to vector<1x16x16xf32>
    %1372 = vector.shape_cast %1371 : vector<1x16x16xf32> to vector<16x16xf32>
    %1373 = vector.broadcast %1370 : f32 to vector<16x16xf32>
    %1374 = arith.mulf %1373, %1372 : vector<16x16xf32>
    %1375 = arith.addf %1296, %1374 : vector<16x16xf32>
    %c185 = arith.constant 185 : index
    %1376 = memref.load %arg2[%c185] : memref<256xf32, #tpu.memory_space<smem>>
    %1377 = vector.extract_strided_slice %1321 {offsets = [1, 0, 0], sizes = [1, 16, 16], strides = [1, 1, 1]} : vector<4x16x16xf32> to vector<1x16x16xf32>
    %1378 = vector.shape_cast %1377 : vector<1x16x16xf32> to vector<16x16xf32>
    %1379 = vector.broadcast %1376 : f32 to vector<16x16xf32>
    %1380 = arith.mulf %1379, %1378 : vector<16x16xf32>
    %1381 = arith.addf %1375, %1380 : vector<16x16xf32>
    %c186 = arith.constant 186 : index
    %1382 = memref.load %arg2[%c186] : memref<256xf32, #tpu.memory_space<smem>>
    %1383 = vector.extract_strided_slice %1321 {offsets = [2, 0, 0], sizes = [1, 16, 16], strides = [1, 1, 1]} : vector<4x16x16xf32> to vector<1x16x16xf32>
    %1384 = vector.shape_cast %1383 : vector<1x16x16xf32> to vector<16x16xf32>
    %1385 = vector.broadcast %1382 : f32 to vector<16x16xf32>
    %1386 = arith.mulf %1385, %1384 : vector<16x16xf32>
    %1387 = arith.addf %1381, %1386 : vector<16x16xf32>
    %c187 = arith.constant 187 : index
    %1388 = memref.load %arg2[%c187] : memref<256xf32, #tpu.memory_space<smem>>
    %1389 = vector.extract_strided_slice %1321 {offsets = [3, 0, 0], sizes = [1, 16, 16], strides = [1, 1, 1]} : vector<4x16x16xf32> to vector<1x16x16xf32>
    %1390 = vector.shape_cast %1389 : vector<1x16x16xf32> to vector<16x16xf32>
    %1391 = vector.broadcast %1388 : f32 to vector<16x16xf32>
    %1392 = arith.mulf %1391, %1390 : vector<16x16xf32>
    %1393 = arith.addf %1387, %1392 : vector<16x16xf32>
    %c188 = arith.constant 188 : index
    %1394 = memref.load %arg2[%c188] : memref<256xf32, #tpu.memory_space<smem>>
    %1395 = vector.extract_strided_slice %1321 {offsets = [0, 0, 0], sizes = [1, 16, 16], strides = [1, 1, 1]} : vector<4x16x16xf32> to vector<1x16x16xf32>
    %1396 = vector.shape_cast %1395 : vector<1x16x16xf32> to vector<16x16xf32>
    %1397 = vector.broadcast %1394 : f32 to vector<16x16xf32>
    %1398 = arith.mulf %1397, %1396 : vector<16x16xf32>
    %1399 = arith.addf %1320, %1398 : vector<16x16xf32>
    %c189 = arith.constant 189 : index
    %1400 = memref.load %arg2[%c189] : memref<256xf32, #tpu.memory_space<smem>>
    %1401 = vector.extract_strided_slice %1321 {offsets = [1, 0, 0], sizes = [1, 16, 16], strides = [1, 1, 1]} : vector<4x16x16xf32> to vector<1x16x16xf32>
    %1402 = vector.shape_cast %1401 : vector<1x16x16xf32> to vector<16x16xf32>
    %1403 = vector.broadcast %1400 : f32 to vector<16x16xf32>
    %1404 = arith.mulf %1403, %1402 : vector<16x16xf32>
    %1405 = arith.addf %1399, %1404 : vector<16x16xf32>
    %c190 = arith.constant 190 : index
    %1406 = memref.load %arg2[%c190] : memref<256xf32, #tpu.memory_space<smem>>
    %1407 = vector.extract_strided_slice %1321 {offsets = [2, 0, 0], sizes = [1, 16, 16], strides = [1, 1, 1]} : vector<4x16x16xf32> to vector<1x16x16xf32>
    %1408 = vector.shape_cast %1407 : vector<1x16x16xf32> to vector<16x16xf32>
    %1409 = vector.broadcast %1406 : f32 to vector<16x16xf32>
    %1410 = arith.mulf %1409, %1408 : vector<16x16xf32>
    %1411 = arith.addf %1405, %1410 : vector<16x16xf32>
    %c191 = arith.constant 191 : index
    %1412 = memref.load %arg2[%c191] : memref<256xf32, #tpu.memory_space<smem>>
    %1413 = vector.extract_strided_slice %1321 {offsets = [3, 0, 0], sizes = [1, 16, 16], strides = [1, 1, 1]} : vector<4x16x16xf32> to vector<1x16x16xf32>
    %1414 = vector.shape_cast %1413 : vector<1x16x16xf32> to vector<16x16xf32>
    %1415 = vector.broadcast %1412 : f32 to vector<16x16xf32>
    %1416 = arith.mulf %1415, %1414 : vector<16x16xf32>
    %1417 = arith.addf %1411, %1416 : vector<16x16xf32>
    %c224 = arith.constant 224 : index
    %1418 = memref.load %arg2[%c224] : memref<256xf32, #tpu.memory_space<smem>>
    %1419 = vector.extract_strided_slice %1321 {offsets = [0, 0, 0], sizes = [1, 16, 16], strides = [1, 1, 1]} : vector<4x16x16xf32> to vector<1x16x16xf32>
    %1420 = vector.shape_cast %1419 : vector<1x16x16xf32> to vector<16x16xf32>
    %1421 = vector.broadcast %1418 : f32 to vector<16x16xf32>
    %1422 = arith.mulf %1421, %1420 : vector<16x16xf32>
    %1423 = arith.addf %1151, %1422 : vector<16x16xf32>
    %c225 = arith.constant 225 : index
    %1424 = memref.load %arg2[%c225] : memref<256xf32, #tpu.memory_space<smem>>
    %1425 = vector.extract_strided_slice %1321 {offsets = [1, 0, 0], sizes = [1, 16, 16], strides = [1, 1, 1]} : vector<4x16x16xf32> to vector<1x16x16xf32>
    %1426 = vector.shape_cast %1425 : vector<1x16x16xf32> to vector<16x16xf32>
    %1427 = vector.broadcast %1424 : f32 to vector<16x16xf32>
    %1428 = arith.mulf %1427, %1426 : vector<16x16xf32>
    %1429 = arith.addf %1423, %1428 : vector<16x16xf32>
    %c226 = arith.constant 226 : index
    %1430 = memref.load %arg2[%c226] : memref<256xf32, #tpu.memory_space<smem>>
    %1431 = vector.extract_strided_slice %1321 {offsets = [2, 0, 0], sizes = [1, 16, 16], strides = [1, 1, 1]} : vector<4x16x16xf32> to vector<1x16x16xf32>
    %1432 = vector.shape_cast %1431 : vector<1x16x16xf32> to vector<16x16xf32>
    %1433 = vector.broadcast %1430 : f32 to vector<16x16xf32>
    %1434 = arith.mulf %1433, %1432 : vector<16x16xf32>
    %1435 = arith.addf %1429, %1434 : vector<16x16xf32>
    %c227 = arith.constant 227 : index
    %1436 = memref.load %arg2[%c227] : memref<256xf32, #tpu.memory_space<smem>>
    %1437 = vector.extract_strided_slice %1321 {offsets = [3, 0, 0], sizes = [1, 16, 16], strides = [1, 1, 1]} : vector<4x16x16xf32> to vector<1x16x16xf32>
    %1438 = vector.shape_cast %1437 : vector<1x16x16xf32> to vector<16x16xf32>
    %1439 = vector.broadcast %1436 : f32 to vector<16x16xf32>
    %1440 = arith.mulf %1439, %1438 : vector<16x16xf32>
    %1441 = arith.addf %1435, %1440 : vector<16x16xf32>
    %c228 = arith.constant 228 : index
    %1442 = memref.load %arg2[%c228] : memref<256xf32, #tpu.memory_space<smem>>
    %1443 = vector.extract_strided_slice %1321 {offsets = [0, 0, 0], sizes = [1, 16, 16], strides = [1, 1, 1]} : vector<4x16x16xf32> to vector<1x16x16xf32>
    %1444 = vector.shape_cast %1443 : vector<1x16x16xf32> to vector<16x16xf32>
    %1445 = vector.broadcast %1442 : f32 to vector<16x16xf32>
    %1446 = arith.mulf %1445, %1444 : vector<16x16xf32>
    %1447 = arith.addf %1175, %1446 : vector<16x16xf32>
    %c229 = arith.constant 229 : index
    %1448 = memref.load %arg2[%c229] : memref<256xf32, #tpu.memory_space<smem>>
    %1449 = vector.extract_strided_slice %1321 {offsets = [1, 0, 0], sizes = [1, 16, 16], strides = [1, 1, 1]} : vector<4x16x16xf32> to vector<1x16x16xf32>
    %1450 = vector.shape_cast %1449 : vector<1x16x16xf32> to vector<16x16xf32>
    %1451 = vector.broadcast %1448 : f32 to vector<16x16xf32>
    %1452 = arith.mulf %1451, %1450 : vector<16x16xf32>
    %1453 = arith.addf %1447, %1452 : vector<16x16xf32>
    %c230 = arith.constant 230 : index
    %1454 = memref.load %arg2[%c230] : memref<256xf32, #tpu.memory_space<smem>>
    %1455 = vector.extract_strided_slice %1321 {offsets = [2, 0, 0], sizes = [1, 16, 16], strides = [1, 1, 1]} : vector<4x16x16xf32> to vector<1x16x16xf32>
    %1456 = vector.shape_cast %1455 : vector<1x16x16xf32> to vector<16x16xf32>
    %1457 = vector.broadcast %1454 : f32 to vector<16x16xf32>
    %1458 = arith.mulf %1457, %1456 : vector<16x16xf32>
    %1459 = arith.addf %1453, %1458 : vector<16x16xf32>
    %c231 = arith.constant 231 : index
    %1460 = memref.load %arg2[%c231] : memref<256xf32, #tpu.memory_space<smem>>
    %1461 = vector.extract_strided_slice %1321 {offsets = [3, 0, 0], sizes = [1, 16, 16], strides = [1, 1, 1]} : vector<4x16x16xf32> to vector<1x16x16xf32>
    %1462 = vector.shape_cast %1461 : vector<1x16x16xf32> to vector<16x16xf32>
    %1463 = vector.broadcast %1460 : f32 to vector<16x16xf32>
    %1464 = arith.mulf %1463, %1462 : vector<16x16xf32>
    %1465 = arith.addf %1459, %1464 : vector<16x16xf32>
    %c232 = arith.constant 232 : index
    %1466 = memref.load %arg2[%c232] : memref<256xf32, #tpu.memory_space<smem>>
    %1467 = vector.extract_strided_slice %1321 {offsets = [0, 0, 0], sizes = [1, 16, 16], strides = [1, 1, 1]} : vector<4x16x16xf32> to vector<1x16x16xf32>
    %1468 = vector.shape_cast %1467 : vector<1x16x16xf32> to vector<16x16xf32>
    %1469 = vector.broadcast %1466 : f32 to vector<16x16xf32>
    %1470 = arith.mulf %1469, %1468 : vector<16x16xf32>
    %1471 = arith.addf %1199, %1470 : vector<16x16xf32>
    %c233 = arith.constant 233 : index
    %1472 = memref.load %arg2[%c233] : memref<256xf32, #tpu.memory_space<smem>>
    %1473 = vector.extract_strided_slice %1321 {offsets = [1, 0, 0], sizes = [1, 16, 16], strides = [1, 1, 1]} : vector<4x16x16xf32> to vector<1x16x16xf32>
    %1474 = vector.shape_cast %1473 : vector<1x16x16xf32> to vector<16x16xf32>
    %1475 = vector.broadcast %1472 : f32 to vector<16x16xf32>
    %1476 = arith.mulf %1475, %1474 : vector<16x16xf32>
    %1477 = arith.addf %1471, %1476 : vector<16x16xf32>
    %c234 = arith.constant 234 : index
    %1478 = memref.load %arg2[%c234] : memref<256xf32, #tpu.memory_space<smem>>
    %1479 = vector.extract_strided_slice %1321 {offsets = [2, 0, 0], sizes = [1, 16, 16], strides = [1, 1, 1]} : vector<4x16x16xf32> to vector<1x16x16xf32>
    %1480 = vector.shape_cast %1479 : vector<1x16x16xf32> to vector<16x16xf32>
    %1481 = vector.broadcast %1478 : f32 to vector<16x16xf32>
    %1482 = arith.mulf %1481, %1480 : vector<16x16xf32>
    %1483 = arith.addf %1477, %1482 : vector<16x16xf32>
    %c235 = arith.constant 235 : index
    %1484 = memref.load %arg2[%c235] : memref<256xf32, #tpu.memory_space<smem>>
    %1485 = vector.extract_strided_slice %1321 {offsets = [3, 0, 0], sizes = [1, 16, 16], strides = [1, 1, 1]} : vector<4x16x16xf32> to vector<1x16x16xf32>
    %1486 = vector.shape_cast %1485 : vector<1x16x16xf32> to vector<16x16xf32>
    %1487 = vector.broadcast %1484 : f32 to vector<16x16xf32>
    %1488 = arith.mulf %1487, %1486 : vector<16x16xf32>
    %1489 = arith.addf %1483, %1488 : vector<16x16xf32>
    %c236 = arith.constant 236 : index
    %1490 = memref.load %arg2[%c236] : memref<256xf32, #tpu.memory_space<smem>>
    %1491 = vector.extract_strided_slice %1321 {offsets = [0, 0, 0], sizes = [1, 16, 16], strides = [1, 1, 1]} : vector<4x16x16xf32> to vector<1x16x16xf32>
    %1492 = vector.shape_cast %1491 : vector<1x16x16xf32> to vector<16x16xf32>
    %1493 = vector.broadcast %1490 : f32 to vector<16x16xf32>
    %1494 = arith.mulf %1493, %1492 : vector<16x16xf32>
    %1495 = arith.addf %1223, %1494 : vector<16x16xf32>
    %c237 = arith.constant 237 : index
    %1496 = memref.load %arg2[%c237] : memref<256xf32, #tpu.memory_space<smem>>
    %1497 = vector.extract_strided_slice %1321 {offsets = [1, 0, 0], sizes = [1, 16, 16], strides = [1, 1, 1]} : vector<4x16x16xf32> to vector<1x16x16xf32>
    %1498 = vector.shape_cast %1497 : vector<1x16x16xf32> to vector<16x16xf32>
    %1499 = vector.broadcast %1496 : f32 to vector<16x16xf32>
    %1500 = arith.mulf %1499, %1498 : vector<16x16xf32>
    %1501 = arith.addf %1495, %1500 : vector<16x16xf32>
    %c238 = arith.constant 238 : index
    %1502 = memref.load %arg2[%c238] : memref<256xf32, #tpu.memory_space<smem>>
    %1503 = vector.extract_strided_slice %1321 {offsets = [2, 0, 0], sizes = [1, 16, 16], strides = [1, 1, 1]} : vector<4x16x16xf32> to vector<1x16x16xf32>
    %1504 = vector.shape_cast %1503 : vector<1x16x16xf32> to vector<16x16xf32>
    %1505 = vector.broadcast %1502 : f32 to vector<16x16xf32>
    %1506 = arith.mulf %1505, %1504 : vector<16x16xf32>
    %1507 = arith.addf %1501, %1506 : vector<16x16xf32>
    %c239 = arith.constant 239 : index
    %1508 = memref.load %arg2[%c239] : memref<256xf32, #tpu.memory_space<smem>>
    %1509 = vector.extract_strided_slice %1321 {offsets = [3, 0, 0], sizes = [1, 16, 16], strides = [1, 1, 1]} : vector<4x16x16xf32> to vector<1x16x16xf32>
    %1510 = vector.shape_cast %1509 : vector<1x16x16xf32> to vector<16x16xf32>
    %1511 = vector.broadcast %1508 : f32 to vector<16x16xf32>
    %1512 = arith.mulf %1511, %1510 : vector<16x16xf32>
    %1513 = arith.addf %1507, %1512 : vector<16x16xf32>
    %1514 = vector.extract_strided_slice %1 {offsets = [0, 2, 2], sizes = [4, 16, 16], strides = [1, 1, 1]} : vector<4x18x18xf32> to vector<4x16x16xf32>
    %c240 = arith.constant 240 : index
    %1515 = memref.load %arg2[%c240] : memref<256xf32, #tpu.memory_space<smem>>
    %1516 = vector.extract_strided_slice %1514 {offsets = [0, 0, 0], sizes = [1, 16, 16], strides = [1, 1, 1]} : vector<4x16x16xf32> to vector<1x16x16xf32>
    %1517 = vector.shape_cast %1516 : vector<1x16x16xf32> to vector<16x16xf32>
    %1518 = vector.broadcast %1515 : f32 to vector<16x16xf32>
    %1519 = arith.mulf %1518, %1517 : vector<16x16xf32>
    %1520 = arith.addf %1441, %1519 : vector<16x16xf32>
    %c241 = arith.constant 241 : index
    %1521 = memref.load %arg2[%c241] : memref<256xf32, #tpu.memory_space<smem>>
    %1522 = vector.extract_strided_slice %1514 {offsets = [1, 0, 0], sizes = [1, 16, 16], strides = [1, 1, 1]} : vector<4x16x16xf32> to vector<1x16x16xf32>
    %1523 = vector.shape_cast %1522 : vector<1x16x16xf32> to vector<16x16xf32>
    %1524 = vector.broadcast %1521 : f32 to vector<16x16xf32>
    %1525 = arith.mulf %1524, %1523 : vector<16x16xf32>
    %1526 = arith.addf %1520, %1525 : vector<16x16xf32>
    %c242 = arith.constant 242 : index
    %1527 = memref.load %arg2[%c242] : memref<256xf32, #tpu.memory_space<smem>>
    %1528 = vector.extract_strided_slice %1514 {offsets = [2, 0, 0], sizes = [1, 16, 16], strides = [1, 1, 1]} : vector<4x16x16xf32> to vector<1x16x16xf32>
    %1529 = vector.shape_cast %1528 : vector<1x16x16xf32> to vector<16x16xf32>
    %1530 = vector.broadcast %1527 : f32 to vector<16x16xf32>
    %1531 = arith.mulf %1530, %1529 : vector<16x16xf32>
    %1532 = arith.addf %1526, %1531 : vector<16x16xf32>
    %c243 = arith.constant 243 : index
    %1533 = memref.load %arg2[%c243] : memref<256xf32, #tpu.memory_space<smem>>
    %1534 = vector.extract_strided_slice %1514 {offsets = [3, 0, 0], sizes = [1, 16, 16], strides = [1, 1, 1]} : vector<4x16x16xf32> to vector<1x16x16xf32>
    %1535 = vector.shape_cast %1534 : vector<1x16x16xf32> to vector<16x16xf32>
    %1536 = vector.broadcast %1533 : f32 to vector<16x16xf32>
    %1537 = arith.mulf %1536, %1535 : vector<16x16xf32>
    %1538 = arith.addf %1532, %1537 : vector<16x16xf32>
    %c244 = arith.constant 244 : index
    %1539 = memref.load %arg2[%c244] : memref<256xf32, #tpu.memory_space<smem>>
    %1540 = vector.extract_strided_slice %1514 {offsets = [0, 0, 0], sizes = [1, 16, 16], strides = [1, 1, 1]} : vector<4x16x16xf32> to vector<1x16x16xf32>
    %1541 = vector.shape_cast %1540 : vector<1x16x16xf32> to vector<16x16xf32>
    %1542 = vector.broadcast %1539 : f32 to vector<16x16xf32>
    %1543 = arith.mulf %1542, %1541 : vector<16x16xf32>
    %1544 = arith.addf %1465, %1543 : vector<16x16xf32>
    %c245 = arith.constant 245 : index
    %1545 = memref.load %arg2[%c245] : memref<256xf32, #tpu.memory_space<smem>>
    %1546 = vector.extract_strided_slice %1514 {offsets = [1, 0, 0], sizes = [1, 16, 16], strides = [1, 1, 1]} : vector<4x16x16xf32> to vector<1x16x16xf32>
    %1547 = vector.shape_cast %1546 : vector<1x16x16xf32> to vector<16x16xf32>
    %1548 = vector.broadcast %1545 : f32 to vector<16x16xf32>
    %1549 = arith.mulf %1548, %1547 : vector<16x16xf32>
    %1550 = arith.addf %1544, %1549 : vector<16x16xf32>
    %c246 = arith.constant 246 : index
    %1551 = memref.load %arg2[%c246] : memref<256xf32, #tpu.memory_space<smem>>
    %1552 = vector.extract_strided_slice %1514 {offsets = [2, 0, 0], sizes = [1, 16, 16], strides = [1, 1, 1]} : vector<4x16x16xf32> to vector<1x16x16xf32>
    %1553 = vector.shape_cast %1552 : vector<1x16x16xf32> to vector<16x16xf32>
    %1554 = vector.broadcast %1551 : f32 to vector<16x16xf32>
    %1555 = arith.mulf %1554, %1553 : vector<16x16xf32>
    %1556 = arith.addf %1550, %1555 : vector<16x16xf32>
    %c247 = arith.constant 247 : index
    %1557 = memref.load %arg2[%c247] : memref<256xf32, #tpu.memory_space<smem>>
    %1558 = vector.extract_strided_slice %1514 {offsets = [3, 0, 0], sizes = [1, 16, 16], strides = [1, 1, 1]} : vector<4x16x16xf32> to vector<1x16x16xf32>
    %1559 = vector.shape_cast %1558 : vector<1x16x16xf32> to vector<16x16xf32>
    %1560 = vector.broadcast %1557 : f32 to vector<16x16xf32>
    %1561 = arith.mulf %1560, %1559 : vector<16x16xf32>
    %1562 = arith.addf %1556, %1561 : vector<16x16xf32>
    %c248 = arith.constant 248 : index
    %1563 = memref.load %arg2[%c248] : memref<256xf32, #tpu.memory_space<smem>>
    %1564 = vector.extract_strided_slice %1514 {offsets = [0, 0, 0], sizes = [1, 16, 16], strides = [1, 1, 1]} : vector<4x16x16xf32> to vector<1x16x16xf32>
    %1565 = vector.shape_cast %1564 : vector<1x16x16xf32> to vector<16x16xf32>
    %1566 = vector.broadcast %1563 : f32 to vector<16x16xf32>
    %1567 = arith.mulf %1566, %1565 : vector<16x16xf32>
    %1568 = arith.addf %1489, %1567 : vector<16x16xf32>
    %c249 = arith.constant 249 : index
    %1569 = memref.load %arg2[%c249] : memref<256xf32, #tpu.memory_space<smem>>
    %1570 = vector.extract_strided_slice %1514 {offsets = [1, 0, 0], sizes = [1, 16, 16], strides = [1, 1, 1]} : vector<4x16x16xf32> to vector<1x16x16xf32>
    %1571 = vector.shape_cast %1570 : vector<1x16x16xf32> to vector<16x16xf32>
    %1572 = vector.broadcast %1569 : f32 to vector<16x16xf32>
    %1573 = arith.mulf %1572, %1571 : vector<16x16xf32>
    %1574 = arith.addf %1568, %1573 : vector<16x16xf32>
    %c250 = arith.constant 250 : index
    %1575 = memref.load %arg2[%c250] : memref<256xf32, #tpu.memory_space<smem>>
    %1576 = vector.extract_strided_slice %1514 {offsets = [2, 0, 0], sizes = [1, 16, 16], strides = [1, 1, 1]} : vector<4x16x16xf32> to vector<1x16x16xf32>
    %1577 = vector.shape_cast %1576 : vector<1x16x16xf32> to vector<16x16xf32>
    %1578 = vector.broadcast %1575 : f32 to vector<16x16xf32>
    %1579 = arith.mulf %1578, %1577 : vector<16x16xf32>
    %1580 = arith.addf %1574, %1579 : vector<16x16xf32>
    %c251 = arith.constant 251 : index
    %1581 = memref.load %arg2[%c251] : memref<256xf32, #tpu.memory_space<smem>>
    %1582 = vector.extract_strided_slice %1514 {offsets = [3, 0, 0], sizes = [1, 16, 16], strides = [1, 1, 1]} : vector<4x16x16xf32> to vector<1x16x16xf32>
    %1583 = vector.shape_cast %1582 : vector<1x16x16xf32> to vector<16x16xf32>
    %1584 = vector.broadcast %1581 : f32 to vector<16x16xf32>
    %1585 = arith.mulf %1584, %1583 : vector<16x16xf32>
    %1586 = arith.addf %1580, %1585 : vector<16x16xf32>
    %c252 = arith.constant 252 : index
    %1587 = memref.load %arg2[%c252] : memref<256xf32, #tpu.memory_space<smem>>
    %1588 = vector.extract_strided_slice %1514 {offsets = [0, 0, 0], sizes = [1, 16, 16], strides = [1, 1, 1]} : vector<4x16x16xf32> to vector<1x16x16xf32>
    %1589 = vector.shape_cast %1588 : vector<1x16x16xf32> to vector<16x16xf32>
    %1590 = vector.broadcast %1587 : f32 to vector<16x16xf32>
    %1591 = arith.mulf %1590, %1589 : vector<16x16xf32>
    %1592 = arith.addf %1513, %1591 : vector<16x16xf32>
    %c253 = arith.constant 253 : index
    %1593 = memref.load %arg2[%c253] : memref<256xf32, #tpu.memory_space<smem>>
    %1594 = vector.extract_strided_slice %1514 {offsets = [1, 0, 0], sizes = [1, 16, 16], strides = [1, 1, 1]} : vector<4x16x16xf32> to vector<1x16x16xf32>
    %1595 = vector.shape_cast %1594 : vector<1x16x16xf32> to vector<16x16xf32>
    %1596 = vector.broadcast %1593 : f32 to vector<16x16xf32>
    %1597 = arith.mulf %1596, %1595 : vector<16x16xf32>
    %1598 = arith.addf %1592, %1597 : vector<16x16xf32>
    %c254 = arith.constant 254 : index
    %1599 = memref.load %arg2[%c254] : memref<256xf32, #tpu.memory_space<smem>>
    %1600 = vector.extract_strided_slice %1514 {offsets = [2, 0, 0], sizes = [1, 16, 16], strides = [1, 1, 1]} : vector<4x16x16xf32> to vector<1x16x16xf32>
    %1601 = vector.shape_cast %1600 : vector<1x16x16xf32> to vector<16x16xf32>
    %1602 = vector.broadcast %1599 : f32 to vector<16x16xf32>
    %1603 = arith.mulf %1602, %1601 : vector<16x16xf32>
    %1604 = arith.addf %1598, %1603 : vector<16x16xf32>
    %c255 = arith.constant 255 : index
    %1605 = memref.load %arg2[%c255] : memref<256xf32, #tpu.memory_space<smem>>
    %1606 = vector.extract_strided_slice %1514 {offsets = [3, 0, 0], sizes = [1, 16, 16], strides = [1, 1, 1]} : vector<4x16x16xf32> to vector<1x16x16xf32>
    %1607 = vector.shape_cast %1606 : vector<1x16x16xf32> to vector<16x16xf32>
    %1608 = vector.broadcast %1605 : f32 to vector<16x16xf32>
    %1609 = arith.mulf %1608, %1607 : vector<16x16xf32>
    %1610 = arith.addf %1604, %1609 : vector<16x16xf32>
    %cst_35 = arith.constant 0.000000e+00 : f32
    %1611 = vector.broadcast %cst_35 : f32 to vector<64x64xf32>
    %1612 = tpu.concatenate %670, %694, %718, %742 in 0 : vector<16x16xf32>, vector<16x16xf32>, vector<16x16xf32>, vector<16x16xf32> -> vector<64x16xf32>
    %c0_36 = arith.constant 0 : index
    %c0_37 = arith.constant 0 : index
    %c0_38 = arith.constant 0 : index
    %1613 = vector.load %arg4[%c0_36, %c0_37, %c0_38] : memref<4x16x64xf32, #tpu.memory_space<vmem>>, vector<1x16x64xf32>
    %1614 = vector.shape_cast %1613 : vector<1x16x64xf32> to vector<16x64xf32>
    %cst_39 = arith.constant dense<0.000000e+00> : vector<64x64xf32>
    %1615 = tpu.matmul %1612, %1614, %cst_39 {dimension_numbers = #tpu.dot_dimension_numbers<[1], [0], [0], [1], [0, 0, 1, 1], [], []>} : vector<64x16xf32>, vector<16x64xf32>, vector<64x64xf32> -> vector<64x64xf32>
    %1616 = arith.addf %1611, %1615 : vector<64x64xf32>
    %1617 = tpu.concatenate %1055, %1079, %1103, %1127 in 0 : vector<16x16xf32>, vector<16x16xf32>, vector<16x16xf32>, vector<16x16xf32> -> vector<64x16xf32>
    %c1_40 = arith.constant 1 : index
    %c0_41 = arith.constant 0 : index
    %c0_42 = arith.constant 0 : index
    %1618 = vector.load %arg4[%c1_40, %c0_41, %c0_42] : memref<4x16x64xf32, #tpu.memory_space<vmem>>, vector<1x16x64xf32>
    %1619 = vector.shape_cast %1618 : vector<1x16x64xf32> to vector<16x64xf32>
    %cst_43 = arith.constant dense<0.000000e+00> : vector<64x64xf32>
    %1620 = tpu.matmul %1617, %1619, %cst_43 {dimension_numbers = #tpu.dot_dimension_numbers<[1], [0], [0], [1], [0, 0, 1, 1], [], []>} : vector<64x16xf32>, vector<16x64xf32>, vector<64x64xf32> -> vector<64x64xf32>
    %1621 = arith.addf %1616, %1620 : vector<64x64xf32>
    %1622 = tpu.concatenate %1345, %1369, %1393, %1417 in 0 : vector<16x16xf32>, vector<16x16xf32>, vector<16x16xf32>, vector<16x16xf32> -> vector<64x16xf32>
    %c2_44 = arith.constant 2 : index
    %c0_45 = arith.constant 0 : index
    %c0_46 = arith.constant 0 : index
    %1623 = vector.load %arg4[%c2_44, %c0_45, %c0_46] : memref<4x16x64xf32, #tpu.memory_space<vmem>>, vector<1x16x64xf32>
    %1624 = vector.shape_cast %1623 : vector<1x16x64xf32> to vector<16x64xf32>
    %cst_47 = arith.constant dense<0.000000e+00> : vector<64x64xf32>
    %1625 = tpu.matmul %1622, %1624, %cst_47 {dimension_numbers = #tpu.dot_dimension_numbers<[1], [0], [0], [1], [0, 0, 1, 1], [], []>} : vector<64x16xf32>, vector<16x64xf32>, vector<64x64xf32> -> vector<64x64xf32>
    %1626 = arith.addf %1621, %1625 : vector<64x64xf32>
    %1627 = tpu.concatenate %1538, %1562, %1586, %1610 in 0 : vector<16x16xf32>, vector<16x16xf32>, vector<16x16xf32>, vector<16x16xf32> -> vector<64x16xf32>
    %c3_48 = arith.constant 3 : index
    %c0_49 = arith.constant 0 : index
    %c0_50 = arith.constant 0 : index
    %1628 = vector.load %arg4[%c3_48, %c0_49, %c0_50] : memref<4x16x64xf32, #tpu.memory_space<vmem>>, vector<1x16x64xf32>
    %1629 = vector.shape_cast %1628 : vector<1x16x64xf32> to vector<16x64xf32>
    %cst_51 = arith.constant dense<0.000000e+00> : vector<64x64xf32>
    %1630 = tpu.matmul %1627, %1629, %cst_51 {dimension_numbers = #tpu.dot_dimension_numbers<[1], [0], [0], [1], [0, 0, 1, 1], [], []>} : vector<64x16xf32>, vector<16x64xf32>, vector<64x64xf32> -> vector<64x64xf32>
    %1631 = arith.addf %1626, %1630 : vector<64x64xf32>
    %c0_52 = arith.constant 0 : index
    %c0_53 = arith.constant 0 : index
    %c0_54 = arith.constant 0 : index
    %1632 = vector.load %arg5[%c0_52, %c0_53, %c0_54] : memref<1x64x64xf32, #tpu.memory_space<vmem>>, vector<1x64x64xf32>
    %1633 = vector.shape_cast %1632 : vector<1x64x64xf32> to vector<64x64xf32>
    %1634 = vector.shape_cast %1631 : vector<64x64xf32> to vector<1x64x64xf32>
    tpu.vector_store %arg5[%c0_52, %c0_53, %c0_54], %1634 {strides = array<i32>} : memref<1x64x64xf32, #tpu.memory_space<vmem>>, vector<1x64x64xf32>,
    return
  }
  func.func @transform_0(%arg0: i32) -> (i32, i32, i32, i32) {
    %c0_i32 = arith.constant 0 : i32
    %c0_i32_0 = arith.constant 0 : i32
    %c0_i32_1 = arith.constant 0 : i32
    %c0_i32_2 = arith.constant 0 : i32
    return %arg0, %c0_i32, %c0_i32_0, %c0_i32_1 : i32, i32, i32, i32
  }
  func.func @transform_1(%arg0: i32) -> i32 {
    %c0_i32 = arith.constant 0 : i32
    %c0_i32_0 = arith.constant 0 : i32
    return %c0_i32 : i32
  }
  func.func @transform_2(%arg0: i32) -> i32 {
    %c0_i32 = arith.constant 0 : i32
    %c0_i32_0 = arith.constant 0 : i32
    return %c0_i32 : i32
  }
  func.func @transform_3(%arg0: i32) -> (i32, i32, i32) {
    %c0_i32 = arith.constant 0 : i32
    %c0_i32_0 = arith.constant 0 : i32
    %c0_i32_1 = arith.constant 0 : i32
    %c0_i32_2 = arith.constant 0 : i32
    return %c0_i32, %c0_i32_0, %c0_i32_1 : i32, i32, i32
  }
  func.func @transform_4(%arg0: i32) -> (i32, i32, i32) {
    %c0_i32 = arith.constant 0 : i32
    %c0_i32_0 = arith.constant 0 : i32
    %c0_i32_1 = arith.constant 0 : i32
    return %arg0, %c0_i32, %c0_i32_0 : i32, i32, i32
  }
}

</mosaic_0001>

<bundles_post_ra>
// kernel: tpu_custom_call.1
= control target key start
LH: loop header
LB: loop body
LE: loop exit
PB: predicated region body
PF: predicated region fallthrough
CT: control target
= control target key end

     0   :  { %9 = vsyncpa [#allocation4], 0  ;;  %s9650_s0 = inlined_call_operand.vmem [shape: f32[2,4,18,18], index: 0, kind: input, shape index: {}]   ;;  %s9651_s1 = inlined_call_operand.vmem [shape: f32[256], index: 1, kind: input, shape index: {}]   ;;  %s9652_s2 = inlined_call_operand.vmem [shape: f32[4], index: 2, kind: input, shape index: {}]   ;;  %s9653_s3 = inlined_call_operand.vmem [shape: f32[4,16,64], index: 3, kind: input, shape index: {}]   ;;  %s9654_s4 = inlined_call_operand.hbm [shape: f32[2,64,64], index: 4, kind: output, shape index: {}]  }
   0x1   :  { %10 = vsyncpa [#allocation6], 0 }
   0x2   :  { %11 = vsyncpa [#allocation3], 0 }
   0x3   :  { %13 = vsyncpa [#allocation3 + $0x1], 0  ;;  %s5455_s15 = smov 0   ;;  %s5457_s16 = smov 0  }
   0x4   :  { %s5459_s17 = smov 0   ;;  %s5461_s18 = smov 0  }
   0x5 LB: > { %s5476_s19 = sadd.s32 4294967295, %s5423_s18   ;;  %s4885_s20 = sadd.s32 4294967294, %s5423_s18   ;;  %s5423_s18 = sphi %s5461_s18, %s10193_s18   ;;  %s5419_s17 = sphi %s5459_s17, %s10192_s17   ;;  %s5415_s16 = sphi %s5457_s16, %s10191_s16   ;;  %s5411_s15 = sphi %s5455_s15, %s10190_s15  }
   0x6   : > { %s5480_s21 = sadd.s32 1, %s5423_s18   ;;  %s115_s22 = sadd.s32 1, %s5419_s17 }
   0x7   : > { %s112_s23 = ssub.s32 %s5423_s18, %s5480_s21  ;;  %p125_p0 = scmp.ne.s32.totalorder %s5419_s17, %s5415_s16 }
   0x8   : > { %p113_p1 = scmp.eq.s32.totalorder %s112_s23, 0  ;;  %p126_p2 = scmp.eq.s32.totalorder %s5476_s19, 1 }
   0x9   : > { %p131_p3 = scmp.ne.s32.totalorder %s5415_s16, %s5411_s15  ;;  %p132_p4 = scmp.eq.s32.totalorder %s4885_s20, 1 }
   0xa   : > { %s5491_s24 = scalar_select %p113_p1, %s5419_s17, %s115_s22  }
   0xb   : > { %p5493_p5 = por %p126_p2, %p125_p0  ;;  %p5497_p6 = por %p132_p4, %p131_p3 }
   0xc   : > { %p4886_p7 = scmp.ge.s32.totalorder %s5423_s18, 1  ;;  %p139_p8 = scmp.lt.s32.totalorder %s5423_s18, 3 }
   0xd   : > { %p5219_p9 = scmp.eq.s32.totalorder %s5476_s19, 0  ;;  %s151_s29 = sshll.u32 %s9651_s1, 4  ;;  %s152_s29 = int_to_ptr.vmem [resolvable:$true] %s151_s29 }
   0xe   : > { %p140_p10 = pnand %p4886_p7, %p139_p8  ;;  %s161_s6 = sshll.u32 %s9652_s2, 4  ;;  %s162_s6 = int_to_ptr.vmem [resolvable:$true] %s161_s6 }
   0xf   : > { %s5425_s7 = smov [#allocation2]   ;;  %s5426_s8 = smov [#allocation5]  }
  0x10   : > { %p5208_p11 = pneg %p140_p10 }
  0x11   : > { %185 = sbr.rel (%p140_p10) target bundleno = 1241 (0x4d9), region = 36 }
  0x12   : > { %p5209_p12 = pnand %p5219_p9, %p5208_p11 }
  0x14   : > { %5211 = dma.vmem_to_smem (!%p5209_p12), %s152_s29, 32, %s5425_s7, [#allocation4]  }
  0x15   : > { %5214 = dma.vmem_to_smem (!%p5209_p12), %s162_s6, 16, %s5426_s8, [#allocation6]  }
  0x16   : > { %5398 = dma.done.wait (%p5219_p9), [#allocation4], 32  }
  0x17   : > { %5400 = vsyncadd (%p5219_p9), [#allocation4], 4294967264 }
  0x18   : > { %5402 = dma.done.wait (%p5219_p9), [#allocation6], 16  }
  0x19   : > { %5404 = vsyncadd (%p5219_p9), [#allocation6], 4294967280 }
  0x1a   : > { %197 = sfence }
  0x1b   : > { %p218_p13 = scmp.lt.s32.totalorder %s5476_s19, 1  ;;  %s4915_s9 = sld [smem:[#allocation2 + $0x12]]  ;;  %vm895_vm0 = vcmask 1046528   ;;  %vm4437_vm1 = vcmask 130048   ;;  %vm4776_vm2 = vcmask 523264  }
  0x1c   : > { %s4914_s11 = sld [smem:[#allocation2 + $0x11]]  ;;  %s5427_s23 = smov 127  }
  0x1d   : > { %s219_s10 = scalar_select %p218_p13, %s5476_s19, 1 }
  0x1e   : > { %s4913_s13 = sld [smem:[#allocation2 + $0x10]] }
  0x1f   : > { %s5197_s12 = smul.u32 96, %s219_s10  ;;  %s4917_s27 = sld [smem:[#allocation2 + $0x14]] }
  0x20   : > { %s4916_s28 = sld [smem:[#allocation2 + $0x13]] }
  0x21   : > { %s5525_s22 = scalar_lea.vmem %s9650_s0, %s5197_s12  ;;  %v372_v1 = vstv %s4915_s9  ;;  %s4918_s29 = sld [smem:[#allocation2 + $0x15]] }
  0x22   : > { %v5528_v0 = vld [vmem:[%s5525_s22 + $0x30] sm:$0xff]  ;;  %v5531_v2 = vld [vmem:[%s5525_s22 + $0x18] sm:$0xff]  ;;  %v5535_v4 = vld [vmem:[%s5525_s22] sm:$0xff]  ;;  %v358_v5 = vstv %s4914_s11  ;;  %s4920_s30 = sld [smem:[#allocation2 + $0x17]] }
  0x23   : > { %v373_v3 = vmul.f32 %v372_v1, %v5528_v0  ;;  %v359_v6 = vmul.f32 %v358_v5, %v5531_v2  ;;  %v5540_v8 = vld [vmem:[%s5525_s22 + $0x38] sm:$0xff]  ;;  %v5545_v10 = vld [vmem:[%s5525_s22 + $0x20] sm:$0xff]  ;;  %v5550_v12 = vld [vmem:[%s5525_s22 + $0x8] sm:$0xff]  ;;  %s4919_s5 = sld [smem:[#allocation2 + $0x16]] }
  0x24   : > { %v344_v7 = vstv %s4913_s13  ;;  %v374_v11 = vmul.f32 %v372_v1, %v5540_v8  ;;  %v360_v13 = vmul.f32 %v358_v5, %v5545_v10  ;;  %v5558_v16 = vld [vmem:[%s5525_s22 + $0x50] sm:$0xff]  ;;  %v5562_v19 = vld [vmem:[%s5525_s22 + $0x48] sm:$0xff]  ;;  %s4921_s6 = sld [smem:[#allocation2 + $0x18]] }
  0x25   : > { %377 = vrot.lane.b32.xlu2 %v373_v3, %s5427_s23  ;;  %v345_v9 = vmul.f32 %v344_v7, %v5535_v4  ;;  %363 = vrot.lane.b32.xlu1 %v359_v6, %s5427_s23  ;;  %v346_v14 = vmul.f32 %v344_v7, %v5550_v12  ;;  %v400_v15 = vstv %s4917_s27  ;;  %s4923_s7 = sld [smem:[#allocation2 + $0x1a]] }
  0x26   : > { %v386_v17 = vstv %s4916_s28  ;;  %v401_v18 = vmul.f32 %v400_v15, %v5535_v4  ;;  %v402_v25 = vmul.f32 %v400_v15, %v5550_v12  ;;  %s4922_s8 = sld [smem:[#allocation2 + $0x19]] }
  0x27   : > { %349 = vrot.lane.b32.xlu0 %v345_v9, %s5427_s23  ;;  %v388_v20 = vmul.f32 %v386_v17, %v5558_v16  ;;  %v387_v21 = vmul.f32 %v386_v17, %v5562_v19  ;;  %v414_v22 = vstv %s4918_s29  ;;  %s4924_s9 = sld [smem:[#allocation2 + $0x1b]] }
  0x28   : > { %v416_v23 = vmul.f32 %v414_v22, %v5545_v10  ;;  %v415_v24 = vmul.f32 %v414_v22, %v5531_v2  ;;  %v442_v26 = vstv %s4920_s30  ;;  %s4926_s10 = sld [smem:[#allocation2 + $0x1d]] }
  0x29   : > { %v428_v27 = vstv %s4919_s5  ;;  %v443_v28 = vmul.f32 %v442_v26, %v5562_v19  ;;  %v444_v34 = vmul.f32 %v442_v26, %v5558_v16  ;;  %s4925_s11 = sld [smem:[#allocation2 + $0x1c]] }
  0x2a   : > { %v430_v29 = vmul.f32 %v428_v27, %v5540_v8  ;;  %v429_v30 = vmul.f32 %v428_v27, %v5528_v0  ;;  %v456_v31 = vstv %s4921_s6  ;;  %s4927_s12 = sld [smem:[#allocation2 + $0x1e]] }
  0x2b   : > { %v458_v32 = vmul.f32 %v456_v31, %v5550_v12  ;;  %v457_v33 = vmul.f32 %v456_v31, %v5535_v4  ;;  %v484_v35 = vstv %s4923_s7  ;;  %s4945_s13 = sld [smem:[#allocation2 + $0x50]] }
  0x2c   : > { %v470_v36 = vstv %s4922_s8  ;;  %v485_v37 = vmul.f32 %v484_v35, %v5528_v0  ;;  %v486_v43 = vmul.f32 %v484_v35, %v5540_v8  ;;  %s4928_s14 = sld [smem:[#allocation2 + $0x1f]] }
  0x2d   : > { %379 = vrot.lane.b32.xlu2 %v374_v11, %s5427_s23  ;;  %365 = vrot.lane.b32.xlu1 %v360_v13, %s5427_s23  ;;  %v472_v38 = vmul.f32 %v470_v36, %v5545_v10  ;;  %v471_v39 = vmul.f32 %v470_v36, %v5531_v2  ;;  %v498_v40 = vstv %s4924_s9  ;;  %s4946_s20 = sld [smem:[#allocation2 + $0x51]] }
  0x2e   : > { %v500_v41 = vmul.f32 %v498_v40, %v5558_v16  ;;  %v499_v42 = vmul.f32 %v498_v40, %v5562_v19  ;;  %v526_v44 = vstv %s4926_s10  ;;  %s4948_s27 = sld [smem:[#allocation2 + $0x53]] }
  0x2f   : > { %351 = vrot.lane.b32.xlu0 %v346_v14, %s5427_s23  ;;  %v512_v45 = vstv %s4925_s11  ;;  %v527_v46 = vmul.f32 %v526_v44, %v5531_v2  ;;  %v528_v52 = vmul.f32 %v526_v44, %v5545_v10  ;;  %s4947_s28 = sld [smem:[#allocation2 + $0x52]] }
  0x30   : > { %v514_v47 = vmul.f32 %v512_v45, %v5550_v12  ;;  %v513_v48 = vmul.f32 %v512_v45, %v5535_v4  ;;  %v540_v49 = vstv %s4927_s12  ;;  %s4949_s29 = sld [smem:[#allocation2 + $0x54]] }
  0x31   : > { %v542_v50 = vmul.f32 %v540_v49, %v5540_v8  ;;  %v541_v51 = vmul.f32 %v540_v49, %v5528_v0  ;;  %v664_v53 = vstv %s4945_s13  ;;  %s4951_s30 = sld [smem:[#allocation2 + $0x56]] }
  0x32   : > { %v554_v54 = vstv %s4928_s14  ;;  %v665_v55 = vmul.f32 %v664_v53, %v5535_v4  ;;  %v666_v61 = vmul.f32 %v664_v53, %v5550_v12  ;;  %s4950_s5 = sld [smem:[#allocation2 + $0x55]] }
  0x33   : > { %v556_v56 = vmul.f32 %v554_v54, %v5558_v16  ;;  %v555_v57 = vmul.f32 %v554_v54, %v5562_v19  ;;  %v678_v58 = vstv %s4946_s20  ;;  %s4952_s6 = sld [smem:[#allocation2 + $0x57]] }
  0x34   : > { %v680_v59 = vmul.f32 %v678_v58, %v5545_v10  ;;  %v679_v60 = vmul.f32 %v678_v58, %v5531_v2  ;;  %v706_v62 = vstv %s4948_s27  ;;  %s5645_s7 = sld [smem:[#allocation2 + $0x59]] }
  0x35   : > { %405 = vrot.lane.b32.xlu2 %v401_v18, %s5427_s23  ;;  %393 = vrot.lane.b32.xlu1 %v388_v20, %s5427_s23  ;;  %v692_v1 = vstv %s4947_s28  ;;  %v707_v3 = vmul.f32 %v706_v62, %v5562_v19  ;;  %v708_v14 = vmul.f32 %v706_v62, %v5558_v16  ;;  %s4953_s8 = sld [smem:[#allocation2 + $0x58]] }
  0x36   : > { %v694_v5 = vmul.f32 %v692_v1, %v5540_v8  ;;  %v693_v6 = vmul.f32 %v692_v1, %v5528_v0  ;;  %v720_v7 = vstv %s4949_s29  ;;  %s4955_s9 = sld [smem:[#allocation2 + $0x5a]] }
  0x37   : > { %391 = vrot.lane.b32.xlu0 %v387_v21, %s5427_s23  ;;  %v722_v11 = vmul.f32 %v720_v7, %v5550_v12  ;;  %v721_v13 = vmul.f32 %v720_v7, %v5535_v4  ;;  %v748_v15 = vstv %s4951_s30  ;;  %s5672_s10 = sld [smem:[#allocation2 + $0x5c]] }
  0x38   : > { %v734_v18 = vstv %s4950_s5  ;;  %v749_v20 = vmul.f32 %v748_v15, %v5528_v0  ;;  %s4956_s11 = sld [smem:[#allocation2 + $0x5b]] }
  0x39   : > { %v736_v21 = vmul.f32 %v734_v18, %v5545_v10  ;;  %v735_v22 = vmul.f32 %v734_v18, %v5531_v2  ;;  %s4958_s12 = sld [smem:[#allocation2 + $0x5d]] }
  0x3a   : > { %s5699_s13 = sld [smem:[#allocation2 + $0x5f]] }
  0x3b   : > { %s4993_s14 = sld [smem:[#allocation2 + $0x30]] }
  0x3c   : > { %s4959_s20 = sld [smem:[#allocation2 + $0x5e]] }
  0x3d   : > { %421 = vrot.lane.b32.xlu2 %v416_v23, %s5427_s23  ;;  %419 = vrot.lane.b32.xlu1 %v415_v24, %s5427_s23  ;;  %v762_v23 = vstv %s4952_s6  ;;  %v832_v45 = vstv %s5672_s10  ;;  %s4995_s27 = sld [smem:[#allocation2 + $0x32]] }
  0x3e   : > { %v764_v26 = vmul.f32 %v762_v23, %v5558_v16  ;;  %v833_v49 = vmul.f32 %v832_v45, %v5535_v4  ;;  %s4994_s28 = sld [smem:[#allocation2 + $0x31]] }
  0x3f   : > { %407 = vrot.lane.b32.xlu0 %v402_v25, %s5427_s23  ;;  %v846_v53 = vstv %s4958_s12  ;;  %s4996_s29 = sld [smem:[#allocation2 + $0x33]] }
  0x40   : > { %v847_v58 = vmul.f32 %v846_v53, %v5531_v2  ;;  %s4998_s30 = sld [smem:[#allocation2 + $0x35]] }
  0x41   : > { %v1289_v62 = vstv %s4993_s14  ;;  %s4997_s5 = sld [smem:[#allocation2 + $0x34]] }
  0x42   : > { %v860_v1 = vstv %s4959_s20  ;;  %v1290_v18 = vmul.f32 %v1289_v62, %v5535_v4  ;;  %s4999_s6 = sld [smem:[#allocation2 + $0x36]] }
  0x43   : > { %s5004_s10 = sld [smem:[#allocation2 + $0x3b]] }
  0x44   : > { %s5005_s12 = sld [smem:[#allocation2 + $0x3c]] }
  0x45   : > { %447 = vrot.lane.b32.xlu2 %v443_v28, %s5427_s23  ;;  %435 = vrot.lane.b32.xlu1 %v430_v29, %s5427_s23  ;;  %v763_v28 = vmul.f32 %v762_v23, %v5562_v19  ;;  %v750_v29 = vmul.f32 %v748_v15, %v5540_v8  ;;  %v861_v15 = vmul.f32 %v860_v1, %v5528_v0  ;;  %v1331_v23 = vstv %s4995_s27  ;;  %s5006_s14 = sld [smem:[#allocation2 + $0x3d]] }
  0x46   : > { %s5008_s20 = sld [smem:[#allocation2 + $0x3f]] }
  0x47   : > { %433 = vrot.lane.b32.xlu0 %v429_v30, %s5427_s23  ;;  %v790_v30 = vstv %s5645_s7  ;;  %s5001_s7 = sld [smem:[#allocation2 + $0x38]] }
  0x48   : > { %v792_v44 = vmul.f32 %v790_v30, %v5545_v10  ;;  %s5890_s27 = sld [smem:[#allocation2]] }
  0x4d   : > { %463 = vrot.lane.b32.xlu2 %v458_v32, %s5427_s23  ;;  %461 = vrot.lane.b32.xlu1 %v457_v33, %s5427_s23  ;;  %v776_v32 = vstv %s4953_s8  ;;  %s5000_s8 = sld [smem:[#allocation2 + $0x37]] }
  0x4e   : > { %v778_v36 = vmul.f32 %v776_v32, %v5550_v12 }
  0x4f   : > { %449 = vrot.lane.b32.xlu0 %v444_v34, %s5427_s23  ;;  %v791_v34 = vmul.f32 %v790_v30, %v5531_v2 }
  0x55   : > { %489 = vrot.lane.b32.xlu2 %v485_v37, %s5427_s23  ;;  %477 = vrot.lane.b32.xlu1 %v472_v38, %s5427_s23  ;;  %v777_v37 = vmul.f32 %v776_v32, %v5535_v4  ;;  %v804_v38 = vstv %s4955_s9  ;;  %s5002_s9 = sld [smem:[#allocation2 + $0x39]] }
  0x57   : > { %475 = vrot.lane.b32.xlu0 %v471_v39, %s5427_s23 }
  0x5d   : > { %505 = vrot.lane.b32.xlu2 %v500_v41, %s5427_s23  ;;  %503 = vrot.lane.b32.xlu1 %v499_v42, %s5427_s23  ;;  %v806_v41 = vmul.f32 %v804_v38, %v5540_v8 }
  0x5f   : > { %491 = vrot.lane.b32.xlu0 %v486_v43, %s5427_s23  ;;  %v805_v43 = vmul.f32 %v804_v38, %v5528_v0 }
  0x65   : > { %531 = vrot.lane.b32.xlu2 %v527_v46, %s5427_s23  ;;  %519 = vrot.lane.b32.xlu1 %v514_v47, %s5427_s23  ;;  %v818_v47 = vstv %s4956_s11  ;;  %s5003_s11 = sld [smem:[#allocation2 + $0x3a]] }
  0x67   : > { %517 = vrot.lane.b32.xlu0 %v513_v48, %s5427_s23 }
  0x6d   : > { %547 = vrot.lane.b32.xlu2 %v542_v50, %s5427_s23  ;;  %545 = vrot.lane.b32.xlu1 %v541_v51, %s5427_s23  ;;  %v820_v51 = vmul.f32 %v818_v47, %v5558_v16 }
  0x6f   : > { %533 = vrot.lane.b32.xlu0 %v528_v52, %s5427_s23  ;;  %v819_v52 = vmul.f32 %v818_v47, %v5562_v19 }
  0x75   : > { %669 = vrot.lane.b32.xlu2 %v665_v55, %s5427_s23  ;;  %561 = vrot.lane.b32.xlu1 %v556_v56, %s5427_s23  ;;  %v848_v56 = vmul.f32 %v846_v53, %v5545_v10 }
  0x77   : > { %559 = vrot.lane.b32.xlu0 %v555_v57, %s5427_s23 }
  0x7d   : > { %685 = vrot.lane.b32.xlu2 %v680_v59, %s5427_s23  ;;  %683 = vrot.lane.b32.xlu1 %v679_v60, %s5427_s23  ;;  %v834_v59 = vmul.f32 %v832_v45, %v5550_v12  ;;  %v874_v60 = vstv %s5699_s13  ;;  %s5007_s13 = sld [smem:[#allocation2 + $0x3e]] }
  0x7f   : > { %v5622_v63 = vpop.permute.xlu2 %377  ;;  %671 = vrot.lane.b32.xlu0 %v666_v61, %s5427_s23 }
  0x85   : > { %711 = vrot.lane.b32.xlu2 %v707_v3, %s5427_s23  ;;  %699 = vrot.lane.b32.xlu1 %v694_v5, %s5427_s23  ;;  %v5719_v3 = vld [vmem:[%s5525_s22 + $0x10] sm:$0x3] }
  0x87   : > { %v5630_v9 = vpop.permute.xlu2 %379  ;;  %697 = vrot.lane.b32.xlu0 %v693_v6, %s5427_s23  ;;  %v875_v6 = vmul.f32 %v874_v60, %v5562_v19 }
  0x8d   : > { %727 = vrot.lane.b32.xlu2 %v722_v11, %s5427_s23  ;;  %725 = vrot.lane.b32.xlu1 %v721_v13, %s5427_s23  ;;  %v1291_v11 = vmul.f32 %v1289_v62, %v5550_v12  ;;  %v1292_v13 = vmul.f32 %v1289_v62, %v5719_v3 }
  0x8f   : > { %v5638_v17 = vpop.permute.xlu2 %405  ;;  %713 = vrot.lane.b32.xlu0 %v708_v14, %s5427_s23  ;;  %v862_v14 = vmul.f32 %v860_v1, %v5540_v8 }
  0x95   : > { %753 = vrot.lane.b32.xlu2 %v749_v20, %s5427_s23  ;;  %741 = vrot.lane.b32.xlu1 %v736_v21, %s5427_s23  ;;  %v1297_v20 = vrot.slane %v1291_v11, 1  ;;  %v1299_v21 = vrot.slane %v1292_v13, 1 }
  0x97   : > { %v5648_v24 = vpop.permute.xlu2 %421  ;;  %739 = vrot.lane.b32.xlu0 %v735_v22, %s5427_s23  ;;  %v5651_v25 = vpop.permute.xlu1 %363  ;;  %v1300_v32 = vsel %vm895_vm0, %v1297_v20, %v1299_v21 }
  0x99   : > { %v5654_v27 = vpop.permute.xlu0 %349 }
  0x9d   : > { %769 = vrot.lane.b32.xlu2 %v764_v26, %s5427_s23  ;;  %767 = vrot.lane.b32.xlu1 %v763_v28, %s5427_s23  ;;  %v1296_v26 = vrot.slane %v1290_v18, 1 }
  0x9f   : > { %v5661_v31 = vpop.permute.xlu2 %447  ;;  %755 = vrot.lane.b32.xlu0 %v750_v29, %s5427_s23  ;;  %v5664_v33 = vpop.permute.xlu1 %365  ;;  %v1310_v29 = vstv %s4994_s28  ;;  %v1298_v38 = vsel %vm895_vm0, %v1296_v26, %v1297_v20  ;;  %s235_s28 = sld [smem:[#allocation5]] }
  0xa0   : > { %v1311_v45 = vmul.f32 %v1310_v29, %v5531_v2 }
  0xa1   : > { %v5667_v35 = vpop.permute.xlu0 %351 }
  0xa5   : > { %795 = vrot.lane.b32.xlu2 %v791_v34, %s5427_s23  ;;  %783 = vrot.lane.b32.xlu1 %v778_v36, %s5427_s23  ;;  %v1332_v34 = vmul.f32 %v1331_v23, %v5528_v0  ;;  %v1333_v36 = vmul.f32 %v1331_v23, %v5540_v8 }
  0xa7   : > { %v5675_v39 = vpop.permute.xlu2 %463  ;;  %781 = vrot.lane.b32.xlu0 %v777_v37, %s5427_s23  ;;  %v5678_v40 = vpop.permute.xlu1 %393  ;;  %v5744_v37 = vld [vmem:[%s5525_s22 + $0x28] sm:$0x3]  ;;  %v1338_v47 = vrot.slane %v1332_v34, 1 }
  0xa9   : > { %v5681_v42 = vpop.permute.xlu0 %391 }
  0xad   : > { %811 = vrot.lane.b32.xlu2 %v806_v41, %s5427_s23  ;;  %809 = vrot.lane.b32.xlu1 %v805_v43, %s5427_s23  ;;  %v876_v41 = vmul.f32 %v874_v60, %v5558_v16  ;;  %v1312_v43 = vmul.f32 %v1310_v29, %v5545_v10  ;;  %v5759_v60 = vld [vmem:[%s5525_s22 + $0x58] sm:$0x3] }
  0xaf   : > { %v5688_v46 = vpop.permute.xlu2 %489  ;;  %797 = vrot.lane.b32.xlu0 %v792_v44, %s5427_s23  ;;  %v5691_v48 = vpop.permute.xlu1 %419  ;;  %v1313_v44 = vmul.f32 %v1310_v29, %v5744_v37  ;;  %v1318_v53 = vrot.slane %v1312_v43, 1 }
  0xb1   : > { %v5694_v50 = vpop.permute.xlu0 %407 }
  0xb5   : > { %837 = vrot.lane.b32.xlu2 %v833_v49, %s5427_s23  ;;  %825 = vrot.lane.b32.xlu1 %v820_v51, %s5427_s23  ;;  %v1339_v49 = vrot.slane %v1333_v36, 1 }
  0xb7   : > { %v5702_v54 = vpop.permute.xlu2 %505  ;;  %823 = vrot.lane.b32.xlu0 %v819_v52, %s5427_s23  ;;  %v5705_v55 = vpop.permute.xlu1 %435  ;;  %v1352_v52 = vstv %s4996_s29  ;;  %v1340_v1 = vsel %vm895_vm0, %v1338_v47, %v1339_v49  ;;  %s5903_s29 = sld [smem:[#allocation2 + $0x1]] }
  0xb8   : > { %9736 = vst [vmem:[#allocation11_spill] sm:$0xff] %v5702_v54  ;;  %v1355_v11 = vmul.f32 %v1352_v52, %v5759_v60 }
  0xb9   : > { %v5708_v57 = vpop.permute.xlu0 %433 }
  0xba   : > { %v1362_v26 = vrot.slane %v1355_v11, 1 }
  0xbd   : > { %853 = vrot.lane.b32.xlu2 %v848_v56, %s5427_s23  ;;  %851 = vrot.lane.b32.xlu1 %v847_v58, %s5427_s23  ;;  %v1320_v56 = vrot.slane %v1313_v44, 1 }
  0xbf   : > { %v5715_v61 = vpop.permute.xlu2 %531  ;;  %839 = vrot.lane.b32.xlu0 %v834_v59, %s5427_s23  ;;  %v5721_v5 = vpop.permute.xlu1 %461  ;;  %v1317_v59 = vrot.slane %v1311_v45, 1  ;;  %v1321_v13 = vsel %vm895_vm0, %v1318_v53, %v1320_v56 }
  0xc0   : > { %9737 = vst [vmem:[#allocation12_spill] sm:$0xff] %v5715_v61 }
  0xc1   : > { %v5724_v7 = vpop.permute.xlu0 %449  ;;  %v1319_v18 = vsel %vm895_vm0, %v1317_v59, %v1318_v53 }
  0xc5   : > { %879 = vrot.lane.b32.xlu2 %v875_v6, %s5427_s23  ;;  %867 = vrot.lane.b32.xlu1 %v862_v14, %s5427_s23  ;;  %v1354_v6 = vmul.f32 %v1352_v52, %v5558_v16  ;;  %v1353_v14 = vmul.f32 %v1352_v52, %v5562_v19 }
  0xc7   : > { %v5733_v22 = vpop.permute.xlu2 %547  ;;  %865 = vrot.lane.b32.xlu0 %v861_v15, %s5427_s23  ;;  %v5736_v28 = vpop.permute.xlu1 %477  ;;  %v5769_v15 = vld [vmem:[%s5525_s22 + $0x40] sm:$0x3]  ;;  %v1360_v21 = vrot.slane %v1354_v6, 1  ;;  %v1359_v34 = vrot.slane %v1353_v14, 1 }
  0xc8   : > { %9738 = vst [vmem:[#allocation13_spill] sm:$0xff] %v5733_v22  ;;  %v1334_v20 = vmul.f32 %v1331_v23, %v5769_v15 }
  0xc9   : > { %v5738_v30 = vpop.permute.xlu0 %475  ;;  %v1363_v44 = vsel %vm895_vm0, %v1360_v21, %v1362_v26  ;;  %v1361_v47 = vsel %vm895_vm0, %v1359_v34, %v1360_v21 }
  0xcd   : > { %1303 = vrot.lane.b32.xlu2 %v1300_v32, %s5427_s23  ;;  %1301 = vrot.lane.b32.xlu1 %v1298_v38, %s5427_s23  ;;  %v1394_v32 = vstv %s4998_s30  ;;  %v1341_v38 = vrot.slane %v1334_v20, 1  ;;  %s5025_s30 = sld [smem:[#allocation2 + $0x90]] }
  0xce   : > { %v1395_v23 = vmul.f32 %v1394_v32, %v5531_v2  ;;  %v1396_v45 = vmul.f32 %v1394_v32, %v5545_v10 }
  0xcf   : > { %v5753_v51 = vpop.permute.xlu2 %669  ;;  %881 = vrot.lane.b32.xlu0 %v876_v41, %s5427_s23  ;;  %v5756_v58 = vpop.permute.xlu1 %503  ;;  %v1373_v41 = vstv %s4997_s5  ;;  %v1342_v56 = vsel %vm895_vm0, %v1339_v49, %v1341_v38  ;;  %s5911_s5 = sld [smem:[#allocation2 + $0x2]] }
  0xd0   : > { %9739 = vst [vmem:[#allocation14_spill] sm:$0xff] %v5753_v51  ;;  %v1375_v52 = vmul.f32 %v1373_v41, %v5550_v12  ;;  %v1376_v53 = vmul.f32 %v1373_v41, %v5719_v3  ;;  %v1374_v59 = vmul.f32 %v1373_v41, %v5535_v4  ;;  %v1402_v6 = vrot.slane %v1396_v45, 1 }
  0xd1   : > { %9740 = vst [vmem:[#allocation15_spill] sm:$0xff] %v5756_v58  ;;  %v5761_v62 = vpop.permute.xlu0 %491  ;;  %v1397_v45 = vmul.f32 %v1394_v32, %v5744_v37 }
  0xd2   : > { %9741 = vst [vmem:[#allocation16_spill] sm:$0xff] %v5761_v62  ;;  %v1381_v14 = vrot.slane %v1375_v52, 1  ;;  %v1380_v21 = vrot.slane %v1374_v59, 1 }
  0xd5   : > { %1343 = vrot.lane.b32.xlu2 %v1340_v1, %s5427_s23  ;;  %1324 = vrot.lane.b32.xlu1 %v1321_v13, %s5427_s23  ;;  %v1401_v1 = vrot.slane %v1395_v23, 1  ;;  %v1415_v13 = vstv %s4999_s6  ;;  %v1382_v23 = vsel %vm895_vm0, %v1380_v21, %v1381_v14  ;;  %s5917_s6 = sld [smem:[#allocation2 + $0x4]] }
  0xd6   : > { %v1417_v34 = vmul.f32 %v1415_v13, %v5540_v8  ;;  %v1418_v38 = vmul.f32 %v1415_v13, %v5769_v15 }
  0xd7   : > { %v5775_v29 = vpop.permute.xlu2 %685  ;;  %1322 = vrot.lane.b32.xlu0 %v1319_v18, %s5427_s23  ;;  %v5778_v36 = vpop.permute.xlu1 %519  ;;  %v1383_v18 = vrot.slane %v1376_v53, 1  ;;  %v1403_v49 = vsel %vm895_vm0, %v1401_v1, %v1402_v6 }
  0xd8   : > { %9742 = vst [vmem:[#allocation17_spill] sm:$0xff] %v5775_v29  ;;  %v1425_v52 = vrot.slane %v1418_v38, 1  ;;  %v1478_v29 = vstv %s5002_s9  ;;  %s5931_s9 = sld [smem:[#allocation2 + $0x5]] }
  0xd9   : > { %9743 = vst [vmem:[#allocation18_spill] sm:$0xff] %v5778_v36  ;;  %v5780_v43 = vpop.permute.xlu0 %517  ;;  %v1384_v41 = vsel %vm895_vm0, %v1381_v14, %v1383_v18  ;;  %v1436_v18 = vstv %s5000_s8  ;;  %s4895_s8 = sld [smem:[#allocation5 + $0x1]] }
  0xda   : > { %9744 = vst [vmem:[#allocation19_spill] sm:$0xff] %v5780_v43  ;;  %v1438_v38 = vmul.f32 %v1436_v18, %v5558_v16 }
  0xdd   : > { %1366 = vrot.lane.b32.xlu2 %v1363_v44, %s5427_s23  ;;  %1364 = vrot.lane.b32.xlu1 %v1361_v47, %s5427_s23  ;;  %v1416_v44 = vmul.f32 %v1415_v13, %v5528_v0  ;;  %v1423_v47 = vrot.slane %v1417_v34, 1  ;;  %v1404_v13 = vrot.slane %v1397_v45, 1 }
  0xdf   : > { %v5792_v11 = vpop.permute.xlu2 %711  ;;  %1345 = vrot.lane.b32.xlu0 %v1342_v56, %s5427_s23  ;;  %v5795_v20 = vpop.permute.xlu1 %545  ;;  %v1457_v56 = vstv %s5001_s7  ;;  %v1422_v59 = vrot.slane %v1416_v44, 1  ;;  %v1426_v14 = vsel %vm895_vm0, %v1423_v47, %v1425_v52  ;;  %v1405_v44 = vsel %vm895_vm0, %v1402_v6, %v1404_v13  ;;  %s5921_s7 = sld [smem:[#allocation2 + $0x3]] }
  0xe0   : > { %9745 = vst [vmem:[#allocation20_spill] sm:$0xff] %v5792_v11  ;;  %v1458_v32 = vmul.f32 %v1457_v56, %v5535_v4  ;;  %v1459_v21 = vmul.f32 %v1457_v56, %v5550_v12  ;;  %v1480_v13 = vmul.f32 %v1478_v29, %v5545_v10 }
  0xe1   : > { %9746 = vst [vmem:[#allocation21_spill] sm:$0xff] %v5795_v20  ;;  %v5797_v26 = vpop.permute.xlu0 %533  ;;  %v1424_v34 = vsel %vm895_vm0, %v1422_v59, %v1423_v47  ;;  %v1444_v47 = vrot.slane %v1438_v38, 1  ;;  %v1460_v38 = vmul.f32 %v1457_v56, %v5719_v3 }
  0xe2   : > { %9747 = vst [vmem:[#allocation22_spill] sm:$0xff] %v5797_v26  ;;  %v1464_v45 = vrot.slane %v1458_v32, 1  ;;  %v1465_v11 = vrot.slane %v1459_v21, 1  ;;  %v1479_v21 = vmul.f32 %v1478_v29, %v5531_v2  ;;  %v6104_v26 = vld [vmem:[%s5525_s22 + $0x48] sm:$0xff] }
  0xe4   : > { %v1466_v6 = vsel %vm895_vm0, %v1464_v45, %v1465_v11  ;;  %v1520_v45 = vstv %s5004_s10  ;;  %s5026_s10 = sld [smem:[#allocation2 + $0x91]] }
  0xe5   : > { %1406 = vrot.lane.b32.xlu2 %v1403_v49, %s5427_s23  ;;  %1387 = vrot.lane.b32.xlu1 %v1384_v41, %s5427_s23  ;;  %v1439_v41 = vmul.f32 %v1436_v18, %v5759_v60  ;;  %v1521_v56 = vmul.f32 %v1520_v45, %v5562_v19 }
  0xe7   : > { %v5808_v53 = vpop.permute.xlu2 %727  ;;  %1385 = vrot.lane.b32.xlu0 %v1382_v23, %s5427_s23  ;;  %v5811_v1 = vpop.permute.xlu1 %561  ;;  %v1437_v23 = vmul.f32 %v1436_v18, %v5562_v19  ;;  %v1446_v59 = vrot.slane %v1439_v41, 1  ;;  %v1481_v18 = vmul.f32 %v1478_v29, %v5744_v37  ;;  %v1486_v41 = vrot.slane %v1480_v13, 1 }
  0xe8   : > { %9748 = vst [vmem:[#allocation23_spill] sm:$0xff] %v5808_v53  ;;  %v1467_v29 = vrot.slane %v1460_v38, 1  ;;  %v1527_v38 = vrot.slane %v1521_v56, 1 }
  0xe9   : > { %9749 = vst [vmem:[#allocation24_spill] sm:$0xff] %v5811_v1  ;;  %v5813_v49 = vpop.permute.xlu0 %559  ;;  %v1443_v51 = vrot.slane %v1437_v23, 1  ;;  %v1447_v32 = vsel %vm895_vm0, %v1444_v47, %v1446_v59 }
  0xea   : > { %9750 = vst [vmem:[#allocation25_spill] sm:$0xff] %v5813_v49 }
  0xed   : > { %1429 = vrot.lane.b32.xlu2 %v1426_v14, %s5427_s23  ;;  %1427 = vrot.lane.b32.xlu1 %v1424_v34, %s5427_s23  ;;  %v1445_v34 = vsel %vm895_vm0, %v1443_v51, %v1444_v47  ;;  %v1522_v47 = vmul.f32 %v1520_v45, %v5558_v16 }
  0xef   : > { %v5825_v52 = vpop.permute.xlu2 %753  ;;  %1408 = vrot.lane.b32.xlu0 %v1405_v44, %s5427_s23  ;;  %v5828_v53 = vpop.permute.xlu1 %683  ;;  %v1488_v44 = vrot.slane %v1481_v18, 1 }
  0xf0   : > { %9751 = vst [vmem:[#allocation26_spill] sm:$0xff] %v5825_v52  ;;  %v1485_v52 = vrot.slane %v1479_v21, 1  ;;  %v1468_v21 = vsel %vm895_vm0, %v1465_v11, %v1467_v29 }
  0xf1   : > { %9752 = vst [vmem:[#allocation27_spill] sm:$0xff] %v5828_v53  ;;  %v5830_v14 = vpop.permute.xlu0 %671  ;;  %v1489_v51 = vsel %vm895_vm0, %v1486_v41, %v1488_v44 }
  0xf2   : > { %9753 = vst [vmem:[#allocation28_spill] sm:$0xff] %v5830_v14  ;;  %v1499_v14 = vstv %s5003_s11  ;;  %v1487_v13 = vsel %vm895_vm0, %v1485_v52, %v1486_v41  ;;  %s5946_s11 = sld [smem:[#allocation2 + $0x6]] }
  0xf3   : > { %v1501_v18 = vmul.f32 %v1499_v14, %v5540_v8 }
  0xf5   : > { %1469 = vrot.lane.b32.xlu2 %v1466_v6, %s5427_s23  ;;  %1450 = vrot.lane.b32.xlu1 %v1447_v32, %s5427_s23  ;;  %v1502_v32 = vmul.f32 %v1499_v14, %v5769_v15  ;;  %v1507_v52 = vrot.slane %v1501_v18, 1  ;;  %v1523_v18 = vmul.f32 %v1520_v45, %v5759_v60 }
  0xf7   : > { %v5841_v23 = vpop.permute.xlu2 %769  ;;  %1448 = vrot.lane.b32.xlu0 %v1445_v34, %s5427_s23  ;;  %v5844_v59 = vpop.permute.xlu1 %699  ;;  %v1500_v34 = vmul.f32 %v1499_v14, %v5528_v0  ;;  %v1509_v41 = vrot.slane %v1502_v32, 1 }
  0xf8   : > { %9754 = vst [vmem:[#allocation29_spill] sm:$0xff] %v5841_v23  ;;  %v1528_v23 = vrot.slane %v1522_v47, 1  ;;  %v9785_v61 = vstv %s5946_s11 }
  0xf9   : > { %9755 = vst [vmem:[#allocation30_spill] sm:$0xff] %v5844_v59  ;;  %v5846_v6 = vpop.permute.xlu0 %697  ;;  %v1506_v53 = vrot.slane %v1500_v34, 1  ;;  %v1510_v56 = vsel %vm895_vm0, %v1507_v52, %v1509_v41 }
  0xfa   : > { %9756 = vst [vmem:[#allocation31_spill] sm:$0xff] %v5846_v6  ;;  %v1541_v6 = vstv %s5005_s12  ;;  %v1529_v11 = vsel %vm895_vm0, %v1527_v38, %v1528_v23  ;;  %v1583_v38 = vstv %s5007_s13  ;;  %s4961_s12 = sld [smem:[#allocation2 + $0x20]] }
  0xfb   : > { %v1543_v14 = vmul.f32 %v1541_v6, %v5550_v12  ;;  %v1544_v29 = vmul.f32 %v1541_v6, %v5719_v3  ;;  %v1542_v47 = vmul.f32 %v1541_v6, %v5535_v4  ;;  %v1530_v6 = vrot.slane %v1523_v18, 1  ;;  %s5958_s13 = sld [smem:[#allocation2 + $0x7]] }
  0xfc   : > { %v1584_v45 = vmul.f32 %v1583_v38, %v5528_v0 }
  0xfd   : > { %1492 = vrot.lane.b32.xlu2 %v1489_v51, %s5427_s23  ;;  %1490 = vrot.lane.b32.xlu1 %v1487_v13, %s5427_s23  ;;  %v1508_v13 = vsel %vm895_vm0, %v1506_v53, %v1507_v52  ;;  %v1549_v32 = vrot.slane %v1543_v14, 1  ;;  %v1585_v52 = vmul.f32 %v1583_v38, %v5540_v8 }
  0xfe   : > { %v1590_v18 = vrot.slane %v1584_v45, 1 }
  0xff   : > { %v5858_v44 = vpop.permute.xlu2 %795  ;;  %1471 = vrot.lane.b32.xlu0 %v1468_v21, %s5427_s23  ;;  %v5861_v59 = vpop.permute.xlu1 %725  ;;  %v1551_v21 = vrot.slane %v1544_v29, 1 }
 0x100   : > { %9757 = vst [vmem:[#allocation32_spill] sm:$0xff] %v5858_v44  ;;  %v1548_v44 = vrot.slane %v1542_v47, 1  ;;  %v1531_v47 = vsel %vm895_vm0, %v1528_v23, %v1530_v6  ;;  %v888_v22 = vstv %s4961_s12  ;;  %s6040_s12 = sld [smem:[#allocation2 + $0xa]] }
 0x101   : > { %9758 = vst [vmem:[#allocation33_spill] sm:$0xff] %v5861_v59  ;;  %v5863_v51 = vpop.permute.xlu0 %713  ;;  %v1562_v59 = vstv %s5006_s14  ;;  %v1552_v53 = vsel %vm895_vm0, %v1549_v32, %v1551_v21  ;;  %s5027_s14 = sld [smem:[#allocation2 + $0x92]] }
 0x102   : > { %9759 = vst [vmem:[#allocation34_spill] sm:$0xff] %v5863_v51  ;;  %v1550_v14 = vsel %vm895_vm0, %v1548_v44, %v1549_v32  ;;  %v1564_v29 = vmul.f32 %v1562_v59, %v5545_v10 }
 0x104   : > { %v1570_v44 = vrot.slane %v1564_v29, 1 }
 0x105   : > { %1532 = vrot.lane.b32.xlu2 %v1529_v11, %s5427_s23  ;;  %1513 = vrot.lane.b32.xlu1 %v1510_v56, %s5427_s23  ;;  %v1565_v56 = vmul.f32 %v1562_v59, %v5744_v37 }
 0x107   : > { %v5874_v34 = vpop.permute.xlu2 %811  ;;  %1511 = vrot.lane.b32.xlu0 %v1508_v13, %s5427_s23  ;;  %v5877_v41 = vpop.permute.xlu1 %741  ;;  %v1563_v13 = vmul.f32 %v1562_v59, %v5531_v2  ;;  %v1572_v32 = vrot.slane %v1565_v56, 1  ;;  %v1586_v56 = vmul.f32 %v1583_v38, %v5769_v15 }
 0x108   : > { %9760 = vst [vmem:[#allocation35_spill] sm:$0xff] %v5874_v34  ;;  %v1591_v34 = vrot.slane %v1585_v52, 1 }
 0x109   : > { %9761 = vst [vmem:[#allocation36_spill] sm:$0xff] %v5877_v41  ;;  %v5879_v11 = vpop.permute.xlu0 %739  ;;  %v1604_v41 = vstv %s5008_s20  ;;  %v1573_v52 = vsel %vm895_vm0, %v1570_v44, %v1572_v32  ;;  %s4962_s20 = sld [smem:[#allocation2 + $0x21]] }
 0x10a   : > { %9762 = vst [vmem:[#allocation37_spill] sm:$0xff] %v5879_v11  ;;  %v1592_v59 = vsel %vm895_vm0, %v1590_v18, %v1591_v34  ;;  %v1606_v6 = vmul.f32 %v1604_v41, %v5558_v16  ;;  %v1607_v45 = vmul.f32 %v1604_v41, %v5759_v60  ;;  %v248_v18 = vstv %s5890_s27  ;;  %s5988_s27 = sld [smem:[#allocation2 + $0x22]] }
 0x10b   : > { %v249_v38 = vmul.f32 %v248_v18, %v5535_v4 }
 0x10d   : > { %1555 = vrot.lane.b32.xlu2 %v1552_v53, %s5427_s23  ;;  %1553 = vrot.lane.b32.xlu1 %v1550_v14, %s5427_s23  ;;  %v1569_v53 = vrot.slane %v1563_v13, 1  ;;  %v1605_v14 = vmul.f32 %v1604_v41, %v5562_v19  ;;  %v1614_v13 = vrot.slane %v1607_v45, 1  ;;  %v254_v45 = vstv %s5903_s29  ;;  %s6000_s29 = sld [smem:[#allocation5 + $0x2]] }
 0x10f   : > { %v5893_v21 = vpop.permute.xlu2 %837  ;;  %1534 = vrot.lane.b32.xlu0 %v1531_v47, %s5427_s23  ;;  %v5896_v11 = vpop.permute.xlu1 %767  ;;  %v1571_v29 = vsel %vm895_vm0, %v1569_v53, %v1570_v44  ;;  %v1612_v47 = vrot.slane %v1606_v6, 1  ;;  %v1611_v41 = vrot.slane %v1605_v14, 1  ;;  %v1593_v44 = vrot.slane %v1586_v56, 1 }
 0x110   : > { %9763 = vst [vmem:[#allocation38_spill] sm:$0xff] %v5893_v21  ;;  %v5927_v6 = vstv %s235_s28  ;;  %s5993_s28 = sld [smem:[#allocation2 + $0x93]] }
 0x111   : > { %9764 = vst [vmem:[#allocation39_spill] sm:$0xff] %v5896_v11  ;;  %v5898_v23 = vpop.permute.xlu0 %755  ;;  %v1594_v14 = vsel %vm895_vm0, %v1591_v34, %v1593_v44  ;;  %v251_v56 = vadd.f32 %v249_v38, %v5927_v6  ;;  %v266_v38 = vstv %s5921_s7  ;;  %s6013_s7 = sld [smem:[#allocation2 + $0x8]] }
 0x112   : > { %9765 = vst [vmem:[#allocation40_spill] sm:$0xff] %v5898_v23  ;;  %v9774_v23 = vstv %s5917_s6 }
 0x113   : > { %9769 = vst [vmem:[#allocation44_spill] sm:$0xff] %v5927_v6  ;;  %v273_v11 = vmul.f32 %v9774_v23, %v5535_v4 }
 0x115   : > { %1595 = vrot.lane.b32.xlu2 %v1592_v59, %s5427_s23  ;;  %1576 = vrot.lane.b32.xlu1 %v1573_v52, %s5427_s23  ;;  %v1615_v59 = vsel %vm895_vm0, %v1612_v47, %v1614_v13  ;;  %v1613_v52 = vsel %vm895_vm0, %v1611_v41, %v1612_v47  ;;  %v260_v13 = vstv %s5911_s5  ;;  %v5955_v47 = vstv %s4895_s8  ;;  %s6023_s8 = sld [smem:[#allocation2 + $0x23]] }
 0x116   : > { %v261_v44 = vmul.f32 %v260_v13, %v5528_v0  ;;  %9773 = vst [vmem:[#allocation48_spill] sm:$0xff] %v5955_v47  ;;  %s6179_s5 = sld [smem:[#allocation2 + $0x27]] }
 0x117   : > { %v5914_v21 = vpop.permute.xlu2 %853  ;;  %1574 = vrot.lane.b32.xlu0 %v1571_v29, %s5427_s23  ;;  %v5919_v32 = vpop.permute.xlu1 %783  ;;  %v255_v29 = vmul.f32 %v254_v45, %v5531_v2 }
 0x118   : > { %9766 = vst [vmem:[#allocation41_spill] sm:$0xff] %v5914_v21  ;;  %v1897_v21 = vstv %s5025_s30  ;;  %s6165_s30 = sld [smem:[#allocation2 + $0x28]] }
 0x119   : > { %9767 = vst [vmem:[#allocation42_spill] sm:$0xff] %v5919_v32  ;;  %v5924_v53 = vpop.permute.xlu0 %781  ;;  %v1900_v34 = vmul.f32 %v1897_v21, %v5719_v3 }
 0x11a   : > { %9768 = vst [vmem:[#allocation43_spill] sm:$0xff] %v5924_v53  ;;  %v250_v53 = vmul.f32 %v248_v18, %v5550_v12 }
 0x11d   : > { %1618 = vrot.lane.b32.xlu2 %v1615_v59, %s5427_s23  ;;  %1616 = vrot.lane.b32.xlu1 %v1613_v52, %s5427_s23  ;;  %v257_v59 = vadd.f32 %v255_v29, %v251_v56  ;;  %v267_v29 = vmul.f32 %v266_v38, %v5562_v19  ;;  %v252_v56 = vadd.f32 %v250_v53, %v5927_v6 }
 0x11e   : > { %v262_v6 = vmul.f32 %v260_v13, %v5540_v8 }
 0x11f   : > { %v5939_v32 = vpop.permute.xlu2 %879  ;;  %1597 = vrot.lane.b32.xlu0 %v1594_v14, %s5427_s23  ;;  %v5943_v41 = vpop.permute.xlu1 %809  ;;  %v1898_v14 = vmul.f32 %v1897_v21, %v5535_v4  ;;  %v263_v18 = vadd.f32 %v261_v44, %v257_v59  ;;  %v9775_v4 = vstv %s5931_s9 }
 0x120   : > { %9770 = vst [vmem:[#allocation45_spill] sm:$0xff] %v5939_v32  ;;  %v1899_v32 = vmul.f32 %v1897_v21, %v5550_v12  ;;  %v1917_v21 = vstv %s5026_s10  ;;  %v279_v23 = vmul.f32 %v9775_v4, %v5531_v2  ;;  %s6028_s10 = sld [smem:[#allocation2 + $0x9]] }
 0x121   : > { %9771 = vst [vmem:[#allocation46_spill] sm:$0xff] %v5943_v41  ;;  %v5951_v52 = vpop.permute.xlu0 %797  ;;  %v1920_v53 = vmul.f32 %v1917_v21, %v5744_v37  ;;  %v269_v59 = vadd.f32 %v267_v29, %v263_v18  ;;  %v1919_v1 = vmul.f32 %v1917_v21, %v5545_v10  ;;  %v890_v29 = vmul.f32 %v888_v22, %v5550_v12 }
 0x122   : > { %9772 = vst [vmem:[#allocation47_spill] sm:$0xff] %v5951_v52  ;;  %v256_v52 = vmul.f32 %v254_v45, %v5545_v10  ;;  %v9658_v45 = vstv %s5946_s11  ;;  %v1937_v10 = vstv %s5027_s14  ;;  %v891_v18 = vmul.f32 %v888_v22, %v5719_v3  ;;  %s6155_s11 = sld [smem:[#allocation2 + $0x26]] }
 0x123   : > { %v285_v4 = vmul.f32 %v9658_v45, %v5528_v0  ;;  %v355_v8 = vadd.f32 %v5654_v27, %v269_v59  ;;  %s6246_s14 = sld [smem:[#allocation2 + $0xe]] }
 0x124   : > { %v258_v51 = vadd.f32 %v256_v52, %v252_v56  ;;  %v268_v52 = vmul.f32 %v266_v38, %v5558_v16  ;;  %v6003_v56 = vld [vmem:[%s5525_s22] sm:$0xff]  ;;  %v4409_v16 = vld [vmem:[%s9653_s3 + $0x8] sm:$0xff] }
 0x125   : > { %1908 = vrot.lane.b32.xlu2 %v1900_v34, %s5427_s23  ;;  %1906 = vrot.lane.b32.xlu1 %v1899_v32, %s5427_s23  ;;  %v275_v34 = vadd.f32 %v273_v11, %v5955_v47  ;;  %v9657_v11 = vstv %s5958_s13  ;;  %v889_v27 = vmul.f32 %v6003_v56, %v888_v22 }
 0x126   : > { %v264_v13 = vadd.f32 %v262_v6, %v258_v51  ;;  %v291_v12 = vmul.f32 %v9657_v11, %v5562_v19  ;;  %v1940_v51 = vmul.f32 %v1937_v10, %v5769_v15  ;;  %4533 = vmatpush.msra.mxu1 %v4409_v16  ;;  %v369_v6 = vadd.f32 %v5651_v25, %v355_v8  ;;  %v6047_v16 = vld [vmem:[%s5525_s22 + $0x30] sm:$0xff] }
 0x127   : > { %v5968_v41 = vpop.permute.xlu2 %1303  ;;  %1904 = vrot.lane.b32.xlu0 %v1898_v14, %s5427_s23  ;;  %v5975_v44 = vpop.permute.xlu1 %825  ;;  %v1918_v14 = vmul.f32 %v1917_v21, %v5531_v2  ;;  %v906_v2 = vstv %s4962_s20  ;;  %v6020_v21 = vld [vmem:[%s5525_s22 + $0x20] sm:$0xff]  ;;  %v9780_v25 = vstv %s5917_s6  ;;  %v899_v8 = vrot.slane %v891_v18, 1  ;;  %s6058_s20 = sld [smem:[#allocation2 + $0x94]] }
 0x128   : > { %9776 = vst [vmem:[#allocation49_spill] sm:$0xff] %v5975_v44  ;;  %v281_v44 = vadd.f32 %v279_v23, %v275_v34  ;;  %v270_v38 = vadd.f32 %v268_v52, %v264_v13  ;;  %v908_v23 = vmul.f32 %v6020_v21, %v906_v2  ;;  %v909_v34 = vmul.f32 %v906_v2, %v5744_v37  ;;  %v6043_v52 = vld [vmem:[%s5525_s22 + $0x18] sm:$0xff]  ;;  %s6219_s6 = sld [smem:[#allocation2 + $0xd]] }
 0x129   : > { %v5980_v32 = vpop.permute.xlu0 %823  ;;  %v896_v13 = vrot.slane %v889_v27, 1  ;;  %v1938_v11 = vmul.f32 %v6047_v16, %v1937_v10  ;;  %v383_v18 = vadd.f32 %v5622_v63, %v369_v6  ;;  %v1957_v27 = vstv %s5993_s28  ;;  %s6085_s28 = sld [smem:[#allocation2 + $0x24]] }
 0x12a   : > { %9777 = vst [vmem:[#allocation50_spill] sm:$0xff] %v5980_v32  ;;  %v287_v22 = vadd.f32 %v285_v4, %v281_v44  ;;  %v6031_v44 = vld [vmem:[%s5525_s22 + $0x8] sm:$0xff]  ;;  %v356_v45 = vadd.f32 %v5667_v35, %v270_v38  ;;  %v916_v32 = vrot.slane %v909_v34, 1  ;;  %v1960_v34 = vmul.f32 %v1957_v27, %v5759_v60 }
 0x12b   : > { %v274_v59 = vmul.f32 %v6031_v44, %v9780_v25  ;;  %v4408_v25 = vld [vmem:[%s9653_s3] sm:$0xff] }
 0x12c   : > { %4534 = vmatpush.msra.mxu1 %v4408_v25  ;;  %v6094_v25 = vstv %s6000_s29  ;;  %s6119_s29 = sld [smem:[#allocation2 + $0x95]] }
 0x12d   : > { %1928 = vrot.lane.b32.xlu2 %v1920_v53, %s5427_s23  ;;  %1926 = vrot.lane.b32.xlu1 %v1919_v1, %s5427_s23  ;;  %v897_v53 = vrot.slane %v890_v29, 1  ;;  %v907_v29 = vmul.f32 %v6043_v52, %v906_v2  ;;  %v293_v2 = vadd.f32 %v291_v12, %v287_v22  ;;  %v397_v12 = vadd.f32 %v5681_v42, %v383_v18 }
 0x12e   : > { %v296_v22 = vstv %s6013_s7  ;;  %v9782_v42 = vstv %s5931_s9  ;;  %9784 = vst [vmem:[#allocation55_spill] sm:$0xff] %v6094_v25  ;;  %v302_v18 = vstv %s6028_s10  ;;  %s6107_s9 = sld [smem:[#allocation2 + $0x25]] }
 0x12f   : > { %v5997_v0 = vpop.permute.xlu2 %1343  ;;  %1924 = vrot.lane.b32.xlu0 %v1918_v14, %s5427_s23  ;;  %v6015_v1 = vpop.permute.xlu1 %851  ;;  %v6037_v14 = vld [vmem:[%s5525_s22 + $0x38] sm:$0xff]  ;;  %v6065_v35 = vsel %vm895_vm0, %v897_v53, %v899_v8  ;;  %v898_v63 = vsel %vm895_vm0, %v896_v13, %v897_v53  ;;  %v913_v6 = vrot.slane %v907_v29, 1  ;;  %v280_v8 = vmul.f32 %v6020_v21, %v9782_v42  ;;  %s6181_s7 = sld [smem:[#allocation2 + $0x29]] }
 0x130   : > { %9778 = vst [vmem:[#allocation51_spill] sm:$0xff] %v6015_v1  ;;  %v1939_v4 = vmul.f32 %v6037_v14, %v1937_v10  ;;  %v914_v1 = vrot.slane %v908_v23, 1  ;;  %v276_v10 = vadd.f32 %v274_v59, %v5955_v47  ;;  %v370_v59 = vadd.f32 %v5664_v33, %v356_v45  ;;  %s6199_s10 = sld [smem:[#allocation2 + $0x97]] }
 0x131   : > { %v6025_v19 = vpop.permute.xlu0 %839  ;;  %v308_v45 = vstv %s6040_s12  ;;  %v903_v42 = vadd.f32 %v898_v63, %v397_v12  ;;  %v286_v43 = vmul.f32 %v6037_v14, %v9785_v61  ;;  %s6212_s12 = sld [smem:[#allocation5 + $0x3]] }
 0x132   : > { %9779 = vst [vmem:[#allocation52_spill] sm:$0xff] %v6025_v19  ;;  %v923_v19 = vstv %s5988_s27  ;;  %s6067_s27 = sld [smem:[#allocation2 + $0xb]]  ;;  %v6091_v29 = vsel %vm895_vm0, %v914_v1, %v916_v32  ;;  %v915_v47 = vsel %vm895_vm0, %v913_v6, %v914_v1  ;;  %v384_v1 = vadd.f32 %v5630_v9, %v370_v59 }
 0x133   : > { %v6074_v38 = vmul.f32 %v6037_v14, %v923_v19  ;;  %v924_v53 = vmul.f32 %v6047_v16, %v923_v19  ;;  %v304_v6 = vmul.f32 %v6020_v21, %v302_v18  ;;  %v310_v12 = vmul.f32 %v6037_v14, %v308_v45 }
 0x134   : > { %v926_v54 = vmul.f32 %v923_v19, %v5769_v15 }
 0x135   : > { %1948 = vrot.lane.b32.xlu2 %v1940_v51, %s5427_s23  ;;  %1946 = vrot.lane.b32.xlu1 %v1939_v4, %s5427_s23  ;;  %v298_v4 = vmul.f32 %v6031_v44, %v296_v22  ;;  %v931_v32 = vrot.slane %v6074_v38, 1  ;;  %v930_v36 = vrot.slane %v924_v53, 1  ;;  %v282_v38 = vadd.f32 %v280_v8, %v276_v10 }
 0x136   : > { %v398_v53 = vadd.f32 %v5678_v40, %v384_v1  ;;  %v957_v1 = vstv %s6085_s28  ;;  %v933_v10 = vrot.slane %v926_v54, 1  ;;  %s6294_s28 = sld [smem:[#allocation2 + $0x2a]] }
 0x137   : > { %v6062_v51 = vpop.permute.xlu2 %1366  ;;  %1944 = vrot.lane.b32.xlu0 %v1938_v11, %s5427_s23  ;;  %v6076_v23 = vpop.permute.xlu1 %867  ;;  %v940_v11 = vstv %s6023_s8  ;;  %v300_v63 = vadd.f32 %v298_v4, %v6094_v25  ;;  %v920_v4 = vadd.f32 %v915_v47, %v903_v42  ;;  %v932_v61 = vsel %vm895_vm0, %v930_v36, %v931_v32  ;;  %s6185_s8 = sld [smem:[#allocation2 + $0xc]] }
 0x138   : > { %9781 = vst [vmem:[#allocation53_spill] sm:$0xff] %v6076_v23  ;;  %v6098_v23 = vld [vmem:[%s5525_s22 + $0x50] sm:$0xff]  ;;  %v941_v20 = vmul.f32 %v6104_v26, %v940_v11  ;;  %v314_v59 = vstv %s6067_s27  ;;  %v288_v19 = vadd.f32 %v286_v43, %v282_v38  ;;  %v904_v42 = vadd.f32 %v6065_v35, %v398_v53  ;;  %s6277_s27 = sld [smem:[#allocation2 + $0xf]] }
 0x139   : > { %v6088_v13 = vpop.permute.xlu0 %865  ;;  %v1959_v33 = vmul.f32 %v6098_v23, %v1957_v27  ;;  %v6111_v49 = vmul.f32 %v6098_v23, %v940_v11  ;;  %v306_v58 = vadd.f32 %v304_v6, %v300_v63  ;;  %v316_v63 = vmul.f32 %v6098_v23, %v314_v59 }
 0x13a   : > { %9783 = vst [vmem:[#allocation54_spill] sm:$0xff] %v6088_v13  ;;  %v1958_v13 = vmul.f32 %v6104_v26, %v1957_v27  ;;  %v1977_v27 = vstv %s6058_s20  ;;  %v947_v8 = vrot.slane %v941_v20, 1  ;;  %v958_v6 = vmul.f32 %v6003_v56, %v957_v1  ;;  %s6256_s20 = sld [smem:[#allocation2 + $0x98]] }
 0x13b   : > { %v1979_v20 = vmul.f32 %v6031_v44, %v1977_v27  ;;  %v943_v43 = vmul.f32 %v940_v11, %v5759_v60  ;;  %v9789_v38 = vrot.slane %v6111_v49, 1  ;;  %v959_v54 = vmul.f32 %v6031_v44, %v957_v1 }
 0x13c   : > { %v974_v35 = vstv %s6107_s9  ;;  %v960_v11 = vmul.f32 %v957_v1, %v5719_v3  ;;  %s6312_s9 = sld [smem:[#allocation2 + $0x99]] }
 0x13d   : > { %1968 = vrot.lane.b32.xlu2 %v1960_v34, %s5427_s23  ;;  %v297_v34 = vmul.f32 %v6003_v56, %v296_v22  ;;  %1966 = vrot.lane.b32.xlu1 %v1959_v33, %s5427_s23  ;;  %v1980_v22 = vmul.f32 %v1977_v27, %v5719_v3  ;;  %v411_v33 = vadd.f32 %v5638_v17, %v293_v2  ;;  %v950_v3 = vrot.slane %v943_v43, 1 }
 0x13e   : > { %v937_v17 = vadd.f32 %v932_v61, %v920_v4  ;;  %v1978_v2 = vmul.f32 %v6003_v56, %v1977_v27  ;;  %v309_v27 = vmul.f32 %v6047_v16, %v308_v45  ;;  %v977_v4 = vmul.f32 %v974_v35, %v5744_v37 }
 0x13f   : > { %v6127_v9 = vpop.permute.xlu2 %1406  ;;  %1964 = vrot.lane.b32.xlu0 %v1958_v13, %s5427_s23  ;;  %v1302_v62 = vpop.permute.xlu1 %1301  ;;  %v303_v13 = vmul.f32 %v6043_v52, %v302_v18  ;;  %v299_v36 = vadd.f32 %v297_v34, %v6094_v25  ;;  %v949_v18 = vsel %vm895_vm0, %v947_v8, %v9789_v38  ;;  %v312_v34 = vadd.f32 %v310_v12, %v306_v58 }
 0x140   : > { %9786 = vst [vmem:[#allocation56_spill] sm:$0xff] %v6127_v9  ;;  %v9787_v9 = vstv %s5958_s13  ;;  %s6160_s13 = sld [smem:[#allocation2 + $0x96]]  ;;  %v921_v58 = vadd.f32 %v6091_v29, %v904_v42  ;;  %v934_v8 = vsel %vm895_vm0, %v931_v32, %v933_v10  ;;  %v964_v45 = vrot.slane %v958_v6, 1 }
 0x141   : > { %v292_v40 = vmul.f32 %v6098_v23, %v9787_v9  ;;  %v6141_v47 = vpop.permute.xlu0 %881  ;;  %v1997_v9 = vstv %s6119_s29  ;;  %v305_v53 = vadd.f32 %v303_v13, %v299_v36  ;;  %v6174_v13 = vmul.f32 %v6020_v21, %v974_v35  ;;  %s6318_s29 = sld [smem:[#allocation2 + $0x2b]] }
 0x142   : > { %9788 = vst [vmem:[#allocation57_spill] sm:$0xff] %v6141_v47  ;;  %v2000_v36 = vmul.f32 %v1997_v9, %v5744_v37  ;;  %v965_v38 = vrot.slane %v959_v54, 1  ;;  %v315_v47 = vmul.f32 %v6104_v26, %v314_v59  ;;  %v967_v10 = vrot.slane %v960_v11, 1 }
 0x143   : > { %v294_v12 = vadd.f32 %v292_v40, %v288_v19  ;;  %v311_v32 = vadd.f32 %v309_v27, %v305_v53  ;;  %v984_v19 = vrot.slane %v977_v4, 1  ;;  %v1999_v42 = vmul.f32 %v6020_v21, %v1997_v9 }
 0x144   : > { %v975_v6 = vmul.f32 %v6043_v52, %v974_v35  ;;  %v6194_v43 = vadd.f32 %v316_v63, %v312_v34  ;;  %v991_v54 = vstv %s6155_s11  ;;  %v6210_v53 = vstv %s6165_s30  ;;  %s6326_s11 = sld [smem:[#allocation2 + $0x2c]] }
 0x145   : > { %1988 = vrot.lane.b32.xlu2 %v1980_v22, %s5427_s23  ;;  %1986 = vrot.lane.b32.xlu1 %v1979_v20, %s5427_s23  ;;  %v954_v22 = vadd.f32 %v949_v18, %v937_v17  ;;  %v425_v20 = vadd.f32 %v5691_v48, %v411_v33  ;;  %v938_v48 = vadd.f32 %v934_v8, %v921_v58  ;;  %v982_v33 = vrot.slane %v6174_v13, 1  ;;  %s6360_s30 = sld [smem:[#allocation2 + $0x2d]] }
 0x146   : > { %v9790_v17 = vrot.slane %v6111_v49, 1  ;;  %v2017_v18 = vstv %s6160_s13  ;;  %v6201_v27 = vadd.f32 %v315_v47, %v311_v32  ;;  %v412_v34 = vadd.f32 %v5694_v50, %v294_v12  ;;  %s6356_s13 = sld [smem:[#allocation2 + $0x9a]] }
 0x147   : > { %v6168_v61 = vpop.permute.xlu2 %1429  ;;  %1984 = vrot.lane.b32.xlu0 %v1978_v2, %s5427_s23  ;;  %v1325_v1 = vpop.permute.xlu1 %1324  ;;  %v1307_v29 = vadd.f32 %v1302_v62, %v954_v22  ;;  %v439_v37 = vadd.f32 %v5708_v57, %v425_v20  ;;  %v1998_v62 = vmul.f32 %v6043_v52, %v1997_v9  ;;  %v966_v57 = vsel %vm895_vm0, %v964_v45, %v965_v38 }
 0x148   : > { %v951_v2 = vsel %vm895_vm0, %v9790_v17, %v950_v3  ;;  %v6204_v9 = vsel %vm895_vm0, %v965_v38, %v967_v10  ;;  %v6207_v49 = vsel %vm895_vm0, %v982_v33, %v984_v19  ;;  %v2020_v58 = vmul.f32 %v2017_v18, %v5769_v15 }
 0x149   : > { %v1323_v40 = vpop.permute.xlu0 %1322  ;;  %v453_v47 = vadd.f32 %v5661_v31, %v439_v37  ;;  %v955_v35 = vadd.f32 %v951_v2, %v938_v48  ;;  %v6225_v8 = vmul.f32 %v6037_v14, %v991_v54  ;;  %v981_v22 = vrot.slane %v975_v6, 1 }
 0x14a   : > { %v1328_v59 = vadd.f32 %v1323_v40, %v1307_v29  ;;  %v1008_v45 = vstv %s6179_s5  ;;  %v992_v13 = vmul.f32 %v6047_v16, %v991_v54  ;;  %v6232_v3 = vmul.f32 %v6003_v56, %v6210_v53  ;;  %s6396_s5 = sld [smem:[#allocation2 + $0x2e]] }
 0x14b   : > { %v1308_v50 = vadd.f32 %v5968_v41, %v955_v35  ;;  %v2019_v20 = vmul.f32 %v6037_v14, %v2017_v18  ;;  %v426_v41 = vadd.f32 %v5648_v24, %v412_v34  ;;  %v320_v38 = vstv %s6185_s8  ;;  %s6419_s8 = sld [smem:[#allocation2 + $0x2f]] }
 0x14c   : > { %v1349_v11 = vadd.f32 %v5997_v0, %v1328_v59  ;;  %v6236_v0 = vmul.f32 %v6031_v44, %v6210_v53  ;;  %v2018_v40 = vmul.f32 %v6047_v16, %v2017_v18  ;;  %v971_v32 = vadd.f32 %v966_v57, %v453_v47 }
 0x14d   : > { %2008 = vrot.lane.b32.xlu2 %v2000_v36, %s5427_s23  ;;  %2006 = vrot.lane.b32.xlu1 %v1999_v42, %s5427_s23  ;;  %v6239_v36 = vstv %s6181_s7  ;;  %v1329_v29 = vadd.f32 %v1325_v1, %v1308_v50  ;;  %v999_v10 = vrot.slane %v6225_v8, 1  ;;  %v6251_v19 = vmul.f32 %v6098_v23, %v1008_v45  ;;  %s6403_s7 = sld [smem:[#allocation2 + $0x9b]] }
 0x14e   : > { %v983_v24 = vsel %vm895_vm0, %v981_v22, %v982_v33  ;;  %v998_v1 = vrot.slane %v992_v13, 1  ;;  %v1009_v37 = vmul.f32 %v6104_v26, %v1008_v45  ;;  %v2037_v48 = vstv %s6199_s10  ;;  %s6440_s10 = sld [smem:[#allocation2 + $0x9c]] }
 0x14f   : > { %v6215_v63 = vpop.permute.xlu2 %1469  ;;  %2004 = vrot.lane.b32.xlu0 %v1998_v62, %s5427_s23  ;;  %v1365_v4 = vpop.permute.xlu1 %1364  ;;  %v440_v59 = vadd.f32 %v5705_v55, %v426_v41  ;;  %v1043_v62 = vmul.f32 %v6043_v52, %v6239_v36  ;;  %v6263_v17 = vmul.f32 %v6020_v21, %v6239_v36  ;;  %v322_v2 = vmul.f32 %v6031_v44, %v320_v38 }
 0x150   : > { %v1370_v31 = vadd.f32 %v1365_v4, %v1349_v11  ;;  %v1032_v6 = vrot.slane %v6232_v3, 1  ;;  %v6271_v57 = vstv %s6212_s12  ;;  %v326_v18 = vstv %s6219_s6  ;;  %s5038_s12 = sld [smem:[#allocation2 + $0x9d]] }
 0x151   : > { %v1346_v12 = vpop.permute.xlu0 %1345  ;;  %9791 = vst [vmem:[#allocation58_spill] sm:$0xff] %v6271_v57  ;;  %v321_v55 = vmul.f32 %v6003_v56, %v320_v38  ;;  %v454_v34 = vadd.f32 %v5724_v7, %v440_v59  ;;  %v994_v47 = vmul.f32 %v991_v54, %v5769_v15  ;;  %v988_v11 = vadd.f32 %v983_v24, %v971_v32  ;;  %v6290_v15 = vld [vmem:[%s5525_s22 + $0x10] sm:$0x3]  ;;  %s5039_s6 = sld [smem:[#allocation2 + $0x9e]] }
 0x152   : > { %5163 = vmatmul.msk.f32.vlgmr.msra.gmra.mxu1 %vm4437_vm1, %v1370_v31  ;;  %v1350_v42 = vadd.f32 %v1346_v12, %v1329_v29  ;;  %v2040_v4 = vmul.f32 %v2037_v48, %v5759_v60  ;;  %v1016_v22 = vrot.slane %v6251_v19, 1  ;;  %v1000_v50 = vsel %vm895_vm0, %v998_v1, %v999_v10 }
 0x153   : > { %v1015_v31 = vrot.slane %v1009_v37, 1  ;;  %v1033_v12 = vrot.slane %v6236_v0, 1  ;;  %v1049_v13 = vrot.slane %v1043_v62, 1  ;;  %v1028_v54 = vmul.f32 %v6290_v15, %v6210_v53 }
 0x154   : > { %v1050_v3 = vrot.slane %v6263_v17, 1  ;;  %v323_v41 = vadd.f32 %v321_v55, %v6271_v57  ;;  %v2038_v0 = vmul.f32 %v6104_v26, %v2037_v48  ;;  %v467_v38 = vadd.f32 %v5721_v5, %v6201_v27 }
 0x155   : > { %2028 = vrot.lane.b32.xlu2 %v2020_v58, %s5427_s23  ;;  %2026 = vrot.lane.b32.xlu1 %v2019_v20, %s5427_s23  ;;  %v1371_v58 = vadd.f32 %v6062_v51, %v1350_v42  ;;  %v2039_v51 = vmul.f32 %v6098_v23, %v2037_v48  ;;  %v327_v20 = vmul.f32 %v6043_v52, %v326_v18  ;;  %v332_v29 = vstv %s6246_s14  ;;  %s5040_s14 = sld [smem:[#allocation2 + $0x9f]] }
 0x156   : > { %v972_v53 = vadd.f32 %v6204_v9, %v454_v34  ;;  %v1001_v32 = vrot.slane %v994_v47, 1  ;;  %v1011_v24 = vmul.f32 %v1008_v45, %v5759_v60  ;;  %v1017_v42 = vsel %vm895_vm0, %v1015_v31, %v1016_v22 }
 0x157   : > { %v6267_v33 = vpop.permute.xlu2 %1492  ;;  %2024 = vrot.lane.b32.xlu0 %v2018_v40, %s5427_s23  ;;  %v6280_v35 = vpop.permute.xlu1 %1387  ;;  %v1005_v40 = vadd.f32 %v1000_v50, %v988_v11  ;;  %v2057_v1 = vstv %s6256_s20  ;;  %v468_v5 = vadd.f32 %v5675_v39, %v6194_v43  ;;  %v481_v27 = vadd.f32 %v5738_v30, %v467_v38  ;;  %s5058_s20 = sld [smem:[#allocation2 + $0x71]] }
 0x158   : > { %v1034_v9 = vsel %vm895_vm0, %v1032_v6, %v1033_v12  ;;  %v1035_v37 = vrot.slane %v1028_v54, 1  ;;  %v324_v45 = vadd.f32 %v322_v2, %v6271_v57  ;;  %v328_v48 = vmul.f32 %v6020_v21, %v326_v18 }
 0x159   : > { %v1386_v7 = vpop.permute.xlu0 %1385  ;;  %v333_v59 = vmul.f32 %v6047_v16, %v332_v29  ;;  %v329_v62 = vadd.f32 %v327_v20, %v323_v41  ;;  %v989_v39 = vadd.f32 %v6207_v49, %v972_v53  ;;  %v338_v30 = vstv %s6277_s27  ;;  %v9792_v20 = vld [vmem:[#allocation15_spill] sm:$0xff]  ;;  %s5057_s27 = sld [smem:[#allocation2 + $0x70]] }
 0x15a   : > { %5164 = vmatmul.msk.f32.gmra.mxu1 %vm4437_vm1, %v1371_v58  ;;  %v1022_v43 = vadd.f32 %v1017_v42, %v1005_v40  ;;  %v2060_v55 = vmul.f32 %v6290_v15, %v2057_v1  ;;  %v1051_v2 = vsel %vm895_vm0, %v1049_v13, %v1050_v3  ;;  %v334_v18 = vmul.f32 %v6037_v14, %v332_v29 }
 0x15b   : > { %v1002_v34 = vsel %vm895_vm0, %v999_v10, %v1001_v32  ;;  %v1018_v47 = vrot.slane %v1011_v24, 1  ;;  %v1059_v49 = vstv %s6294_s28  ;;  %v2059_v50 = vmul.f32 %v6031_v44, %v2057_v1  ;;  %v9794_v32 = vld [vmem:[#allocation56_spill] sm:$0xff]  ;;  %s5059_s28 = sld [smem:[#allocation2 + $0x72]] }
 0x15c   : > { %v1391_v58 = vadd.f32 %v1386_v7, %v1022_v43  ;;  %v330_v31 = vadd.f32 %v328_v48, %v324_v45  ;;  %v339_v54 = vmul.f32 %v6104_v26, %v338_v30  ;;  %v335_v13 = vadd.f32 %v333_v59, %v329_v62 }
 0x15d   : > { %2048 = vrot.lane.b32.xlu2 %v2040_v4, %s5427_s23  ;;  %2046 = vrot.lane.b32.xlu1 %v2039_v51, %s5427_s23  ;;  %v495_v4 = vadd.f32 %v5688_v46, %v481_v27  ;;  %v2058_v51 = vmul.f32 %v6003_v56, %v2057_v1  ;;  %v482_v8 = vadd.f32 %v5736_v28, %v468_v5  ;;  %v2077_v53 = vstv %s6312_s9  ;;  %v9793_v28 = vld [vmem:[#allocation16_spill] sm:$0xff]  ;;  %s5061_s9 = sld [smem:[#allocation2 + $0x74]] }
 0x15e   : > { %v1036_v41 = vsel %vm895_vm0, %v1033_v12, %v1035_v37  ;;  %v1060_v46 = vmul.f32 %v6047_v16, %v1059_v49  ;;  %v6350_v7 = vmul.f32 %v6037_v14, %v1059_v49  ;;  %v1019_v38 = vsel %vm895_vm0, %v1016_v22, %v1018_v47  ;;  %v6372_v22 = vld [vmem:[%s5525_s22 + $0x28] sm:$0x3] }
 0x15f   : > { %v6321_v60 = vpop.permute.xlu2 %1532  ;;  %2044 = vrot.lane.b32.xlu0 %v2038_v0, %s5427_s23  ;;  %v1428_v6 = vpop.permute.xlu1 %1427  ;;  %v509_v10 = vadd.f32 %v9792_v20, %v495_v4  ;;  %v1006_v0 = vadd.f32 %v1002_v34, %v989_v39  ;;  %v496_v29 = vadd.f32 %v9793_v28, %v482_v8  ;;  %v340_v12 = vmul.f32 %v6098_v23, %v338_v30  ;;  %v9795_v34 = vld [vmem:[#allocation11_spill] sm:$0xff]  ;;  %v6415_v28 = vld [vmem:[%s5525_s22 + $0x58] sm:$0x3] }
 0x160   : > { %v1076_v40 = vstv %s6318_s29  ;;  %v1412_v24 = vadd.f32 %v9794_v32, %v1391_v58  ;;  %v336_v1 = vadd.f32 %v334_v18, %v330_v31  ;;  %v341_v19 = vadd.f32 %v339_v54, %v335_v13  ;;  %v6391_v31 = vld [vmem:[%s5525_s22 + $0x40] sm:$0x3]  ;;  %s5060_s29 = sld [smem:[#allocation2 + $0x73]] }
 0x161   : > { %v1409_v11 = vpop.permute.xlu0 %1408  ;;  %v6368_v5 = vstv %s6326_s11  ;;  %v1045_v27 = vmul.f32 %v6372_v22, %v6239_v36  ;;  %v1039_v37 = vadd.f32 %v1034_v9, %v509_v10  ;;  %v1023_v45 = vadd.f32 %v1019_v38, %v1006_v0  ;;  %s5062_s11 = sld [smem:[#allocation2 + $0x75]] }
 0x162   : > { %v1433_v48 = vadd.f32 %v1428_v6, %v1412_v24  ;;  %v2080_v62 = vmul.f32 %v6372_v22, %v2077_v53  ;;  %v1066_v39 = vrot.slane %v1060_v46, 1  ;;  %v1067_v30 = vrot.slane %v6350_v7, 1  ;;  %v9796_v46 = vld [vmem:[#allocation19_spill] sm:$0xff] }
 0x163   : > { %v1077_v43 = vmul.f32 %v6104_v26, %v1076_v40  ;;  %v510_v47 = vadd.f32 %v9795_v34, %v496_v29  ;;  %v1392_v36 = vadd.f32 %v6280_v35, %v1023_v45  ;;  %v2079_v6 = vmul.f32 %v6020_v21, %v2077_v53 }
 0x164   : > { %v6387_v4 = vmul.f32 %v6031_v44, %v6368_v5  ;;  %v2078_v58 = vmul.f32 %v6043_v52, %v2077_v53  ;;  %v1062_v54 = vmul.f32 %v6391_v31, %v1059_v49  ;;  %v1056_v13 = vadd.f32 %v1051_v2, %v1039_v37 }
 0x165   : > { %2068 = vrot.lane.b32.xlu2 %v2060_v55, %s5427_s23  ;;  %2066 = vrot.lane.b32.xlu1 %v2059_v50, %s5427_s23  ;;  %v6380_v55 = vmul.f32 %v6098_v23, %v1076_v40  ;;  %v1052_v50 = vrot.slane %v1045_v27, 1  ;;  %v1094_v35 = vmul.f32 %v6003_v56, %v6368_v5  ;;  %v1068_v8 = vsel %vm895_vm0, %v1066_v39, %v1067_v30 }
 0x166   : > { %v1083_v20 = vrot.slane %v1077_v43, 1  ;;  %v2097_v0 = vstv %s6356_s13  ;;  %v1040_v2 = vadd.f32 %v1036_v41, %v510_v47  ;;  %v1110_v49 = vstv %s6360_s30  ;;  %s5064_s13 = sld [smem:[#allocation2 + $0x77]] }
 0x167   : > { %v6365_v42 = vpop.permute.xlu2 %1555  ;;  %2064 = vrot.lane.b32.xlu0 %v2058_v51, %s5427_s23  ;;  %v1451_v59 = vpop.permute.xlu1 %1450  ;;  %v1413_v51 = vadd.f32 %v1409_v11, %v1392_v36  ;;  %v1084_v10 = vrot.slane %v6380_v55, 1  ;;  %v523_v7 = vadd.f32 %v9796_v46, %v341_v19  ;;  %v1053_v38 = vsel %vm895_vm0, %v1050_v3, %v1052_v50  ;;  %v9798_v36 = vld [vmem:[#allocation21_spill] sm:$0xff]  ;;  %s5063_s30 = sld [smem:[#allocation2 + $0x76]] }
 0x168   : > { %v1069_v53 = vrot.slane %v1062_v54, 1  ;;  %v1079_v29 = vmul.f32 %v6415_v28, %v1076_v40  ;;  %v342_v32 = vadd.f32 %v340_v12, %v336_v1  ;;  %v1073_v41 = vadd.f32 %v1068_v8, %v1056_v13  ;;  %v9800_v8 = vld [vmem:[#allocation25_spill] sm:$0xff] }
 0x169   : > { %v1449_v18 = vpop.permute.xlu0 %1448  ;;  %v1434_v24 = vadd.f32 %v6168_v61, %v1413_v51  ;;  %v2100_v19 = vmul.f32 %v6391_v31, %v2097_v0  ;;  %v1101_v37 = vrot.slane %v6387_v4, 1  ;;  %v6424_v17 = vmul.f32 %v6020_v21, %v1110_v49 }
 0x16a   : > { %v1454_v9 = vadd.f32 %v1449_v18, %v1433_v48  ;;  %v1100_v3 = vrot.slane %v1094_v35, 1  ;;  %v1085_v45 = vsel %vm895_vm0, %v1083_v20, %v1084_v10  ;;  %v1111_v12 = vmul.f32 %v6043_v52, %v1110_v49  ;;  %v9799_v35 = vld [vmem:[#allocation18_spill] sm:$0xff] }
 0x16b   : > { %v1455_v40 = vadd.f32 %v1451_v59, %v1434_v24  ;;  %v1057_v61 = vadd.f32 %v1053_v38, %v1040_v2  ;;  %v2099_v1 = vmul.f32 %v6037_v14, %v2097_v0  ;;  %v1070_v43 = vsel %vm895_vm0, %v1067_v30, %v1069_v53  ;;  %v9801_v53 = vld [vmem:[#allocation22_spill] sm:$0xff] }
 0x16c   : > { %5165 = vmatmul.msk.f32.gmra.mxu1 %vm4437_vm1, %v1454_v9  ;;  %v1086_v55 = vrot.slane %v1079_v29, 1  ;;  %v2098_v18 = vmul.f32 %v6047_v16, %v2097_v0  ;;  %v1090_v34 = vadd.f32 %v1085_v45, %v1073_v41  ;;  %v1127_v47 = vstv %s6396_s5  ;;  %s5065_s5 = sld [smem:[#allocation2 + $0x78]] }
 0x16d   : > { %2088 = vrot.lane.b32.xlu2 %v2080_v62, %s5427_s23  ;;  %2086 = vrot.lane.b32.xlu1 %v2079_v6, %s5427_s23  ;;  %v9797_v62 = vld [vmem:[#allocation12_spill] sm:$0xff]  ;;  %v1096_v59 = vmul.f32 %v6290_v15, %v6368_v5  ;;  %v1118_v6 = vrot.slane %v6424_v17, 1  ;;  %v2117_v4 = vstv %s6403_s7  ;;  %v1102_v30 = vsel %vm895_vm0, %v1100_v3, %v1101_v37  ;;  %s5067_s7 = sld [smem:[#allocation2 + $0x7a]] }
 0x16e   : > { %v537_v39 = vadd.f32 %v9797_v62, %v523_v7  ;;  %v1475_v50 = vadd.f32 %v6215_v63, %v1090_v34  ;;  %v1074_v54 = vadd.f32 %v1070_v43, %v1057_v61  ;;  %v524_v51 = vadd.f32 %v9799_v35, %v342_v32 }
 0x16f   : > { %v6407_v11 = vpop.permute.xlu2 %1595  ;;  %2084 = vrot.lane.b32.xlu0 %v2078_v58, %s5427_s23  ;;  %v1491_v27 = vpop.permute.xlu1 %1490  ;;  %v1117_v58 = vrot.slane %v1111_v12, 1  ;;  %v6450_v5 = vmul.f32 %v6037_v14, %v1127_v47  ;;  %v1087_v0 = vsel %vm895_vm0, %v1084_v10, %v1086_v55  ;;  %v1144_v2 = vstv %s6419_s8  ;;  %s5066_s8 = sld [smem:[#allocation2 + $0x79]] }
 0x170   : > { %v551_v9 = vadd.f32 %v9798_v36, %v537_v39  ;;  %v1496_v46 = vadd.f32 %v1491_v27, %v1475_v50  ;;  %v2120_v63 = vmul.f32 %v6415_v28, %v2117_v4  ;;  %v1128_v38 = vmul.f32 %v6047_v16, %v1127_v47  ;;  %v9802_v39 = vld [vmem:[#allocation13_spill] sm:$0xff] }
 0x171   : > { %v1472_v48 = vpop.permute.xlu0 %1471  ;;  %v538_v29 = vadd.f32 %v9801_v53, %v524_v51  ;;  %v1103_v41 = vrot.slane %v1096_v59, 1  ;;  %v1113_v32 = vmul.f32 %v6372_v22, %v1110_v49  ;;  %v1091_v17 = vadd.f32 %v1087_v0, %v1074_v54 }
 0x172   : > { %v565_v20 = vadd.f32 %v9800_v8, %v551_v9  ;;  %v2119_v3 = vmul.f32 %v6098_v23, %v2117_v4  ;;  %v1146_v27 = vmul.f32 %v6098_v23, %v1144_v2  ;;  %v2118_v12 = vmul.f32 %v6104_v26, %v2117_v4  ;;  %v9803_v9 = vld [vmem:[#allocation24_spill] sm:$0xff] }
 0x173   : > { %v1135_v61 = vrot.slane %v6450_v5, 1  ;;  %v1134_v62 = vrot.slane %v1128_v38, 1  ;;  %v552_v43 = vadd.f32 %v9802_v39, %v538_v29  ;;  %v2137_v55 = vstv %s6440_s10  ;;  %s5068_s10 = sld [smem:[#allocation2 + $0x7b]] }
 0x174   : > { %5166 = vmatmul.msk.f32.gmra.mxu1 %vm4437_vm1, %v1455_v40  ;;  %v1107_v45 = vadd.f32 %v1102_v30, %v565_v20  ;;  %v1145_v40 = vmul.f32 %v6104_v26, %v1144_v2  ;;  %v1120_v34 = vrot.slane %v1113_v32, 1  ;;  %v1152_v4 = vrot.slane %v1146_v27, 1 }
 0x175   : > { %2108 = vrot.lane.b32.xlu2 %v2100_v19, %s5427_s23  ;;  %2106 = vrot.lane.b32.xlu1 %v2099_v1, %s5427_s23  ;;  %v1119_v19 = vsel %vm895_vm0, %v1117_v58, %v1118_v6  ;;  %v1476_v1 = vadd.f32 %v1472_v48, %v1091_v17  ;;  %v566_v48 = vadd.f32 %v9803_v9, %v552_v43  ;;  %v2157_v53 = vstv %s5038_s12  ;;  %s5070_s12 = sld [smem:[#allocation2 + $0x7d]] }
 0x176   : > { %v1124_v59 = vadd.f32 %v1119_v19, %v1107_v45  ;;  %v1136_v58 = vsel %vm895_vm0, %v1134_v62, %v1135_v61  ;;  %v2140_v54 = vmul.f32 %v6290_v15, %v2137_v55  ;;  %v2139_v8 = vmul.f32 %v6031_v44, %v2137_v55 }
 0x177   : > { %v6445_v13 = vpop.permute.xlu2 %1618  ;;  %2104 = vrot.lane.b32.xlu0 %v2098_v18, %s5427_s23  ;;  %v1514_v7 = vpop.permute.xlu1 %1513  ;;  %v1104_v18 = vsel %vm895_vm0, %v1101_v37, %v1103_v41  ;;  %v1497_v30 = vadd.f32 %v6267_v33, %v1476_v1  ;;  %v1151_v37 = vrot.slane %v1145_v40, 1  ;;  %v1121_v20 = vsel %vm895_vm0, %v1118_v6, %v1120_v34 }
 0x178   : > { %v1108_v5 = vadd.f32 %v1104_v18, %v566_v48  ;;  %v1141_v0 = vadd.f32 %v1136_v58, %v1124_v59  ;;  %v2158_v27 = vmul.f32 %v6043_v52, %v2157_v53  ;;  %v2177_v40 = vstv %s5039_s6  ;;  %s5069_s6 = sld [smem:[#allocation2 + $0x7c]] }
 0x179   : > { %v1512_v24 = vpop.permute.xlu0 %1511  ;;  %v1518_v51 = vadd.f32 %v1514_v7, %v1497_v30  ;;  %v1153_v33 = vsel %vm895_vm0, %v1151_v37, %v1152_v4  ;;  %v2180_v39 = vmul.f32 %v6391_v31, %v2177_v40  ;;  %v2179_v34 = vmul.f32 %v6037_v14, %v2177_v40 }
 0x17a   : > { %v1517_v10 = vadd.f32 %v1512_v24, %v1496_v46  ;;  %v1125_v6 = vadd.f32 %v1121_v20, %v1108_v5  ;;  %v1158_v29 = vadd.f32 %v1153_v33, %v1141_v0  ;;  %v2160_v24 = vmul.f32 %v6372_v22, %v2157_v53 }
 0x17b   : > { %v2178_v48 = vmul.f32 %v6047_v16, %v2177_v40  ;;  %v2345_v58 = vstv %s5057_s27  ;;  %s5073_s27 = sld [smem:[#allocation2 + $0xd0]] }
 0x17c   : > { %v1538_v49 = vadd.f32 %v6321_v60, %v1517_v10  ;;  %v1130_v60 = vmul.f32 %v6391_v31, %v1127_v47  ;;  %v2138_v47 = vmul.f32 %v6003_v56, %v2137_v55  ;;  %v2159_v10 = vmul.f32 %v6020_v21, %v2157_v53 }
 0x17d   : > { %2128 = vrot.lane.b32.xlu2 %v2120_v63, %s5427_s23  ;;  %2126 = vrot.lane.b32.xlu1 %v2119_v3, %s5427_s23  ;;  %v1147_v63 = vmul.f32 %v6415_v28, %v1144_v2  ;;  %v2347_v20 = vmul.f32 %v6031_v44, %v2345_v58  ;;  %v2348_v5 = vmul.f32 %v6290_v15, %v2345_v58 }
 0x17e   : > { %5167 = vmatmul.msk.f32.gmra.mxu1 %vm4437_vm1, %v1538_v49  ;;  %v1137_v46 = vrot.slane %v1130_v60, 1  ;;  %v2197_v60 = vstv %s5040_s14  ;;  %s5071_s14 = sld [smem:[#allocation2 + $0x7e]] }
 0x17f   : > { %v6472_v36 = vpop.permute.xlu2 %1908  ;;  %2124 = vrot.lane.b32.xlu0 %v2118_v12, %s5427_s23  ;;  %v1554_v50 = vpop.permute.xlu1 %1553  ;;  %v1154_v2 = vrot.slane %v1147_v63, 1  ;;  %v2200_v30 = vmul.f32 %v6415_v28, %v2197_v60  ;;  %v2355_v63 = vrot.slane %v2348_v5, 1  ;;  %v6579_v5 = vld [vmem:[%s5525_s22 + $0x18] sm:$0xff] }
 0x180   : > { %v1138_v41 = vsel %vm895_vm0, %v1135_v61, %v1137_v46  ;;  %v1559_v19 = vadd.f32 %v1554_v50, %v1158_v29  ;;  %v2353_v46 = vrot.slane %v2347_v20, 1 }
 0x181   : > { %v1535_v35 = vpop.permute.xlu0 %1534  ;;  %v1142_v3 = vadd.f32 %v1138_v41, %v1125_v6  ;;  %v1155_v12 = vsel %vm895_vm0, %v1152_v4, %v1154_v2  ;;  %v2366_v4 = vstv %s5058_s20  ;;  %s5072_s20 = sld [smem:[#allocation2 + $0x7f]] }
 0x182   : > { %v1539_v38 = vadd.f32 %v1535_v35, %v1518_v51  ;;  %v2368_v35 = vmul.f32 %v6020_v21, %v2366_v4  ;;  %v2199_v51 = vmul.f32 %v6098_v23, %v2197_v60  ;;  %v2387_v21 = vstv %s5059_s28  ;;  %s5074_s28 = sld [smem:[#allocation2 + $0xd1]] }
 0x183   : > { %v1159_v1 = vadd.f32 %v1155_v12, %v1142_v3  ;;  %v2389_v6 = vmul.f32 %v6037_v14, %v2387_v21  ;;  %v2390_v29 = vmul.f32 %v6391_v31, %v2387_v21  ;;  %v2356_v41 = vsel %vm895_vm0, %v2353_v46, %v2355_v63 }
 0x184   : > { %v2388_v2 = vmul.f32 %v6047_v16, %v2387_v21  ;;  %v2429_v14 = vstv %s5061_s9  ;;  %s5075_s9 = sld [smem:[#allocation2 + $0xd2]] }
 0x185   : > { %2148 = vrot.lane.b32.xlu2 %v2140_v54, %s5427_s23  ;;  %2146 = vrot.lane.b32.xlu1 %v2139_v8, %s5427_s23  ;;  %v1560_v43 = vadd.f32 %v6365_v42, %v1159_v1  ;;  %v2367_v54 = vmul.f32 %v6043_v52, %v2366_v4  ;;  %v2198_v8 = vmul.f32 %v6104_v26, %v2197_v60  ;;  %v6553_v1 = vld [vmem:[%s5525_s22] sm:$0xff] }
 0x186   : > { %5168 = vmatmul.msk.f32.gmra.mxu1 %vm4437_vm1, %v1539_v38  ;;  %v2394_v3 = vrot.slane %v2388_v2, 1 }
 0x187   : > { %v6488_v7 = vpop.permute.xlu2 %1928  ;;  %2144 = vrot.lane.b32.xlu0 %v2138_v47, %s5427_s23  ;;  %v1577_v32 = vpop.permute.xlu1 %1576  ;;  %v2373_v0 = vrot.slane %v2367_v54, 1  ;;  %v2374_v47 = vrot.slane %v2368_v35, 1  ;;  %v6573_v35 = vld [vmem:[%s5525_s22 + $0x20] sm:$0xff] }
 0x188   : > { %v1581_v9 = vadd.f32 %v1577_v32, %v1560_v43 }
 0x189   : > { %v1575_v17 = vpop.permute.xlu0 %1574 }
 0x18a   : > { %v1580_v45 = vadd.f32 %v1575_v17, %v1559_v19  ;;  %v2395_v19 = vrot.slane %v2389_v6, 1  ;;  %v2397_v17 = vrot.slane %v2390_v29, 1 }
 0x18c   : > { %v1601_v49 = vadd.f32 %v6407_v11, %v1580_v45  ;;  %v2398_v40 = vsel %vm895_vm0, %v2395_v19, %v2397_v17 }
 0x18d   : > { %2168 = vrot.lane.b32.xlu2 %v2160_v24, %s5427_s23  ;;  %2166 = vrot.lane.b32.xlu1 %v2159_v10, %s5427_s23  ;;  %v2369_v24 = vmul.f32 %v6372_v22, %v2366_v4 }
 0x18f   : > { %v6498_v61 = vpop.permute.xlu2 %1948  ;;  %2164 = vrot.lane.b32.xlu0 %v2158_v27, %s5427_s23  ;;  %v1617_v62 = vpop.permute.xlu1 %1616  ;;  %v2376_v16 = vrot.slane %v2369_v24, 1  ;;  %v2408_v27 = vstv %s5060_s29  ;;  %s5076_s29 = sld [smem:[#allocation2 + $0xd3]] }
 0x190   : > { %v1622_v55 = vadd.f32 %v1617_v62, %v1601_v49  ;;  %v2430_v49 = vmul.f32 %v6553_v1, %v2429_v14  ;;  %v2431_v62 = vmul.f32 %v6031_v44, %v2429_v14  ;;  %v2410_v43 = vmul.f32 %v6098_v23, %v2408_v27 }
 0x191   : > { %v1598_v18 = vpop.permute.xlu0 %1597  ;;  %v2450_v44 = vstv %s5062_s11  ;;  %s5077_s11 = sld [smem:[#allocation2 + $0xd4]] }
 0x192   : > { %5169 = vmatmul.msk.f32.gmra.mxu1 %vm4437_vm1, %v1622_v55  ;;  %v1602_v59 = vadd.f32 %v1598_v18, %v1581_v9  ;;  %v2411_v55 = vmul.f32 %v6415_v28, %v2408_v27  ;;  %v2377_v18 = vsel %vm895_vm0, %v2374_v47, %v2376_v16  ;;  %v2436_v9 = vrot.slane %v2430_v49, 1 }
 0x193   : > { %v2416_v60 = vrot.slane %v2410_v43, 1 }
 0x194   : > { %v1623_v37 = vadd.f32 %v6445_v13, %v1602_v59  ;;  %v2346_v13 = vmul.f32 %v6003_v56, %v2345_v58  ;;  %v2375_v56 = vsel %vm895_vm0, %v2373_v0, %v2374_v47  ;;  %v2418_v4 = vrot.slane %v2411_v55, 1 }
 0x195   : > { %2188 = vrot.lane.b32.xlu2 %v2180_v39, %s5427_s23  ;;  %2186 = vrot.lane.b32.xlu1 %v2179_v34, %s5427_s23  ;;  %v2396_v39 = vsel %vm895_vm0, %v2394_v3, %v2395_v19  ;;  %v2409_v34 = vmul.f32 %v6104_v26, %v2408_v27  ;;  %v2432_v47 = vmul.f32 %v6290_v15, %v2429_v14  ;;  %v6598_v14 = vld [vmem:[%s5525_s22 + $0x38] sm:$0xff] }
 0x196   : > { %v2352_v38 = vrot.slane %v2346_v13, 1  ;;  %v2419_v20 = vsel %vm895_vm0, %v2416_v60, %v2418_v4  ;;  %v2451_v13 = vmul.f32 %v6579_v5, %v2450_v44 }
 0x197   : > { %v6509_v11 = vpop.permute.xlu2 %1968  ;;  %2184 = vrot.lane.b32.xlu0 %v2178_v48, %s5427_s23  ;;  %v6512_v42 = vpop.permute.xlu1 %1906  ;;  %v2437_v48 = vrot.slane %v2431_v62, 1  ;;  %v2415_v58 = vrot.slane %v2409_v34, 1  ;;  %v2439_v29 = vrot.slane %v2432_v47, 1  ;;  %v2555_v47 = vstv %s5067_s7  ;;  %s5081_s7 = sld [smem:[#allocation2 + $0xd8]] }
 0x198   : > { %v2354_v32 = vsel %vm895_vm0, %v2352_v38, %v2353_v46  ;;  %v2492_v38 = vstv %s5064_s13  ;;  %s5078_s13 = sld [smem:[#allocation2 + $0xd5]] }
 0x199   : > { %v6516_v50 = vpop.permute.xlu0 %1904  ;;  %v2438_v54 = vsel %vm895_vm0, %v2436_v9, %v2437_v48  ;;  %v2417_v0 = vsel %vm895_vm0, %v2415_v58, %v2416_v60  ;;  %v2493_v24 = vmul.f32 %v6104_v26, %v2492_v38  ;;  %v2494_v19 = vmul.f32 %v6098_v23, %v2492_v38 }
 0x19a   : > { %5170 = vmatmul.msk.f32.gmra.mxu1 %vm4437_vm1, %v1623_v37  ;;  %v2440_v27 = vsel %vm895_vm0, %v2437_v48, %v2439_v29  ;;  %v2534_v29 = vstv %s5066_s8  ;;  %s5082_s8 = sld [smem:[#allocation2 + $0xd9]] }
 0x19b   : > { %v2499_v26 = vrot.slane %v2493_v24, 1  ;;  %v2500_v62 = vrot.slane %v2494_v19, 1  ;;  %v2557_v24 = vmul.f32 %v6598_v14, %v2555_v47 }
 0x19d   : > { %2208 = vrot.lane.b32.xlu2 %v2200_v30, %s5427_s23  ;;  %2206 = vrot.lane.b32.xlu1 %v2199_v51, %s5427_s23  ;;  %v2452_v51 = vmul.f32 %v6573_v35, %v2450_v44  ;;  %v2501_v48 = vsel %vm895_vm0, %v2499_v26, %v2500_v62  ;;  %v2563_v26 = vrot.slane %v2557_v24, 1  ;;  %v2618_v24 = vstv %s5070_s12  ;;  %s5084_s12 = sld [smem:[#allocation2 + $0xdb]] }
 0x19f   : > { %v6528_v52 = vpop.permute.xlu2 %1988  ;;  %2204 = vrot.lane.b32.xlu0 %v2198_v8, %s5427_s23  ;;  %v6531_v33 = vpop.permute.xlu1 %1926  ;;  %v2453_v8 = vmul.f32 %v6372_v22, %v2450_v44  ;;  %v2458_v21 = vrot.slane %v2452_v51, 1  ;;  %v6618_v44 = vld [vmem:[%s5525_s22 + $0x8] sm:$0xff] }
 0x1a0   : > { %9804 = vst [vmem:[#allocation15_spill] sm:$0xff] %v6528_v52 }
 0x1a1   : > { %9805 = vst [vmem:[#allocation16_spill] sm:$0xff] %v6531_v33  ;;  %v6533_v53 = vpop.permute.xlu0 %1924  ;;  %v2460_v46 = vrot.slane %v2453_v8, 1  ;;  %v2495_v8 = vmul.f32 %v6415_v28, %v2492_v38 }
 0x1a2   : > { %9806 = vst [vmem:[#allocation56_spill] sm:$0xff] %v6533_v53 }
 0x1a5   : > { %2378 = vrot.lane.b32.xlu2 %v2375_v56, %s5427_s23  ;;  %2359 = vrot.lane.b32.xlu1 %v2356_v41, %s5427_s23  ;;  %v2457_v56 = vrot.slane %v2451_v13, 1  ;;  %v2471_v41 = vstv %s5063_s30  ;;  %s5079_s30 = sld [smem:[#allocation2 + $0xd6]] }
 0x1a6   : > { %v2473_v3 = vmul.f32 %v6598_v14, %v2471_v41  ;;  %v2474_v16 = vmul.f32 %v6391_v31, %v2471_v41 }
 0x1a7   : > { %v6544_v10 = vpop.permute.xlu2 %2008  ;;  %2357 = vrot.lane.b32.xlu0 %v2354_v32, %s5427_s23  ;;  %v6547_v45 = vpop.permute.xlu1 %1946  ;;  %v2461_v32 = vsel %vm895_vm0, %v2458_v21, %v2460_v46  ;;  %v2459_v17 = vsel %vm895_vm0, %v2457_v56, %v2458_v21  ;;  %v2502_v56 = vrot.slane %v2495_v8, 1 }
 0x1a8   : > { %9807 = vst [vmem:[#allocation11_spill] sm:$0xff] %v6544_v10  ;;  %v2479_v43 = vrot.slane %v2473_v3, 1  ;;  %v2481_v55 = vrot.slane %v2474_v16, 1  ;;  %v2537_v3 = vmul.f32 %v6372_v22, %v2534_v29 }
 0x1a9   : > { %9808 = vst [vmem:[#allocation19_spill] sm:$0xff] %v6547_v45  ;;  %v6549_v12 = vpop.permute.xlu0 %1944  ;;  %v2503_v16 = vsel %vm895_vm0, %v2500_v62, %v2502_v56  ;;  %v2558_v56 = vmul.f32 %v6391_v31, %v2555_v47 }
 0x1aa   : > { %9809 = vst [vmem:[#allocation12_spill] sm:$0xff] %v6549_v12  ;;  %v2482_v58 = vsel %vm895_vm0, %v2479_v43, %v2481_v55 }
 0x1ad   : > { %2401 = vrot.lane.b32.xlu2 %v2398_v40, %s5427_s23  ;;  %2399 = vrot.lane.b32.xlu1 %v2396_v39, %s5427_s23  ;;  %v6605_v40 = vld [vmem:[%s5525_s22 + $0x30] sm:$0xff]  ;;  %v2513_v39 = vstv %s5065_s5  ;;  %s5080_s5 = sld [smem:[#allocation2 + $0xd7]] }
 0x1ae   : > { %v2472_v49 = vmul.f32 %v6605_v40, %v2471_v41  ;;  %v2515_v60 = vmul.f32 %v6618_v44, %v2513_v39  ;;  %v2516_v4 = vmul.f32 %v6290_v15, %v2513_v39  ;;  %v2556_v38 = vmul.f32 %v6605_v40, %v2555_v47 }
 0x1af   : > { %v6564_v59 = vpop.permute.xlu2 %2028  ;;  %2380 = vrot.lane.b32.xlu0 %v2377_v18, %s5427_s23  ;;  %v6567_v30 = vpop.permute.xlu1 %1966  ;;  %v2619_v47 = vmul.f32 %v6579_v5, %v2618_v24 }
 0x1b0   : > { %9810 = vst [vmem:[#allocation21_spill] sm:$0xff] %v6564_v59  ;;  %v2478_v34 = vrot.slane %v2472_v49, 1  ;;  %v2523_v13 = vrot.slane %v2516_v4, 1  ;;  %v2562_v49 = vrot.slane %v2556_v38, 1 }
 0x1b1   : > { %9811 = vst [vmem:[#allocation18_spill] sm:$0xff] %v6567_v30  ;;  %v6569_v37 = vpop.permute.xlu0 %1964 }
 0x1b2   : > { %9812 = vst [vmem:[#allocation25_spill] sm:$0xff] %v6569_v37  ;;  %v2480_v51 = vsel %vm895_vm0, %v2478_v34, %v2479_v43  ;;  %v2576_v43 = vstv %s5068_s10  ;;  %v2544_v34 = vrot.slane %v2537_v3, 1  ;;  %v2564_v4 = vsel %vm895_vm0, %v2562_v49, %v2563_v26  ;;  %s5083_s10 = sld [smem:[#allocation2 + $0xda]] }
 0x1b3   : > { %v2565_v3 = vrot.slane %v2558_v56, 1 }
 0x1b5   : > { %2441 = vrot.lane.b32.xlu2 %v2438_v54, %s5427_s23  ;;  %2422 = vrot.lane.b32.xlu1 %v2419_v20, %s5427_s23  ;;  %v2514_v54 = vmul.f32 %v6553_v1, %v2513_v39  ;;  %v2521_v20 = vrot.slane %v2515_v60, 1 }
 0x1b7   : > { %v6586_v63 = vpop.permute.xlu2 %2048  ;;  %2420 = vrot.lane.b32.xlu0 %v2417_v0, %s5427_s23  ;;  %v6589_v6 = vpop.permute.xlu1 %1986  ;;  %v2520_v21 = vrot.slane %v2514_v54, 1 }
 0x1b8   : > { %9813 = vst [vmem:[#allocation22_spill] sm:$0xff] %v6586_v63 }
 0x1b9   : > { %9814 = vst [vmem:[#allocation13_spill] sm:$0xff] %v6589_v6  ;;  %v6591_v2 = vpop.permute.xlu0 %1984  ;;  %v2522_v19 = vsel %vm895_vm0, %v2520_v21, %v2521_v20 }
 0x1bd   : > { %2464 = vrot.lane.b32.xlu2 %v2461_v32, %s5427_s23  ;;  %2462 = vrot.lane.b32.xlu1 %v2459_v17, %s5427_s23  ;;  %v2524_v32 = vsel %vm895_vm0, %v2521_v20, %v2523_v13  ;;  %v2536_v17 = vmul.f32 %v6573_v35, %v2534_v29  ;;  %v6660_v20 = vld [vmem:[%s5525_s22 + $0x48] sm:$0xff] }
 0x1be   : > { %v2577_v13 = vmul.f32 %v6660_v20, %v2576_v43 }
 0x1bf   : > { %v6609_v23 = vpop.permute.xlu2 %2068  ;;  %2443 = vrot.lane.b32.xlu0 %v2440_v27, %s5427_s23  ;;  %v6612_v18 = vpop.permute.xlu1 %2006  ;;  %v2535_v27 = vmul.f32 %v6579_v5, %v2534_v29  ;;  %v2542_v55 = vrot.slane %v2536_v17, 1 }
 0x1c0   : > { %9815 = vst [vmem:[#allocation24_spill] sm:$0xff] %v6609_v23 }
 0x1c1   : > { %9816 = vst [vmem:[#allocation59_spill] sm:$0xff] %v6612_v18  ;;  %v6614_v9 = vpop.permute.xlu0 %2004  ;;  %v2541_v60 = vrot.slane %v2535_v27, 1  ;;  %v2545_v8 = vsel %vm895_vm0, %v2542_v55, %v2544_v34 }
 0x1c3   : > { %v2543_v21 = vsel %vm895_vm0, %v2541_v60, %v2542_v55 }
 0x1c5   : > { %2504 = vrot.lane.b32.xlu2 %v2501_v48, %s5427_s23  ;;  %2485 = vrot.lane.b32.xlu1 %v2482_v58, %s5427_s23  ;;  %v6654_v58 = vld [vmem:[%s5525_s22 + $0x50] sm:$0xff] }
 0x1c6   : > { %v2578_v54 = vmul.f32 %v6654_v58, %v2576_v43 }
 0x1c7   : > { %v6628_v0 = vpop.permute.xlu2 %2088  ;;  %2483 = vrot.lane.b32.xlu0 %v2480_v51, %s5427_s23  ;;  %v6631_v46 = vpop.permute.xlu1 %2026  ;;  %v2579_v51 = vmul.f32 %v6415_v28, %v2576_v43  ;;  %v2620_v43 = vmul.f32 %v6573_v35, %v2618_v24 }
 0x1c8   : > { %9817 = vst [vmem:[#allocation60_spill] sm:$0xff] %v6628_v0  ;;  %v2584_v29 = vrot.slane %v2578_v54, 1 }
 0x1c9   : > { %9818 = vst [vmem:[#allocation61_spill] sm:$0xff] %v6631_v46  ;;  %v6633_v41 = vpop.permute.xlu0 %2024 }
 0x1cd   : > { %2527 = vrot.lane.b32.xlu2 %v2524_v32, %s5427_s23  ;;  %2525 = vrot.lane.b32.xlu1 %v2522_v19, %s5427_s23  ;;  %v2586_v32 = vrot.slane %v2579_v51, 1  ;;  %v2583_v19 = vrot.slane %v2577_v13, 1  ;;  %v2625_v51 = vrot.slane %v2619_v47, 1 }
 0x1cf   : > { %v6645_v39 = vpop.permute.xlu2 %2108  ;;  %2506 = vrot.lane.b32.xlu0 %v2503_v16, %s5427_s23  ;;  %v6648_v48 = vpop.permute.xlu1 %2046  ;;  %v2597_v16 = vstv %s5069_s6  ;;  %v2587_v49 = vsel %vm895_vm0, %v2584_v29, %v2586_v32  ;;  %v2585_v55 = vsel %vm895_vm0, %v2583_v19, %v2584_v29  ;;  %s5085_s6 = sld [smem:[#allocation2 + $0xdc]] }
 0x1d0   : > { %9819 = vst [vmem:[#allocation62_spill] sm:$0xff] %v6645_v39  ;;  %v2599_v34 = vmul.f32 %v6618_v44, %v2597_v16  ;;  %v2600_v60 = vmul.f32 %v6290_v15, %v2597_v16  ;;  %v2598_v54 = vmul.f32 %v6553_v1, %v2597_v16 }
 0x1d1   : > { %9820 = vst [vmem:[#allocation63_spill] sm:$0xff] %v6648_v48  ;;  %v6650_v62 = vpop.permute.xlu0 %2044 }
 0x1d2   : > { %9821 = vst [vmem:[#allocation64_spill] sm:$0xff] %v6650_v62  ;;  %v2605_v56 = vrot.slane %v2599_v34, 1  ;;  %v2607_v29 = vrot.slane %v2600_v60, 1  ;;  %v2604_v19 = vrot.slane %v2598_v54, 1  ;;  %v2621_v34 = vmul.f32 %v6372_v22, %v2618_v24 }
 0x1d4   : > { %v2608_v47 = vsel %vm895_vm0, %v2605_v56, %v2607_v29  ;;  %v2628_v29 = vrot.slane %v2621_v34, 1 }
 0x1d5   : > { %2567 = vrot.lane.b32.xlu2 %v2564_v4, %s5427_s23  ;;  %2548 = vrot.lane.b32.xlu1 %v2545_v8, %s5427_s23  ;;  %v2566_v4 = vsel %vm895_vm0, %v2563_v26, %v2565_v3  ;;  %v2626_v8 = vrot.slane %v2620_v43, 1 }
 0x1d7   : > { %v6667_v38 = vpop.permute.xlu2 %2128  ;;  %2546 = vrot.lane.b32.xlu0 %v2543_v21, %s5427_s23  ;;  %v6670_v17 = vpop.permute.xlu1 %2066  ;;  %v2639_v21 = vstv %s5071_s14  ;;  %v2627_v26 = vsel %vm895_vm0, %v2625_v51, %v2626_v8  ;;  %s5086_s14 = sld [smem:[#allocation2 + $0xdd]] }
 0x1d8   : > { %9822 = vst [vmem:[#allocation65_spill] sm:$0xff] %v6667_v38  ;;  %v2641_v3 = vmul.f32 %v6598_v14, %v2639_v21  ;;  %v2642_v16 = vmul.f32 %v6391_v31, %v2639_v21  ;;  %v2640_v43 = vmul.f32 %v6605_v40, %v2639_v21  ;;  %v2660_v21 = vstv %s5072_s20  ;;  %s5087_s20 = sld [smem:[#allocation2 + $0xde]] }
 0x1d9   : > { %9823 = vst [vmem:[#allocation66_spill] sm:$0xff] %v6670_v17  ;;  %v6672_v27 = vpop.permute.xlu0 %2064 }
 0x1da   : > { %9824 = vst [vmem:[#allocation67_spill] sm:$0xff] %v6672_v27  ;;  %v2647_v60 = vrot.slane %v2641_v3, 1  ;;  %v2646_v51 = vrot.slane %v2640_v43, 1  ;;  %v2629_v3 = vsel %vm895_vm0, %v2626_v8, %v2628_v29 }
 0x1dc   : > { %v2648_v24 = vsel %vm895_vm0, %v2646_v51, %v2647_v60 }
 0x1dd   : > { %2590 = vrot.lane.b32.xlu2 %v2587_v49, %s5427_s23  ;;  %2588 = vrot.lane.b32.xlu1 %v2585_v55, %s5427_s23  ;;  %v2606_v55 = vsel %vm895_vm0, %v2604_v19, %v2605_v56  ;;  %v2662_v19 = vmul.f32 %v6654_v58, %v2660_v21 }
 0x1df   : > { %v6684_v13 = vpop.permute.xlu2 %2148  ;;  %2569 = vrot.lane.b32.xlu0 %v2566_v4, %s5427_s23  ;;  %v6687_v32 = vpop.permute.xlu1 %2086  ;;  %v2649_v4 = vrot.slane %v2642_v16, 1  ;;  %v2661_v16 = vmul.f32 %v6660_v20, %v2660_v21 }
 0x1e0   : > { %9825 = vst [vmem:[#allocation68_spill] sm:$0xff] %v6684_v13 }
 0x1e1   : > { %9826 = vst [vmem:[#allocation69_spill] sm:$0xff] %v6687_v32  ;;  %v6689_v49 = vpop.permute.xlu0 %2084  ;;  %v2650_v56 = vsel %vm895_vm0, %v2647_v60, %v2649_v4  ;;  %v2667_v51 = vrot.slane %v2661_v16, 1 }
 0x1e2   : > { %9827 = vst [vmem:[#allocation70_spill] sm:$0xff] %v6689_v49 }
 0x1e5   : > { %2630 = vrot.lane.b32.xlu2 %v2627_v26, %s5427_s23  ;;  %2611 = vrot.lane.b32.xlu1 %v2608_v47, %s5427_s23  ;;  %v2663_v26 = vmul.f32 %v6415_v28, %v2660_v21  ;;  %v2681_v47 = vstv %s5073_s27  ;;  %v2701_v21 = vstv %s5074_s28  ;;  %s5045_s27 = sld [smem:[#allocation2 + $0xc4]] }
 0x1e6   : > { %v2682_v4 = vmul.f32 %v6553_v1, %v2681_v47  ;;  %v2684_v16 = vmul.f32 %v6290_v15, %v2681_v47  ;;  %v2704_v15 = vmul.f32 %v6372_v22, %v2701_v21  ;;  %s5046_s28 = sld [smem:[#allocation2 + $0xc5]] }
 0x1e7   : > { %v6700_v54 = vpop.permute.xlu2 %2168  ;;  %2609 = vrot.lane.b32.xlu0 %v2606_v55, %s5427_s23  ;;  %v6703_v13 = vpop.permute.xlu1 %2106  ;;  %v2668_v55 = vrot.slane %v2662_v19, 1  ;;  %v2670_v34 = vrot.slane %v2663_v26, 1  ;;  %v2702_v26 = vmul.f32 %v6579_v5, %v2701_v21 }
 0x1e8   : > { %9828 = vst [vmem:[#allocation71_spill] sm:$0xff] %v6700_v54 }
 0x1e9   : > { %9829 = vst [vmem:[#allocation72_spill] sm:$0xff] %v6703_v13  ;;  %v6705_v38 = vpop.permute.xlu0 %2104  ;;  %v2671_v8 = vsel %vm895_vm0, %v2668_v55, %v2670_v34  ;;  %v2669_v29 = vsel %vm895_vm0, %v2667_v51, %v2668_v55  ;;  %v2683_v34 = vmul.f32 %v6618_v44, %v2681_v47  ;;  %v2721_v55 = vstv %s5075_s9  ;;  %s5088_s9 = sld [smem:[#allocation2 + $0xdf]] }
 0x1ea   : > { %9830 = vst [vmem:[#allocation73_spill] sm:$0xff] %v6705_v38  ;;  %v2703_v47 = vmul.f32 %v6573_v35, %v2701_v21  ;;  %v2724_v54 = vmul.f32 %v6391_v31, %v2721_v55  ;;  %v2723_v21 = vmul.f32 %v6598_v14, %v2721_v55 }
 0x1ed   : > { %2653 = vrot.lane.b32.xlu2 %v2650_v56, %s5427_s23  ;;  %2651 = vrot.lane.b32.xlu1 %v2648_v24, %s5427_s23 }
 0x1ef   : > { %v6715_v43 = vpop.permute.xlu2 %2188  ;;  %2632 = vrot.lane.b32.xlu0 %v2629_v3, %s5427_s23  ;;  %v6718_v60 = vpop.permute.xlu1 %2126 }
 0x1f0   : > { %9831 = vst [vmem:[#allocation74_spill] sm:$0xff] %v6715_v43 }
 0x1f1   : > { %9832 = vst [vmem:[#allocation75_spill] sm:$0xff] %v6718_v60  ;;  %v6721_v56 = vpop.permute.xlu0 %2124 }
 0x1f2   : > { %9833 = vst [vmem:[#allocation76_spill] sm:$0xff] %v6721_v56 }
 0x1f5   : > { %2688 = vrot.lane.b32.xlu2 %v2682_v4, %s5427_s23  ;;  %2674 = vrot.lane.b32.xlu1 %v2671_v8, %s5427_s23  ;;  %v2722_v8 = vmul.f32 %v6605_v40, %v2721_v55 }
 0x1f7   : > { %v6727_v24 = vpop.permute.xlu2 %2208  ;;  %2672 = vrot.lane.b32.xlu0 %v2669_v29, %s5427_s23  ;;  %v6730_v19 = vpop.permute.xlu1 %2146 }
 0x1f8   : > { %9834 = vst [vmem:[#allocation77_spill] sm:$0xff] %v6727_v24 }
 0x1f9   : > { %9835 = vst [vmem:[#allocation78_spill] sm:$0xff] %v6730_v19  ;;  %v6733_v3 = vpop.permute.xlu0 %2144 }
 0x1fa   : > { %9836 = vst [vmem:[#allocation79_spill] sm:$0xff] %v6733_v3 }
 0x1fd   : > { %2708 = vrot.lane.b32.xlu2 %v2702_v26, %s5427_s23  ;;  %2692 = vrot.lane.b32.xlu1 %v2684_v16, %s5427_s23  ;;  %v2741_v26 = vstv %s5076_s29  ;;  %s5105_s29 = sld [smem:[#allocation2 + $0xb0]] }
 0x1fe   : > { %v2742_v24 = vmul.f32 %v6660_v20, %v2741_v26  ;;  %v2744_v3 = vmul.f32 %v6415_v28, %v2741_v26  ;;  %v2743_v55 = vmul.f32 %v6654_v58, %v2741_v26 }
 0x1ff   : > { %v6739_v4 = vpop.permute.xlu2 %2378  ;;  %2690 = vrot.lane.b32.xlu0 %v2683_v34, %s5427_s23  ;;  %v6742_v51 = vpop.permute.xlu1 %2166 }
 0x200   : > { %9837 = vst [vmem:[#allocation80_spill] sm:$0xff] %v6739_v4 }
 0x201   : > { %9838 = vst [vmem:[#allocation81_spill] sm:$0xff] %v6742_v51  ;;  %v6745_v29 = vpop.permute.xlu0 %2164  ;;  %v2801_v51 = vstv %s5079_s30  ;;  %s5048_s30 = sld [smem:[#allocation2 + $0xc7]] }
 0x202   : > { %9839 = vst [vmem:[#allocation82_spill] sm:$0xff] %v6745_v29  ;;  %v2802_v19 = vmul.f32 %v6605_v40, %v2801_v51 }
 0x205   : > { %2728 = vrot.lane.b32.xlu2 %v2722_v8, %s5427_s23  ;;  %2712 = vrot.lane.b32.xlu1 %v2704_v15, %s5427_s23  ;;  %v2761_v8 = vstv %s5077_s11  ;;  %s5047_s11 = sld [smem:[#allocation2 + $0xc6]] }
 0x206   : > { %v2762_v29 = vmul.f32 %v6553_v1, %v2761_v8 }
 0x207   : > { %v6751_v16 = vpop.permute.xlu2 %2401  ;;  %2710 = vrot.lane.b32.xlu0 %v2703_v47, %s5427_s23  ;;  %v6754_v34 = vpop.permute.xlu1 %2186 }
 0x208   : > { %9840 = vst [vmem:[#allocation83_spill] sm:$0xff] %v6751_v16 }
 0x209   : > { %9841 = vst [vmem:[#allocation84_spill] sm:$0xff] %v6754_v34  ;;  %v6757_v43 = vpop.permute.xlu0 %2184 }
 0x20a   : > { %9842 = vst [vmem:[#allocation85_spill] sm:$0xff] %v6757_v43 }
 0x20d   : > { %2748 = vrot.lane.b32.xlu2 %v2742_v24, %s5427_s23  ;;  %2732 = vrot.lane.b32.xlu1 %v2724_v54, %s5427_s23  ;;  %v2781_v24 = vstv %s5078_s13  ;;  %s6897_s13 = sld [smem:[#allocation2 + $0x40]] }
 0x20e   : > { %v2784_v0 = vmul.f32 %v6372_v22, %v2781_v24  ;;  %v2804_v22 = vmul.f32 %v6391_v31, %v2801_v51 }
 0x20f   : > { %v6763_v15 = vpop.permute.xlu2 %2441  ;;  %2730 = vrot.lane.b32.xlu0 %v2723_v21, %s5427_s23  ;;  %v6766_v47 = vpop.permute.xlu1 %2206 }
 0x210   : > { %9843 = vst [vmem:[#allocation86_spill] sm:$0xff] %v6763_v15  ;;  %v6934_v15 = vld [vmem:[%s5525_s22 + $0x40] sm:$0x3] }
 0x211   : > { %9844 = vst [vmem:[#allocation87_spill] sm:$0xff] %v6766_v47  ;;  %v6769_v43 = vpop.permute.xlu0 %2204  ;;  %v2782_v47 = vmul.f32 %v6579_v5, %v2781_v24 }
 0x212   : > { %9845 = vst [vmem:[#allocation88_spill] sm:$0xff] %v6769_v43  ;;  %v6784_v43 = vld [vmem:[%s5525_s22 + $0x10] sm:$0x3] }
 0x213   : > { %v2764_v26 = vmul.f32 %v6784_v43, %v2761_v8 }
 0x215   : > { %2768 = vrot.lane.b32.xlu2 %v2762_v29, %s5427_s23  ;;  %2752 = vrot.lane.b32.xlu1 %v2744_v3, %s5427_s23  ;;  %v2763_v29 = vmul.f32 %v6618_v44, %v2761_v8  ;;  %v2783_v8 = vmul.f32 %v6573_v35, %v2781_v24  ;;  %v2803_v24 = vmul.f32 %v6598_v14, %v2801_v51 }
 0x217   : > { %v6775_v54 = vpop.permute.xlu2 %2464  ;;  %2750 = vrot.lane.b32.xlu0 %v2743_v55, %s5427_s23  ;;  %v6778_v21 = vpop.permute.xlu1 %2359 }
 0x218   : > { %9846 = vst [vmem:[#allocation89_spill] sm:$0xff] %v6775_v54 }
 0x219   : > { %9847 = vst [vmem:[#allocation90_spill] sm:$0xff] %v6778_v21  ;;  %v6781_v34 = vpop.permute.xlu0 %2357  ;;  %v9880_v21 = vld [vmem:[#allocation44_spill] sm:$0xff] }
 0x21a   : > { %9848 = vst [vmem:[#allocation91_spill] sm:$0xff] %v6781_v34 }
 0x21d   : > { %2788 = vrot.lane.b32.xlu2 %v2782_v47, %s5427_s23  ;;  %2772 = vrot.lane.b32.xlu1 %v2764_v26, %s5427_s23  ;;  %v2821_v47 = vstv %s5080_s5  ;;  %s6908_s5 = sld [smem:[#allocation2 + $0x41]] }
 0x21e   : > { %v2822_v23 = vmul.f32 %v6660_v20, %v2821_v47  ;;  %v2824_v32 = vmul.f32 %v6415_v28, %v2821_v47  ;;  %v2823_v51 = vmul.f32 %v6654_v58, %v2821_v47 }
 0x21f   : > { %v6790_v3 = vpop.permute.xlu2 %2504  ;;  %2770 = vrot.lane.b32.xlu0 %v2763_v29, %s5427_s23  ;;  %v6793_v55 = vpop.permute.xlu1 %2399 }
 0x220   : > { %9849 = vst [vmem:[#allocation92_spill] sm:$0xff] %v6790_v3 }
 0x221   : > { %9850 = vst [vmem:[#allocation93_spill] sm:$0xff] %v6793_v55  ;;  %v6796_v39 = vpop.permute.xlu0 %2380 }
 0x222   : > { %9851 = vst [vmem:[#allocation94_spill] sm:$0xff] %v6796_v39 }
 0x223   : > { %v574_v34 = vstv %s6908_s5  ;;  %s7056_s5 = sld [smem:[#allocation2 + $0xcb]] }
 0x225   : > { %2808 = vrot.lane.b32.xlu2 %v2802_v19, %s5427_s23  ;;  %2792 = vrot.lane.b32.xlu1 %v2784_v0, %s5427_s23  ;;  %v2841_v19 = vstv %s5081_s7  ;;  %s5106_s7 = sld [smem:[#allocation2 + $0xb1]] }
 0x226   : > { %v2842_v13 = vmul.f32 %v6553_v1, %v2841_v19  ;;  %v2844_v49 = vmul.f32 %v6784_v43, %v2841_v19  ;;  %v2843_v47 = vmul.f32 %v6618_v44, %v2841_v19 }
 0x227   : > { %v6802_v26 = vpop.permute.xlu2 %2527  ;;  %2790 = vrot.lane.b32.xlu0 %v2783_v8, %s5427_s23  ;;  %v6805_v29 = vpop.permute.xlu1 %2422 }
 0x228   : > { %9852 = vst [vmem:[#allocation95_spill] sm:$0xff] %v6802_v26  ;;  %v6847_v26 = vld [vmem:[%s5525_s22 + $0x28] sm:$0x3] }
 0x229   : > { %9853 = vst [vmem:[#allocation96_spill] sm:$0xff] %v6805_v29  ;;  %v6808_v60 = vpop.permute.xlu0 %2420 }
 0x22a   : > { %9854 = vst [vmem:[#allocation97_spill] sm:$0xff] %v6808_v60 }
 0x22d   : > { %2828 = vrot.lane.b32.xlu2 %v2822_v23, %s5427_s23  ;;  %2812 = vrot.lane.b32.xlu1 %v2804_v22, %s5427_s23  ;;  %v2861_v23 = vstv %s5082_s8  ;;  %s6917_s8 = sld [smem:[#allocation2 + $0x42]] }
 0x22e   : > { %v2862_v38 = vmul.f32 %v6579_v5, %v2861_v23  ;;  %v2864_v19 = vmul.f32 %v6847_v26, %v2861_v23 }
 0x22f   : > { %v6814_v0 = vpop.permute.xlu2 %2567  ;;  %2810 = vrot.lane.b32.xlu0 %v2803_v24, %s5427_s23  ;;  %v6817_v8 = vpop.permute.xlu1 %2462 }
 0x230   : > { %9855 = vst [vmem:[#allocation98_spill] sm:$0xff] %v6814_v0  ;;  %v2901_v0 = vstv %s5084_s12  ;;  %s6941_s12 = sld [smem:[#allocation2 + $0x43]] }
 0x231   : > { %9856 = vst [vmem:[#allocation99_spill] sm:$0xff] %v6817_v8  ;;  %v6820_v56 = vpop.permute.xlu0 %2443 }
 0x232   : > { %9857 = vst [vmem:[#allocation100_spill] sm:$0xff] %v6820_v56 }
 0x233   : > { %v9883_v48 = vstv %s6917_s8 }
 0x234   : > { %v581_v46 = vmul.f32 %v6605_v40, %v9883_v48 }
 0x235   : > { %2848 = vrot.lane.b32.xlu2 %v2842_v13, %s5427_s23  ;;  %2832 = vrot.lane.b32.xlu1 %v2824_v32, %s5427_s23  ;;  %v2881_v13 = vstv %s5083_s10  ;;  %s6925_s10 = sld [smem:[#allocation2 + $0x44]] }
 0x236   : > { %v2882_v27 = vmul.f32 %v6605_v40, %v2881_v13 }
 0x237   : > { %v6826_v22 = vpop.permute.xlu2 %2590  ;;  %2830 = vrot.lane.b32.xlu0 %v2823_v51, %s5427_s23  ;;  %v6829_v24 = vpop.permute.xlu1 %2485 }
 0x238   : > { %9858 = vst [vmem:[#allocation101_spill] sm:$0xff] %v6826_v22 }
 0x239   : > { %9859 = vst [vmem:[#allocation102_spill] sm:$0xff] %v6829_v24  ;;  %v6832_v17 = vpop.permute.xlu0 %2483  ;;  %v3305_v24 = vstv %s5105_s29  ;;  %s6999_s29 = sld [smem:[#allocation2 + $0xb3]] }
 0x23a   : > { %9860 = vst [vmem:[#allocation103_spill] sm:$0xff] %v6832_v17  ;;  %v568_v17 = vstv %s6897_s13  ;;  %v3308_v63 = vmul.f32 %v6784_v43, %v3305_v24  ;;  %s7031_s13 = sld [smem:[#allocation2 + $0xca]] }
 0x23b   : > { %v569_v29 = vmul.f32 %v6553_v1, %v568_v17 }
 0x23d   : > { %2868 = vrot.lane.b32.xlu2 %v2862_v38, %s5427_s23  ;;  %2852 = vrot.lane.b32.xlu1 %v2844_v49, %s5427_s23  ;;  %v2863_v38 = vmul.f32 %v6573_v35, %v2861_v23  ;;  %v2883_v23 = vmul.f32 %v6598_v14, %v2881_v13 }
 0x23f   : > { %v6838_v32 = vpop.permute.xlu2 %2630  ;;  %2850 = vrot.lane.b32.xlu0 %v2843_v47, %s5427_s23  ;;  %v6841_v51 = vpop.permute.xlu1 %2525 }
 0x240   : > { %9861 = vst [vmem:[#allocation104_spill] sm:$0xff] %v6838_v32  ;;  %v2902_v32 = vmul.f32 %v6660_v20, %v2901_v0 }
 0x241   : > { %9862 = vst [vmem:[#allocation105_spill] sm:$0xff] %v6841_v51  ;;  %v6844_v22 = vpop.permute.xlu0 %2506 }
 0x242   : > { %9863 = vst [vmem:[#allocation106_spill] sm:$0xff] %v6844_v22  ;;  %v2884_v22 = vmul.f32 %v6391_v31, %v2881_v13  ;;  %v2904_v31 = vmul.f32 %v6415_v28, %v2901_v0  ;;  %v2903_v13 = vmul.f32 %v6654_v58, %v2901_v0 }
 0x245   : > { %2888 = vrot.lane.b32.xlu2 %v2882_v27, %s5427_s23  ;;  %2872 = vrot.lane.b32.xlu1 %v2864_v19, %s5427_s23  ;;  %v2921_v27 = vstv %s5085_s6  ;;  %s6947_s6 = sld [smem:[#allocation2 + $0x45]] }
 0x246   : > { %v2924_v28 = vmul.f32 %v6784_v43, %v2921_v27  ;;  %v2923_v0 = vmul.f32 %v6618_v44, %v2921_v27 }
 0x247   : > { %v6853_v49 = vpop.permute.xlu2 %2653  ;;  %2870 = vrot.lane.b32.xlu0 %v2863_v38, %s5427_s23  ;;  %v6856_v47 = vpop.permute.xlu1 %2548 }
 0x248   : > { %9864 = vst [vmem:[#allocation107_spill] sm:$0xff] %v6853_v49  ;;  %v2922_v49 = vmul.f32 %v6553_v1, %v2921_v27 }
 0x249   : > { %9865 = vst [vmem:[#allocation108_spill] sm:$0xff] %v6856_v47  ;;  %v6859_v51 = vpop.permute.xlu0 %2546 }
 0x24a   : > { %9866 = vst [vmem:[#allocation109_spill] sm:$0xff] %v6859_v51 }
 0x24b   : > { %v9662_v18 = vstv %s6947_s6  ;;  %v9894_v10 = vstv %s6947_s6  ;;  %s7171_s6 = sld [smem:[#allocation2 + $0x48]] }
 0x24c   : > { %v600_v48 = vmul.f32 %v6573_v35, %v9662_v18  ;;  %v3315_v18 = vrot.slane %v3308_v63, 1 }
 0x24d   : > { %2908 = vrot.lane.b32.xlu2 %v2902_v32, %s5427_s23  ;;  %2892 = vrot.lane.b32.xlu1 %v2884_v22, %s5427_s23  ;;  %v2941_v32 = vstv %s5086_s14  ;;  %s6951_s14 = sld [smem:[#allocation2 + $0xb2]] }
 0x24f   : > { %v6865_v19 = vpop.permute.xlu2 %2688  ;;  %2890 = vrot.lane.b32.xlu0 %v2883_v23, %s5427_s23  ;;  %v6868_v38 = vpop.permute.xlu1 %2588 }
 0x250   : > { %9867 = vst [vmem:[#allocation110_spill] sm:$0xff] %v6865_v19 }
 0x251   : > { %9868 = vst [vmem:[#allocation111_spill] sm:$0xff] %v6868_v38  ;;  %v6871_v47 = vpop.permute.xlu0 %2569  ;;  %v2942_v38 = vmul.f32 %v6579_v5, %v2941_v32 }
 0x252   : > { %9869 = vst [vmem:[#allocation112_spill] sm:$0xff] %v6871_v47 }
 0x255   : > { %2928 = vrot.lane.b32.xlu2 %v2922_v49, %s5427_s23  ;;  %2912 = vrot.lane.b32.xlu1 %v2904_v31, %s5427_s23  ;;  %v2961_v49 = vstv %s5087_s20  ;;  %s6962_s20 = sld [smem:[#allocation2 + $0x46]] }
 0x256   : > { %v2964_v60 = vmul.f32 %v6934_v15, %v2961_v49 }
 0x257   : > { %v6877_v22 = vpop.permute.xlu2 %2708  ;;  %2910 = vrot.lane.b32.xlu0 %v2903_v13, %s5427_s23  ;;  %v6880_v23 = vpop.permute.xlu1 %2611 }
 0x258   : > { %9870 = vst [vmem:[#allocation113_spill] sm:$0xff] %v6877_v22 }
 0x259   : > { %9871 = vst [vmem:[#allocation114_spill] sm:$0xff] %v6880_v23  ;;  %v6883_v47 = vpop.permute.xlu0 %2609  ;;  %v2962_v23 = vmul.f32 %v6605_v40, %v2961_v49 }
 0x25a   : > { %9872 = vst [vmem:[#allocation115_spill] sm:$0xff] %v6883_v47  ;;  %v6895_v47 = vstv %s5045_s27  ;;  %s6978_s27 = sld [smem:[#allocation2 + $0x47]] }
 0x25b   : > { %v2250_v51 = vmul.f32 %v6553_v1, %v6895_v47 }
 0x25d   : > { %2948 = vrot.lane.b32.xlu2 %v2942_v38, %s5427_s23  ;;  %2932 = vrot.lane.b32.xlu1 %v2924_v28, %s5427_s23  ;;  %v2944_v38 = vmul.f32 %v6847_v26, %v2941_v32  ;;  %v2943_v28 = vmul.f32 %v6573_v35, %v2941_v32  ;;  %v9877_v32 = vld [vmem:[#allocation48_spill] sm:$0xff] }
 0x25e   : > { %v2253_v54 = vadd.f32 %v2250_v51, %v9877_v32  ;;  %v6931_v51 = vmul.f32 %v6618_v44, %v3305_v24 }
 0x25f   : > { %v6889_v31 = vpop.permute.xlu2 %2728  ;;  %2930 = vrot.lane.b32.xlu0 %v2923_v0, %s5427_s23  ;;  %v6892_v13 = vpop.permute.xlu1 %2651  ;;  %v6906_v0 = vstv %s5046_s28  ;;  %s6986_s28 = sld [smem:[#allocation2 + $0xc8]] }
 0x260   : > { %9873 = vst [vmem:[#allocation116_spill] sm:$0xff] %v6889_v31 }
 0x261   : > { %9874 = vst [vmem:[#allocation117_spill] sm:$0xff] %v6892_v13  ;;  %v6899_v27 = vpop.permute.xlu0 %2632  ;;  %v2981_v13 = vstv %s5088_s9  ;;  %s6990_s9 = sld [smem:[#allocation2 + $0x60]] }
 0x262   : > { %9875 = vst [vmem:[#allocation118_spill] sm:$0xff] %v6899_v27  ;;  %v2982_v3 = vmul.f32 %v6660_v20, %v2981_v13 }
 0x265   : > { %2968 = vrot.lane.b32.xlu2 %v2962_v23, %s5427_s23  ;;  %2952 = vrot.lane.b32.xlu1 %v2944_v38, %s5427_s23  ;;  %v2258_v23 = vmul.f32 %v6579_v5, %v6906_v0  ;;  %v6922_v38 = vstv %s5047_s11  ;;  %s7008_s11 = sld [smem:[#allocation2 + $0xc9]] }
 0x266   : > { %v2266_v4 = vmul.f32 %v6605_v40, %v6922_v38 }
 0x267   : > { %v6911_v27 = vpop.permute.xlu2 %2748  ;;  %2950 = vrot.lane.b32.xlu0 %v2943_v28, %s5427_s23  ;;  %v6919_v56 = vpop.permute.xlu1 %2674  ;;  %v3306_v28 = vmul.f32 %v6553_v1, %v3305_v24  ;;  %v2261_v55 = vadd.f32 %v2258_v23, %v2253_v54  ;;  %v3330_v23 = vstv %s5106_s7  ;;  %v3355_v24 = vstv %s6951_s14  ;;  %s7061_s7 = sld [smem:[#allocation2 + $0x61]] }
 0x268   : > { %9876 = vst [vmem:[#allocation119_spill] sm:$0xff] %v6911_v27  ;;  %v571_v27 = vadd.f32 %v569_v29, %v9880_v21  ;;  %s7182_s14 = sld [smem:[#allocation2 + $0xb6]] }
 0x269   : > { %9878 = vst [vmem:[#allocation48_spill] sm:$0xff] %v6919_v56  ;;  %v6927_v8 = vpop.permute.xlu0 %2672  ;;  %v2963_v56 = vmul.f32 %v6598_v14, %v2961_v49  ;;  %v3312_v16 = vrot.slane %v3306_v28, 1  ;;  %v3313_v49 = vrot.slane %v6931_v51, 1  ;;  %v575_v28 = vmul.f32 %v6579_v5, %v574_v34  ;;  %v6975_v51 = vld [vmem:[%s5525_s22 + $0x58] sm:$0x3] }
 0x26a   : > { %9879 = vst [vmem:[#allocation120_spill] sm:$0xff] %v6927_v8  ;;  %v6944_v8 = vstv %s5048_s30  ;;  %s7043_s30 = sld [smem:[#allocation2 + $0xb4]] }
 0x26b   : > { %v2274_v39 = vmul.f32 %v6660_v20, %v6944_v8 }
 0x26d   : > { %2988 = vrot.lane.b32.xlu2 %v2982_v3, %s5427_s23  ;;  %2972 = vrot.lane.b32.xlu1 %v2964_v60, %s5427_s23  ;;  %v2269_v3 = vadd.f32 %v2266_v4, %v2261_v55  ;;  %v9661_v60 = vstv %s6925_s10  ;;  %v3331_v4 = vmul.f32 %v6579_v5, %v3330_v23  ;;  %v6969_v55 = vmul.f32 %v6573_v35, %v3330_v23 }
 0x26e   : > { %v594_v29 = vmul.f32 %v6618_v44, %v9661_v60  ;;  %v9663_v60 = vstv %s6941_s12  ;;  %v7132_v53 = vstv %s7061_s7  ;;  %s7319_s7 = sld [smem:[#allocation2 + $0xce]] }
 0x26f   : > { %v2769_v54 = vpop.permute.xlu2 %2768  ;;  %2970 = vrot.lane.b32.xlu0 %v2963_v56, %s5427_s23  ;;  %v6959_v31 = vpop.permute.xlu1 %2692  ;;  %v3314_v56 = vsel %vm895_vm0, %v3312_v16, %v3313_v49  ;;  %v2277_v19 = vadd.f32 %v2274_v39, %v2269_v3  ;;  %v577_v16 = vadd.f32 %v575_v28, %v571_v27  ;;  %v3337_v6 = vrot.slane %v3331_v4, 1 }
 0x270   : > { %9881 = vst [vmem:[#allocation121_spill] sm:$0xff] %v6959_v31  ;;  %v2984_v31 = vmul.f32 %v6975_v51, %v2981_v13  ;;  %v570_v3 = vmul.f32 %v6618_v44, %v568_v17  ;;  %v587_v4 = vmul.f32 %v6660_v20, %v9663_v60  ;;  %v9886_v59 = vrot.slane %v6969_v55, 1 }
 0x271   : > { %v6964_v22 = vpop.permute.xlu0 %2690  ;;  %v2777_v28 = vadd.f32 %v2769_v54, %v2277_v19  ;;  %v3356_v19 = vmul.f32 %v6605_v40, %v3355_v24  ;;  %v7112_v45 = vstv %s7043_s30  ;;  %s7277_s30 = sld [smem:[#allocation2 + $0xf0]] }
 0x272   : > { %9882 = vst [vmem:[#allocation122_spill] sm:$0xff] %v6964_v22  ;;  %v2983_v22 = vmul.f32 %v6654_v58, %v2981_v13  ;;  %v596_v13 = vadd.f32 %v594_v29, %v9877_v32  ;;  %v3339_v17 = vsel %vm895_vm0, %v3337_v6, %v9886_v59  ;;  %v572_v54 = vadd.f32 %v570_v3, %v9880_v21 }
 0x273   : > { %v3316_v59 = vsel %vm895_vm0, %v3313_v49, %v3315_v18  ;;  %v3333_v6 = vmul.f32 %v6847_v26, %v3330_v23 }
 0x275   : > { %3317 = vrot.lane.b32.xlu2 %v3314_v56, %s5427_s23  ;;  %2992 = vrot.lane.b32.xlu1 %v2984_v31, %s5427_s23  ;;  %v583_v56 = vadd.f32 %v581_v46, %v577_v16  ;;  %v9664_v31 = vstv %s6962_s20  ;;  %v7018_v46 = vmul.f32 %v6598_v14, %v3355_v24  ;;  %v576_v16 = vmul.f32 %v6573_v35, %v574_v34 }
 0x276   : > { %v606_v63 = vmul.f32 %v6598_v14, %v9664_v31  ;;  %v3362_v31 = vrot.slane %v3356_v19, 1 }
 0x277   : > { %v2789_v27 = vpop.permute.xlu2 %2788  ;;  %2990 = vrot.lane.b32.xlu0 %v2983_v22, %s5427_s23  ;;  %v7006_v29 = vpop.permute.xlu1 %2712  ;;  %v602_v22 = vadd.f32 %v600_v48, %v596_v13  ;;  %v589_v13 = vadd.f32 %v587_v4, %v583_v56  ;;  %v9665_v48 = vstv %s6978_s27  ;;  %v9666_v3 = vrot.slane %v7018_v46, 1 }
 0x278   : > { %9884 = vst [vmem:[#allocation123_spill] sm:$0xff] %v7006_v29  ;;  %v2797_v60 = vadd.f32 %v2789_v27, %v2777_v28  ;;  %v7029_v29 = vstv %s6986_s28  ;;  %v612_v27 = vmul.f32 %v6654_v58, %v9665_v48  ;;  %v1625_v28 = vstv %s6990_s9  ;;  %s7220_s28 = sld [smem:[#allocation2 + $0x4d]] }
 0x279   : > { %v7011_v39 = vpop.permute.xlu0 %2710  ;;  %v608_v34 = vadd.f32 %v606_v63, %v602_v22  ;;  %v578_v23 = vadd.f32 %v576_v16, %v572_v54  ;;  %v2282_v19 = vmul.f32 %v6553_v1, %v7029_v29  ;;  %v7054_v63 = vstv %s7008_s11  ;;  %s7229_s9 = sld [smem:[#allocation2 + $0x4e]] }
 0x27a   : > { %9885 = vst [vmem:[#allocation124_spill] sm:$0xff] %v7011_v39  ;;  %v9887_v39 = vstv %s6917_s8  ;;  %v7059_v54 = vmul.f32 %v6553_v1, %v1625_v28  ;;  %s7114_s8 = sld [smem:[#allocation2 + $0xb5]] }
 0x27b   : > { %v582_v56 = vmul.f32 %v6598_v14, %v9887_v39  ;;  %v7077_v48 = vadd.f32 %v612_v27, %v608_v34  ;;  %v2285_v12 = vadd.f32 %v2282_v19, %v6094_v25  ;;  %v9893_v34 = vrot.slane %v6969_v55, 1  ;;  %s7253_s11 = sld [smem:[#allocation2 + $0x4f]] }
 0x27d   : > { %3342 = vrot.lane.b32.xlu2 %v3339_v17, %s5427_s23  ;;  %3321 = vrot.lane.b32.xlu1 %v3315_v18, %s5427_s23  ;;  %v7041_v17 = vstv %s6999_s29  ;;  %v3340_v18 = vrot.slane %v3333_v6, 1  ;;  %v9890_v6 = vld [vmem:[#allocation14_spill] sm:$0xff]  ;;  %s7242_s29 = sld [smem:[#allocation2 + $0xcc]] }
 0x27e   : > { %v3381_v16 = vmul.f32 %v6660_v20, %v7041_v17 }
 0x27f   : > { %v2809_v49 = vpop.permute.xlu2 %2808  ;;  %3319 = vrot.lane.b32.xlu0 %v3316_v59, %s5427_s23  ;;  %v7051_v22 = vpop.permute.xlu1 %2732  ;;  %v7072_v59 = vmul.f32 %v6654_v58, %v7041_v17  ;;  %v3341_v27 = vsel %vm895_vm0, %v9893_v34, %v3340_v18  ;;  %v599_v34 = vmul.f32 %v6579_v5, %v9894_v10 }
 0x280   : > { %v2817_v4 = vadd.f32 %v2809_v49, %v2797_v60  ;;  %9888 = vst [vmem:[#allocation125_spill] sm:$0xff] %v7051_v22  ;;  %v3364_v60 = vsel %vm895_vm0, %v3362_v31, %v9666_v3  ;;  %v7075_v49 = vadd.f32 %v9890_v6, %v589_v13  ;;  %v9891_v22 = vstv %s6925_s10  ;;  %s7151_s10 = sld [smem:[#allocation2 + $0x64]] }
 0x281   : > { %v7063_v39 = vpop.permute.xlu0 %2730  ;;  %v593_v37 = vmul.f32 %v6553_v1, %v9891_v22  ;;  %v584_v31 = vadd.f32 %v582_v56, %v578_v23  ;;  %v9892_v3 = vstv %s6941_s12  ;;  %v2290_v13 = vmul.f32 %v6579_v5, %v7054_v63  ;;  %s7153_s12 = sld [smem:[#allocation2 + $0x65]] }
 0x282   : > { %9889 = vst [vmem:[#allocation126_spill] sm:$0xff] %v7063_v39  ;;  %v2252_v39 = vmul.f32 %v6784_v43, %v6895_v47  ;;  %v588_v30 = vmul.f32 %v6654_v58, %v9892_v3  ;;  %v3358_v22 = vmul.f32 %v6934_v15, %v3355_v24  ;;  %v7096_v6 = vstv %s7031_s13  ;;  %s7269_s13 = sld [smem:[#allocation2 + $0xf1]] }
 0x283   : > { %v2251_v23 = vmul.f32 %v6618_v44, %v6895_v47  ;;  %v7101_v3 = vmul.f32 %v6618_v44, %v1625_v28  ;;  %v3387_v19 = vrot.slane %v3381_v16, 1  ;;  %v595_v55 = vadd.f32 %v593_v37, %v9877_v32 }
 0x284   : > { %v2255_v47 = vadd.f32 %v2252_v39, %v9877_v32  ;;  %v2260_v37 = vmul.f32 %v6847_v26, %v6906_v0  ;;  %v2293_v56 = vadd.f32 %v2290_v13, %v2285_v12  ;;  %v2298_v10 = vmul.f32 %v6605_v40, %v7096_v6 }
 0x285   : > { %3367 = vrot.lane.b32.xlu2 %v3364_v60, %s5427_s23  ;;  %3346 = vrot.lane.b32.xlu1 %v3340_v18, %s5427_s23  ;;  %v3365_v18 = vrot.slane %v3358_v22, 1  ;;  %v7126_v39 = vstv %s7056_s5  ;;  %v2254_v60 = vadd.f32 %v2251_v23, %v9877_v32  ;;  %v3406_v13 = vmul.f32 %v6553_v1, %v7112_v45  ;;  %s7283_s5 = sld [smem:[#allocation2 + $0xcd]] }
 0x286   : > { %v7143_v22 = vmul.f32 %v6618_v44, %v7112_v45  ;;  %v9899_v23 = vstv %s6962_s20  ;;  %v2268_v1 = vmul.f32 %v6934_v15, %v6922_v38  ;;  %s7184_s20 = sld [smem:[#allocation2 + $0x4c]] }
 0x287   : > { %v2829_v24 = vpop.permute.xlu2 %2828  ;;  %3344 = vrot.lane.b32.xlu0 %v3341_v27, %s5427_s23  ;;  %v7123_v5 = vpop.permute.xlu1 %2752  ;;  %v2259_v27 = vmul.f32 %v6573_v35, %v6906_v0  ;;  %v605_v0 = vmul.f32 %v6605_v40, %v9899_v23  ;;  %v9900_v40 = vrot.slane %v7018_v46, 1  ;;  %v2267_v23 = vmul.f32 %v6598_v14, %v6922_v38 }
 0x288   : > { %v7117_v16 = vadd.f32 %v2829_v24, %v2817_v4  ;;  %9896 = vst [vmem:[#allocation127_spill] sm:$0xff] %v7123_v5  ;;  %v9898_v24 = vrot.slane %v7072_v59, 1  ;;  %v1628_v5 = vmul.f32 %v6784_v43, %v1625_v28  ;;  %v3412_v62 = vrot.slane %v3406_v13, 1 }
 0x289   : > { %v7134_v4 = vpop.permute.xlu0 %2750  ;;  %v3366_v28 = vsel %vm895_vm0, %v9900_v40, %v3365_v18  ;;  %v7180_v38 = vstv %s7114_s8  ;;  %v9905_v40 = vld [vmem:[#allocation23_spill] sm:$0xff]  ;;  %s7337_s8 = sld [smem:[#allocation2 + $0xf2]] }
 0x28a   : > { %9895 = vst [vmem:[#allocation14_spill] sm:$0xff] %v7117_v16  ;;  %v3389_v12 = vsel %vm895_vm0, %v3387_v19, %v9898_v24  ;;  %v601_v16 = vadd.f32 %v599_v34, %v595_v55  ;;  %v2263_v19 = vadd.f32 %v2260_v37, %v2255_v47  ;;  %v2301_v24 = vadd.f32 %v2298_v10, %v2293_v56 }
 0x28b   : > { %9897 = vst [vmem:[#allocation128_spill] sm:$0xff] %v7134_v4  ;;  %v1645_v4 = vmul.f32 %v6847_v26, %v7132_v53  ;;  %v2306_v55 = vmul.f32 %v6660_v20, %v7126_v39  ;;  %v2262_v34 = vadd.f32 %v2259_v27, %v2254_v60  ;;  %v3383_v47 = vmul.f32 %v6975_v51, %v7041_v17 }
 0x28c   : > { %v1633_v37 = vrot.slane %v7101_v3, 1  ;;  %v9901_v56 = vstv %s6978_s27  ;;  %v607_v46 = vadd.f32 %v605_v0, %v601_v16  ;;  %v1635_v52 = vrot.slane %v1628_v5, 1  ;;  %s7196_s27 = sld [smem:[#allocation2 + $0x49]] }
 0x28d   : > { %3392 = vrot.lane.b32.xlu2 %v3389_v12, %s5427_s23  ;;  %v611_v10 = vmul.f32 %v6660_v20, %v9901_v56  ;;  %v9668_v12 = vrot.slane %v7143_v22, 1  ;;  %v7176_v60 = vmul.f32 %v6573_v35, %v7132_v53  ;;  %3371 = vrot.lane.b32.xlu1 %v3365_v18, %s5427_s23  ;;  %v590_v20 = vadd.f32 %v588_v30, %v584_v31 }
 0x28e   : > { %v2271_v17 = vadd.f32 %v2268_v1, %v2263_v19  ;;  %v2276_v3 = vmul.f32 %v6975_v51, %v6944_v8  ;;  %v2309_v35 = vadd.f32 %v2306_v55, %v2301_v24  ;;  %v1652_v16 = vrot.slane %v1645_v4, 1  ;;  %v7202_v19 = vld [vmem:[%s5525_s22 + $0x18] sm:$0xff] }
 0x28f   : > { %9902 = vst [vmem:[#allocation129_spill] sm:$0xff] %v7176_v60  ;;  %v2849_v14 = vpop.permute.xlu2 %2848  ;;  %3369 = vrot.lane.b32.xlu0 %v3366_v28, %s5427_s23  ;;  %v2773_v5 = vpop.permute.xlu1 %2772  ;;  %v2270_v18 = vadd.f32 %v2267_v23, %v2262_v34  ;;  %v2275_v27 = vmul.f32 %v6654_v58, %v6944_v8  ;;  %v3390_v13 = vrot.slane %v3383_v47, 1  ;;  %v9903_v30 = vrot.slane %v7059_v54, 1  ;;  %v7207_v58 = vld [vmem:[%s5525_s22 + $0x20] sm:$0xff] }
 0x290   : > { %v3414_v4 = vsel %vm895_vm0, %v3412_v62, %v9668_v12  ;;  %v3431_v1 = vmul.f32 %v7202_v19, %v7180_v38  ;;  %v7211_v8 = vmul.f32 %v7207_v58, %v7180_v38  ;;  %v7213_v54 = vadd.f32 %v611_v10, %v607_v46  ;;  %v7245_v46 = vld [vmem:[%s5525_s22] sm:$0xff] }
 0x291   : > { %v7194_v31 = vsel %vm895_vm0, %v9903_v30, %v1633_v37  ;;  %v2771_v0 = vpop.permute.xlu0 %2770  ;;  %v7216_v24 = vsel %vm895_vm0, %v1633_v37, %v1635_v52  ;;  %v9667_v55 = vrot.slane %v7176_v60, 1  ;;  %v1693_v62 = vstv %s7151_s10  ;;  %s7356_s10 = sld [smem:[#allocation2 + $0xcf]] }
 0x292   : > { %9904 = vst [vmem:[#allocation130_spill] sm:$0xff] %v7213_v54  ;;  %v7224_v28 = vadd.f32 %v9905_v40, %v7077_v48  ;;  %v7227_v34 = vstv %s7153_s12  ;;  %v2279_v23 = vadd.f32 %v2276_v3, %v2271_v17  ;;  %v2857_v47 = vadd.f32 %v2849_v14, %v2309_v35  ;;  %v9911_v35 = vld [vmem:[#allocation27_spill] sm:$0xff]  ;;  %s7369_s12 = sld [smem:[#allocation2 + $0x4a]] }
 0x293   : > { %9907 = vst [vmem:[#allocation131_spill] sm:$0xff] %v7227_v34  ;;  %v7234_v52 = vsel %vm895_vm0, %v9667_v55, %v1652_v16  ;;  %v2278_v37 = vadd.f32 %v2275_v27, %v2270_v18  ;;  %v9908_v56 = vrot.slane %v7072_v59, 1  ;;  %v3408_v10 = vmul.f32 %v6784_v43, %v7112_v45 }
 0x294   : > { %9906 = vst [vmem:[#allocation23_spill] sm:$0xff] %v7224_v28  ;;  %v7248_v14 = vmul.f32 %v7245_v46, %v1693_v62  ;;  %v7251_v17 = vmul.f32 %v6618_v44, %v1693_v62  ;;  %v3437_v3 = vrot.slane %v3431_v1, 1  ;;  %v9669_v59 = vrot.slane %v7211_v8, 1 }
 0x295   : > { %3417 = vrot.lane.b32.xlu2 %v3414_v4, %s5427_s23  ;;  %v3391_v48 = vsel %vm895_vm0, %v9908_v56, %v3390_v13  ;;  %v7258_v16 = vadd.f32 %v9911_v35, %v7075_v49  ;;  %v7262_v45 = vmul.f32 %v7202_v19, %v7227_v34  ;;  %3396 = vrot.lane.b32.xlu1 %v3390_v13, %s5427_s23  ;;  %v7267_v30 = vstv %s7182_s14  ;;  %v9915_v13 = vld [vmem:[#allocation28_spill] sm:$0xff]  ;;  %s7396_s14 = sld [smem:[#allocation2 + $0x80]] }
 0x296   : > { %9909 = vst [vmem:[#allocation132_spill] sm:$0xff] %v7248_v14  ;;  %v7273_v44 = vmul.f32 %v7207_v58, %v7227_v34  ;;  %v9671_v4 = vstv %s7184_s20  ;;  %v2779_v49 = vadd.f32 %v2773_v5, %v2279_v23  ;;  %v676_v40 = vadd.f32 %v9915_v13, %v590_v20 }
 0x297   : > { %9910 = vst [vmem:[#allocation133_spill] sm:$0xff] %v7251_v17  ;;  %v2869_v27 = vpop.permute.xlu2 %2868  ;;  %3394 = vrot.lane.b32.xlu0 %v3391_v48, %s5427_s23  ;;  %v7281_v56 = vmul.f32 %v6784_v43, %v1693_v62  ;;  %v2778_v35 = vadd.f32 %v2771_v0, %v2278_v37  ;;  %v2793_v55 = vpop.permute.xlu1 %2792  ;;  %v3415_v18 = vrot.slane %v3408_v10, 1  ;;  %v3439_v23 = vsel %vm895_vm0, %v3437_v3, %v9669_v59  ;;  %v7294_v62 = vld [vmem:[%s5525_s22 + $0x38] sm:$0xff]  ;;  %v9918_v59 = vld [vmem:[#allocation17_spill] sm:$0xff] }
 0x298   : > { %9912 = vst [vmem:[#allocation27_spill] sm:$0xff] %v7262_v45  ;;  %v2877_v1 = vadd.f32 %v2869_v27, %v2857_v47  ;;  %v2799_v12 = vadd.f32 %v2793_v55, %v2779_v49  ;;  %v7289_v47 = vld [vmem:[%s5525_s22 + $0x30] sm:$0xff]  ;;  %v7298_v0 = vmul.f32 %v7294_v62, %v7267_v30  ;;  %v641_v37 = vmul.f32 %v7245_v46, %v9671_v4 }
 0x299   : > { %9913 = vst [vmem:[#allocation134_spill] sm:$0xff] %v7267_v30  ;;  %v2791_v5 = vpop.permute.xlu0 %2790  ;;  %v3456_v20 = vmul.f32 %v7289_v47, %v7267_v30  ;;  %v9672_v48 = vstv %s7220_s28  ;;  %v9673_v13 = vstv %s7229_s9  ;;  %v690_v34 = vadd.f32 %v9918_v59, %v676_v40  ;;  %v9921_v59 = vld [vmem:[#allocation30_spill] sm:$0xff] }
 0x29a   : > { %9914 = vst [vmem:[#allocation135_spill] sm:$0xff] %v7273_v44  ;;  %v2798_v10 = vadd.f32 %v2791_v5, %v2778_v35  ;;  %v9919_v55 = vrot.slane %v7143_v22, 1  ;;  %v3433_v35 = vmul.f32 %v6847_v26, %v7180_v38  ;;  %v7317_v5 = vstv %s7242_s29  ;;  %v7347_v22 = vld [vmem:[%s5525_s22 + $0x8] sm:$0xff]  ;;  %s7404_s29 = sld [smem:[#allocation2 + $0x4b]] }
 0x29b   : > { %9916 = vst [vmem:[#allocation28_spill] sm:$0xff] %v7281_v56  ;;  %v647_v27 = vmul.f32 %v7202_v19, %v9672_v48  ;;  %v3462_v40 = vrot.slane %v3456_v20, 1  ;;  %v7330_v38 = vmul.f32 %v7289_v47, %v9673_v13  ;;  %v7335_v48 = vstv %s7269_s13  ;;  %s7418_s13 = sld [smem:[#allocation2 + $0xf3]] }
 0x29c   : > { %9917 = vst [vmem:[#allocation136_spill] sm:$0xff] %v7298_v0  ;;  %v3416_v4 = vsel %vm895_vm0, %v9919_v55, %v3415_v18  ;;  %v7340_v20 = vadd.f32 %v9921_v59, %v690_v34  ;;  %v2314_v13 = vmul.f32 %v7245_v46, %v7317_v5  ;;  %v9922_v55 = vstv %s7171_s6 }
 0x29d   : > { %3442 = vrot.lane.b32.xlu2 %v3439_v23, %s5427_s23  ;;  %v643_v23 = vadd.f32 %v641_v37, %v6271_v57  ;;  %9920 = vst [vmem:[#allocation17_spill] sm:$0xff] %v7330_v38  ;;  %3421 = vrot.lane.b32.xlu1 %v3415_v18, %s5427_s23  ;;  %v4009_v37 = vstv %s7277_s30  ;;  %v618_v18 = vmul.f32 %v7347_v22, %v9922_v55  ;;  %v3440_v56 = vrot.slane %v3433_v35, 1  ;;  %v9924_v35 = vld [vmem:[#allocation31_spill] sm:$0xff]  ;;  %s7420_s30 = sld [smem:[#allocation2 + $0x81]] }
 0x29e   : > { %v7354_v45 = vstv %s7283_s5  ;;  %v7365_v55 = vmul.f32 %v7207_v58, %v7335_v48  ;;  %v703_v28 = vadd.f32 %v9924_v35, %v7258_v16  ;;  %v2284_v44 = vmul.f32 %v6784_v43, %v7029_v29  ;;  %s7445_s5 = sld [smem:[#allocation2 + $0x82]] }
 0x29f   : > { %v2889_v49 = vpop.permute.xlu2 %2888  ;;  %3419 = vrot.lane.b32.xlu0 %v3416_v4, %s5427_s23  ;;  %v2813_v54 = vpop.permute.xlu1 %2812  ;;  %v9923_v4 = vrot.slane %v7298_v0, 1  ;;  %v2317_v14 = vadd.f32 %v2314_v13, %v6271_v57  ;;  %v2322_v17 = vmul.f32 %v7202_v19, %v7354_v45  ;;  %v9926_v16 = vrot.slane %v7211_v8, 1 }
 0x2a0   : > { %v2897_v3 = vadd.f32 %v2889_v49, %v2877_v1  ;;  %v2819_v34 = vadd.f32 %v2813_v54, %v2799_v12  ;;  %v4035_v49 = vmul.f32 %v7202_v19, %v7335_v48  ;;  %v4011_v54 = vmul.f32 %v7347_v22, %v4009_v37 }
 0x2a1   : > { %v2811_v59 = vpop.permute.xlu0 %2810  ;;  %v3464_v1 = vsel %vm895_vm0, %v3462_v40, %v9923_v4  ;;  %v7374_v40 = vadd.f32 %v647_v27, %v643_v23  ;;  %v7377_v4 = vmul.f32 %v6784_v43, %v4009_v37  ;;  %v7388_v35 = vstv %s7319_s7  ;;  %s7457_s7 = sld [smem:[#allocation2 + $0x62]] }
 0x2a2   : > { %v2818_v12 = vadd.f32 %v2811_v59, %v2798_v10  ;;  %v3441_v10 = vsel %vm895_vm0, %v9926_v16, %v3440_v56  ;;  %v4010_v59 = vmul.f32 %v7245_v46, %v4009_v37  ;;  %v2283_v27 = vmul.f32 %v7347_v22, %v7029_v29 }
 0x2a3   : > { %9925 = vst [vmem:[#allocation30_spill] sm:$0xff] %v7374_v40  ;;  %v620_v23 = vadd.f32 %v618_v18, %v6094_v25  ;;  %v9927_v13 = vstv %s7196_s27  ;;  %v4041_v40 = vrot.slane %v4035_v49, 1  ;;  %v4017_v37 = vrot.slane %v4011_v54, 1 }
 0x2a4   : > { %v624_v38 = vmul.f32 %v7207_v58, %v9927_v13  ;;  %v2287_v16 = vadd.f32 %v2284_v44, %v6094_v25  ;;  %v2292_v29 = vmul.f32 %v6847_v26, %v7054_v63  ;;  %v4059_v60 = vstv %s7337_s8  ;;  %s7472_s8 = sld [smem:[#allocation2 + $0x83]] }
 0x2a5   : > { %3467 = vrot.lane.b32.xlu2 %v3464_v1, %s5427_s23  ;;  %3446 = vrot.lane.b32.xlu1 %v3440_v56, %s5427_s23  ;;  %v2325_v13 = vadd.f32 %v2322_v17, %v2317_v14  ;;  %v2330_v56 = vmul.f32 %v7289_v47, %v7388_v35  ;;  %v4016_v8 = vrot.slane %v4010_v59, 1  ;;  %v7413_v44 = vstv %s7356_s10  ;;  %s7475_s10 = sld [smem:[#allocation2 + $0xa0]] }
 0x2a6   : > { %v2286_v0 = vadd.f32 %v2283_v27, %v6094_v25  ;;  %v2291_v30 = vmul.f32 %v7207_v58, %v7054_v63  ;;  %v9930_v17 = vrot.slane %v7365_v55, 1  ;;  %v4061_v59 = vmul.f32 %v7294_v62, %v4059_v60 }
 0x2a7   : > { %v2909_v1 = vpop.permute.xlu2 %2908  ;;  %3444 = vrot.lane.b32.xlu0 %v3441_v10, %s5427_s23  ;;  %v2833_v54 = vpop.permute.xlu1 %2832  ;;  %v2295_v63 = vadd.f32 %v2292_v29, %v2287_v16  ;;  %v4060_v27 = vmul.f32 %v7289_v47, %v4059_v60  ;;  %v2299_v29 = vmul.f32 %v7294_v62, %v7096_v6 }
 0x2a8   : > { %v7407_v18 = vadd.f32 %v2909_v1, %v2897_v3  ;;  %v7422_v3 = vadd.f32 %v2833_v54, %v2819_v34  ;;  %v4043_v10 = vsel %vm895_vm0, %v4041_v40, %v9930_v17  ;;  %v7429_v1 = vmul.f32 %v6934_v15, %v4059_v60  ;;  %v7440_v40 = vld [vmem:[%s5525_s22 + $0x48] sm:$0xff] }
 0x2a9   : > { %v2831_v14 = vpop.permute.xlu0 %2830  ;;  %v9932_v34 = vrot.slane %v7377_v4, 1  ;;  %v2338_v17 = vmul.f32 %v7440_v40, %v7413_v44  ;;  %v2294_v16 = vadd.f32 %v2291_v30, %v2286_v0  ;;  %v4067_v60 = vrot.slane %v4061_v59, 1 }
 0x2aa   : > { %9928 = vst [vmem:[#allocation31_spill] sm:$0xff] %v7407_v18  ;;  %v7432_v49 = vadd.f32 %v2831_v14, %v2818_v12  ;;  %v2300_v18 = vmul.f32 %v6934_v15, %v7096_v6  ;;  %v4018_v12 = vsel %vm895_vm0, %v4016_v8, %v4017_v37 }
 0x2ab   : > { %9929 = vst [vmem:[#allocation137_spill] sm:$0xff] %v7422_v3  ;;  %v4020_v54 = vsel %vm895_vm0, %v4017_v37, %v9932_v34  ;;  %v2333_v3 = vadd.f32 %v2330_v56, %v2325_v13  ;;  %v7453_v13 = vmul.f32 %v6847_v26, %v7335_v48  ;;  %v9933_v56 = vld [vmem:[#allocation20_spill] sm:$0xff]  ;;  %v1161_v34 = vstv %s7396_s14  ;;  %s7492_s14 = sld [smem:[#allocation2 + $0xa1]] }
 0x2ac   : > { %9931 = vst [vmem:[#allocation138_spill] sm:$0xff] %v7432_v49  ;;  %v717_v14 = vadd.f32 %v9933_v56, %v703_v28  ;;  %v1164_v30 = vmul.f32 %v6784_v43, %v1161_v34  ;;  %v2303_v6 = vadd.f32 %v2300_v18, %v2295_v63  ;;  %v2308_v28 = vmul.f32 %v6975_v51, %v7126_v39  ;;  %v7478_v18 = vld [vmem:[%s5525_s22 + $0x50] sm:$0xff] }
 0x2ad   : > { %4046 = vrot.lane.b32.xlu2 %v4043_v10, %s5427_s23  ;;  %v9934_v10 = vstv %s7369_s12  ;;  %4023 = vrot.lane.b32.xlu1 %v4020_v54, %s5427_s23  ;;  %v7469_v48 = vadd.f32 %v624_v38, %v620_v23  ;;  %v2341_v59 = vadd.f32 %v2338_v17, %v2333_v3  ;;  %v4066_v56 = vrot.slane %v4060_v27, 1  ;;  %v9937_v23 = vld [vmem:[#allocation34_spill] sm:$0xff] }
 0x2ae   : > { %v7463_v8 = vmul.f32 %v7294_v62, %v9934_v10  ;;  %v2302_v54 = vadd.f32 %v2299_v29, %v2294_v16  ;;  %v2307_v63 = vmul.f32 %v7478_v18, %v7126_v39  ;;  %v4084_v38 = vstv %s7418_s13  ;;  %s7527_s13 = sld [smem:[#allocation2 + $0xf5]] }
 0x2af   : > { %v2929_v0 = vpop.permute.xlu2 %2928  ;;  %9936 = vst [vmem:[#allocation139_spill] sm:$0xff] %v7469_v48  ;;  %4021 = vrot.lane.b32.xlu0 %v4018_v12, %s5427_s23  ;;  %v2853_v43 = vpop.permute.xlu1 %2852  ;;  %v718_v37 = vadd.f32 %v9937_v23, %v7340_v20  ;;  %v9938_v49 = vstv %s7171_s6  ;;  %v1169_v27 = vstv %s7420_s30  ;;  %v9940_v12 = vrot.slane %v7429_v1, 1  ;;  %s7521_s6 = sld [smem:[#allocation2 + $0x63]] }
 0x2b0   : > { %9935 = vst [vmem:[#allocation20_spill] sm:$0xff] %v7463_v8  ;;  %v7489_v3 = vmul.f32 %v7245_v46, %v9938_v49  ;;  %v1167_v39 = vadd.f32 %v1164_v30, %v9880_v21  ;;  %v1172_v29 = vmul.f32 %v6847_v26, %v1169_v27  ;;  %v1163_v10 = vmul.f32 %v7347_v22, %v1161_v34  ;;  %s7531_s30 = sld [smem:[#allocation2 + $0xf4]] }
 0x2b1   : > { %v2851_v17 = vpop.permute.xlu0 %2850  ;;  %v4070_v16 = vsel %vm895_vm0, %v4067_v60, %v9940_v12  ;;  %v2311_v20 = vadd.f32 %v2308_v28, %v2303_v6  ;;  %v2937_v23 = vadd.f32 %v2929_v0, %v2341_v59  ;;  %v4068_v49 = vsel %vm895_vm0, %v4066_v56, %v4067_v60 }
 0x2b2   : > { %9939 = vst [vmem:[#allocation34_spill] sm:$0xff] %v7489_v3  ;;  %v4086_v8 = vmul.f32 %v7478_v18, %v4084_v38  ;;  %v7503_v48 = vmul.f32 %v6975_v51, %v4084_v38  ;;  %v1177_v3 = vstv %s7445_s5  ;;  %v2310_v25 = vadd.f32 %v2307_v63, %v2302_v54  ;;  %s7548_s5 = sld [smem:[#allocation2 + $0x84]] }
 0x2b3   : > { %v9941_v30 = vrot.slane %v7453_v13, 1  ;;  %v9942_v12 = vrot.slane %v7365_v55, 1  ;;  %v4085_v6 = vmul.f32 %v7440_v40, %v4084_v38  ;;  %v7514_v28 = vadd.f32 %v7194_v31, %v717_v14 }
 0x2b4   : > { %v1640_v60 = vadd.f32 %v7216_v24, %v718_v37  ;;  %v1180_v0 = vmul.f32 %v6934_v15, %v1177_v3  ;;  %v7519_v59 = vstv %s7457_s7  ;;  %v1175_v56 = vadd.f32 %v1172_v29, %v1167_v39  ;;  %s7554_s7 = sld [smem:[#allocation2 + $0x85]] }
 0x2b5   : > { %4073 = vrot.lane.b32.xlu2 %v4070_v16, %s5427_s23  ;;  %v4045_v33 = vsel %vm895_vm0, %v9942_v12, %v9941_v30  ;;  %9943 = vst [vmem:[#allocation140_spill] sm:$0xff] %v7514_v28  ;;  %v1166_v54 = vadd.f32 %v1163_v10, %v9880_v21  ;;  %v1171_v55 = vmul.f32 %v7207_v58, %v1169_v27  ;;  %v4092_v37 = vrot.slane %v4086_v8, 1 }
 0x2b6   : > { %9944 = vst [vmem:[#allocation141_spill] sm:$0xff] %v7519_v59  ;;  %v1162_v63 = vmul.f32 %v7245_v46, %v1161_v34  ;;  %4071 = vrot.lane.b32.xlu1 %v4068_v49, %s5427_s23  ;;  %v2859_v24 = vadd.f32 %v2853_v43, %v2311_v20  ;;  %v9686_v38 = vrot.slane %v7503_v48, 1  ;;  %v7535_v10 = vmul.f32 %v7294_v62, %v7519_v59 }
 0x2b7   : > { %v2949_v31 = vpop.permute.xlu2 %2948  ;;  %4048 = vrot.lane.b32.xlu0 %v4045_v33, %s5427_s23  ;;  %v7539_v34 = vmul.f32 %v7202_v19, %v7132_v53  ;;  %v2858_v16 = vadd.f32 %v2851_v17, %v2310_v25  ;;  %v2873_v39 = vpop.permute.xlu1 %2872  ;;  %v4091_v29 = vrot.slane %v4085_v6, 1  ;;  %v1185_v43 = vstv %s7472_s8  ;;  %s7570_s8 = sld [smem:[#allocation2 + $0x86]] }
 0x2b8   : > { %v2957_v14 = vadd.f32 %v2949_v31, %v2937_v23  ;;  %9945 = vst [vmem:[#allocation142_spill] sm:$0xff] %v7535_v10  ;;  %v7543_v33 = vstv %s7475_s10  ;;  %v7546_v8 = vstv %s7492_s14  ;;  %v2879_v20 = vadd.f32 %v2873_v39, %v2859_v24  ;;  %v7560_v24 = vld [vmem:[%s5525_s22 + $0x10] sm:$0x3]  ;;  %s7594_s10 = sld [smem:[#allocation2 + $0xf6]] }
 0x2b9   : > { %9946 = vst [vmem:[#allocation143_spill] sm:$0xff] %v7539_v34  ;;  %v2871_v23 = vpop.permute.xlu0 %2870  ;;  %v1183_v49 = vadd.f32 %v1180_v0, %v1175_v56  ;;  %v1188_v30 = vmul.f32 %v6975_v51, %v1185_v43  ;;  %v1179_v12 = vmul.f32 %v7294_v62, %v1177_v3  ;;  %v1174_v25 = vadd.f32 %v1171_v55, %v1166_v54  ;;  %s7603_s14 = sld [smem:[#allocation2 + $0x87]] }
 0x2ba   : > { %v2878_v53 = vadd.f32 %v2871_v23, %v2858_v16  ;;  %v1165_v17 = vadd.f32 %v1162_v63, %v9880_v21  ;;  %v1170_v6 = vmul.f32 %v7202_v19, %v1169_v27  ;;  %v4095_v31 = vsel %vm895_vm0, %v4092_v37, %v9686_v38 }
 0x2bb   : > { %v7564_v0 = vmul.f32 %v7560_v24, %v7543_v33  ;;  %v7568_v56 = vmul.f32 %v6847_v26, %v7546_v8  ;;  %v7574_v27 = vmul.f32 %v6934_v15, %v7519_v59  ;;  %v9948_v54 = vrot.slane %v7377_v4, 1 }
 0x2bc   : > { %v4093_v55 = vsel %vm895_vm0, %v4091_v29, %v4092_v37  ;;  %v7581_v63 = vadd.f32 %v7234_v52, %v1640_v60  ;;  %v7585_v26 = vstv %s7521_s6  ;;  %v1191_v23 = vadd.f32 %v1188_v30, %v1183_v49  ;;  %s7670_s6 = sld [smem:[#allocation2 + $0xf7]] }
 0x2bd   : > { %9947 = vst [vmem:[#allocation144_spill] sm:$0xff] %v7574_v27  ;;  %4025 = vrot.lane.b32.xlu2 %v9948_v54, %s5427_s23  ;;  %v1187_v38 = vmul.f32 %v7478_v18, %v1185_v43  ;;  %v1178_v28 = vmul.f32 %v7289_v47, %v1177_v3  ;;  %v7592_v37 = vstv %s7527_s13  ;;  %v1182_v52 = vadd.f32 %v1179_v12, %v1174_v25  ;;  %s7728_s13 = sld [smem:[#allocation2 + $0xa4]] }
 0x2be   : > { %9949 = vst [vmem:[#allocation145_spill] sm:$0xff] %v7581_v63  ;;  %4098 = vrot.lane.b32.xlu1 %v4095_v31, %s5427_s23  ;;  %v1173_v60 = vadd.f32 %v1170_v6, %v1165_v17  ;;  %v4109_v54 = vstv %s7531_s30  ;;  %v7601_v3 = vmul.f32 %v7440_v40, %v1185_v43  ;;  %v7607_v12 = vstv %s7548_s5  ;;  %s7738_s30 = sld [smem:[#allocation2 + $0xa5]] }
 0x2bf   : > { %9950 = vst [vmem:[#allocation146_spill] sm:$0xff] %v7585_v26  ;;  %v2969_v4 = vpop.permute.xlu2 %2968  ;;  %4096 = vrot.lane.b32.xlu0 %v4093_v55, %s5427_s23  ;;  %v2893_v39 = vpop.permute.xlu1 %2892  ;;  %v7613_v6 = vmul.f32 %v7207_v58, %v7592_v37  ;;  %v1915_v43 = vadd.f32 %v6472_v36, %v1191_v23  ;;  %v1196_v55 = vmul.f32 %v7560_v24, %v7607_v12  ;;  %v7629_v49 = vstv %s7554_s7  ;;  %v7641_v23 = vld [vmem:[%s5525_s22 + $0x28] sm:$0x3]  ;;  %s7772_s5 = sld [smem:[#allocation2 + $0xf9]] }
 0x2c0   : > { %v2977_v29 = vadd.f32 %v2969_v4, %v2957_v14  ;;  %v2899_v25 = vadd.f32 %v2893_v39, %v2879_v20  ;;  %v4135_v14 = vmul.f32 %v7202_v19, %v7592_v37  ;;  %v4111_v16 = vmul.f32 %v7347_v22, %v4109_v54  ;;  %s7779_s7 = sld [smem:[#allocation2 + $0xf8]] }
 0x2c1   : > { %v2891_v17 = vpop.permute.xlu0 %2890  ;;  %v7619_v31 = vadd.f32 %v1187_v38, %v1182_v52  ;;  %v7621_v20 = vadd.f32 %v1178_v28, %v1173_v60  ;;  %v7624_v39 = vmul.f32 %v7560_v24, %v4109_v54  ;;  %v2316_v30 = vmul.f32 %v7560_v24, %v7317_v5 }
 0x2c2   : > { %v2898_v4 = vadd.f32 %v2891_v17, %v2878_v53  ;;  %v7632_v36 = vstv %s7570_s8  ;;  %v9951_v53 = vrot.slane %v7503_v48, 1  ;;  %v4110_v38 = vmul.f32 %v7245_v46, %v4109_v54  ;;  %s7787_s8 = sld [smem:[#allocation2 + $0xa6]] }
 0x2c3   : > { %v2315_v28 = vmul.f32 %v7347_v22, %v7317_v5  ;;  %v1204_v52 = vmul.f32 %v7641_v23, %v7629_v49  ;;  %v1212_v60 = vmul.f32 %v6934_v15, %v7632_v36  ;;  %v4141_v17 = vrot.slane %v4135_v14, 1 }
 0x2c4   : > { %v1199_v48 = vadd.f32 %v1196_v55, %v9877_v32  ;;  %v1194_v54 = vmul.f32 %v7245_v46, %v7607_v12  ;;  %v9952_v5 = vrot.slane %v7429_v1, 1  ;;  %v4117_v34 = vrot.slane %v4111_v16, 1 }
 0x2c5   : > { %4100 = vrot.lane.b32.xlu2 %v9951_v53, %s5427_s23  ;;  %v4159_v10 = vstv %s7594_s10  ;;  %v9953_v27 = vrot.slane %v7453_v13, 1  ;;  %v2319_v55 = vadd.f32 %v2316_v30, %v6271_v57  ;;  %v2324_v63 = vmul.f32 %v7641_v23, %v7354_v45  ;;  %s7819_s10 = sld [smem:[#allocation2 + $0xa7]] }
 0x2c6   : > { %4075 = vrot.lane.b32.xlu1 %v9952_v5, %s5427_s23  ;;  %v7665_v26 = vstv %s7603_s14  ;;  %v4116_v5 = vrot.slane %v4110_v38, 1  ;;  %v2318_v16 = vadd.f32 %v2315_v28, %v6271_v57  ;;  %v2323_v21 = vmul.f32 %v7207_v58, %v7354_v45  ;;  %s7829_s14 = sld [smem:[#allocation2 + $0xfa]]  ;;  %v10067_v57 = vld [vmem:[#allocation138_spill] sm:$0xff] }
 0x2c7   : > { %v2989_v53 = vpop.permute.xlu2 %2988  ;;  %4050 = vrot.lane.b32.xlu0 %v9953_v27, %s5427_s23  ;;  %v2913_v1 = vpop.permute.xlu1 %2912  ;;  %v7679_v14 = vmul.f32 %v6934_v15, %v4159_v10  ;;  %v1207_v38 = vadd.f32 %v1204_v52, %v1199_v48  ;;  %v1197_v28 = vadd.f32 %v1194_v54, %v9877_v32  ;;  %v1202_v45 = vmul.f32 %v7202_v19, %v7629_v49 }
 0x2c8   : > { %v7658_v59 = vadd.f32 %v2989_v53, %v2977_v29  ;;  %v7672_v13 = vadd.f32 %v2913_v1, %v2899_v25  ;;  %v9956_v29 = vrot.slane %v7613_v6, 1  ;;  %v4161_v53 = vmul.f32 %v7294_v62, %v4159_v10 }
 0x2c9   : > { %v2911_v27 = vpop.permute.xlu0 %2910  ;;  %v9957_v25 = vrot.slane %v7624_v39, 1  ;;  %v4118_v52 = vsel %vm895_vm0, %v4116_v5, %v4117_v34  ;;  %v2326_v48 = vadd.f32 %v2323_v21, %v2318_v16  ;;  %v2331_v54 = vmul.f32 %v7294_v62, %v7388_v35 }
 0x2ca   : > { %9954 = vst [vmem:[#allocation147_spill] sm:$0xff] %v7658_v59  ;;  %v4143_v30 = vsel %vm895_vm0, %v4141_v17, %v9956_v29  ;;  %v7684_v59 = vadd.f32 %v2911_v27, %v2898_v4  ;;  %v2332_v17 = vmul.f32 %v6934_v15, %v7388_v35  ;;  %v4160_v29 = vmul.f32 %v7289_v47, %v4159_v10 }
 0x2cb   : > { %9955 = vst [vmem:[#allocation148_spill] sm:$0xff] %v7672_v13  ;;  %v4120_v1 = vsel %vm895_vm0, %v4117_v34, %v9957_v25  ;;  %v2327_v13 = vadd.f32 %v2324_v63, %v2319_v55  ;;  %v7698_v4 = vmul.f32 %v7641_v23, %v7592_v37  ;;  %v1935_v27 = vadd.f32 %v6488_v7, %v1915_v43 }
 0x2cc   : > { %v7703_v63 = vmul.f32 %v7347_v22, %v7543_v33  ;;  %v4167_v15 = vrot.slane %v4161_v53, 1  ;;  %v1220_v21 = vmul.f32 %v6975_v51, %v7665_v26  ;;  %v7710_v35 = vmul.f32 %v7207_v58, %v7546_v8 }
 0x2cd   : > { %4146 = vrot.lane.b32.xlu2 %v4143_v30, %s5427_s23  ;;  %v1205_v34 = vadd.f32 %v1202_v45, %v1197_v28  ;;  %v1210_v37 = vmul.f32 %v7289_v47, %v7632_v36  ;;  %v1215_v43 = vadd.f32 %v1212_v60, %v1207_v38  ;;  %v2335_v55 = vadd.f32 %v2332_v17, %v2327_v13 }
 0x2ce   : > { %4123 = vrot.lane.b32.xlu1 %v4120_v1, %s5427_s23  ;;  %v2340_v5 = vmul.f32 %v6975_v51, %v7413_v44  ;;  %v4166_v16 = vrot.slane %v4160_v29, 1  ;;  %v2334_v53 = vadd.f32 %v2331_v54, %v2326_v48  ;;  %v2339_v28 = vmul.f32 %v7478_v18, %v7413_v44 }
 0x2cf   : > { %v7715_v7 = vpop.permute.xlu2 %3317  ;;  %4121 = vrot.lane.b32.xlu0 %v4118_v52, %s5427_s23  ;;  %v2933_v30 = vpop.permute.xlu1 %2932  ;;  %v4144_v45 = vrot.slane %v7698_v4, 1  ;;  %v4184_v25 = vstv %s7670_s6  ;;  %v1955_v1 = vadd.f32 %v6498_v61, %v1935_v27  ;;  %v3009_v10 = vrot.slane %v7703_v63, 1  ;;  %s7875_s6 = sld [smem:[#allocation2 + $0xa2]] }
 0x2d0   : > { %v3002_v60 = vmul.f32 %v7245_v46, %v7543_v33  ;;  %v9958_v38 = vrot.slane %v7679_v14, 1  ;;  %v3028_v29 = vrot.slane %v7710_v35, 1  ;;  %v1195_v44 = vmul.f32 %v7347_v22, %v7607_v12 }
 0x2d1   : > { %v2931_v13 = vpop.permute.xlu0 %2930  ;;  %v1213_v52 = vadd.f32 %v1210_v37, %v1205_v34  ;;  %v1218_v61 = vmul.f32 %v7440_v40, %v7665_v26  ;;  %v2343_v48 = vadd.f32 %v2340_v5, %v2335_v55  ;;  %v4168_v33 = vsel %vm895_vm0, %v4166_v16, %v4167_v15 }
 0x2d2   : > { %v4170_v17 = vsel %vm895_vm0, %v4167_v15, %v9958_v38  ;;  %v4186_v54 = vmul.f32 %v7478_v18, %v4184_v25  ;;  %v7743_v27 = vmul.f32 %v6975_v51, %v4184_v25  ;;  %v3021_v63 = vmul.f32 %v7202_v19, %v7546_v8 }
 0x2d3   : > { %v2342_v35 = vadd.f32 %v2339_v28, %v2334_v53  ;;  %v9959_v12 = vrot.slane %v7613_v6, 1  ;;  %v4185_v37 = vmul.f32 %v7440_v40, %v4184_v25  ;;  %v1975_v15 = vadd.f32 %v6509_v11, %v1955_v1 }
 0x2d4   : > { %v1189_v51 = vadd.f32 %v7601_v3, %v7621_v20  ;;  %v1223_v55 = vadd.f32 %v1220_v21, %v1215_v43  ;;  %v3008_v5 = vrot.slane %v3002_v60, 1  ;;  %v9960_v8 = vrot.slane %v7564_v0, 1 }
 0x2d5   : > { %4173 = vrot.lane.b32.xlu2 %v4170_v17, %s5427_s23  ;;  %v4145_v34 = vsel %vm895_vm0, %v9959_v12, %v4144_v45  ;;  %v9961_v53 = vrot.slane %v7568_v56, 1  ;;  %v1203_v28 = vmul.f32 %v7207_v58, %v7629_v49  ;;  %v1221_v25 = vadd.f32 %v1218_v61, %v1213_v52 }
 0x2d6   : > { %v7760_v16 = vsel %vm895_vm0, %v3009_v10, %v9960_v8  ;;  %4171 = vrot.lane.b32.xlu1 %v4168_v33, %s5427_s23  ;;  %v1198_v3 = vadd.f32 %v1195_v44, %v9877_v32  ;;  %v2939_v20 = vadd.f32 %v2933_v30, %v2343_v48  ;;  %v4192_v21 = vrot.slane %v4186_v54, 1 }
 0x2d7   : > { %v7765_v6 = vsel %vm895_vm0, %v3028_v29, %v9961_v53  ;;  %v7770_v11 = vpop.permute.xlu2 %3342  ;;  %4148 = vrot.lane.b32.xlu0 %v4145_v34, %s5427_s23  ;;  %v4194_v43 = vrot.slane %v7743_v27, 1  ;;  %v1914_v1 = vadd.f32 %v6512_v42, %v7619_v31  ;;  %v3027_v49 = vrot.slane %v3021_v63, 1  ;;  %v2953_v38 = vpop.permute.xlu1 %2952 }
 0x2d8   : > { %v2938_v60 = vadd.f32 %v2931_v13, %v2342_v35  ;;  %v4191_v17 = vrot.slane %v4185_v37, 1  ;;  %v9962_v52 = vmov %v9960_v8  ;;  %v7784_v32 = vsel %vm895_vm0, %v3008_v5, %v3009_v10 }
 0x2d9   : > { %v3018_v61 = vadd.f32 %v9962_v52, %v1975_v15  ;;  %v3077_v30 = vstv %s7728_s13  ;;  %v2959_v44 = vadd.f32 %v2953_v38, %v2939_v20  ;;  %v2951_v48 = vpop.permute.xlu0 %2950  ;;  %v1993_v42 = vadd.f32 %v6591_v2, %v1221_v25  ;;  %s7901_s13 = sld [smem:[#allocation2 + $0xfb]] }
 0x2da   : > { %v7791_v31 = vmul.f32 %v7347_v22, %v3077_v30  ;;  %v3078_v13 = vmul.f32 %v7245_v46, %v3077_v30  ;;  %v2958_v33 = vadd.f32 %v2951_v48, %v2938_v60  ;;  %v1206_v54 = vadd.f32 %v1203_v28, %v1198_v3 }
 0x2db   : > { %v1211_v0 = vmul.f32 %v7294_v62, %v7632_v36  ;;  %v3096_v63 = vstv %s7738_s30  ;;  %v4195_v10 = vsel %vm895_vm0, %v4192_v21, %v4194_v43  ;;  %v2013_v35 = vadd.f32 %v6614_v9, %v1993_v42  ;;  %s7903_s30 = sld [smem:[#allocation2 + $0xa3]] }
 0x2dc   : > { %v7802_v2 = vmul.f32 %v7207_v58, %v3096_v63  ;;  %v3097_v12 = vmul.f32 %v7202_v19, %v3096_v63  ;;  %v9963_v34 = vrot.slane %v7624_v39, 1  ;;  %v4193_v37 = vsel %vm895_vm0, %v4191_v17, %v4192_v21 }
 0x2dd   : > { %v9964_v36 = vmov %v9961_v53  ;;  %v1913_v5 = vadd.f32 %v6516_v50, %v1189_v51  ;;  %v7815_v8 = vsel %vm895_vm0, %v3027_v49, %v3028_v29  ;;  %v1219_v9 = vmul.f32 %v7478_v18, %v7665_v26  ;;  %v9965_v50 = vld [vmem:[#allocation16_spill] sm:$0xff]  ;;  %v9966_v26 = vld [vmem:[#allocation15_spill] sm:$0xff] }
 0x2de   : > { %4125 = vrot.lane.b32.xlu2 %v9963_v34, %s5427_s23  ;;  %v7811_v15 = vadd.f32 %v9964_v36, %v3018_v61  ;;  %v2033_v53 = vadd.f32 %v6633_v41, %v2013_v35  ;;  %v3085_v39 = vrot.slane %v7791_v31, 1  ;;  %v3084_v28 = vrot.slane %v3078_v13, 1  ;;  %4198 = vrot.lane.b32.xlu1 %v4195_v10, %s5427_s23  ;;  %v9967_v49 = vld [vmem:[#allocation64_spill] sm:$0xff]  ;;  %v9969_v35 = vld [vmem:[#allocation19_spill] sm:$0xff] }
 0x2df   : > { %v7824_v56 = vpop.permute.xlu2 %3367  ;;  %v7827_v25 = vstv %s7772_s5  ;;  %v1934_v29 = vadd.f32 %v9965_v50, %v1914_v1  ;;  %v1995_v51 = vadd.f32 %v9966_v26, %v1223_v55  ;;  %v1214_v3 = vadd.f32 %v1211_v0, %v1206_v54  ;;  %4196 = vrot.lane.b32.xlu0 %v4193_v37, %s5427_s23  ;;  %v2973_v38 = vpop.permute.xlu1 %2972  ;;  %v9968_v10 = vld [vmem:[#allocation56_spill] sm:$0xff]  ;;  %s7923_s5 = sld [smem:[#allocation2 + $0xc0]] }
 0x2e0   : > { %v7834_v41 = vmul.f32 %v7560_v24, %v3077_v30  ;;  %v3104_v20 = vrot.slane %v7802_v2, 1  ;;  %v3103_v21 = vrot.slane %v3097_v12, 1  ;;  %v2053_v60 = vadd.f32 %v9967_v49, %v2033_v53  ;;  %v9971_v49 = vld [vmem:[#allocation11_spill] sm:$0xff] }
 0x2e1   : > { %v4209_v17 = vstv %s7779_s7  ;;  %v2979_v52 = vadd.f32 %v2973_v38, %v2959_v44  ;;  %v2971_v61 = vpop.permute.xlu0 %2970  ;;  %v4235_v1 = vmul.f32 %v7202_v19, %v7827_v25  ;;  %v7844_v55 = vmul.f32 %v7207_v58, %v7827_v25  ;;  %v9972_v38 = vld [vmem:[#allocation12_spill] sm:$0xff]  ;;  %s8031_s7 = sld [smem:[#allocation2 + $0xfc]] }
 0x2e2   : > { %v7847_v30 = vstv %s7787_s8  ;;  %v3086_v48 = vsel %vm895_vm0, %v3084_v28, %v3085_v39  ;;  %v2978_v42 = vadd.f32 %v2971_v61, %v2958_v33  ;;  %v3087_v19 = vrot.slane %v7834_v41, 1  ;;  %v9973_v61 = vld [vmem:[#allocation18_spill] sm:$0xff]  ;;  %s8059_s8 = sld [smem:[#allocation2 + $0xe0]] }
 0x2e3   : > { %v3116_v13 = vmul.f32 %v7289_v47, %v7847_v30  ;;  %v7856_v44 = vmul.f32 %v7294_v62, %v7847_v30  ;;  %v7860_v54 = vmul.f32 %v7641_v23, %v3096_v63  ;;  %v4211_v58 = vmul.f32 %v7347_v22, %v4209_v17 }
 0x2e4   : > { %v7864_v0 = vmul.f32 %v7560_v24, %v4209_v17  ;;  %v1933_v33 = vadd.f32 %v9968_v10, %v1913_v5  ;;  %v1954_v12 = vadd.f32 %v9969_v35, %v1934_v29  ;;  %v1222_v34 = vadd.f32 %v1219_v9, %v1214_v3  ;;  %v9975_v35 = vld [vmem:[#allocation25_spill] sm:$0xff] }
 0x2e5   : > { %v4210_v37 = vmul.f32 %v7245_v46, %v4209_v17  ;;  %v3105_v63 = vsel %vm895_vm0, %v3103_v21, %v3104_v20  ;;  %v3092_v36 = vadd.f32 %v3086_v48, %v2053_v60  ;;  %v4241_v53 = vrot.slane %v4235_v1, 1 }
 0x2e6   : > { %4200 = vrot.lane.b32.xlu2 %v4194_v43, %s5427_s23  ;;  %v4242_v28 = vrot.slane %v7844_v55, 1  ;;  %v9970_v5 = vrot.slane %v7679_v14, 1  ;;  %v3122_v27 = vrot.slane %v3116_v13, 1  ;;  %v9696_v43 = vrot.slane %v7856_v44, 1 }
 0x2e7   : > { %v7881_v9 = vpop.permute.xlu2 %3392  ;;  %v7885_v50 = vstv %s7819_s10  ;;  %v4259_v29 = vstv %s7829_s14  ;;  %4150 = vrot.lane.b32.xlu0 %v4144_v45, %s5427_s23  ;;  %v4217_v26 = vrot.slane %v4211_v58, 1  ;;  %v9697_v3 = vrot.slane %v7864_v0, 1  ;;  %v2993_v48 = vpop.permute.xlu1 %2992  ;;  %s8068_s10 = sld [smem:[#allocation2 + $0xe1]] }
 0x2e8   : > { %4175 = vrot.lane.b32.xlu1 %v9970_v5, %s5427_s23  ;;  %v3135_v14 = vmul.f32 %v7440_v40, %v7885_v50  ;;  %v7896_v21 = vmul.f32 %v7478_v18, %v7885_v50  ;;  %v2015_v60 = vadd.f32 %v9971_v49, %v1995_v51  ;;  %v1953_v17 = vadd.f32 %v9972_v38, %v1933_v33  ;;  %v7912_v51 = vld [vmem:[%s5525_s22 + $0x40] sm:$0x3]  ;;  %s8082_s14 = sld [smem:[#allocation2 + $0xfe]] }
 0x2e9   : > { %v1974_v1 = vadd.f32 %v9973_v61, %v1954_v12  ;;  %v4216_v4 = vrot.slane %v4210_v37, 1  ;;  %v7905_v45 = vadd.f32 %v2993_v48, %v2979_v52  ;;  %v2991_v13 = vpop.permute.xlu0 %2990  ;;  %v4243_v58 = vsel %vm895_vm0, %v4241_v53, %v4242_v28  ;;  %v9978_v48 = vld [vmem:[#allocation13_spill] sm:$0xff] }
 0x2ea   : > { %v4261_v10 = vmul.f32 %v7294_v62, %v4259_v29  ;;  %v7915_v33 = vmul.f32 %v7912_v51, %v4259_v29  ;;  %v1973_v12 = vadd.f32 %v9975_v35, %v1953_v17  ;;  %v3111_v37 = vadd.f32 %v3105_v63, %v3092_v36  ;;  %v9977_v17 = vld [vmem:[#allocation21_spill] sm:$0xff] }
 0x2eb   : > { %9974 = vst [vmem:[#allocation16_spill] sm:$0xff] %v7905_v45  ;;  %v7918_v5 = vadd.f32 %v2991_v13, %v2978_v42  ;;  %v3124_v52 = vsel %vm895_vm0, %v3122_v27, %v9696_v43  ;;  %v4220_v53 = vsel %vm895_vm0, %v4217_v26, %v9697_v3  ;;  %v3141_v49 = vrot.slane %v3135_v14, 1  ;;  %v5172_v14 = vld [vmem:[%s9653_s3 + $0x28] sm:$0xff] }
 0x2ec   : > { %v9694_v38 = vrot.slane %v7896_v21, 1  ;;  %v4260_v61 = vmul.f32 %v7289_v47, %v4259_v29  ;;  %v2035_v63 = vadd.f32 %v9977_v17, %v2015_v60  ;;  %v3106_v42 = vrot.slane %v7860_v54, 1  ;;  %v5171_v29 = vld [vmem:[%s9653_s3 + $0x20] sm:$0xff]  ;;  %4625 = vmatpush.msra.mxu2 %v5172_v14 }
 0x2ed   : > { %9976 = vst [vmem:[#allocation15_spill] sm:$0xff] %v7918_v5  ;;  %v4218_v36 = vsel %vm895_vm0, %v4216_v4, %v4217_v26  ;;  %v7936_v27 = vmul.f32 %v7641_v23, %v7827_v25  ;;  %v1994_v60 = vadd.f32 %v9978_v48, %v1222_v34  ;;  %v3039_v13 = vstv %s7875_s6  ;;  %v9979_v48 = vld [vmem:[#allocation59_spill] sm:$0xff]  ;;  %s7957_s6 = sld [smem:[#allocation2 + $0xc1]] }
 0x2ee   : > { %4246 = vrot.lane.b32.xlu2 %v4243_v58, %s5427_s23  ;;  %v4267_v35 = vrot.slane %v4261_v10, 1  ;;  %v9695_v58 = vrot.slane %v7915_v33, 1  ;;  %v3017_v26 = vadd.f32 %v7760_v16, %v1974_v1  ;;  %v3088_v25 = vsel %vm895_vm0, %v3085_v39, %v3087_v19  ;;  %4626 = vmatpush.msra.mxu2 %v5171_v29 }
 0x2ef   : > { %v3040_v4 = vmul.f32 %v7289_v47, %v3039_v13  ;;  %v3418_v17 = vpop.permute.xlu2 %3417  ;;  %v3130_v34 = vadd.f32 %v3124_v52, %v3111_v37  ;;  %v3016_v10 = vadd.f32 %v7784_v32, %v1973_v12  ;;  %v2014_v14 = vadd.f32 %v9979_v48, %v1994_v60  ;;  %4221 = vrot.lane.b32.xlu0 %v4218_v36, %s5427_s23  ;;  %v7971_v39 = vpop.permute.xlu1 %3321  ;;  %v9980_v37 = vld [vmem:[#allocation22_spill] sm:$0xff] }
 0x2f0   : > { %4223 = vrot.lane.b32.xlu1 %v4220_v53, %s5427_s23  ;;  %v3143_v16 = vsel %vm895_vm0, %v3141_v49, %v9694_v38  ;;  %v4266_v31 = vrot.slane %v4260_v61, 1  ;;  %v7968_v47 = vsel %vm895_vm0, %v3104_v20, %v3106_v42  ;;  %v3041_v32 = vmul.f32 %v7294_v62, %v3039_v13  ;;  %v9981_v53 = vld [vmem:[#allocation61_spill] sm:$0xff] }
 0x2f1   : > { %v4244_v1 = vrot.slane %v7936_v27, 1  ;;  %v4284_v12 = vstv %s7901_s13  ;;  %v2055_v52 = vadd.f32 %v9980_v37, %v2035_v63  ;;  %v2034_v49 = vadd.f32 %v9981_v53, %v2014_v14  ;;  %v7978_v36 = vpop.permute.xlu0 %3319  ;;  %s7988_s13 = sld [smem:[#allocation2 + $0xc2]]  ;;  %v7993_v37 = vld [vmem:[%s5525_s22 + $0x58] sm:$0x3] }
 0x2f2   : > { %v3058_v61 = vstv %s7903_s30  ;;  %v4270_v2 = vsel %vm895_vm0, %v4267_v35, %v9695_v58  ;;  %v3046_v20 = vrot.slane %v3040_v4, 1  ;;  %v3042_v29 = vmul.f32 %v7912_v51, %v3039_v13  ;;  %s8016_s30 = sld [smem:[#allocation2 + $0xfd]] }
 0x2f3   : > { %v3059_v62 = vmul.f32 %v7440_v40, %v3058_v61  ;;  %v3149_v60 = vadd.f32 %v3143_v16, %v3130_v34  ;;  %v7986_v48 = vstv %s7923_s5  ;;  %v4268_v63 = vsel %vm895_vm0, %v4266_v31, %v4267_v35  ;;  %v9982_v31 = vld [vmem:[#allocation63_spill] sm:$0xff]  ;;  %s8023_s5 = sld [smem:[#allocation2 + $0xc3]] }
 0x2f4   : > { %v4286_v14 = vmul.f32 %v7478_v18, %v4284_v12  ;;  %v7996_v53 = vmul.f32 %v7993_v37, %v4284_v12  ;;  %v3047_v38 = vrot.slane %v3041_v32, 1  ;;  %v7999_v4 = vmul.f32 %v7478_v18, %v3058_v61 }
 0x2f5   : > { %v4245_v13 = vsel %vm895_vm0, %v4242_v28, %v4244_v1  ;;  %v4285_v35 = vmul.f32 %v7440_v40, %v4284_v12  ;;  %v3035_v34 = vadd.f32 %v7815_v8, %v3016_v10  ;;  %v3094_v16 = vadd.f32 %v3087_v19, %v2055_v52 }
 0x2f6   : > { %4273 = vrot.lane.b32.xlu2 %v4270_v2, %s5427_s23  ;;  %v2054_v32 = vadd.f32 %v9982_v31, %v2034_v49  ;;  %v3426_v58 = vadd.f32 %v3418_v17, %v3149_v60  ;;  %v2218_v43 = vmul.f32 %v7245_v46, %v7986_v48  ;;  %v3049_v2 = vrot.slane %v3042_v29, 1 }
 0x2f7   : > { %v3061_v3 = vmul.f32 %v7993_v37, %v3058_v61  ;;  %v3443_v55 = vpop.permute.xlu2 %3442  ;;  %v3118_v8 = vmul.f32 %v7912_v51, %v7847_v30  ;;  %v8021_v28 = vstv %s7957_s6  ;;  %4248 = vrot.lane.b32.xlu0 %v4245_v13, %s5427_s23  ;;  %v4292_v46 = vrot.slane %v4286_v14, 1  ;;  %v8029_v52 = vpop.permute.xlu1 %3346  ;;  %s8152_s6 = sld [smem:[#allocation2 + $0xff]] }
 0x2f8   : > { %4271 = vrot.lane.b32.xlu1 %v4268_v63, %s5427_s23  ;;  %v3451_v41 = vadd.f32 %v3443_v55, %v3426_v58  ;;  %v4294_v19 = vrot.slane %v7996_v53, 1  ;;  %v3048_v17 = vsel %vm895_vm0, %v3046_v20, %v3047_v38  ;;  %v3065_v10 = vrot.slane %v3059_v62, 1  ;;  %v9983_v62 = vld [vmem:[#allocation44_spill] sm:$0xff]  ;;  %v8044_v63 = vld [vmem:[%s5525_s22 + $0x18] sm:$0xff] }
 0x2f9   : > { %v3066_v12 = vrot.slane %v7999_v4, 1  ;;  %v4291_v30 = vrot.slane %v4285_v35, 1  ;;  %v3036_v49 = vadd.f32 %v7765_v6, %v3017_v26  ;;  %v3113_v61 = vadd.f32 %v3106_v42, %v3094_v16  ;;  %v8036_v29 = vpop.permute.xlu0 %3344  ;;  %v9984_v26 = vld [vmem:[#allocation146_spill] sm:$0xff] }
 0x2fa   : > { %v3093_v58 = vadd.f32 %v3088_v25, %v2054_v32  ;;  %v8040_v20 = vmul.f32 %v7993_v37, %v7885_v50  ;;  %v2221_v60 = vadd.f32 %v2218_v43, %v9983_v62  ;;  %v2226_v14 = vmul.f32 %v8044_v63, %v8021_v28 }
 0x2fb   : > { %v3050_v4 = vsel %vm895_vm0, %v3047_v38, %v3049_v2  ;;  %v3125_v6 = vrot.slane %v3118_v8, 1  ;;  %v8051_v54 = vmul.f32 %v7993_v37, %v9984_v26  ;;  %v8054_v42 = vstv %s7988_s13  ;;  %s8197_s13 = sld [smem:[#allocation2 + $0xe2]] }
 0x2fc   : > { %v3054_v25 = vadd.f32 %v3048_v17, %v3035_v34  ;;  %v4295_v43 = vsel %vm895_vm0, %v4292_v46, %v4294_v19  ;;  %v3067_v50 = vsel %vm895_vm0, %v3065_v10, %v3066_v12  ;;  %v3068_v13 = vrot.slane %v3061_v3, 1 }
 0x2fd   : > { %v3056_v38 = vadd.f32 %v3049_v2, %v7811_v15  ;;  %v9985_v35 = vrot.slane %v7864_v0, 1  ;;  %v4293_v16 = vsel %vm895_vm0, %v4291_v30, %v4292_v46  ;;  %v3112_v34 = vadd.f32 %v7968_v47, %v3093_v58  ;;  %v8074_v15 = vld [vmem:[%s5525_s22 + $0x30] sm:$0xff]  ;;  %v8092_v30 = vld [vmem:[%s5525_s22 + $0x20] sm:$0xff] }
 0x2fe   : > { %v2219_v31 = vmul.f32 %v7347_v22, %v7986_v48  ;;  %v3055_v32 = vadd.f32 %v3050_v4, %v3036_v49  ;;  %v9698_v3 = vrot.slane %v8040_v20, 1  ;;  %v2229_v55 = vadd.f32 %v2226_v14, %v2221_v60 }
 0x2ff   : > { %4225 = vrot.lane.b32.xlu2 %v9985_v35, %s5427_s23  ;;  %v2234_v0 = vmul.f32 %v8074_v15, %v8054_v42  ;;  %v3468_v2 = vpop.permute.xlu2 %3467  ;;  %v8080_v47 = vstv %s8016_s30  ;;  %v3132_v8 = vadd.f32 %v3125_v6, %v3113_v61  ;;  %v8085_v22 = vstv %s8023_s5  ;;  %4296 = vrot.lane.b32.xlu0 %v4293_v16, %s5427_s23  ;;  %v3372_v60 = vpop.permute.xlu1 %3371  ;;  %s8219_s30 = sld [smem:[#allocation2 + $0xe3]] }
 0x300   : > { %4298 = vrot.lane.b32.xlu1 %v4295_v43, %s5427_s23  ;;  %v3073_v46 = vadd.f32 %v3067_v50, %v3054_v25  ;;  %v3069_v17 = vsel %vm895_vm0, %v3066_v12, %v3068_v13  ;;  %v8089_v10 = vadd.f32 %v3468_v2, %v3451_v41  ;;  %v2227_v49 = vmul.f32 %v8092_v30, %v8021_v28  ;;  %v8116_v35 = vld [vmem:[%s5525_s22 + $0x8] sm:$0xff]  ;;  %s8269_s5 = sld [smem:[#allocation2 + $0xb7]] }
 0x301   : > { %v3075_v58 = vadd.f32 %v3068_v13, %v3056_v38  ;;  %v4309_v61 = vstv %s8031_s7  ;;  %v9987_v14 = vrot.slane %v7856_v44, 1  ;;  %v2222_v12 = vadd.f32 %v2219_v31, %v9983_v62  ;;  %v3370_v25 = vpop.permute.xlu0 %3369  ;;  %s8398_s7 = sld [smem:[#allocation2 + $0xe5]] }
 0x302   : > { %9986 = vst [vmem:[#allocation64_spill] sm:$0xff] %v8089_v10  ;;  %v3326_v41 = vadd.f32 %v7715_v7, %v3073_v46  ;;  %v4335_v43 = vmul.f32 %v8044_v63, %v8080_v47  ;;  %v8106_v50 = vmul.f32 %v8092_v30, %v8080_v47  ;;  %v2237_v13 = vadd.f32 %v2234_v0, %v2229_v55 }
 0x303   : > { %v3126_v4 = vsel %vm895_vm0, %v9987_v14, %v3125_v6  ;;  %v2242_v44 = vmul.f32 %v7440_v40, %v8085_v22  ;;  %v3074_v38 = vadd.f32 %v3069_v17, %v3055_v32  ;;  %v8112_v6 = vadd.f32 %v9698_v3, %v3132_v8  ;;  %v8126_v40 = vld [vmem:[%s5525_s22 + $0x38] sm:$0xff] }
 0x304   : > { %v3351_v7 = vadd.f32 %v7770_v11, %v3326_v41  ;;  %v4311_v16 = vmul.f32 %v8116_v35, %v4309_v61  ;;  %v8120_v31 = vmul.f32 %v7560_v24, %v4309_v61  ;;  %v8122_v2 = vadd.f32 %v3126_v4, %v3112_v34  ;;  %v8135_v11 = vld [vmem:[%s5525_s22] sm:$0xff] }
 0x305   : > { %v3705_v55 = vstv %s8059_s8  ;;  %v2235_v32 = vmul.f32 %v8126_v40, %v8054_v42  ;;  %v3327_v0 = vadd.f32 %v7978_v36, %v3074_v38  ;;  %v4310_v8 = vmul.f32 %v8135_v11, %v4309_v61  ;;  %s8403_s8 = sld [smem:[#allocation2 + $0x68]] }
 0x306   : > { %v2230_v46 = vadd.f32 %v2227_v49, %v2222_v12  ;;  %v3376_v34 = vadd.f32 %v7824_v56, %v3351_v7  ;;  %v4341_v17 = vrot.slane %v4335_v43, 1  ;;  %v4342_v14 = vrot.slane %v8106_v50, 1 }
 0x307   : > { %4300 = vrot.lane.b32.xlu2 %v4294_v19, %s5427_s23  ;;  %v2245_v4 = vadd.f32 %v2242_v44, %v2237_v13  ;;  %v8141_v41 = vstv %s8068_s10  ;;  %v3352_v3 = vadd.f32 %v8036_v29, %v3327_v0  ;;  %v9988_v36 = vrot.slane %v7915_v33, 1  ;;  %v8147_v53 = vpop.permute.xlu2 %4046  ;;  %4250 = vrot.lane.b32.xlu0 %v4244_v1, %s5427_s23  ;;  %v3397_v13 = vpop.permute.xlu1 %3396  ;;  %s8411_s10 = sld [smem:[#allocation2 + $0x69]] }
 0x308   : > { %v8150_v19 = vstv %s8082_s14  ;;  %v8155_v56 = vmul.f32 %v8135_v11, %v3705_v55  ;;  %v3401_v49 = vadd.f32 %v7881_v9, %v3376_v34  ;;  %v4317_v29 = vrot.slane %v4311_v16, 1  ;;  %v9989_v16 = vld [vmem:[#allocation110_spill] sm:$0xff]  ;;  %s8493_s14 = sld [smem:[#allocation2 + $0xe7]] }
 0x309   : > { %4275 = vrot.lane.b32.xlu1 %v9988_v36, %s5427_s23  ;;  %v9700_v61 = vrot.slane %v8120_v31, 1  ;;  %v2243_v33 = vmul.f32 %v7478_v18, %v8085_v22  ;;  %v3328_v12 = vadd.f32 %v7971_v39, %v3075_v58  ;;  %v3377_v43 = vadd.f32 %v3370_v25, %v3352_v3  ;;  %v3395_v7 = vpop.permute.xlu0 %3394 }
 0x30a   : > { %v4316_v44 = vrot.slane %v4310_v8, 1  ;;  %v2238_v38 = vadd.f32 %v2235_v32, %v2230_v46  ;;  %v4343_v9 = vsel %vm895_vm0, %v4341_v17, %v4342_v14  ;;  %v4360_v27 = vmul.f32 %v8074_v15, %v8150_v19 }
 0x30b   : > { %v8172_v1 = vmul.f32 %v8126_v40, %v8150_v19  ;;  %v2697_v0 = vadd.f32 %v9989_v16, %v2245_v4  ;;  %v8176_v39 = vmul.f32 %v8116_v35, %v3705_v55  ;;  %v3353_v3 = vadd.f32 %v8029_v52, %v3328_v12 }
 0x30c   : > { %v3402_v58 = vadd.f32 %v3395_v7, %v3377_v43  ;;  %v3725_v25 = vmul.f32 %v8044_v63, %v8141_v41  ;;  %v8183_v32 = vmul.f32 %v8092_v30, %v8141_v41  ;;  %v4563_v8 = vrot.slane %v3401_v49, 1  ;;  %v9990_v7 = vld [vmem:[#allocation113_spill] sm:$0xff] }
 0x30d   : > { %v4320_v46 = vsel %vm895_vm0, %v4317_v29, %v9700_v61  ;;  %v3378_v34 = vadd.f32 %v3372_v60, %v3353_v3  ;;  %v4318_v52 = vsel %vm895_vm0, %v4316_v44, %v4317_v29  ;;  %v8192_v4 = vmul.f32 %v7641_v23, %v8080_v47  ;;  %v9993_v3 = vld [vmem:[#allocation122_spill] sm:$0xff] }
 0x30e   : > { %v4564_v17 = vrot.slane %v3402_v58, 1  ;;  %v2220_v36 = vmul.f32 %v7560_v24, %v7986_v48  ;;  %v2246_v12 = vadd.f32 %v2243_v33, %v2238_v38  ;;  %v4366_v49 = vrot.slane %v4360_v27, 1 }
 0x30f   : > { %4346 = vrot.lane.b32.xlu2 %v4343_v9, %s5427_s23  ;;  %v4367_v43 = vrot.slane %v8172_v1, 1  ;;  %v2717_v60 = vadd.f32 %v9990_v7, %v2697_v0  ;;  %v3403_v16 = vadd.f32 %v3397_v13, %v3378_v34  ;;  %v8202_v44 = vpop.permute.xlu2 %4073  ;;  %v8205_v47 = vstv %s8152_s6  ;;  %4321 = vrot.lane.b32.xlu0 %v4318_v52, %s5427_s23  ;;  %v9995_v7 = vld [vmem:[#allocation124_spill] sm:$0xff]  ;;  %s8551_s6 = sld [smem:[#allocation2 + $0xb8]] }
 0x310   : > { %v4565_v29 = vsel %vm895_vm0, %v4563_v8, %v4564_v17  ;;  %v3712_v48 = vrot.slane %v8155_v56, 1  ;;  %v3713_v33 = vrot.slane %v8176_v39, 1  ;;  %v8210_v38 = vmul.f32 %v7560_v24, %v3705_v55  ;;  %v3422_v24 = vpop.permute.xlu1 %3421 }
 0x311   : > { %4323 = vrot.lane.b32.xlu1 %v4320_v46, %s5427_s23  ;;  %5173 = vmatmul.msk.f32.vlgmr.msra.gmra.mxu2 %vm4437_vm1, %v4565_v29  ;;  %v9991_v13 = vrot.slane %v8040_v20, 1  ;;  %v9992_v9 = vrot.slane %v7896_v21, 1  ;;  %v3731_v0 = vrot.slane %v3725_v25, 1  ;;  %v3732_v56 = vrot.slane %v8183_v32, 1  ;;  %v3420_v8 = vpop.permute.xlu0 %3419  ;;  %v8230_v20 = vld [vmem:[%s5525_s22 + $0x48] sm:$0xff] }
 0x312   : > { %v2228_v39 = vmul.f32 %v7641_v23, %v8021_v28  ;;  %v9702_v55 = vrot.slane %v8192_v4, 1  ;;  %v2698_v58 = vadd.f32 %v9993_v3, %v2246_v12  ;;  %v4368_v21 = vsel %vm895_vm0, %v4366_v49, %v4367_v43  ;;  %v9994_v28 = vld [vmem:[#allocation116_spill] sm:$0xff] }
 0x313   : > { %v3145_v27 = vsel %vm895_vm0, %v9992_v9, %v9991_v13  ;;  %v4385_v25 = vmul.f32 %v8230_v20, %v8205_v47  ;;  %v8236_v32 = vmul.f32 %v7478_v18, %v8205_v47  ;;  %v2737_v46 = vadd.f32 %v9994_v28, %v2717_v60 }
 0x314   : > { %v2223_v34 = vadd.f32 %v2220_v36, %v9983_v62  ;;  %v8242_v52 = vmul.f32 %v7641_v23, %v8141_v41  ;;  %v4566_v12 = vrot.slane %v3403_v16, 1  ;;  %v3714_v49 = vsel %vm895_vm0, %v3712_v48, %v3713_v33  ;;  %v9996_v41 = vld [vmem:[#allocation126_spill] sm:$0xff] }
 0x315   : > { %v2718_v29 = vadd.f32 %v9995_v7, %v2698_v58  ;;  %v9704_v13 = vrot.slane %v8210_v38, 1  ;;  %v3150_v9 = vadd.f32 %v3145_v27, %v8122_v2  ;;  %v3733_v18 = vsel %vm895_vm0, %v3731_v0, %v3732_v56 }
 0x316   : > { %v2236_v60 = vmul.f32 %v7912_v51, %v8054_v42  ;;  %v4345_v23 = vsel %vm895_vm0, %v4342_v14, %v9702_v55  ;;  %v8259_v62 = vmul.f32 %v7912_v51, %v8150_v19  ;;  %v3743_v36 = vstv %s8197_s13  ;;  %v9997_v42 = vld [vmem:[#allocation119_spill] sm:$0xff]  ;;  %v9998_v19 = vld [vmem:[#allocation128_spill] sm:$0xff]  ;;  %s8557_s13 = sld [smem:[#allocation2 + $0x67]] }
 0x317   : > { %4371 = vrot.lane.b32.xlu2 %v4368_v21, %s5427_s23  ;;  %v2738_v2 = vadd.f32 %v9996_v41, %v2718_v29  ;;  %v4391_v16 = vrot.slane %v4385_v25, 1  ;;  %v9705_v48 = vrot.slane %v8236_v32, 1  ;;  %v2757_v27 = vadd.f32 %v9997_v42, %v2737_v46  ;;  %v8267_v58 = vpop.permute.xlu2 %4025  ;;  %4348 = vrot.lane.b32.xlu0 %v4345_v23, %s5427_s23  ;;  %v10000_v29 = vld [vmem:[#allocation134_spill] sm:$0xff] }
 0x318   : > { %v2231_v0 = vadd.f32 %v2228_v39, %v2223_v34  ;;  %v9701_v3 = vrot.slane %v8242_v52, 1  ;;  %v4567_v50 = vsel %vm895_vm0, %v4564_v17, %v4566_v12  ;;  %v3716_v14 = vsel %vm895_vm0, %v3713_v33, %v9704_v13  ;;  %v3447_v17 = vpop.permute.xlu1 %3446  ;;  %v10015_v13 = vld [vmem:[#allocation143_spill] sm:$0xff] }
 0x319   : > { %v2758_v21 = vadd.f32 %v9998_v19, %v2738_v2  ;;  %v3428_v25 = vadd.f32 %v3422_v24, %v8112_v6  ;;  %5174 = vmatmul.msk.f32.gmra.mxu2 %vm4437_vm1, %v4567_v50  ;;  %v3762_v39 = vstv %s8219_s30  ;;  %v3427_v28 = vadd.f32 %v3420_v8, %v3150_v9  ;;  %v3445_v7 = vpop.permute.xlu0 %3444  ;;  %v8302_v19 = vld [vmem:[%s5525_s22 + $0x50] sm:$0xff]  ;;  %s8601_s30 = sld [smem:[#allocation2 + $0xba]] }
 0x31a   : > { %v8280_v46 = vmul.f32 %v7912_v51, %v3743_v36  ;;  %v9699_v34 = vrot.slane %v8259_v62, 1  ;;  %v3745_v12 = vmul.f32 %v8126_v40, %v3743_v36  ;;  %v4393_v6 = vsel %vm895_vm0, %v4391_v16, %v9705_v48 }
 0x31b   : > { %v8284_v33 = vadd.f32 %v3447_v17, %v3428_v25  ;;  %v3744_v24 = vmul.f32 %v8074_v15, %v3743_v36  ;;  %v8292_v8 = vmul.f32 %v7912_v51, %v10000_v29  ;;  %v3720_v9 = vadd.f32 %v3714_v49, %v2757_v27  ;;  %v10003_v27 = vld [vmem:[#allocation141_spill] sm:$0xff]  ;;  %v10006_v17 = vld [vmem:[#allocation142_spill] sm:$0xff] }
 0x31c   : > { %v2239_v23 = vadd.f32 %v2236_v60, %v2231_v0  ;;  %v2244_v41 = vmul.f32 %v7993_v37, %v8085_v22  ;;  %v8296_v2 = vadd.f32 %v3445_v7, %v3427_v28  ;;  %v3735_v42 = vsel %vm895_vm0, %v3732_v56, %v9701_v3 }
 0x31d   : > { %9999 = vst [vmem:[#allocation56_spill] sm:$0xff] %v8284_v33  ;;  %v3721_v50 = vadd.f32 %v3716_v14, %v2758_v21  ;;  %v3764_v36 = vmul.f32 %v8302_v19, %v3762_v39  ;;  %v3763_v16 = vmul.f32 %v8230_v20, %v3762_v39  ;;  %v9703_v49 = vrot.slane %v8280_v46, 1 }
 0x31e   : > { %10001 = vst [vmem:[#allocation19_spill] sm:$0xff] %v8292_v8  ;;  %v8308_v60 = vmul.f32 %v7993_v37, %v3762_v39  ;;  %v4370_v22 = vsel %vm895_vm0, %v4367_v43, %v9699_v34  ;;  %v8318_v56 = vmul.f32 %v7993_v37, %v8205_v47  ;;  %v1660_v0 = vmul.f32 %v8074_v15, %v10003_v27  ;;  %v10004_v39 = vld [vmem:[#allocation144_spill] sm:$0xff] }
 0x31f   : > { %10002 = vst [vmem:[#allocation11_spill] sm:$0xff] %v8296_v2  ;;  %4396 = vrot.lane.b32.xlu2 %v4393_v6, %s5427_s23  ;;  %v3751_v14 = vrot.slane %v3745_v12, 1  ;;  %v3750_v21 = vrot.slane %v3744_v24, 1  ;;  %v9706_v25 = vrot.slane %v8292_v8, 1  ;;  %v10005_v28 = vrot.slane %v10004_v39, 1  ;;  %v8333_v47 = vpop.permute.xlu2 %4100  ;;  %4373 = vrot.lane.b32.xlu0 %v4370_v22, %s5427_s23 }
 0x320   : > { %v10007_v7 = vrot.slane %v10006_v17, 1  ;;  %v8330_v1 = vmul.f32 %v8302_v19, %v9984_v26  ;;  %v1686_v43 = vrot.slane %v8051_v54, 1  ;;  %v8336_v29 = vstv %s8269_s5  ;;  %v10017_v54 = vld [vmem:[#allocation145_spill] sm:$0xff]  ;;  %s8613_s5 = sld [smem:[#allocation2 + $0xe8]] }
 0x321   : > { %v3739_v12 = vadd.f32 %v3733_v18, %v3720_v9  ;;  %v2247_v24 = vadd.f32 %v2244_v41, %v2239_v23  ;;  %v3740_v27 = vadd.f32 %v3735_v42, %v3721_v50  ;;  %v3770_v39 = vrot.slane %v3764_v36, 1  ;;  %v4022_v55 = vpop.permute.xlu0 %4021  ;;  %v10008_v18 = vld [vmem:[#allocation136_spill] sm:$0xff]  ;;  %v10010_v50 = vld [vmem:[#allocation55_spill] sm:$0xff]  ;;  %v10011_v36 = vld [vmem:[#allocation34_spill] sm:$0xff] }
 0x322   : > { %v1670_v6 = vsel %vm895_vm0, %v10007_v7, %v10005_v28  ;;  %v3754_v28 = vsel %vm895_vm0, %v3751_v14, %v9703_v49  ;;  %v4024_v7 = vpop.permute.xlu1 %4023  ;;  %v3769_v61 = vrot.slane %v3763_v16, 1  ;;  %v3752_v3 = vsel %vm895_vm0, %v3750_v21, %v3751_v14  ;;  %v10013_v21 = vld [vmem:[#allocation129_spill] sm:$0xff] }
 0x323   : > { %v10009_v9 = vrot.slane %v10008_v18, 1  ;;  %v3481_v41 = vmul.f32 %v8230_v20, %v8336_v29  ;;  %v8354_v42 = vmul.f32 %v8302_v19, %v8336_v29  ;;  %v619_v16 = vadd.f32 %v10011_v36, %v10010_v50  ;;  %v10018_v50 = vld [vmem:[#allocation121_spill] sm:$0xff] }
 0x324   : > { %v10012_v22 = vstv %s7196_s27  ;;  %v10014_v49 = vrot.slane %v10013_v21, 1  ;;  %v10016_v48 = vrot.slane %v10015_v13, 1  ;;  %v1674_v34 = vadd.f32 %v1670_v6, %v10017_v54  ;;  %s8371_s27 = sld [smem:[#allocation2 + $0xe4]]  ;;  %v10023_v54 = vld [vmem:[#allocation17_spill] sm:$0xff] }
 0x325   : > { %v3466_v23 = vsel %vm895_vm0, %v10009_v9, %v9706_v25  ;;  %v623_v14 = vmul.f32 %v8044_v63, %v10012_v22  ;;  %v1666_v9 = vrot.slane %v1660_v0, 1  ;;  %v1684_v25 = vrot.slane %v8330_v1, 1 }
 0x326   : > { %v1651_v18 = vsel %vm895_vm0, %v10016_v48, %v10014_v49  ;;  %v1677_v33 = vmul.f32 %v8230_v20, %v9984_v26  ;;  %v3759_v36 = vadd.f32 %v3754_v28, %v3740_v27  ;;  %v2699_v45 = vadd.f32 %v10018_v50, %v2247_v24  ;;  %v10022_v28 = vld [vmem:[#allocation30_spill] sm:$0xff] }
 0x327   : > { %v10019_v22 = vrot.slane %v8308_v60, 1  ;;  %v3758_v48 = vadd.f32 %v3752_v3, %v3739_v12  ;;  %3469 = vrot.lane.b32.xlu2 %v3466_v23, %s5427_s23  ;;  %v10020_v49 = vrot.slane %v8318_v56, 1  ;;  %v10021_v0 = vrot.slane %v8236_v32, 1  ;;  %v10025_v12 = vld [vmem:[#allocation140_spill] sm:$0xff] }
 0x328   : > { %v1687_v26 = vsel %vm895_vm0, %v1684_v25, %v1686_v43  ;;  %v3771_v1 = vsel %vm895_vm0, %v3769_v61, %v3770_v39  ;;  %v3487_v24 = vrot.slane %v3481_v41, 1  ;;  %v3488_v27 = vrot.slane %v8354_v42, 1 }
 0x329   : > { %v3773_v13 = vsel %vm895_vm0, %v3770_v39, %v10019_v22  ;;  %v4395_v6 = vsel %vm895_vm0, %v10021_v0, %v10020_v49  ;;  %v655_v50 = vadd.f32 %v10023_v54, %v10022_v28  ;;  %v10024_v21 = vstv %s7253_s11  ;;  %v10026_v22 = vld [vmem:[#allocation123_spill] sm:$0xff]  ;;  %v10030_v28 = vld [vmem:[#allocation20_spill] sm:$0xff] }
 0x32a   : > { %v659_v3 = vmul.f32 %v8230_v20, %v10024_v21  ;;  %v1656_v23 = vadd.f32 %v1651_v18, %v10025_v12  ;;  %v2719_v32 = vadd.f32 %v10026_v22, %v2699_v45  ;;  %v10027_v10 = vstv %s7404_s29  ;;  %4398 = vrot.lane.b32.xlu0 %v4395_v6, %s5427_s23  ;;  %v10029_v0 = vld [vmem:[#allocation139_spill] sm:$0xff]  ;;  %v10031_v45 = vld [vmem:[#allocation125_spill] sm:$0xff]  ;;  %v8406_v22 = vpop.permute.xlu2 %4146 }
 0x32b   : > { %v636_v49 = vmul.f32 %v8302_v19, %v10027_v10  ;;  %v10028_v43 = vrot.slane %v10006_v17, 1  ;;  %v1683_v39 = vrot.slane %v1677_v33, 1  ;;  %v3778_v41 = vadd.f32 %v3773_v13, %v3759_v36  ;;  %v4072_v10 = vpop.permute.xlu1 %4071  ;;  %v4049_v13 = vpop.permute.xlu0 %4048 }
 0x32c   : > { %v632_v54 = vadd.f32 %v10030_v28, %v10029_v0  ;;  %v1691_v18 = vadd.f32 %v1687_v26, %v1674_v34  ;;  %v2739_v21 = vadd.f32 %v10031_v45, %v2719_v32  ;;  %v3777_v12 = vadd.f32 %v3771_v1, %v3758_v48  ;;  %v10033_v34 = vld [vmem:[#allocation90_spill] sm:$0xff]  ;;  %v10034_v1 = vld [vmem:[#allocation127_spill] sm:$0xff]  ;;  %v10037_v0 = vld [vmem:[#allocation132_spill] sm:$0xff] }
 0x32d   : > { %v1668_v61 = vsel %vm895_vm0, %v1666_v9, %v10028_v43  ;;  %v625_v17 = vadd.f32 %v623_v14, %v619_v16  ;;  %v10032_v9 = vstv %s7369_s12  ;;  %v4031_v36 = vadd.f32 %v4024_v7, %v3778_v41  ;;  %v10035_v16 = vld [vmem:[#allocation133_spill] sm:$0xff]  ;;  %v10039_v7 = vld [vmem:[#allocation135_spill] sm:$0xff]  ;;  %s8459_s12 = sld [smem:[#allocation2 + $0xe6]] }
 0x32e   : > { %v629_v33 = vmul.f32 %v8074_v15, %v10032_v9  ;;  %v3489_v6 = vsel %vm895_vm0, %v3487_v24, %v3488_v27  ;;  %v2364_v26 = vadd.f32 %v10033_v34, %v1691_v18  ;;  %v1673_v48 = vadd.f32 %v1668_v61, %v1656_v23  ;;  %v10041_v9 = vld [vmem:[#allocation27_spill] sm:$0xff]  ;;  %v10043_v61 = vld [vmem:[#allocation28_spill] sm:$0xff]  ;;  %v10046_v34 = vld [vmem:[#allocation94_spill] sm:$0xff] }
 0x32f   : > { %v2759_v32 = vadd.f32 %v10034_v1, %v2739_v21  ;;  %v4030_v43 = vadd.f32 %v4022_v55, %v3777_v12  ;;  %v10036_v14 = vrot.slane %v10035_v16, 1  ;;  %v10038_v28 = vrot.slane %v10037_v0, 1  ;;  %3492 = vrot.lane.b32.xlu2 %v3489_v6, %s5427_s23  ;;  %v10047_v0 = vld [vmem:[#allocation130_spill] sm:$0xff] }
 0x330   : > { %v10040_v41 = vrot.slane %v10039_v7, 1  ;;  %v10042_v2 = vrot.slane %v10041_v9, 1  ;;  %v1685_v18 = vsel %vm895_vm0, %v1683_v39, %v1684_v25  ;;  %v4056_v23 = vadd.f32 %v4049_v13, %v4031_v36  ;;  %v10048_v25 = vld [vmem:[#allocation33_spill] sm:$0xff] }
 0x331   : > { %v8423_v45 = vsel %vm895_vm0, %v10038_v28, %v10036_v14  ;;  %v10044_v21 = vrot.slane %v10043_v61, 1  ;;  %v10045_v55 = vmov %v10036_v14  ;;  %v2385_v1 = vadd.f32 %v10046_v34, %v2364_v26  ;;  %v10055_v34 = vld [vmem:[#allocation96_spill] sm:$0xff] }
 0x332   : > { %v8430_v24 = vsel %vm895_vm0, %v10042_v2, %v10040_v41  ;;  %v3781_v14 = vstv %s8371_s27  ;;  %v8445_v2 = vmul.f32 %v7993_v37, %v8336_v29  ;;  %v731_v39 = vadd.f32 %v10048_v25, %v10047_v0  ;;  %v8491_v25 = vpop.permute.xlu2 %4173  ;;  %s8637_s27 = sld [smem:[#allocation2 + $0xe9]] }
 0x333   : > { %v8438_v12 = vsel %vm895_vm0, %v10045_v55, %v10044_v21  ;;  %v8449_v36 = vadd.f32 %v659_v3, %v655_v50  ;;  %v8451_v13 = vadd.f32 %v636_v49, %v632_v54  ;;  %v10050_v16 = vstv %s7404_s29  ;;  %s8482_s29 = sld [smem:[#allocation2 + $0x66]]  ;;  %v4097_v55 = vpop.permute.xlu0 %4096 }
 0x334   : > { %v635_v28 = vmul.f32 %v8230_v20, %v10050_v16  ;;  %v631_v41 = vadd.f32 %v629_v33, %v625_v17  ;;  %v1690_v26 = vadd.f32 %v1685_v18, %v1673_v48  ;;  %v10051_v6 = vrot.slane %v8210_v38, 1  ;;  %v10053_v17 = vld [vmem:[#allocation83_spill] sm:$0xff]  ;;  %v8470_v38 = vld [vmem:[%s5525_s22 + $0x10] sm:$0x3] }
 0x335   : > { %10049 = vst [vmem:[#allocation12_spill] sm:$0xff] %v8451_v13  ;;  %v4055_v29 = vadd.f32 %v8147_v53, %v4030_v43  ;;  %v3782_v61 = vmul.f32 %v8135_v11, %v3781_v14  ;;  %v3783_v50 = vmul.f32 %v8116_v35, %v3781_v14  ;;  %v3800_v3 = vstv %s8398_s7  ;;  %s8674_s7 = sld [smem:[#allocation2 + $0xbb]] }
 0x336   : > { %v3722_v9 = vadd.f32 %v10051_v6, %v2759_v32  ;;  %v10052_v49 = vrot.slane %v8192_v4, 1  ;;  %v4081_v54 = vadd.f32 %v8202_v44, %v4056_v23  ;;  %v2406_v33 = vadd.f32 %v10053_v17, %v2385_v1  ;;  %v4099_v32 = vpop.permute.xlu1 %4098  ;;  %v10054_v4 = vld [vmem:[#allocation91_spill] sm:$0xff]  ;;  %v8499_v17 = vld [vmem:[%s5525_s22 + $0x28] sm:$0x3] }
 0x337   : > { %v8473_v48 = vmul.f32 %v8470_v38, %v3781_v14  ;;  %v4080_v53 = vadd.f32 %v4072_v10, %v4055_v29  ;;  %v9708_v43 = vrot.slane %v8445_v2, 1  ;;  %v8477_v18 = vstv %s8403_s8  ;;  %s8690_s8 = sld [smem:[#allocation2 + $0xea]] }
 0x338   : > { %4350 = vrot.lane.b32.xlu0 %v10052_v49, %s5427_s23  ;;  %v8480_v21 = vstv %s8411_s10  ;;  %v2363_v44 = vadd.f32 %v10054_v4, %v1690_v26  ;;  %v8485_v23 = vadd.f32 %v4099_v32, %v4081_v54  ;;  %v2427_v1 = vadd.f32 %v10055_v34, %v2406_v33  ;;  %v10057_v32 = vld [vmem:[#allocation37_spill] sm:$0xff]  ;;  %v10059_v34 = vld [vmem:[#allocation80_spill] sm:$0xff]  ;;  %s8746_s10 = sld [smem:[#allocation2 + $0xb9]] }
 0x339   : > { %v10056_v14 = vrot.slane %v8242_v52, 1  ;;  %v3801_v0 = vmul.f32 %v8044_v63, %v3800_v3  ;;  %v4105_v16 = vadd.f32 %v4097_v55, %v4080_v53  ;;  %v3788_v6 = vrot.slane %v3782_v61, 1 }
 0x33a   : > { %v3789_v29 = vrot.slane %v3783_v50, 1  ;;  %v3802_v26 = vmul.f32 %v8092_v30, %v3800_v3  ;;  %v9707_v49 = vrot.slane %v8485_v23, 1  ;;  %v9709_v54 = vrot.slane %v8473_v48, 1  ;;  %4423 = vrot.lane.b32.xlu2 %v2427_v1, %s5427_s23 }
 0x33b   : > { %v3741_v10 = vadd.f32 %v10056_v14, %v3722_v9  ;;  %v8502_v52 = vmul.f32 %v8499_v17, %v3800_v3  ;;  %v4663_v9 = vrot.slane %v4105_v16, 1  ;;  %v3491_v61 = vsel %vm895_vm0, %v3488_v27, %v9708_v43 }
 0x33c   : > { %v8510_v50 = vadd.f32 %v635_v28, %v631_v41  ;;  %v8514_v33 = vmul.f32 %v8116_v35, %v8477_v18  ;;  %v8518_v53 = vmul.f32 %v8470_v38, %v8477_v18  ;;  %v8522_v3 = vmul.f32 %v8092_v30, %v8480_v21 }
 0x33d   : > { %v745_v4 = vadd.f32 %v10057_v32, %v731_v39  ;;  %v10058_v42 = vrot.slane %v8280_v46, 1  ;;  %v4665_v27 = vsel %vm895_vm0, %v4663_v9, %v9707_v49  ;;  %v3819_v28 = vstv %s8459_s12  ;;  %v10063_v49 = vld [vmem:[#allocation26_spill] sm:$0xff]  ;;  %s8805_s12 = sld [smem:[#allocation2 + $0x6a]] }
 0x33e   : > { %v8533_v41 = vmul.f32 %v8499_v17, %v8480_v21  ;;  %v2384_v1 = vadd.f32 %v10059_v34, %v2363_v44  ;;  %v3807_v14 = vrot.slane %v3801_v0, 1  ;;  %v3808_v16 = vrot.slane %v3802_v26, 1  ;;  %4695 = vrot.lane.b32.xlu1 %v4665_v27, %s5427_s23  ;;  %v4076_v9 = vpop.permute.xlu1 %4075  ;;  %v10060_v44 = vld [vmem:[#allocation23_spill] sm:$0xff]  ;;  %v10061_v0 = vld [vmem:[#allocation36_spill] sm:$0xff]  ;;  %v4051_v34 = vpop.permute.xlu0 %4050 }
 0x33f   : > { %v3760_v55 = vadd.f32 %v10058_v42, %v3741_v10  ;;  %v3790_v46 = vsel %vm895_vm0, %v3788_v6, %v3789_v29  ;;  %v3792_v10 = vsel %vm895_vm0, %v3789_v29, %v9709_v54  ;;  %v8544_v32 = vmul.f32 %v7912_v51, %v3819_v28  ;;  %v10062_v42 = vld [vmem:[#allocation93_spill] sm:$0xff] }
 0x340   : > { %3494 = vrot.lane.b32.xlu0 %v3491_v61, %s5427_s23  ;;  %v746_v26 = vadd.f32 %v10061_v0, %v10060_v44  ;;  %v2405_v61 = vadd.f32 %v10062_v42, %v2384_v1  ;;  %v3821_v27 = vmul.f32 %v8126_v40, %v3819_v28  ;;  %v3820_v6 = vmul.f32 %v8074_v15, %v3819_v28  ;;  %v10065_v44 = vld [vmem:[#allocation97_spill] sm:$0xff]  ;;  %v10066_v42 = vld [vmem:[#allocation14_spill] sm:$0xff] }
 0x341   : > { %v759_v43 = vadd.f32 %v10063_v49, %v745_v4  ;;  %v8555_v39 = vstv %s8482_s29  ;;  %v10064_v51 = vrot.slane %v8308_v60, 1  ;;  %v3838_v54 = vstv %s8493_s14  ;;  %s8842_s29 = sld [smem:[#allocation2 + $0x6b]] }
 0x342   : > { %v2426_v0 = vadd.f32 %v10065_v44, %v2405_v61  ;;  %v3809_v1 = vsel %vm895_vm0, %v3807_v14, %v3808_v16  ;;  %v3796_v5 = vadd.f32 %v3790_v46, %v10066_v42  ;;  %v3797_v28 = vadd.f32 %v3792_v10, %v10067_v57  ;;  %v10069_v57 = vld [vmem:[#allocation39_spill] sm:$0xff]  ;;  %s8857_s14 = sld [smem:[#allocation2 + $0x6c]] }
 0x343   : > { %v3779_v29 = vadd.f32 %v10064_v51, %v3760_v55  ;;  %v10068_v13 = vrot.slane %v8502_v52, 1  ;;  %v9713_v8 = vrot.slane %v8544_v32, 1  ;;  %v8572_v60 = vmul.f32 %v7993_v37, %v3838_v54  ;;  %v8574_v55 = vpop.permute.xlu2 %4125 }
 0x344   : > { %v3827_v61 = vrot.slane %v3821_v27, 1  ;;  %v3840_v14 = vmul.f32 %v8302_v19, %v3838_v54  ;;  %v3826_v51 = vrot.slane %v3820_v6, 1  ;;  %v3839_v46 = vmul.f32 %v8230_v20, %v3838_v54 }
 0x345   : > { %v3811_v49 = vsel %vm895_vm0, %v3808_v16, %v10068_v13  ;;  %v4032_v4 = vadd.f32 %v8267_v58, %v3779_v29  ;;  %v773_v10 = vadd.f32 %v10069_v57, %v759_v43  ;;  %v9714_v44 = vrot.slane %v8514_v33, 1 }
 0x346   : > { %v1771_v13 = vrot.slane %v8518_v53, 1  ;;  %v9715_v16 = vrot.slane %v8522_v3, 1  ;;  %v1728_v37 = vmul.f32 %v8074_v15, %v8555_v39  ;;  %v8586_v27 = vmul.f32 %v8126_v40, %v8555_v39  ;;  %4421 = vrot.lane.b32.xlu1 %v2426_v0, %s5427_s23  ;;  %v4124_v42 = vpop.permute.xlu1 %4123  ;;  %v4122_v57 = vpop.permute.xlu0 %4121  ;;  %v10071_v0 = vld [vmem:[#allocation40_spill] sm:$0xff] }
 0x347   : > { %v4057_v58 = vadd.f32 %v4051_v34, %v4032_v4  ;;  %v3816_v6 = vadd.f32 %v3811_v49, %v3797_v28  ;;  %v10070_v54 = vrot.slane %v8318_v56, 1  ;;  %v1788_v43 = vrot.slane %v8533_v41, 1 }
 0x348   : > { %v3815_v53 = vadd.f32 %v3809_v1, %v3796_v5  ;;  %v9717_v34 = vrot.slane %v8572_v60, 1  ;;  %v3830_v29 = vsel %vm895_vm0, %v3827_v61, %v9713_v8  ;;  %v3846_v4 = vrot.slane %v3840_v14, 1 }
 0x349   : > { %4400 = vrot.lane.b32.xlu0 %v10070_v54, %s5427_s23  ;;  %v3828_v28 = vsel %vm895_vm0, %v3826_v51, %v3827_v61  ;;  %v3845_v49 = vrot.slane %v3839_v46, 1  ;;  %v8599_v56 = vstv %s8551_s6  ;;  %v760_v54 = vadd.f32 %v10071_v0, %v746_v26  ;;  %s8916_s6 = sld [smem:[#allocation2 + $0xed]] }
 0x34a   : > { %v8606_v5 = vmul.f32 %v8135_v11, %v8477_v18  ;;  %v8609_v41 = vstv %s8557_s13  ;;  %v4082_v1 = vadd.f32 %v4076_v9, %v4057_v58  ;;  %v1707_v8 = vadd.f32 %v8423_v45, %v773_v10  ;;  %s8927_s13 = sld [smem:[#allocation2 + $0xbc]] }
 0x34b   : > { %v1734_v14 = vrot.slane %v1728_v37, 1  ;;  %v9716_v61 = vrot.slane %v8586_v27, 1  ;;  %v3835_v51 = vadd.f32 %v3830_v29, %v3816_v6  ;;  %v3849_v46 = vsel %vm895_vm0, %v3846_v4, %v9717_v34  ;;  %v10072_v6 = vld [vmem:[#allocation38_spill] sm:$0xff]  ;;  %v8654_v0 = vpop.permute.xlu2 %4200 }
 0x34c   : > { %v3834_v26 = vadd.f32 %v3828_v28, %v3815_v53  ;;  %v8620_v18 = vmul.f32 %v8116_v35, %v8599_v56  ;;  %v8624_v9 = vmul.f32 %v8470_v38, %v8599_v56  ;;  %v8629_v45 = vsel %vm895_vm0, %v9714_v44, %v1771_v13 }
 0x34d   : > { %v1745_v10 = vmul.f32 %v8230_v20, %v8609_v41  ;;  %v8635_v58 = vmul.f32 %v8302_v19, %v8609_v41  ;;  %v3847_v37 = vsel %vm895_vm0, %v3845_v49, %v3846_v4  ;;  %v8642_v53 = vadd.f32 %v10072_v6, %v8449_v36  ;;  %v10073_v49 = vld [vmem:[#allocation29_spill] sm:$0xff] }
 0x34e   : > { %v8647_v13 = vsel %vm895_vm0, %v9715_v16, %v1788_v43  ;;  %v8651_v29 = vmul.f32 %v8044_v63, %v8480_v21  ;;  %v4107_v28 = vadd.f32 %v8333_v47, %v4082_v1  ;;  %v1724_v4 = vadd.f32 %v8430_v24, %v1707_v8  ;;  %v4172_v8 = vpop.permute.xlu1 %4171 }
 0x34f   : > { %v774_v44 = vadd.f32 %v10073_v49, %v760_v54  ;;  %v3854_v6 = vadd.f32 %v3849_v46, %v3835_v51  ;;  %v10074_v43 = vrot.slane %v8445_v2, 1  ;;  %v10075_v21 = vrot.slane %v8120_v31, 1  ;;  %v4149_v49 = vpop.permute.xlu0 %4148 }
 0x350   : > { %v1736_v47 = vsel %vm895_vm0, %v1734_v14, %v9716_v61  ;;  %v3853_v1 = vadd.f32 %v3847_v37, %v3834_v26  ;;  %v9721_v24 = vrot.slane %v8620_v18, 1  ;;  %v9718_v54 = vrot.slane %v8624_v9, 1  ;;  %v10079_v61 = vld [vmem:[#allocation131_spill] sm:$0xff] }
 0x351   : > { %3496 = vrot.lane.b32.xlu0 %v10074_v43, %s5427_s23  ;;  %4325 = vrot.lane.b32.xlu1 %v10075_v21, %s5427_s23  ;;  %v1751_v51 = vrot.slane %v1745_v10, 1  ;;  %v9720_v2 = vrot.slane %v8635_v58, 1  ;;  %v4131_v46 = vadd.f32 %v4124_v42, %v3854_v6  ;;  %v8672_v43 = vstv %s8601_s30  ;;  %v10076_v21 = vld [vmem:[#allocation137_spill] sm:$0xff]  ;;  %s9011_s30 = sld [smem:[#allocation2 + $0xef]] }
 0x352   : > { %v10077_v14 = vrot.slane %v8473_v48, 1  ;;  %v4666_v37 = vrot.slane %v4107_v28, 1  ;;  %v4130_v16 = vadd.f32 %v4122_v57, %v3853_v1  ;;  %v10078_v36 = vstv %s7184_s20  ;;  %s8729_s20 = sld [smem:[#allocation2 + $0xeb]] }
 0x353   : > { %v8683_v10 = vmul.f32 %v8116_v35, %v10078_v36  ;;  %v8687_v42 = vmul.f32 %v8499_v17, %v10079_v61  ;;  %v3857_v6 = vstv %s8613_s5  ;;  %v4156_v34 = vadd.f32 %v4149_v49, %v4131_v46  ;;  %v10080_v36 = vld [vmem:[#allocation43_spill] sm:$0xff]  ;;  %s9077_s5 = sld [smem:[#allocation2 + $0x6d]] }
 0x354   : > { %v3798_v26 = vadd.f32 %v10077_v14, %v10076_v21  ;;  %v1741_v31 = vadd.f32 %v1736_v47, %v1724_v4  ;;  %v3516_v48 = vsel %vm895_vm0, %v9721_v24, %v9718_v54  ;;  %v3556_v57 = vmul.f32 %v8074_v15, %v8672_v43 }
 0x355   : > { %v8701_v28 = vmul.f32 %v8126_v40, %v8672_v43  ;;  %v8704_v61 = vadd.f32 %v8438_v12, %v774_v44  ;;  %v8708_v1 = vadd.f32 %v10080_v36, %v8510_v50  ;;  %v1753_v4 = vsel %vm895_vm0, %v1751_v51, %v9720_v2 }
 0x356   : > { %v3876_v47 = vstv %s8637_s27  ;;  %v10081_v46 = vrot.slane %v8502_v52, 1  ;;  %v3858_v21 = vmul.f32 %v8135_v11, %v3857_v6  ;;  %v4155_v14 = vadd.f32 %v8406_v22, %v4130_v16  ;;  %v8731_v16 = vpop.permute.xlu2 %4246  ;;  %s9094_s27 = sld [smem:[#allocation2 + $0x6e]] }
 0x357   : > { %v10082_v54 = vrot.slane %v8485_v23, 1  ;;  %v3859_v50 = vmul.f32 %v8116_v35, %v3857_v6  ;;  %v8724_v36 = vmul.f32 %v8470_v38, %v3857_v6  ;;  %v4181_v52 = vadd.f32 %v8491_v25, %v4156_v34 }
 0x358   : > { %v3817_v49 = vadd.f32 %v10081_v46, %v3798_v26  ;;  %v1758_v22 = vadd.f32 %v1753_v4, %v1741_v31  ;;  %v4180_v23 = vadd.f32 %v4172_v8, %v4155_v14  ;;  %v3562_v51 = vrot.slane %v3556_v57, 1 }
 0x359   : > { %v4667_v12 = vsel %vm895_vm0, %v10082_v54, %v4666_v37  ;;  %3519 = vrot.lane.b32.xlu0 %v3516_v48, %s5427_s23  ;;  %v4199_v54 = vpop.permute.xlu1 %4198  ;;  %v9719_v35 = vrot.slane %v8701_v28, 1  ;;  %v3877_v26 = vmul.f32 %v8044_v63, %v3876_v47  ;;  %v3878_v37 = vmul.f32 %v8092_v30, %v3876_v47  ;;  %v4197_v48 = vpop.permute.xlu0 %4196 }
 0x35a   : > { %4697 = vrot.lane.b32.xlu1 %v4667_v12, %s5427_s23  ;;  %v8736_v6 = vadd.f32 %v4199_v54, %v4181_v52  ;;  %v8739_v25 = vstv %s8674_s7  ;;  %v3864_v34 = vrot.slane %v3858_v21, 1  ;;  %v8742_v8 = vmul.f32 %v8499_v17, %v3876_v47  ;;  %s5097_s7 = sld [smem:[#allocation2 + $0xa8]] }
 0x35b   : > { %v10083_v31 = vrot.slane %v8544_v32, 1  ;;  %v4205_v57 = vadd.f32 %v4197_v48, %v4180_v23  ;;  %v3865_v46 = vrot.slane %v3859_v50, 1  ;;  %v9722_v63 = vrot.slane %v8724_v36, 1 }
 0x35c   : > { %v9723_v14 = vrot.slane %v8736_v6, 1  ;;  %v3895_v12 = vstv %s8690_s8  ;;  %v3564_v21 = vsel %vm895_vm0, %v3562_v51, %v9719_v35  ;;  %v3581_v47 = vmul.f32 %v8230_v20, %v8739_v25  ;;  %v10084_v51 = vld [vmem:[#allocation86_spill] sm:$0xff]  ;;  %s5098_s8 = sld [smem:[#allocation2 + $0xa9]] }
 0x35d   : > { %v3836_v4 = vadd.f32 %v10083_v31, %v3817_v49  ;;  %v4671_v52 = vrot.slane %v4205_v57, 1  ;;  %v8758_v32 = vmul.f32 %v8302_v19, %v8739_v25  ;;  %v8761_v49 = vld [vmem:[%s5525_s22 + $0x40] sm:$0x3]  ;;  %v3883_v23 = vrot.slane %v3877_v26, 1 }
 0x35e   : > { %v8765_v50 = vmul.f32 %v8761_v49, %v8555_v39  ;;  %v3884_v54 = vrot.slane %v3878_v37, 1  ;;  %v3506_v48 = vmul.f32 %v8135_v11, %v8599_v56  ;;  %v2447_v31 = vadd.f32 %v10084_v51, %v1758_v22 }
 0x35f   : > { %v9725_v57 = vrot.slane %v8742_v8, 1  ;;  %v10085_v35 = vrot.slane %v8572_v60, 1  ;;  %v4673_v44 = vsel %vm895_vm0, %v4671_v52, %v9723_v14  ;;  %v3866_v24 = vsel %vm895_vm0, %v3864_v34, %v3865_v46 }
 0x360   : > { %v3868_v39 = vsel %vm895_vm0, %v3865_v46, %v9722_v63  ;;  %v10086_v11 = vrot.slane %v8259_v62, 1  ;;  %v3914_v56 = vstv %s8729_s20  ;;  %v3897_v60 = vmul.f32 %v8126_v40, %v3895_v12  ;;  %4699 = vrot.lane.b32.xlu2 %v4673_v44, %s5427_s23  ;;  %v8799_v44 = vpop.permute.xlu2 %4273  ;;  %s9141_s20 = sld [smem:[#allocation2 + $0xbe]] }
 0x361   : > { %v3855_v2 = vadd.f32 %v10085_v35, %v3836_v4  ;;  %3567 = vrot.lane.b32.xlu0 %v3564_v21, %s5427_s23  ;;  %v4176_v35 = vpop.permute.xlu1 %4175  ;;  %v8789_v26 = vmul.f32 %v8761_v49, %v3895_v12  ;;  %v3587_v37 = vrot.slane %v3581_v47, 1  ;;  %v9724_v34 = vrot.slane %v8758_v32, 1  ;;  %v10087_v4 = vld [vmem:[#allocation99_spill] sm:$0xff]  ;;  %v4151_v52 = vpop.permute.xlu0 %4150 }
 0x362   : > { %4375 = vrot.lane.b32.xlu1 %v10086_v11, %s5427_s23  ;;  %v2468_v46 = vadd.f32 %v10087_v4, %v2447_v31  ;;  %v3885_v62 = vsel %vm895_vm0, %v3883_v23, %v3884_v54  ;;  %v3512_v21 = vrot.slane %v3506_v48, 1  ;;  %v3896_v51 = vmul.f32 %v8074_v15, %v3895_v12  ;;  %v10088_v11 = vld [vmem:[#allocation31_spill] sm:$0xff] }
 0x363   : > { %v4132_v22 = vadd.f32 %v8574_v55, %v3855_v2  ;;  %v3872_v55 = vadd.f32 %v3866_v24, %v10088_v11  ;;  %v3887_v2 = vsel %vm895_vm0, %v3884_v54, %v9725_v57  ;;  %v3530_v63 = vstv %s8746_s10  ;;  %v8809_v24 = vld [vmem:[%s5525_s22 + $0x58] sm:$0x3]  ;;  %v10090_v11 = vld [vmem:[#allocation32_spill] sm:$0xff]  ;;  %s9143_s10 = sld [smem:[#allocation2 + $0x6f]] }
 0x364   : > { %v3873_v14 = vadd.f32 %v3868_v39, %v7684_v59  ;;  %v3903_v31 = vrot.slane %v3897_v60, 1  ;;  %v3916_v4 = vmul.f32 %v8302_v19, %v3914_v56  ;;  %v3915_v23 = vmul.f32 %v8230_v20, %v3914_v56 }
 0x365   : > { %v4157_v47 = vadd.f32 %v4151_v52, %v4132_v22  ;;  %v8812_v12 = vmul.f32 %v8809_v24, %v3914_v56  ;;  %v3589_v48 = vsel %vm895_vm0, %v3587_v37, %v9724_v34  ;;  %v10089_v59 = vrot.slane %v8620_v18, 1 }
 0x366   : > { %v3902_v60 = vrot.slane %v3896_v51, 1  ;;  %v8821_v22 = vmul.f32 %v8092_v30, %v3530_v63  ;;  %v8824_v52 = vmul.f32 %v8499_v17, %v3530_v63  ;;  %v801_v56 = vadd.f32 %v10090_v11, %v8708_v1  ;;  %v10097_v11 = vld [vmem:[#allocation12_spill] sm:$0xff] }
 0x367   : > { %v4182_v54 = vadd.f32 %v4176_v35, %v4157_v47  ;;  %v3514_v39 = vsel %vm895_vm0, %v3512_v21, %v10089_v59  ;;  %v10091_v35 = vrot.slane %v8687_v42, 1  ;;  %v10092_v47 = vrot.slane %v10039_v7, 1  ;;  %v10093_v59 = vld [vmem:[#allocation103_spill] sm:$0xff] }
 0x368   : > { %v1747_v18 = vmul.f32 %v8809_v24, %v8609_v41  ;;  %v1737_v51 = vrot.slane %v8765_v50, 1  ;;  %v2489_v34 = vadd.f32 %v10093_v59, %v2468_v46  ;;  %v3891_v57 = vadd.f32 %v3885_v62, %v3872_v55  ;;  %v10094_v42 = vld [vmem:[#allocation19_spill] sm:$0xff]  ;;  %3517 = vrot.lane.b32.xlu2 %v3514_v39, %s5427_s23 }
 0x369   : > { %v1721_v37 = vsel %vm895_vm0, %v10092_v47, %v10091_v35  ;;  %v4207_v21 = vadd.f32 %v8654_v0, %v4182_v54  ;;  %v3892_v15 = vadd.f32 %v3887_v2, %v3873_v14  ;;  %3592 = vrot.lane.b32.xlu0 %v3589_v48, %s5427_s23  ;;  %v10095_v1 = vrot.slane %v10094_v42, 1  ;;  %v4224_v14 = vpop.permute.xlu1 %4223  ;;  %v4222_v2 = vpop.permute.xlu0 %4221  ;;  %v10098_v35 = vld [vmem:[#allocation42_spill] sm:$0xff] }
 0x36a   : > { %v3924_v7 = vrot.slane %v8812_v12, 1  ;;  %v10096_v0 = vrot.slane %v8789_v26, 1  ;;  %v3922_v46 = vrot.slane %v3916_v4, 1  ;;  %v3904_v62 = vsel %vm895_vm0, %v3902_v60, %v3903_v31 }
 0x36b   : > { %3471 = vrot.lane.b32.xlu1 %v10095_v1, %s5427_s23  ;;  %v4674_v41 = vrot.slane %v4207_v21, 1  ;;  %v3921_v55 = vrot.slane %v3915_v23, 1  ;;  %v3538_v54 = vrot.slane %v8821_v22, 1  ;;  %v9728_v48 = vrot.slane %v8824_v52, 1  ;;  %v10101_v23 = vld [vmem:[#allocation46_spill] sm:$0xff] }
 0x36c   : > { %v3906_v50 = vsel %vm895_vm0, %v3903_v31, %v10096_v0  ;;  %v788_v47 = vadd.f32 %v10098_v35, %v10097_v11  ;;  %v10099_v39 = vstv %s7220_s28  ;;  %v1754_v4 = vrot.slane %v1747_v18, 1  ;;  %v10105_v35 = vld [vmem:[#allocation47_spill] sm:$0xff]  ;;  %s8902_s28 = sld [smem:[#allocation2 + $0xec]] }
 0x36d   : > { %v648_v21 = vmul.f32 %v8092_v30, %v10099_v39  ;;  %v10100_v59 = vrot.slane %v8736_v6, 1  ;;  %v815_v60 = vadd.f32 %v10101_v23, %v801_v56  ;;  %v1725_v22 = vadd.f32 %v1721_v37, %v8704_v61  ;;  %v8872_v30 = vpop.permute.xlu2 %4225  ;;  %v10103_v61 = vld [vmem:[#allocation58_spill] sm:$0xff]  ;;  %v10104_v37 = vld [vmem:[#allocation92_spill] sm:$0xff] }
 0x36e   : > { %v10102_v42 = vrot.slane %v8586_v27, 1  ;;  %v3911_v0 = vadd.f32 %v3906_v50, %v3892_v15  ;;  %v8870_v11 = vstv %s8805_s12  ;;  %v3925_v6 = vsel %vm895_vm0, %v3922_v46, %v3924_v7  ;;  %s9431_s12 = sld [smem:[#allocation2 + $0x8c]] }
 0x36f   : > { %v8862_v31 = vsel %vm895_vm0, %v10100_v59, %v4674_v41  ;;  %v3910_v18 = vadd.f32 %v3904_v62, %v3891_v57  ;;  %v8878_v41 = vld [vmem:[%s5525_s22 + $0x18] sm:$0xff]  ;;  %v644_v27 = vadd.f32 %v8683_v10, %v10103_v61  ;;  %v2510_v15 = vadd.f32 %v10104_v37, %v2489_v34 }
 0x370   : > { %v1738_v1 = vsel %vm895_vm0, %v10102_v42, %v1737_v51  ;;  %v3531_v56 = vmul.f32 %v8878_v41, %v3530_v63  ;;  %v3923_v51 = vsel %vm895_vm0, %v3921_v55, %v3922_v46  ;;  %v3541_v50 = vsel %vm895_vm0, %v3538_v54, %v9728_v48  ;;  %v10108_v59 = vld [vmem:[#allocation50_spill] sm:$0xff] }
 0x371   : > { %v802_v39 = vadd.f32 %v10105_v35, %v788_v47  ;;  %v10106_v57 = vrot.slane %v8514_v33, 1  ;;  %v10107_v62 = vrot.slane %v8606_v5, 1  ;;  %v829_v23 = vadd.f32 %v10108_v59, %v815_v60  ;;  %3544 = vrot.lane.b32.xlu2 %v3541_v50, %s5427_s23 }
 0x372   : > { %v10109_v10 = vrot.slane %v8635_v58, 1  ;;  %v8900_v46 = vmul.f32 %v8126_v40, %v8870_v11  ;;  %v1742_v55 = vadd.f32 %v1738_v1, %v1725_v22  ;;  %v3930_v47 = vadd.f32 %v3925_v6, %v3911_v0  ;;  %v8912_v58 = vld [vmem:[%s5525_s22 + $0x30] sm:$0xff]  ;;  %v4272_v22 = vpop.permute.xlu1 %4271 }
 0x373   : > { %v1770_v63 = vsel %vm895_vm0, %v10107_v62, %v10106_v57  ;;  %v10110_v33 = vrot.slane %v8624_v9, 1  ;;  %4425 = vrot.lane.b32.xlu1 %v2510_v15, %s5427_s23  ;;  %v8909_v5 = vstv %s8842_s29  ;;  %v3929_v60 = vadd.f32 %v3923_v51, %v3910_v18  ;;  %v4249_v57 = vpop.permute.xlu0 %4248  ;;  %v10114_v18 = vld [vmem:[#allocation35_spill] sm:$0xff]  ;;  %s4991_s29 = sld [smem:[#allocation2 + $0x8e]] }
 0x374   : > { %v1755_v34 = vsel %vm895_vm0, %v10109_v10, %v1754_v4  ;;  %v1796_v4 = vmul.f32 %v8912_v58, %v8870_v11  ;;  %v3537_v42 = vrot.slane %v3531_v56, 1  ;;  %v10111_v9 = vrot.slane %v8522_v3, 1  ;;  %v10115_v56 = vld [vmem:[#allocation148_spill] sm:$0xff] }
 0x375   : > { %3521 = vrot.lane.b32.xlu0 %v10110_v33, %s5427_s23  ;;  %v10112_v1 = vrot.slane %v8651_v29, 1  ;;  %v650_v6 = vadd.f32 %v648_v21, %v644_v27  ;;  %v10113_v37 = vstv %s7229_s9  ;;  %v4231_v35 = vadd.f32 %v4224_v14, %v3930_v47  ;;  %s8986_s9 = sld [smem:[#allocation2 + $0xee]] }
 0x376   : > { %v654_v15 = vmul.f32 %v8126_v40, %v10113_v37  ;;  %v816_v51 = vadd.f32 %v10114_v18, %v802_v39  ;;  %v8931_v50 = vstv %s8857_s14  ;;  %v10116_v3 = vrot.slane %v8724_v36, 1  ;;  %s9209_s14 = sld [smem:[#allocation2 + $0xbf]] }
 0x377   : > { %v1787_v0 = vsel %vm895_vm0, %v10112_v1, %v10111_v9  ;;  %v4230_v62 = vadd.f32 %v4222_v2, %v3929_v60  ;;  %v1775_v21 = vadd.f32 %v1770_v63, %v829_v23  ;;  %v8938_v40 = vmul.f32 %v8302_v19, %v8909_v5  ;;  %v8954_v23 = vld [vmem:[%s5525_s22] sm:$0xff]  ;;  %v8963_v60 = vld [vmem:[%s5525_s22 + $0x8] sm:$0xff]  ;;  %v8971_v1 = vpop.permute.xlu2 %4300 }
 0x378   : > { %v3874_v29 = vadd.f32 %v10116_v3, %v10115_v56  ;;  %v1759_v14 = vadd.f32 %v1755_v34, %v1742_v55  ;;  %v4256_v27 = vadd.f32 %v4249_v57, %v4231_v35  ;;  %v1803_v59 = vrot.slane %v8900_v46, 1  ;;  %v10118_v55 = vld [vmem:[#allocation100_spill] sm:$0xff] }
 0x379   : > { %v1802_v10 = vrot.slane %v1796_v4, 1  ;;  %v3539_v39 = vsel %vm895_vm0, %v3537_v42, %v3538_v54  ;;  %v8944_v47 = vmul.f32 %v8761_v49, %v8672_v43  ;;  %v8946_v36 = vadd.f32 %v654_v15, %v650_v6  ;;  %v10119_v4 = vld [vmem:[#allocation49_spill] sm:$0xff]  ;;  %4701 = vrot.lane.b32.xlu2 %v8862_v31, %s5427_s23 }
 0x37a   : > { %v10117_v2 = vstv %s7253_s11  ;;  %v8958_v34 = vmul.f32 %v8954_v23, %v8931_v50  ;;  %v2448_v33 = vadd.f32 %v10118_v55, %v1759_v14  ;;  %v830_v54 = vadd.f32 %v10119_v4, %v816_v51  ;;  %s8997_s11 = sld [smem:[#allocation2 + $0xbd]] }
 0x37b   : > { %v8951_v63 = vmul.f32 %v8302_v19, %v10117_v2  ;;  %v8967_v43 = vmul.f32 %v8963_v60, %v8931_v50  ;;  %v10120_v42 = vrot.slane %v8742_v8, 1  ;;  %v4255_v6 = vadd.f32 %v8731_v16, %v4230_v62  ;;  %3542 = vrot.lane.b32.xlu1 %v3539_v39, %s5427_s23  ;;  %v4299_v16 = vpop.permute.xlu1 %4298 }
 0x37c   : > { %v1792_v37 = vadd.f32 %v1787_v0, %v1775_v21  ;;  %v1813_v15 = vmul.f32 %v8230_v20, %v8909_v5  ;;  %v3933_v35 = vstv %s8902_s28  ;;  %v4281_v57 = vadd.f32 %v8799_v44, %v4256_v27  ;;  %v10121_v20 = vld [vmem:[#allocation89_spill] sm:$0xff]  ;;  %s5101_s28 = sld [smem:[#allocation2 + $0xac]] }
 0x37d   : > { %v3893_v9 = vadd.f32 %v10120_v42, %v3874_v29  ;;  %v9730_v18 = vrot.slane %v8938_v40, 1  ;;  %v1804_v8 = vsel %vm895_vm0, %v1802_v10, %v1803_v59  ;;  %v4280_v51 = vadd.f32 %v4272_v22, %v4255_v6  ;;  %v4297_v29 = vpop.permute.xlu0 %4296  ;;  %v10123_v10 = vld [vmem:[#allocation102_spill] sm:$0xff] }
 0x37e   : > { %v3565_v0 = vrot.slane %v8944_v47, 1  ;;  %v2469_v56 = vadd.f32 %v10121_v20, %v2448_v33  ;;  %v8990_v3 = vstv %s8916_s6  ;;  %v8992_v44 = vadd.f32 %v4299_v16, %v4281_v57  ;;  %v10125_v57 = vld [vmem:[#allocation106_spill] sm:$0xff]  ;;  %v9028_v16 = vld [vmem:[%s5525_s22 + $0x20] sm:$0xff]  ;;  %s5102_s6 = sld [smem:[#allocation2 + $0xad]] }
 0x37f   : > { %v8995_v62 = vstv %s8927_s13  ;;  %v3934_v22 = vmul.f32 %v8954_v23, %v3933_v35  ;;  %v9001_v31 = vmul.f32 %v8963_v60, %v3933_v35  ;;  %v10122_v21 = vrot.slane %v8789_v26, 1  ;;  %v5182_v47 = vld [vmem:[%s9653_s3 + $0x38] sm:$0xff]  ;;  %s9511_s13 = sld [smem:[#allocation2 + $0xae]] }
 0x380   : > { %v4305_v27 = vadd.f32 %v4297_v29, %v4280_v51  ;;  %v2490_v39 = vadd.f32 %v10123_v10, %v2469_v56  ;;  %v1819_v2 = vrot.slane %v1813_v15, 1  ;;  %v4680_v55 = vrot.slane %v8992_v44, 1  ;;  %4741 = vmatpush.msra.mxu3 %v5182_v47 }
 0x381   : > { %v3912_v14 = vadd.f32 %v10122_v21, %v3893_v9  ;;  %v9009_v33 = vmul.f32 %v8809_v24, %v8739_v25  ;;  %v10124_v42 = vrot.slane %v8701_v28, 1  ;;  %v3606_v9 = vmul.f32 %v8954_v23, %v8995_v62 }
 0x382   : > { %v4679_v4 = vrot.slane %v4305_v27, 1  ;;  %v9022_v6 = vmul.f32 %v8963_v60, %v8995_v62  ;;  %v1809_v15 = vadd.f32 %v1804_v8, %v1792_v37  ;;  %v2511_v25 = vadd.f32 %v10125_v57, %v2490_v39 }
 0x383   : > { %v3566_v26 = vsel %vm895_vm0, %v10124_v42, %v3565_v0  ;;  %v3953_v51 = vmul.f32 %v8878_v41, %v8990_v3  ;;  %v9032_v28 = vmul.f32 %v9028_v16, %v8990_v3  ;;  %v3940_v20 = vrot.slane %v3934_v22, 1  ;;  %v9049_v22 = vpop.permute.xlu2 %4346 }
 0x384   : > { %v3941_v56 = vrot.slane %v9001_v31, 1  ;;  %v3931_v29 = vadd.f32 %v3924_v7, %v3912_v14  ;;  %v4681_v37 = vsel %vm895_vm0, %v4679_v4, %v4680_v55  ;;  %v1776_v8 = vadd.f32 %v8629_v45, %v830_v54  ;;  %3569 = vrot.lane.b32.xlu1 %v3566_v26, %s5427_s23  ;;  %4427 = vrot.lane.b32.xlu2 %v2511_v25, %s5427_s23  ;;  %v4276_v25 = vpop.permute.xlu1 %4275 }
 0x385   : > { %v1821_v27 = vsel %vm895_vm0, %v1819_v2, %v9730_v18  ;;  %4703 = vrot.lane.b32.xlu0 %v4681_v37, %s5427_s23  ;;  %v9726_v12 = vrot.slane %v9009_v33, 1  ;;  %v3612_v45 = vrot.slane %v3606_v9, 1  ;;  %v9727_v54 = vrot.slane %v9022_v6, 1  ;;  %v4251_v4 = vpop.permute.xlu0 %4250 }
 0x386   : > { %v4232_v7 = vadd.f32 %v8872_v30, %v3931_v29  ;;  %v3971_v14 = vstv %s8986_s9  ;;  %v1798_v10 = vmul.f32 %v8761_v49, %v8870_v11  ;;  %v3959_v39 = vrot.slane %v3953_v51, 1  ;;  %v9070_v51 = vld [vmem:[%s5525_s22 + $0x38] sm:$0xff]  ;;  %s9522_s9 = sld [smem:[#allocation2 + $0xaf]] }
 0x387   : > { %v9729_v2 = vrot.slane %v9032_v28, 1  ;;  %v3630_v42 = vstv %s8997_s11  ;;  %v1826_v26 = vadd.f32 %v1821_v27, %v1809_v15  ;;  %v3942_v30 = vsel %vm895_vm0, %v3940_v20, %v3941_v56  ;;  %s4985_s11 = sld [smem:[#allocation2 + $0x88]] }
 0x388   : > { %v9062_v57 = vmul.f32 %v8470_v38, %v3933_v35  ;;  %v4257_v9 = vadd.f32 %v4251_v4, %v4232_v7  ;;  %v10126_v29 = vrot.slane %v8758_v32, 1  ;;  %v9073_v37 = vmul.f32 %v9070_v51, %v3971_v14 }
 0x389   : > { %v3990_v15 = vstv %s9011_s30  ;;  %v3972_v27 = vmul.f32 %v8912_v58, %v3971_v14  ;;  %v3614_v20 = vsel %vm895_vm0, %v3612_v45, %v9727_v54  ;;  %v9083_v7 = vmul.f32 %v9028_v16, %v3630_v42  ;;  %v10128_v45 = vld [vmem:[#allocation147_spill] sm:$0xff]  ;;  %s4986_s30 = sld [smem:[#allocation2 + $0x89]] }
 0x38a   : > { %v3591_v11 = vsel %vm895_vm0, %v10126_v29, %v9726_v12  ;;  %v4282_v35 = vadd.f32 %v4276_v25, %v4257_v9  ;;  %v9086_v32 = vmul.f32 %v8499_v17, %v3630_v42  ;;  %v1805_v4 = vrot.slane %v1798_v10, 1  ;;  %v10127_v12 = vld [vmem:[#allocation105_spill] sm:$0xff] }
 0x38b   : > { %v1815_v29 = vmul.f32 %v8809_v24, %v8909_v5  ;;  %v2531_v21 = vadd.f32 %v10127_v12, %v1826_v26  ;;  %v3961_v9 = vsel %vm895_vm0, %v3959_v39, %v9729_v2  ;;  %v3948_v25 = vadd.f32 %v3942_v30, %v10128_v45  ;;  %v9110_v26 = vld [vmem:[%s5525_s22 + $0x48] sm:$0xff]  ;;  %v10129_v45 = vld [vmem:[#allocation109_spill] sm:$0xff] }
 0x38c   : > { %v9731_v54 = vrot.slane %v9062_v57, 1  ;;  %v9100_v48 = vmul.f32 %v8499_v17, %v8990_v3  ;;  %v4307_v10 = vadd.f32 %v8971_v1, %v4282_v35  ;;  %3594 = vrot.lane.b32.xlu1 %v3591_v11, %s5427_s23  ;;  %v3979_v5 = vrot.slane %v9073_v37, 1  ;;  %3571 = vrot.lane.b32.xlu2 %v3565_v0, %s5427_s23 }
 0x38d   : > { %3617 = vrot.lane.b32.xlu0 %v3614_v20, %s5427_s23  ;;  %v9107_v12 = vmul.f32 %v8302_v19, %v3990_v15  ;;  %v3978_v39 = vrot.slane %v3972_v27, 1  ;;  %v3991_v30 = vmul.f32 %v9110_v26, %v3990_v15  ;;  %v2552_v2 = vadd.f32 %v10129_v45, %v2531_v21  ;;  %v10130_v19 = vld [vmem:[#allocation51_spill] sm:$0xff]  ;;  %v4322_v21 = vpop.permute.xlu0 %4321 }
 0x38e   : > { %v4682_v3 = vrot.slane %v4307_v10, 1  ;;  %v3638_v1 = vrot.slane %v9083_v7, 1  ;;  %v9732_v11 = vrot.slane %v9086_v32, 1  ;;  %v1793_v35 = vadd.f32 %v8647_v13, %v1776_v8  ;;  %v9134_v13 = vpop.permute.xlu2 %4371  ;;  %v10141_v7 = vld [vmem:[#allocation108_spill] sm:$0xff] }
 0x38f   : > { %v857_v27 = vadd.f32 %v10130_v19, %v8642_v53  ;;  %v1806_v20 = vsel %vm895_vm0, %v1803_v59, %v1805_v4  ;;  %v1822_v18 = vrot.slane %v1815_v29, 1  ;;  %v3967_v0 = vadd.f32 %v3961_v9, %v3948_v25  ;;  %v10131_v4 = vld [vmem:[#allocation98_spill] sm:$0xff] }
 0x390   : > { %v3962_v10 = vrot.slane %v9100_v48, 1  ;;  %v3944_v53 = vsel %vm895_vm0, %v3941_v56, %v9731_v54  ;;  %v9139_v46 = vsel %vm895_vm0, %v4680_v55, %v4682_v3  ;;  %v9146_v59 = vmul.f32 %v8761_v49, %v3971_v14  ;;  %v10132_v9 = vld [vmem:[#allocation54_spill] sm:$0xff]  ;;  %v10134_v3 = vld [vmem:[#allocation111_spill] sm:$0xff] }
 0x391   : > { %v3998_v31 = vrot.slane %v9107_v12, 1  ;;  %v3980_v56 = vsel %vm895_vm0, %v3978_v39, %v3979_v5  ;;  %v3997_v8 = vrot.slane %v3991_v30, 1  ;;  %v1837_v44 = vrot.slane %v8967_v43, 1 }
 0x392   : > { %v9154_v55 = vstv %s9077_s5  ;;  %v2573_v29 = vadd.f32 %v10131_v4, %v2552_v2  ;;  %v3641_v14 = vsel %vm895_vm0, %v3638_v1, %v9732_v11  ;;  %v871_v25 = vadd.f32 %v10132_v9, %v857_v27  ;;  %v10135_v2 = vld [vmem:[#allocation15_spill] sm:$0xff]  ;;  %s4987_s5 = sld [smem:[#allocation2 + $0x8a]] }
 0x393   : > { %v10133_v12 = vrot.slane %v8938_v40, 1  ;;  %v1810_v39 = vadd.f32 %v1806_v20, %v1793_v35  ;;  %v3631_v30 = vmul.f32 %v8878_v41, %v3630_v42  ;;  %v9169_v47 = vstv %s9094_s27  ;;  %s4988_s27 = sld [smem:[#allocation2 + $0x8b]] }
 0x394   : > { %v2594_v19 = vadd.f32 %v10134_v3, %v2573_v29  ;;  %v3949_v4 = vadd.f32 %v3944_v53, %v10135_v2  ;;  %v3986_v54 = vadd.f32 %v3980_v56, %v3967_v0  ;;  %v10136_v11 = vrot.slane %v9032_v28, 1 }
 0x395   : > { %v1823_v45 = vsel %vm895_vm0, %v10133_v12, %v1822_v18  ;;  %v3981_v40 = vrot.slane %v9146_v59, 1  ;;  %v9179_v18 = vmul.f32 %v8809_v24, %v3990_v15  ;;  %v3999_v42 = vsel %vm895_vm0, %v3997_v8, %v3998_v31  ;;  %3644 = vrot.lane.b32.xlu0 %v3641_v14, %s5427_s23  ;;  %v4349_v56 = vpop.permute.xlu0 %4348 }
 0x396   : > { %v3963_v27 = vsel %vm895_vm0, %v10136_v11, %v3962_v10  ;;  %v10137_v35 = vrot.slane %v8824_v52, 1  ;;  %v662_v20 = vadd.f32 %v8951_v63, %v8946_v36  ;;  %v9190_v28 = vmul.f32 %v9028_v16, %v9154_v55  ;;  %4429 = vrot.lane.b32.xlu2 %v2594_v19, %s5427_s23  ;;  %v5181_v52 = vld [vmem:[%s9653_s3 + $0x30] sm:$0xff] }
 0x397   : > { %v1847_v15 = vmul.f32 %v8878_v41, %v9154_v55  ;;  %v10138_v11 = vrot.slane %v8958_v34, 1  ;;  %v10139_v63 = vld [vmem:[#allocation45_spill] sm:$0xff]  ;;  %v1827_v53 = vadd.f32 %v1823_v45, %v1810_v39  ;;  %v3637_v8 = vrot.slane %v3631_v30, 1  ;;  %4742 = vmatpush.msra.mxu3 %v5181_v52  ;;  %v4397_v30 = vpop.permute.xlu2 %4396 }
 0x398   : > { %3546 = vrot.lane.b32.xlu1 %v10137_v35, %s5427_s23  ;;  %v885_v0 = vadd.f32 %v10139_v63, %v871_v25  ;;  %v9206_v29 = vmul.f32 %v9070_v51, %v9169_v47  ;;  %v3968_v14 = vadd.f32 %v3963_v27, %v3949_v4  ;;  %v4005_v9 = vadd.f32 %v3999_v42, %v3986_v54  ;;  %v5154_v4 = vld [vmem:[%s9653_s3 + $0x18] sm:$0xff]  ;;  %v10140_v27 = vld [vmem:[#allocation95_spill] sm:$0xff] }
 0x399   : > { %v1838_v36 = vsel %vm895_vm0, %v10138_v11, %v1837_v44  ;;  %v3655_v12 = vstv %s9141_s20  ;;  %v9212_v3 = vstv %s9143_s10  ;;  %v1864_v34 = vmul.f32 %v8912_v58, %v9169_v47  ;;  %4468 = vmatpush.msra.mxu0 %v5154_v4  ;;  %s9405_s20 = sld [smem:[#allocation2 + $0xaa]] }
 0x39a   : > { %v3982_v25 = vsel %vm895_vm0, %v3979_v5, %v3981_v40  ;;  %v9733_v45 = vrot.slane %v9179_v18, 1  ;;  %v1854_v39 = vrot.slane %v9190_v28, 1  ;;  %v1853_v54 = vrot.slane %v1847_v15, 1  ;;  %v9242_v15 = vld [vmem:[%s5525_s22 + $0x50] sm:$0xff]  ;;  %s9416_s10 = sld [smem:[#allocation2 + $0xab]] }
 0x39b   : > { %v4330_v19 = vadd.f32 %v4322_v21, %v4005_v9  ;;  %v9225_v2 = vmul.f32 %v8470_v38, %v8995_v62  ;;  %v2532_v37 = vadd.f32 %v10140_v27, %v1827_v53  ;;  %v3639_v5 = vsel %vm895_vm0, %v3637_v8, %v3638_v1 }
 0x39c   : > { %v9235_v42 = vmul.f32 %v9070_v51, %v3655_v12  ;;  %v9238_v35 = vmul.f32 %v8761_v49, %v3655_v12  ;;  %v1843_v21 = vadd.f32 %v1838_v36, %v885_v0  ;;  %v1871_v62 = vrot.slane %v9206_v29, 1 }
 0x39d   : > { %v9246_v52 = vmul.f32 %v9242_v15, %v9212_v3  ;;  %v3987_v11 = vadd.f32 %v3982_v25, %v3968_v14  ;;  %v2553_v63 = vadd.f32 %v10141_v7, %v2532_v37  ;;  %v1870_v1 = vrot.slane %v1864_v34, 1  ;;  %4705 = vrot.lane.b32.xlu0 %v9139_v46, %s5427_s23  ;;  %v4324_v25 = vpop.permute.xlu1 %4323  ;;  %v4374_v4 = vpop.permute.xlu0 %4373 }
 0x39e   : > { %v1881_v53 = vmul.f32 %v9110_v26, %v9212_v3  ;;  %v4001_v8 = vsel %vm895_vm0, %v3998_v31, %v9733_v45  ;;  %v10142_v36 = vrot.slane %v9009_v33, 1  ;;  %v1855_v0 = vsel %vm895_vm0, %v1853_v54, %v1854_v39  ;;  %3642 = vrot.lane.b32.xlu2 %v3639_v5, %s5427_s23  ;;  %v5153_v31 = vld [vmem:[%s9653_s3 + $0x10] sm:$0xff]  ;;  %v10143_v33 = vld [vmem:[#allocation112_spill] sm:$0xff] }
 0x39f   : > { %v4355_v14 = vadd.f32 %v9049_v22, %v4330_v19  ;;  %v3615_v9 = vrot.slane %v9225_v2, 1  ;;  %v2574_v34 = vadd.f32 %v10143_v33, %v2553_v63  ;;  %v3663_v46 = vrot.slane %v9235_v42, 1  ;;  %4469 = vmatpush.msra.mxu0 %v5153_v31  ;;  %v10144_v54 = vld [vmem:[#allocation52_spill] sm:$0xff] }
 0x3a0   : > { %3596 = vrot.lane.b32.xlu1 %v10142_v36, %s5427_s23  ;;  %v3665_v27 = vrot.slane %v9238_v35, 1  ;;  %v844_v37 = vadd.f32 %v10144_v54, %v662_v20  ;;  %v1832_v22 = vmul.f32 %v8470_v38, %v8931_v50  ;;  %v4006_v19 = vadd.f32 %v4001_v8, %v3987_v11  ;;  %v10146_v50 = vld [vmem:[#allocation101_spill] sm:$0xff] }
 0x3a1   : > { %v3680_v5 = vstv %s9209_s14  ;;  %v1888_v7 = vrot.slane %v9246_v52, 1  ;;  %v1860_v36 = vadd.f32 %v1855_v0, %v1843_v21  ;;  %v1872_v63 = vsel %vm895_vm0, %v1870_v1, %v1871_v62  ;;  %v10158_v52 = vld [vmem:[#allocation118_spill] sm:$0xff]  ;;  %s4992_s14 = sld [smem:[#allocation2 + $0x8f]] }
 0x3a2   : > { %v1887_v33 = vrot.slane %v1881_v53, 1  ;;  %v4331_v45 = vadd.f32 %v4324_v25, %v4006_v19  ;;  %v4380_v42 = vadd.f32 %v9134_v13, %v4355_v14  ;;  %v10145_v20 = vrot.slane %v9022_v6, 1  ;;  %v3470_v53 = vpop.permute.xlu2 %3469  ;;  %v10147_v13 = vld [vmem:[#allocation41_spill] sm:$0xff] }
 0x3a3   : > { %v3656_v38 = vmul.f32 %v8912_v58, %v3655_v12  ;;  %v2595_v11 = vadd.f32 %v10146_v50, %v2574_v34  ;;  %v3666_v21 = vsel %vm895_vm0, %v3663_v46, %v3665_v27  ;;  %v3682_v8 = vmul.f32 %v9242_v15, %v3680_v5 }
 0x3a4   : > { %v3616_v35 = vsel %vm895_vm0, %v10145_v20, %v3615_v9  ;;  %v9290_v1 = vmul.f32 %v8809_v24, %v3680_v5  ;;  %v4356_v0 = vadd.f32 %v4349_v56, %v4331_v45  ;;  %v858_v14 = vadd.f32 %v10147_v13, %v844_v37  ;;  %v10148_v56 = vld [vmem:[#allocation53_spill] sm:$0xff]  ;;  %v10151_v13 = vld [vmem:[#allocation104_spill] sm:$0xff] }
 0x3a5   : > { %v1849_v6 = vmul.f32 %v8499_v17, %v9154_v55  ;;  %v1877_v31 = vadd.f32 %v1872_v63, %v1860_v36  ;;  %4431 = vrot.lane.b32.xlu0 %v2595_v11, %s5427_s23  ;;  %v1889_v12 = vsel %vm895_vm0, %v1887_v33, %v1888_v7  ;;  %v4405_v34 = vadd.f32 %v4397_v30, %v4380_v42  ;;  %v4399_v19 = vpop.permute.xlu0 %4398  ;;  %v10149_v63 = vld [vmem:[#allocation57_spill] sm:$0xff] }
 0x3a6   : > { %v4381_v25 = vadd.f32 %v4374_v4, %v4356_v0  ;;  %3669 = vrot.lane.b32.xlu2 %v3666_v21, %s5427_s23  ;;  %v3662_v54 = vrot.slane %v3656_v38, 1  ;;  %v872_v45 = vadd.f32 %v10148_v56, %v858_v14  ;;  %v1839_v37 = vrot.slane %v1832_v22, 1  ;;  %v10150_v38 = vld [vmem:[#allocation115_spill] sm:$0xff] }
 0x3a7   : > { %v3688_v20 = vrot.slane %v3682_v8, 1  ;;  %v3690_v17 = vrot.slane %v9290_v1, 1  ;;  %v1856_v36 = vrot.slane %v1849_v6, 1  ;;  %v1894_v50 = vadd.f32 %v1889_v12, %v1877_v31  ;;  %v10152_v31 = vld [vmem:[#allocation117_spill] sm:$0xff]  ;;  %v10154_v56 = vld [vmem:[#allocation11_spill] sm:$0xff] }
 0x3a8   : > { %3619 = vrot.lane.b32.xlu1 %v3616_v35, %s5427_s23  ;;  %v9303_v55 = vadd.f32 %v4399_v19, %v4381_v25  ;;  %v886_v35 = vadd.f32 %v10149_v63, %v872_v45  ;;  %v4687_v11 = vrot.slane %v4405_v34, 1  ;;  %v3664_v4 = vsel %vm895_vm0, %v3662_v54, %v3663_v46  ;;  %v10153_v54 = vld [vmem:[#allocation120_spill] sm:$0xff] }
 0x3a9   : > { %v3681_v33 = vmul.f32 %v9110_v26, %v3680_v5  ;;  %v1840_v22 = vsel %vm895_vm0, %v1837_v44, %v1839_v37  ;;  %v1866_v42 = vmul.f32 %v8761_v49, %v9169_v47  ;;  %v2615_v21 = vadd.f32 %v10150_v38, %v1894_v50  ;;  %v10155_v37 = vld [vmem:[#allocation64_spill] sm:$0xff] }
 0x3aa   : > { %v4688_v30 = vrot.slane %v9303_v55, 1  ;;  %v3691_v8 = vsel %vm895_vm0, %v3688_v20, %v3690_v17  ;;  %v1844_v46 = vadd.f32 %v1840_v22, %v886_v35  ;;  %v3493_v5 = vpop.permute.xlu2 %3492  ;;  %v1857_v44 = vsel %vm895_vm0, %v1854_v39, %v1856_v36 }
 0x3ab   : > { %v3687_v43 = vrot.slane %v3681_v33, 1  ;;  %v1873_v47 = vrot.slane %v1866_v42, 1  ;;  %v1883_v0 = vmul.f32 %v8809_v24, %v9212_v3  ;;  %v2636_v14 = vadd.f32 %v10151_v13, %v2615_v21  ;;  %v10159_v21 = vld [vmem:[#allocation107_spill] sm:$0xff] }
 0x3ac   : > { %v4689_v1 = vsel %vm895_vm0, %v4687_v11, %v4688_v30  ;;  %v3477_v45 = vadd.f32 %v3470_v53, %v10154_v56  ;;  %v3501_v19 = vadd.f32 %v3493_v5, %v10155_v37  ;;  %v10156_v36 = vrot.slane %v9086_v32, 1 }
 0x3ad   : > { %3671 = vrot.lane.b32.xlu0 %v3665_v27, %s5427_s23  ;;  %v9328_v6 = vpop.permute.xlu0 %4350  ;;  %v2657_v12 = vadd.f32 %v10152_v31, %v2636_v14  ;;  %v1861_v27 = vadd.f32 %v1857_v44, %v1844_v46  ;;  %v3689_v34 = vsel %vm895_vm0, %v3687_v43, %v3688_v20  ;;  %v1874_v25 = vsel %vm895_vm0, %v1871_v62, %v1873_v47  ;;  %v10160_v46 = vld [vmem:[#allocation48_spill] sm:$0xff] }
 0x3ae   : > { %3694 = vrot.lane.b32.xlu2 %v3691_v8, %s5427_s23  ;;  %v1890_v28 = vrot.slane %v1883_v0, 1  ;;  %v4571_v11 = vrot.slane %v3501_v19, 1  ;;  %v10161_v43 = vld [vmem:[#allocation16_spill] sm:$0xff]  ;;  %v10162_v2 = vrot.slane %v9062_v57, 1  ;;  %v1225_v44 = vstv %s4985_s11 }
 0x3af   : > { %v2678_v39 = vadd.f32 %v10153_v54, %v2657_v12  ;;  %v1878_v3 = vadd.f32 %v1874_v25, %v1861_v27  ;;  %v1226_v0 = vmul.f32 %v8954_v23, %v1225_v44  ;;  %v1233_v57 = vstv %s4986_s30  ;;  %v10163_v12 = vld [vmem:[#allocation55_spill] sm:$0xff] }
 0x3b0   : > { %3667 = vrot.lane.b32.xlu1 %v3664_v4, %s5427_s23  ;;  %v1891_v29 = vsel %vm895_vm0, %v1888_v7, %v1890_v28  ;;  %v4696_v62 = vpop.permute.xlu1 %4695  ;;  %v10157_v4 = vld [vmem:[#allocation114_spill] sm:$0xff]  ;;  %v1227_v31 = vmul.f32 %v8963_v60, %v1225_v44  ;;  %v1234_v27 = vmul.f32 %v8878_v41, %v1233_v57  ;;  %v1241_v25 = vstv %s4987_s5  ;;  %s5196_s5 = sshll.u32 %s5476_s19, 6 }
 0x3b1   : > { %5183 = vmatmul.msk.f32.vlgmr.msra.gmra.mxu3 %vm4437_vm1, %v4696_v62  ;;  %v1895_v50 = vadd.f32 %v1891_v29, %v1878_v3  ;;  %v1235_v28 = vmul.f32 %v9028_v16, %v1233_v57  ;;  %v10164_v3 = vrot.slane %v9179_v18, 1  ;;  %v1249_v37 = vstv %s4988_s27 }
 0x3b2   : > { %v4424_v63 = vpop.permute.xlu2 %4423  ;;  %v1250_v62 = vmul.f32 %v9110_v26, %v1249_v37 }
 0x3b3   : > { %v2616_v33 = vadd.f32 %v10157_v4, %v1895_v50  ;;  %v1251_v4 = vmul.f32 %v9242_v15, %v1249_v37 }
 0x3b5   : > { %4433 = vrot.lane.b32.xlu0 %v2678_v39, %s5427_s23  ;;  %v3495_v20 = vpop.permute.xlu0 %3494  ;;  %v2637_v7 = vadd.f32 %v10158_v52, %v2616_v33  ;;  %v1242_v39 = vmul.f32 %v8912_v58, %v1241_v25 }
 0x3b6   : > { %3646 = vrot.lane.b32.xlu2 %v10156_v36, %s5427_s23  ;;  %v9346_v35 = vadd.f32 %v3495_v20, %v3477_v45  ;;  %v1243_v36 = vmul.f32 %v9070_v51, %v1241_v25  ;;  %v9394_v20 = vld [vmem:[%s5525_s22 + $0x10] sm:$0x3] }
 0x3b7   : > { %v2658_v8 = vadd.f32 %v10159_v21, %v2637_v7  ;;  %v1228_v18 = vmul.f32 %v9394_v20, %v1225_v44  ;;  %v10165_v44 = vld [vmem:[#allocation67_spill] sm:$0xff] }
 0x3b8   : > { %3692 = vrot.lane.b32.xlu1 %v3689_v34, %s5427_s23  ;;  %v4572_v53 = vrot.slane %v9346_v35, 1  ;;  %v4422_v22 = vpop.permute.xlu1 %4421 }
 0x3b9   : > { %5155 = vmatmul.msk.f32.vlgmr.msra.gmra.mxu0 %vm4437_vm1, %v4422_v22  ;;  %v2679_v5 = vadd.f32 %v10160_v46, %v2658_v8  ;;  %v1231_v7 = vadd.f32 %v1228_v18, %v10163_v12  ;;  %v9402_v22 = vld [vmem:[%s5525_s22 + $0x28] sm:$0x3]  ;;  %v3153_v8 = vstv %s5097_s7 }
 0x3ba   : > { %v4573_v32 = vsel %vm895_vm0, %v4571_v11, %v4572_v53  ;;  %v4700_v38 = vpop.permute.xlu2 %4699  ;;  %v1236_v21 = vmul.f32 %v9402_v22, %v1233_v57  ;;  %v10171_v18 = vld [vmem:[#allocation76_spill] sm:$0xff] }
 0x3bb   : > { %5175 = vmatmul.msk.f32.gmra.mxu2 %vm4437_vm1, %v4573_v32 }
 0x3bd   : > { %v4401_v42 = vpop.permute.xlu0 %4400 }
 0x3be   : > { %3696 = vrot.lane.b32.xlu2 %v3690_v17, %s5427_s23 }
 0x3c0   : > { %3621 = vrot.lane.b32.xlu1 %v3615_v9, %s5427_s23  ;;  %v3950_v9 = vadd.f32 %v10162_v2, %v10161_v43 }
 0x3c1   : > { %5156 = vmatmul.msk.f32.gmra.mxu0 %vm4437_vm1, %v4424_v63 }
 0x3c2   : > { %v3969_v13 = vadd.f32 %v3962_v10, %v3950_v9  ;;  %v9373_v14 = vpop.permute.xlu2 %3517  ;;  %v1230_v10 = vadd.f32 %v1227_v31, %v10163_v12  ;;  %v3172_v9 = vstv %s5098_s8  ;;  %s4797_s8 = scalar_lea.hbm %s9654_s4, %s5196_s5 }
 0x3c3   : > { %v4326_v17 = vpop.permute.xlu1 %4325  ;;  %v3174_v57 = vmul.f32 %v9028_v16, %v3172_v9  ;;  %v3173_v31 = vmul.f32 %v8878_v41, %v3172_v9 }
 0x3c4   : > { %v3988_v34 = vadd.f32 %v3981_v40, %v3969_v13  ;;  %v1238_v19 = vadd.f32 %v1235_v28, %v1230_v10  ;;  %v1244_v13 = vmul.f32 %v8761_v49, %v1241_v25  ;;  %v10167_v25 = vld [vmem:[#allocation66_spill] sm:$0xff] }
 0x3c5   : > { %v9368_v47 = vpop.permute.xlu0 %3496 }
 0x3c6   : > { %4435 = vrot.lane.b32.xlu2 %v2679_v5, %s5427_s23  ;;  %v4007_v56 = vadd.f32 %v10164_v3, %v3988_v34  ;;  %v1246_v11 = vadd.f32 %v1243_v36, %v1238_v19  ;;  %v3154_v5 = vmul.f32 %v8954_v23, %v3153_v8  ;;  %v10169_v3 = vld [vmem:[#allocation56_spill] sm:$0xff]  ;;  %v3180_v19 = vrot.slane %v3174_v57, 1 }
 0x3c7   : > { %v3179_v36 = vrot.slane %v3173_v31, 1 }
 0x3c8   : > { %4707 = vrot.lane.b32.xlu1 %v4689_v1, %s5427_s23  ;;  %v1229_v1 = vadd.f32 %v1226_v0, %v10163_v12  ;;  %v4332_v40 = vadd.f32 %v4326_v17, %v4007_v56  ;;  %v1254_v2 = vadd.f32 %v1251_v4, %v1246_v11  ;;  %v1239_v0 = vadd.f32 %v1236_v21, %v1231_v7  ;;  %v10166_v12 = vld [vmem:[#allocation70_spill] sm:$0xff] }
 0x3c9   : > { %v3160_v28 = vrot.slane %v3154_v5, 1 }
 0x3ca   : > { %v1237_v54 = vadd.f32 %v1234_v27, %v1229_v1  ;;  %v4357_v63 = vadd.f32 %v9328_v6, %v4332_v40  ;;  %v3155_v6 = vmul.f32 %v8963_v60, %v3153_v8  ;;  %v9422_v27 = vmul.f32 %v9394_v20, %v3153_v8 }
 0x3cb   : > { %v9386_v45 = vpop.permute.xlu2 %3544  ;;  %v2074_v10 = vadd.f32 %v10167_v25, %v1254_v2  ;;  %v1247_v55 = vadd.f32 %v1244_v13, %v1239_v0  ;;  %v10173_v2 = vld [vmem:[#allocation75_spill] sm:$0xff] }
 0x3cc   : > { %v4698_v48 = vpop.permute.xlu1 %4697  ;;  %v1245_v29 = vadd.f32 %v1242_v39, %v1237_v54  ;;  %v3161_v34 = vrot.slane %v3155_v6, 1  ;;  %v10168_v54 = vld [vmem:[#allocation73_spill] sm:$0xff]  ;;  %v3163_v4 = vrot.slane %v9422_v27, 1 }
 0x3cd   : > { %5184 = vmatmul.msk.f32.gmra.mxu3 %vm4437_vm1, %v4698_v48  ;;  %v9389_v59 = vpop.permute.xlu0 %3519 }
 0x3ce   : > { %v1253_v33 = vadd.f32 %v1250_v62, %v1245_v29  ;;  %v10170_v29 = vld [vmem:[#allocation69_spill] sm:$0xff]  ;;  %v3164_v6 = vsel %vm895_vm0, %v3161_v34, %v3163_v4 }
 0x3cf   : > { %v2094_v62 = vadd.f32 %v10170_v29, %v2074_v10 }
 0x3d3   : > { %v4702_v52 = vpop.permute.xlu2 %4701 }
 0x3d4   : > { %v4376_v50 = vpop.permute.xlu1 %4375 }
 0x3d5   : > { %v4382_v32 = vadd.f32 %v4376_v50, %v4357_v63  ;;  %5185 = vmatmul.msk.f32.gmra.mxu3 %vm4437_vm1, %v4700_v38  ;;  %v9409_v43 = vpop.permute.xlu0 %3567  ;;  %v2073_v38 = vadd.f32 %v10165_v44, %v1253_v33  ;;  %v3191_v50 = vstv %s9405_s20  ;;  %v3162_v33 = vsel %vm895_vm0, %v3160_v28, %v3161_v34 }
 0x3d6   : > { %v1257_v28 = vstv %s9431_s12 }
 0x3d7   : > { %v4407_v46 = vadd.f32 %v4401_v42, %v4382_v32  ;;  %v2093_v42 = vadd.f32 %v10166_v12, %v2073_v38  ;;  %v3192_v32 = vmul.f32 %v8912_v58, %v3191_v50 }
 0x3d9   : > { %v4690_v17 = vrot.slane %v4407_v46, 1  ;;  %v2113_v39 = vadd.f32 %v10168_v54, %v2093_v42  ;;  %v9442_v46 = vmul.f32 %v9402_v22, %v3172_v9  ;;  %v3198_v9 = vrot.slane %v3192_v32, 1 }
 0x3db   : > { %v4691_v1 = vsel %vm895_vm0, %v4688_v30, %v4690_v17  ;;  %v1252_v30 = vmul.f32 %v8809_v24, %v1249_v37  ;;  %v2133_v63 = vadd.f32 %v10171_v18, %v2113_v39  ;;  %v3193_v37 = vmul.f32 %v9070_v51, %v3191_v50 }
 0x3dc   : > { %4709 = vrot.lane.b32.xlu1 %v4691_v1, %s5427_s23  ;;  %v3210_v17 = vstv %s9416_s10  ;;  %s4990_s23 = sld [smem:[#allocation2 + $0x8d]]  ;;  %v10174_v1 = vld [vmem:[#allocation24_spill] sm:$0xff]  ;;  %v3182_v35 = vrot.slane %v9442_v46, 1  ;;  %v1273_v46 = vstv %s4991_s29  ;;  %s4800_s10 = sshll.u32 %s4797_s8, 4  ;;  %s4801_s10 = int_to_ptr.hbm [resolvable:$true] %s4800_s10 }
 0x3dd   : > { %v3472_v48 = vpop.permute.xlu1 %3471  ;;  %5186 = vmatmul.msk.f32.gmra.mxu3 %vm4437_vm1, %v4702_v52  ;;  %v10172_v52 = vld [vmem:[#allocation72_spill] sm:$0xff]  ;;  %v1255_v8 = vadd.f32 %v1252_v30, %v1247_v55  ;;  %v9448_v5 = vpop.permute.xlu0 %3592  ;;  %v3168_v38 = vadd.f32 %v3162_v33, %v2133_v63  ;;  %v3199_v13 = vrot.slane %v3193_v37, 1  ;;  %v3211_v57 = vmul.f32 %v9110_v26, %v3210_v17  ;;  %v10176_v33 = vld [vmem:[#allocation62_spill] sm:$0xff]  ;;  %s5367_s12 = sshra.s32 %s4801_s10, 4  ;;  %s5368_s12 = int_to_ptr.hbm [resolvable:$true] %s5367_s12 }
 0x3de   : > { %v3478_v56 = vadd.f32 %v3472_v48, %v10169_v3  ;;  %v4428_v40 = vpop.permute.xlu2 %4427  ;;  %v2114_v7 = vadd.f32 %v10172_v52, %v2094_v62  ;;  %v3212_v31 = vmul.f32 %v9242_v15, %v3210_v17  ;;  %v3183_v10 = vsel %vm895_vm0, %v3180_v19, %v3182_v35  ;;  %p5374_p3 = scmp.lt.s32.totalorder %s5368_s12, %s9654_s4 }
 0x3df   : > { %v2075_v34 = vadd.f32 %v10174_v1, %v1255_v8  ;;  %v3200_v54 = vsel %vm895_vm0, %v3198_v9, %v3199_v13  ;;  %v3217_v39 = vrot.slane %v3211_v57, 1 }
 0x3e0   : > { %v3503_v11 = vadd.f32 %v9368_v47, %v3478_v56  ;;  %v3181_v47 = vsel %vm895_vm0, %v3179_v36, %v3180_v19  ;;  %v2134_v44 = vadd.f32 %v10173_v2, %v2114_v7  ;;  %v3218_v3 = vrot.slane %v3212_v31, 1  ;;  %v10175_v56 = vld [vmem:[#allocation60_spill] sm:$0xff]  ;;  %v10177_v2 = vld [vmem:[#allocation65_spill] sm:$0xff] }
 0x3e1   : > { %v3187_v25 = vadd.f32 %v3181_v47, %v3168_v38  ;;  %v2095_v55 = vadd.f32 %v10175_v56, %v2075_v34  ;;  %v9472_v36 = vmul.f32 %v8809_v24, %v3210_v17  ;;  %v1258_v47 = vmul.f32 %v8954_v23, %v1257_v28 }
 0x3e2   : > { %v4574_v21 = vrot.slane %v3503_v11, 1  ;;  %v3169_v48 = vadd.f32 %v3164_v6, %v2134_v44  ;;  %v1265_v18 = vstv %s4990_s23  ;;  %v3219_v63 = vsel %vm895_vm0, %v3217_v39, %v3218_v3  ;;  %s5369_s23 = scalar_lea.hbm %s5368_s12, 64 }
 0x3e3   : > { %v3206_v62 = vadd.f32 %v3200_v54, %v3187_v25  ;;  %v2115_v32 = vadd.f32 %v10176_v33, %v2095_v55  ;;  %v3220_v24 = vrot.slane %v9472_v36, 1  ;;  %v1267_v52 = vmul.f32 %v9028_v16, %v1265_v18  ;;  %p5370_p0 = scmp.ne.s32.totalorder %s5368_s12, %s5369_s23 }
 0x3e4   : > { %v4575_v0 = vsel %vm895_vm0, %v4572_v53, %v4574_v21  ;;  %v9464_v53 = vmul.f32 %v8761_v49, %v3191_v50  ;;  %v3188_v29 = vadd.f32 %v3183_v10, %v3169_v48  ;;  %v1259_v49 = vmul.f32 %v8963_v60, %v1257_v28 }
 0x3e5   : > { %v4426_v12 = vpop.permute.xlu1 %4425  ;;  %5176 = vmatmul.msk.f32.gmra.mxu2 %vm4437_vm1, %v4575_v0  ;;  %v3225_v7 = vadd.f32 %v3219_v63, %v3206_v62  ;;  %v3221_v6 = vsel %vm895_vm0, %v3218_v3, %v3220_v24  ;;  %v2135_v44 = vadd.f32 %v10177_v2, %v2115_v32  ;;  %v1275_v17 = vmul.f32 %v9070_v51, %v1273_v46  ;;  %p5371_p1 = pnand %p5370_p0, %p5493_p5 }
 0x3e6   : > { %v9458_v42 = vpop.permute.xlu2 %3571  ;;  %5157 = vmatmul.msk.f32.gmra.mxu0 %vm4437_vm1, %v4426_v12  ;;  %v3201_v30 = vrot.slane %v9464_v53, 1  ;;  %v1262_v37 = vadd.f32 %v1259_v49, %v10103_v61  ;;  %v1261_v12 = vadd.f32 %v1258_v47, %v10103_v61  ;;  %v1266_v1 = vmul.f32 %v8878_v41, %v1265_v18 }
 0x3e7   : > { %v9477_v50 = vpop.permute.xlu0 %3521  ;;  %v1274_v54 = vmul.f32 %v8912_v58, %v1273_v46  ;;  %v3229_v49 = vstv %s5101_s28  ;;  %p5372_p2 = pneg %p5371_p1  ;;  %s5373_s28 = scalar_lea.hbm %s9654_s4, 128 }
 0x3e8   : > { %v3202_v19 = vsel %vm895_vm0, %v3199_v13, %v3201_v30  ;;  %v1270_v38 = vadd.f32 %v1267_v52, %v1262_v37  ;;  %v1281_v13 = vstv %s4992_s14  ;;  %v1269_v10 = vadd.f32 %v1266_v1, %v1261_v12  ;;  %v5320_v12 = vld [vmem:[%s5525_s22 + $0x58] sm:$0x3]  ;;  %p5375_p4 = scmp.lt.s32.totalorder %s5373_s28, %s5369_s23 }
 0x3e9   : > { %v3207_v21 = vadd.f32 %v3202_v19, %v3188_v29  ;;  %v1283_v48 = vmul.f32 %v9242_v15, %v1281_v13  ;;  %v1282_v62 = vmul.f32 %v9110_v26, %v1281_v13  ;;  %v9519_v32 = vmul.f32 %v9394_v20, %v3229_v49 }
 0x3ea   : > { %v1278_v53 = vadd.f32 %v1275_v17, %v1270_v38  ;;  %v3248_v37 = vstv %s5102_s6  ;;  %v1284_v1 = vmul.f32 %v5320_v12, %v1281_v13  ;;  %v10184_v13 = vld [vmem:[#allocation85_spill] sm:$0xff]  ;;  %p5376_p7 = por %p5375_p4, %p5374_p3 }
 0x3eb   : > { %v3226_v0 = vadd.f32 %v3221_v6, %v3207_v21  ;;  %v10180_v6 = vld [vmem:[#allocation84_spill] sm:$0xff]  ;;  %v9537_v38 = vmul.f32 %v9402_v22, %v3248_v37 }
 0x3ec   : > { %v1286_v56 = vadd.f32 %v1283_v48, %v1278_v53  ;;  %v10183_v53 = vld [vmem:[#allocation82_spill] sm:$0xff]  ;;  %p5377_p8 = pnand %p5376_p7, %p5372_p2 }
 0x3ed   : > { %v3543_v11 = vpop.permute.xlu1 %3542  ;;  %v3527_v34 = vadd.f32 %v9389_v59, %v3226_v0  ;;  %v1260_v59 = vmul.f32 %v9394_v20, %v1257_v28  ;;  %v5319_v20 = vld [vmem:[%s5525_s22 + $0x40] sm:$0x3] }
 0x3ee   : > { %5158 = vmatmul.msk.f32.gmra.mxu0 %vm4437_vm1, %v4428_v40  ;;  %v3526_v40 = vadd.f32 %v9373_v14, %v3225_v7  ;;  %v3170_v14 = vadd.f32 %v3163_v4, %v2135_v44  ;;  %v10179_v7 = vld [vmem:[#allocation81_spill] sm:$0xff]  ;;  %v3239_v44 = vrot.slane %v9519_v32, 1 }
 0x3ef   : > { %v3552_v41 = vadd.f32 %v9386_v45, %v3527_v34  ;;  %v1263_v58 = vadd.f32 %v1260_v59, %v10103_v61  ;;  %v1268_v45 = vmul.f32 %v9402_v22, %v1265_v18  ;;  %v3250_v18 = vmul.f32 %v9028_v16, %v3248_v37 }
 0x3f0   : > { %v4430_v8 = vpop.permute.xlu2 %4429  ;;  %v3551_v9 = vadd.f32 %v3543_v11, %v3526_v40  ;;  %v3189_v3 = vadd.f32 %v3182_v35, %v3170_v14  ;;  %v3231_v35 = vmul.f32 %v8963_v60, %v3229_v49  ;;  %v3230_v16 = vmul.f32 %v8954_v23, %v3229_v49 }
 0x3f1   : > { %v3256_v34 = vrot.slane %v3250_v18, 1 }
 0x3f2   : > { %v3576_v25 = vadd.f32 %v9409_v43, %v3551_v9  ;;  %v1277_v43 = vadd.f32 %v1274_v54, %v1269_v10  ;;  %v3208_v19 = vadd.f32 %v3201_v30, %v3189_v3  ;;  %v3237_v60 = vrot.slane %v3231_v35, 1  ;;  %v10181_v9 = vld [vmem:[#allocation79_spill] sm:$0xff] }
 0x3f3   : > { %v1271_v30 = vadd.f32 %v1268_v45, %v1263_v58 }
 0x3f4   : > { %v3601_v27 = vadd.f32 %v9448_v5, %v3576_v25  ;;  %v10178_v5 = vld [vmem:[#allocation78_spill] sm:$0xff]  ;;  %v1285_v52 = vadd.f32 %v1282_v62, %v1277_v43  ;;  %v3227_v40 = vadd.f32 %v3220_v24, %v3208_v19  ;;  %v3267_v24 = vstv %s9511_s13  ;;  %v10185_v62 = vld [vmem:[#allocation88_spill] sm:$0xff] }
 0x3f5   : > { %v2154_v28 = vadd.f32 %v10178_v5, %v1286_v56  ;;  %v3240_v22 = vsel %vm895_vm0, %v3237_v60, %v3239_v44  ;;  %v3269_v23 = vmul.f32 %v9070_v51, %v3267_v24  ;;  %v5321_v25 = vld [vmem:[%s5525_s22 + $0x18] sm:$0xff]  ;;  %v9554_v59 = vmul.f32 %v5319_v20, %v3267_v24  ;;  %v5322_v5 = vld [vmem:[%s5525_s22 + $0x30] sm:$0xff]  ;;  %s215_s22 = sand.u32 1, %s5415_s16  }
 0x3f6   : > { %v3570_v57 = vpop.permute.xlu1 %3569  ;;  %5159 = vmatmul.msk.f32.gmra.mxu0 %vm4437_vm1, %v4430_v8  ;;  %v4579_v11 = vrot.slane %v3601_v27, 1  ;;  %v1276_v8 = vmul.f32 %v5319_v20, %v1273_v46  ;;  %v2153_v46 = vadd.f32 %v10181_v9, %v1285_v52  ;;  %v3528_v36 = vadd.f32 %v9477_v50, %v3227_v40  ;;  %v10187_v9 = vld [vmem:[#allocation71_spill] sm:$0xff]  ;;  %s4893_s11 = sshll.u32 %s215_s22, 6  ;;  %s4786_s19 = scalar_lea.sflag [#allocation3], %s215_s22 }
 0x3f7   : > { %v4704_v31 = vpop.permute.xlu0 %4703  ;;  %v3577_v4 = vadd.f32 %v3570_v57, %v3552_v41  ;;  %v2174_v21 = vadd.f32 %v10179_v7, %v2154_v28  ;;  %v10182_v57 = vld [vmem:[#allocation87_spill] sm:$0xff]  ;;  %v3249_v10 = vmul.f32 %v5321_v25, %v3248_v37  ;;  %v3258_v50 = vrot.slane %v9537_v38, 1  ;;  %s9597_s30 = scalar_lea.vmem [#allocation7], %s4893_s11 }
 0x3f8   : > { %5187 = vmatmul.msk.f32.gmra.mxu3 %vm4437_vm1, %v4704_v31  ;;  %v9502_v39 = vpop.permute.xlu2 %3642  ;;  %v1279_v14 = vadd.f32 %v1276_v8, %v1271_v30  ;;  %v2173_v48 = vadd.f32 %v10183_v53, %v2153_v46  ;;  %v3236_v41 = vrot.slane %v3230_v16, 1  ;;  %v3286_v27 = vstv %s9522_s9  ;;  %v10186_v30 = vld [vmem:[#allocation68_spill] sm:$0xff]  ;;  %s4798_s20 = sshll.u32 %s9597_s30, 4  ;;  %s4799_s20 = int_to_ptr.vmem [resolvable:$true] %s4798_s20 }
 0x3f9   : > { %v2194_v47 = vadd.f32 %v10180_v6, %v2174_v21  ;;  %v3288_v51 = vmul.f32 %v9242_v15, %v3286_v27  ;;  %v3255_v43 = vrot.slane %v3249_v10, 1  ;;  %v3268_v28 = vmul.f32 %v5322_v5, %v3267_v24 }
 0x3fa   : > { %v2193_v3 = vadd.f32 %v10184_v13, %v2173_v48  ;;  %v1287_v49 = vadd.f32 %v1284_v1, %v1279_v14  ;;  %v3238_v35 = vsel %vm895_vm0, %v3236_v41, %v3237_v60  ;;  %v3277_v37 = vrot.slane %v9554_v59, 1  ;;  %v10189_v14 = vld [vmem:[#allocation77_spill] sm:$0xff] }
 0x3fb   : > { %v2214_v31 = vadd.f32 %v10182_v57, %v2194_v47  ;;  %v3289_v52 = vmul.f32 %v5320_v12, %v3286_v27  ;;  %v3294_v15 = vrot.slane %v3288_v51, 1  ;;  %v3257_v60 = vsel %vm895_vm0, %v3255_v43, %v3256_v34 }
 0x3fc   : > { %v2213_v58 = vadd.f32 %v10185_v62, %v2193_v3  ;;  %v2155_v20 = vadd.f32 %v10186_v30, %v1287_v49  ;;  %v3274_v6 = vrot.slane %v3268_v28, 1  ;;  %v3287_v47 = vmul.f32 %v9110_v26, %v3286_v27  ;;  %v10188_v26 = vld [vmem:[#allocation74_spill] sm:$0xff] }
 0x3fd   : > { %v3245_v56 = vadd.f32 %v3240_v22, %v2214_v31  ;;  %v3296_v40 = vrot.slane %v3289_v52, 1 }
 0x3fe   : > { %v3595_v55 = vpop.permute.xlu1 %3594  ;;  %v2175_v46 = vadd.f32 %v10187_v9, %v2155_v20 }
 0x3ff   : > { %v9506_v29 = vpop.permute.xlu0 %3617  ;;  %v9509_v63 = vadd.f32 %v3595_v55, %v3577_v4  ;;  %v3259_v4 = vsel %vm895_vm0, %v3256_v34, %v3258_v50  ;;  %v3275_v55 = vrot.slane %v3269_v23, 1 }
 0x400   : > { %v9533_v2 = vpop.permute.xlu2 %3669  ;;  %v3264_v7 = vadd.f32 %v3259_v4, %v3245_v56 }
 0x401   : > { %v4580_v33 = vrot.slane %v9509_v63, 1  ;;  %v3278_v18 = vsel %vm895_vm0, %v3275_v55, %v3277_v37  ;;  %v3276_v31 = vsel %vm895_vm0, %v3274_v6, %v3275_v55  ;;  %v2195_v63 = vadd.f32 %v10188_v26, %v2175_v46 }
 0x402   : > { %v3283_v16 = vadd.f32 %v3278_v18, %v3264_v7  ;;  %v4628_v7 = vpop.f32.mrf.mxu2 }
 0x403   : > { %v4581_v61 = vsel %vm895_vm0, %v4579_v11, %v4580_v33  ;;  %v2215_v53 = vadd.f32 %v10189_v14, %v2195_v63 }
 0x404   : > { %5177 = vmatmul.msk.f32.gmra.mxu2 %vm4437_vm1, %v4581_v61 }
 0x405   : > { %v3246_v59 = vadd.f32 %v3239_v44, %v2215_v53 }
 0x407   : > { %v9540_v0 = vpop.permute.xlu0 %3644  ;;  %v3265_v27 = vadd.f32 %v3258_v50, %v3246_v59 }
 0x408   : > { %v3695_v61 = vpop.permute.xlu2 %3694 }
 0x40a   : > { %v3547_v17 = vpop.permute.xlu1 %3546 }
 0x40b   : > { %v3553_v54 = vadd.f32 %v3547_v17, %v3528_v36  ;;  %v3297_v17 = vsel %vm895_vm0, %v3294_v15, %v3296_v40  ;;  %v3293_v36 = vrot.slane %v3287_v47, 1 }
 0x40c   : > { %v3302_v1 = vadd.f32 %v3297_v17, %v3283_v16 }
 0x40d   : > { %v3578_v45 = vadd.f32 %v9458_v42, %v3553_v54  ;;  %v3244_v42 = vadd.f32 %v3238_v35, %v2213_v58  ;;  %v3295_v34 = vsel %vm895_vm0, %v3293_v36, %v3294_v15  ;;  %v3284_v58 = vadd.f32 %v3277_v37, %v3265_v27 }
 0x40f   : > { %v4706_v11 = vpop.permute.xlu0 %4705  ;;  %v3263_v57 = vadd.f32 %v3257_v60, %v3244_v42  ;;  %v3303_v32 = vadd.f32 %v3296_v40, %v3284_v58  ;;  %v4631_v42 = vpop.f32.mrf.mxu2 }
 0x410   : > { %5188 = vmatmul.msk.f32.gmra.mxu3 %vm4437_vm1, %v4706_v11  ;;  %v3647_v23 = vpop.permute.xlu2 %3646  ;;  %v4536_v11 = vpop.f32.mrf.mxu1 }
 0x411   : > { %v3282_v22 = vadd.f32 %v3276_v31, %v3263_v57 }
 0x412   : > { %v3597_v19 = vpop.permute.xlu1 %3596 }
 0x413   : > { %v3603_v21 = vadd.f32 %v3597_v19, %v3578_v45  ;;  %v3301_v48 = vadd.f32 %v3295_v34, %v3282_v22 }
 0x415   : > { %v4582_v8 = vrot.slane %v3603_v21, 1  ;;  %v3626_v41 = vadd.f32 %v9506_v29, %v3301_v48 }
 0x417   : > { %v4583_v38 = vsel %vm895_vm0, %v4580_v33, %v4582_v8  ;;  %v4432_v12 = vpop.permute.xlu0 %4431  ;;  %v3651_v3 = vadd.f32 %v9502_v39, %v3626_v41 }
 0x418   : > { %5178 = vmatmul.msk.f32.gmra.mxu2 %vm4437_vm1, %v4583_v38  ;;  %5160 = vmatmul.msk.f32.gmra.mxu0 %vm4437_vm1, %v4432_v12  ;;  %v3697_v56 = vpop.permute.xlu2 %3696  ;;  %v4539_v30 = vpop.f32.mrf.mxu1 }
 0x41a   : > { %v3620_v24 = vpop.permute.xlu1 %3619 }
 0x41b   : > { %v3627_v33 = vadd.f32 %v3620_v24, %v3302_v1 }
 0x41d   : > { %v3652_v25 = vadd.f32 %v9540_v0, %v3627_v33 }
 0x41f   : > { %v3672_v54 = vpop.permute.xlu0 %3671  ;;  %v3677_v13 = vadd.f32 %v9533_v2, %v3652_v25 }
 0x420   : > { %v4436_v39 = vpop.permute.xlu2 %4435  ;;  %v4542_v40 = vpop.f32.mrf.mxu1 }
 0x421   : > { %v3702_v4 = vadd.f32 %v3695_v61, %v3677_v13 }
 0x422   : > { %v3668_v10 = vpop.permute.xlu1 %3667 }
 0x423   : > { %v3676_v55 = vadd.f32 %v3668_v10, %v3651_v3  ;;  %v4588_v62 = vrot.slane %v3702_v4, 1 }
 0x427   : > { %v4434_v49 = vpop.permute.xlu0 %4433 }
 0x428   : > { %5161 = vmatmul.msk.f32.gmra.mxu0 %vm4437_vm1, %v4434_v49  ;;  %v4545_v31 = vpop.f32.mrf.mxu1 }
 0x42a   : > { %v3693_v51 = vpop.permute.xlu1 %3692 }
 0x42b   : > { %v3701_v43 = vadd.f32 %v3693_v51, %v3676_v55 }
 0x42d   : > { %v4587_v0 = vrot.slane %v3701_v43, 1 }
 0x42f   : > { %v4589_v29 = vsel %vm895_vm0, %v4587_v0, %v4588_v62 }
 0x430   : > { %5179 = vmatmul.msk.f32.gmra.mxu2 %vm4437_vm1, %v4589_v29  ;;  %5162 = vmatmul.msk.f32.gmra.mxu0 %vm4437_vm1, %v4436_v39  ;;  %v4548_v33 = vpop.f32.mrf.mxu1 }
 0x432   : > { %v3622_v2 = vpop.permute.xlu1 %3621 }
 0x433   : > { %v3628_v44 = vadd.f32 %v3622_v2, %v3303_v32 }
 0x434   : > { %v4744_v15 = vpop.f32.mrf.mxu3 }
 0x435   : > { %v3653_v50 = vadd.f32 %v3647_v23, %v3628_v44 }
 0x436   : > { %v4471_v37 = vpop.f32.mrf.mxu0 }
 0x437   : > { %v3678_v45 = vadd.f32 %v3672_v54, %v3653_v50  ;;  %v4537_v52 = vadd.f32 %v4536_v11, %v4471_v37 }
 0x438   : > { %v4551_v25 = vpop.f32.mrf.mxu1 }
 0x439   : > { %v3703_v35 = vadd.f32 %v3697_v56, %v3678_v45  ;;  %v4652_v21 = vadd.f32 %v4628_v7, %v4537_v52 }
 0x43a   : > { %v4708_v5 = vpop.permute.xlu1 %4707 }
 0x43b   : > { %5189 = vmatmul.msk.f32.gmra.mxu3 %vm4437_vm1, %v4708_v5  ;;  %v4590_v28 = vrot.slane %v3703_v35, 1  ;;  %v4768_v61 = vadd.f32 %v4744_v15, %v4652_v21 }
 0x43d   : > { %v4591_v19 = vsel %vm895_vm0, %v4588_v62, %v4590_v28  ;;  %4777 = vst.msk [vmem:[%s9597_s30] sm:$0xff] %vm4776_vm2, %v4768_v61 }
 0x43e   : > { %5180 = vmatmul.msk.f32.gmra.mxu2 %vm4437_vm1, %v4591_v19  ;;  %v4474_v18 = vpop.f32.mrf.mxu0  ;;  %v4634_v17 = vpop.f32.mrf.mxu2 }
 0x43f   : > { %v4540_v20 = vadd.f32 %v4539_v30, %v4474_v18 }
 0x440   : > { %v4554_v27 = vpop.f32.mrf.mxu1 }
 0x441   : > { %v4653_v60 = vadd.f32 %v4631_v42, %v4540_v20 }
 0x448   : > { %v4557_v62 = vpop.f32.mrf.mxu1 }
 0x44e   : > { %v4710_v8 = vpop.permute.xlu1 %4709 }
 0x44f   : > { %5190 = vmatmul.msk.f32.gmra.mxu3 %vm4437_vm1, %v4710_v8 }
 0x450   : > { %v4747_v6 = vpop.f32.mrf.mxu3 }
 0x451   : > { %v4769_v47 = vadd.f32 %v4747_v6, %v4653_v60 }
 0x453   : > { %4778 = vst.msk [vmem:[%s9597_s30 + $0x8] sm:$0xff] %vm4776_vm2, %v4769_v47 }
 0x458   : > { %v4750_v9 = vpop.f32.mrf.mxu3 }
 0x460   : > { %v4753_v26 = vpop.f32.mrf.mxu3 }
 0x463   : > { %v4477_v38 = vpop.f32.mrf.mxu0 }
 0x464   : > { %v4543_v16 = vadd.f32 %v4542_v40, %v4477_v38 }
 0x466   : > { %v4654_v46 = vadd.f32 %v4634_v17, %v4543_v16 }
 0x468   : > { %v4770_v57 = vadd.f32 %v4750_v9, %v4654_v46  ;;  %v4637_v12 = vpop.f32.mrf.mxu2 }
 0x46a   : > { %4779 = vst.msk [vmem:[%s9597_s30 + $0x10] sm:$0xff] %vm4776_vm2, %v4770_v57 }
 0x46b   : > { %v4480_v36 = vpop.f32.mrf.mxu0 }
 0x46c   : > { %v4546_v24 = vadd.f32 %v4545_v31, %v4480_v36 }
 0x46e   : > { %v4655_v1 = vadd.f32 %v4637_v12, %v4546_v24 }
 0x470   : > { %v4771_v63 = vadd.f32 %v4753_v26, %v4655_v1 }
 0x472   : > { %4780 = vst.msk [vmem:[%s9597_s30 + $0x18] sm:$0xff] %vm4776_vm2, %v4771_v63 }
 0x473   : > { %v4483_v22 = vpop.f32.mrf.mxu0 }
 0x474   : > { %v4549_v34 = vadd.f32 %v4548_v33, %v4483_v22 }
 0x47b   : > { %v4756_v53 = vpop.f32.mrf.mxu3 }
 0x487   : > { %v4640_v23 = vpop.f32.mrf.mxu2 }
 0x488   : > { %v4656_v14 = vadd.f32 %v4640_v23, %v4549_v34 }
 0x48a   : > { %v4772_v48 = vadd.f32 %v4756_v53, %v4656_v14 }
 0x48c   : > { %4781 = vst.msk [vmem:[%s9597_s30 + $0x20] sm:$0xff] %vm4776_vm2, %v4772_v48 }
 0x493   : > { %v4759_v13 = vpop.f32.mrf.mxu3 }
 0x495   : > { %v4486_v10 = vpop.f32.mrf.mxu0 }
 0x496   : > { %v4552_v54 = vadd.f32 %v4551_v25, %v4486_v10 }
 0x49b   : > { %v4643_v41 = vpop.f32.mrf.mxu2 }
 0x49c   : > { %v4657_v59 = vadd.f32 %v4643_v41, %v4552_v54 }
 0x49e   : > { %v4773_v3 = vadd.f32 %v4759_v13, %v4657_v59 }
 0x4a0   : > { %4782 = vst.msk [vmem:[%s9597_s30 + $0x28] sm:$0xff] %vm4776_vm2, %v4773_v3 }
 0x4a5   : > { %v4489_v56 = vpop.f32.mrf.mxu0 }
 0x4a6   : > { %v4555_v55 = vadd.f32 %v4554_v27, %v4489_v56 }
 0x4ad   : > { %v4492_v0 = vpop.f32.mrf.mxu0 }
 0x4ae   : > { %v4558_v29 = vadd.f32 %v4557_v62, %v4492_v0 }
 0x4b3   : > { %v4646_v4 = vpop.f32.mrf.mxu2 }
 0x4b4   : > { %v4658_v51 = vadd.f32 %v4646_v4, %v4555_v55 }
 0x4be   : > { %v4762_v49 = vpop.f32.mrf.mxu3 }
 0x4bf   : > { %v4774_v43 = vadd.f32 %v4762_v49, %v4658_v51 }
 0x4c1   : > { %4783 = vst.msk [vmem:[%s9597_s30 + $0x30] sm:$0xff] %vm4776_vm2, %v4774_v43  ;;  %v4649_v58 = vpop.f32.mrf.mxu2 }
 0x4c2   : > { %v4659_v32 = vadd.f32 %v4649_v58, %v4558_v29 }
 0x4d2   : > { %v4765_v39 = vpop.f32.mrf.mxu3 }
 0x4d3   : > { %v4775_v2 = vadd.f32 %v4765_v39, %v4659_v32 }
 0x4d5   : > { %4784 = vst.msk [vmem:[%s9597_s30 + $0x38] sm:$0xff] %vm4776_vm2, %v4775_v2 }
 0x4d6   : > { %5380 = shalt.err (!%p5377_p8)
}
 0x4d7   : > { %s5428_s9 = smov 128   ;;  %s5429_s22 = smov 8  }
 0x4d8   : > { %5206 = dma.vmem_to_hbm [thread:$0]  (%p5493_p5), %s4799_s20, 1024, %s4801_s10, %s4786_s19, %s5428_s9, %s5428_s9, %s5429_s22  }
 0x4d9 PF: > { %p5223_p9 = scmp.ge.s32.totalorder %s5423_s18, 2  ;;  %s4815_s11 = sand.u32 1, %s5411_s15  }
 0x4da   : > { %s4816_s30 = scalar_lea.sflag [#allocation3], %s4815_s11 }
 0x4db   : > { %p5216_p10 = pnand %p5223_p9, %p5497_p6 }
 0x4dd   : > { %p5217_p11 = pneg %p5216_p10 }
 0x4df   : > { %5406 = dma.done.wait (%p5217_p11), %s4816_s30, 1024  }
 0x4e0   : > { %5408 = vsyncadd (%p5217_p11), %s4816_s30, 4294966272  ;;  %p16_p12 = scmp.ge.s32.totalorder %s5480_s21, 4   ;;  %s10190_s15 = smov %s5415_s16 }
 0x4e1   : > { %s10191_s16 = smov %s5419_s17  ;;  %s10192_s17 = smov %s5491_s24 }
 0x4e2   : > { %s10193_s18 = smov %s5480_s21  ;;  %18 = sbr.rel (!%p16_p12) target bundleno = 5 (0x5), region = 83 }
 0x4e7   :  { %4822 = vsyncpa [#allocation3], 1 }
 0x4e8   :  { %4824 = vsyncpa [#allocation3 + $0x1], 1 }
 0x4e9   :  { %4825 = vsyncpa [#allocation4], 1 }
 0x4ea   :  { %4827 = vsyncpa [#allocation4 + $0x1], 1 }
 0x4eb   :  { %4828 = vsyncpa [#allocation6], 1 }

</bundles_post_ra>
